<compile_context>
chip_gen: v7x
topology: tpu7x:2x2x1
jax: 0.10.0
libtpu: 0.0.40
codegen_flags: <defaults>
</compile_context>

<pallas_src>
import functools

import jax
import jax.numpy as jnp
from jax.experimental import pallas as pl
from jax.experimental.pallas import tpu as pltpu


def _round_up(x, m):
    return (x + m - 1) // m * m


# ----------------------------- Pallas kernel --------------------------------
def _conv_relu_kernel(x_ref, w_ref, b_ref, o_ref, xp_ref, acc_ref, *,
                      taps, pad_t, pad_l, col0, hin, win, ho, wo, wo_t):
    """Direct shifted-window conv + bias + ReLU for one image (stride 1).

    x_ref  : (1, hin, win, cin)   bf16 input image
    w_ref  : (KH*KW, cin, cout)   bf16 packed taps (tap-major)
    b_ref  : (1, cout)            f32 bias
    o_ref  : (1, ho, wo, cout)    output block
    xp_ref : (hp, wp, cin)        VMEM scratch: zero-padded image
    acc_ref: (ho*wo_t, cout) f32  VMEM accumulator
    """
    cin = xp_ref.shape[-1]
    cout = o_ref.shape[-1]

    # Zero-padded copy of the image in VMEM (halo + alignment padding).
    # Input column 0 is placed at the aligned scratch column `col0`.
    xp_ref[...] = jnp.zeros_like(xp_ref)
    xp_ref[pad_t:pad_t + hin, col0:col0 + win, :] = x_ref[0]

    # KH*KW shifted views -> accumulating MXU matmuls into the f32 accumulator.
    acc_ref[...] = jnp.zeros_like(acc_ref)
    for t, (ky, kx) in enumerate(taps):
        c0 = col0 - pad_l + kx
        patch = xp_ref[ky:ky + ho, c0:c0 + wo_t, :].reshape(ho * wo_t, cin)
        acc_ref[...] += jnp.dot(patch, w_ref[t],
                                preferred_element_type=jnp.float32)

    # Bias + ReLU in f32, drop the alignment columns, store once.
    y = jnp.maximum(acc_ref[...] + b_ref[...], 0.0)
    y = y.reshape(ho, wo_t, cout)[:, :wo, :]
    o_ref[0] = y.astype(o_ref.dtype)


def conv_relu(x, w_packed, b2d, *, kh, kw, pad_t, pad_l, out_dtype):
    """relu(conv_stride1(x, KHxKW) + b); zero pad = (pad_t, kh-1-pad_t) rows,
    (pad_l, >=kw-1-pad_l) cols.  Spatial dims are preserved (the only cases
    this encoder needs)."""
    n, hin, win, cin = x.shape
    ntaps, cin_w, cout = w_packed.shape
    assert ntaps == kh * kw and cin_w == cin, (w_packed.shape, x.shape)

    ho, wo = hin, win                       # both layer types preserve H, W
    wo_t = _round_up(wo, 16)                # sublane/lane friendly tap width
    col0 = 16                               # aligned scratch column for col 0
    wp = _round_up(col0 - pad_l + (kw - 1) + wo_t, 16)
    hp = max(pad_t + hin, (kh - 1) + ho)

    kernel = functools.partial(
        _conv_relu_kernel,
        taps=tuple((ky, kx) for ky in range(kh) for kx in range(kw)),
        pad_t=pad_t, pad_l=pad_l, col0=col0,
        hin=hin, win=win, ho=ho, wo=wo, wo_t=wo_t)

    in_b = jnp.dtype(x.dtype).itemsize
    out_b = jnp.dtype(out_dtype).itemsize
    vmem_bytes = (2 * hin * win * cin * in_b          # double-buffered input blk
                  + 2 * ntaps * cin * cout * 2        # bf16 weights
                  + 2 * cout * 4                      # bias
                  + 2 * ho * wo * cout * out_b        # double-buffered out blk
                  + hp * wp * cin * in_b              # padded-image scratch
                  + ho * wo_t * cout * 4              # f32 accumulator
                  + (1 << 20))
    cp = dict(dimension_semantics=("parallel",))
    if vmem_bytes > 32 * 1024 * 1024:
        cp["vmem_limit_bytes"] = int(vmem_bytes)

    cost = pl.CostEstimate(
        flops=2 * n * ho * wo_t * ntaps * cin * cout,
        transcendentals=0,
        bytes_accessed=(n * hin * win * cin * in_b
                        + ntaps * cin * cout * 2
                        + n * ho * wo * cout * out_b))

    return pl.pallas_call(
        kernel,
        out_shape=jax.ShapeDtypeStruct((n, ho, wo, cout), out_dtype),
        grid_spec=pltpu.PrefetchScalarGridSpec(
            num_scalar_prefetch=0,
            grid=(n,),
            in_specs=[
                pl.BlockSpec((1, hin, win, cin), lambda i: (i, 0, 0, 0)),
                pl.BlockSpec((ntaps, cin, cout), lambda i: (0, 0, 0)),
                pl.BlockSpec((1, cout), lambda i: (0, 0)),
            ],
            out_specs=pl.BlockSpec((1, ho, wo, cout), lambda i: (i, 0, 0, 0)),
            scratch_shapes=[
                pltpu.VMEM((hp, wp, cin), x.dtype),
                pltpu.VMEM((ho * wo_t, cout), jnp.float32),
            ],
        ),
        compiler_params=pltpu.CompilerParams(**cp),
        cost_estimate=cost,
    )(x, w_packed, b2d)


# ------------------------- stride-2 -> s2d rewrite ---------------------------
def space_to_depth(x_nhwc):
    """(N,H,W,C) -> (N,H/2,W/2,4C), channel index = (a*2+b)*C + c for phase
    (a,b) = (row%2, col%2)."""
    n, h, w, c = x_nhwc.shape
    assert h % 2 == 0 and w % 2 == 0, "spatial dims must be even"
    x = x_nhwc.reshape(n, h // 2, 2, w // 2, 2, c)
    x = jnp.transpose(x, (0, 1, 3, 2, 4, 5))
    return x.reshape(n, h // 2, w // 2, 4 * c)


def pack_conv3x3_stride1(w_oihw):
    """(Cout,Cin,3,3) -> (9, Cin, Cout), tap index = ky*3+kx."""
    cout, cin, _, _ = w_oihw.shape
    w = jnp.transpose(w_oihw, (2, 3, 1, 0))           # (ky, kx, cin, cout)
    return w.reshape(9, cin, cout)


def pack_conv3x3_stride2_as_s2d(w_oihw):
    """Rewrite a 3x3/stride-2/pad-1 conv as a 2x2/stride-1 conv (pad 1 on
    top/left only) over the space-to-depth input.
    (Cout,Cin,3,3) -> (4, 4*Cin, Cout), tap index = dy*2+dx,
    channel index = (a*2+b)*Cin + ci  (matches space_to_depth)."""
    cout, cin, _, _ = w_oihw.shape
    w = jnp.transpose(w_oihw, (2, 3, 1, 0))           # (ky, kx, cin, cout)
    v = jnp.zeros((2, 2, 4, cin, cout), w_oihw.dtype)
    kmap = {0: (0, 1), 1: (1, 0), 2: (1, 1)}          # k -> (tap offset d, phase)
    for ky in range(3):
        dy, pa = kmap[ky]
        for kx in range(3):
            dx, pb = kmap[kx]
            v = v.at[dy, dx, pa * 2 + pb].set(w[ky, kx])
    return v.reshape(4, 4 * cin, cout)


# ----------------------------- Encoder module -------------------------------
def init_encoder_params(key, in_channels=3, hidden_channels=128):
    """Synthetic params in PyTorch Conv2d layout, pre-packed ONCE for the
    Pallas kernels.  Returns (packed_params, raw_params)."""
    specs = [(in_channels, 16, 1), (16, 32, 2), (32, 64, 2),
             (64, hidden_channels, 2)]
    packed, raw = [], []
    for i, (cin, cout, stride) in enumerate(specs):
        k_w, k_b = jax.random.split(jax.random.fold_in(key, i))
        fan_in = cin * 9
        w = (jax.random.normal(k_w, (cout, cin, 3, 3), jnp.float32)
             * (1.0 / fan_in) ** 0.5).astype(jnp.bfloat16)
        b = jax.random.normal(k_b, (cout,), jnp.float32) * 0.01
        if stride == 1:
            w_pk = pack_conv3x3_stride1(w)
        else:
            w_pk = pack_conv3x3_stride2_as_s2d(w)
        packed.append((w_pk, b.reshape(1, cout).astype(jnp.float32)))
        raw.append((w, b))
    return packed, raw


def encoder_forward(x_nchw, packed_params):
    """x: (N, Cin, H, W) -> (N, hidden, H/8, W/8), matching the PyTorch Encoder."""
    x = jnp.transpose(x_nchw, (0, 2, 3, 1)).astype(jnp.bfloat16)   # NCHW -> NHWC
    # Layer 1: 3x3 stride-1 conv, symmetric zero padding of 1.
    w, b = packed_params[0]
    x = conv_relu(x, w, b, kh=3, kw=3, pad_t=1, pad_l=1, out_dtype=jnp.bfloat16)
    # Layers 2..4: 3x3 stride-2 convs, rewritten exactly as 2x2 stride-1 convs
    # over the space-to-depth input (zero padding of 1 on top/left only).
    n_layers = len(packed_params)
    for li in range(1, n_layers):
        w, b = packed_params[li]
        x = space_to_depth(x)
        out_dtype = jnp.float32 if li == n_layers - 1 else jnp.bfloat16
        x = conv_relu(x, w, b, kh=2, kw=2, pad_t=1, pad_l=1, out_dtype=out_dtype)
    return jnp.transpose(x, (0, 3, 1, 2))                          # NHWC -> NCHW


# ----------------------------- pure-JAX reference ----------------------------
def encoder_reference(x_nchw, raw_params):
    """lax.conv reference with the same bf16 rounding points as the kernels."""
    x = jnp.transpose(x_nchw, (0, 2, 3, 1)).astype(jnp.bfloat16)
    strides = [1, 2, 2, 2]
    for i, (w, b) in enumerate(raw_params):
        w_hwio = jnp.transpose(w.astype(jnp.float32), (2, 3, 1, 0))
        y = jax.lax.conv_general_dilated(
            x.astype(jnp.float32), w_hwio,
            window_strides=(strides[i], strides[i]),
            padding=((1, 1), (1, 1)),
            dimension_numbers=("NHWC", "HWIO", "NHWC"),
            precision=jax.lax.Precision.HIGHEST)
        y = jnp.maximum(y + b.reshape(1, 1, 1, -1), 0.0)
        x = y.astype(jnp.float32 if i == len(raw_params) - 1 else jnp.bfloat16)
    return jnp.transpose(x, (0, 3, 1, 2))


# --------------------------------- main --------------------------------------
if __name__ == "__main__":
    key = jax.random.PRNGKey(0)
    kx, kp = jax.random.split(key)

    # Small shapes: batch=2, in_channels=3 (module default), spatial=16,
    # hidden_channels=32 (kept small for the test).
    in_channels, hidden_channels = 3, 32
    x = jax.random.normal(kx, (2, in_channels, 16, 16), jnp.float32)

    packed_params, raw_params = init_encoder_params(kp, in_channels,
                                                    hidden_channels)

    out = jax.jit(encoder_forward)(x, packed_params)
    out = jax.block_until_ready(out)

    # 16 -> 16 -> 8 -> 4 -> 2 spatially; channels -> hidden_channels (NCHW out).
    assert out.shape == (2, hidden_channels, 2, 2), out.shape
    assert bool(jnp.all(out >= 0.0))  # final ReLU

    # Numerical check vs a lax.conv reference with matching bf16 rounding.
    ref = encoder_reference(x, raw_params)
    max_err = float(jnp.max(jnp.abs(out - ref)))
    assert max_err < 1e-2, max_err

    print("KERNEL_OK")
</pallas_src>

<mosaic_0001>
module attributes {stable_mosaic.version = 11 : i64} {
  func.func @_conv_relu_kernel(%arg0: i32, %arg1: memref<1x16x16x3xbf16, #tpu.memory_space<vmem>>, %arg2: memref<9x3x16xbf16, #tpu.memory_space<vmem>>, %arg3: memref<1x16xf32, #tpu.memory_space<vmem>>, %arg4: memref<1x16x16x16xbf16, #tpu.memory_space<vmem>>, %arg5: memref<18x48x3xbf16, #tpu.memory_space<vmem>>, %arg6: memref<256x16xf32, #tpu.memory_space<vmem>>) attributes {dimension_semantics = [#tpu.dimension_semantics<parallel>], iteration_bounds = array<i64: 2>, scalar_prefetch = 0 : i64, scratch_operands = 2 : i64, tpu.core_type = #tpu.core_type<tc>, window_params = [{transform_indices = @transform_0, window_bounds = array<i64: 1, 16, 16, 3>}, {pipeline_mode = #tpu.pipeline_mode<synchronous>, transform_indices = @transform_1, window_bounds = array<i64: 9, 3, 16>}, {pipeline_mode = #tpu.pipeline_mode<synchronous>, transform_indices = @transform_2, window_bounds = array<i64: 1, 16>}, {transform_indices = @transform_3, window_bounds = array<i64: 1, 16, 16, 16>}]} {
    %cst = arith.constant 0.000000e+00 : bf16
    %0 = vector.broadcast %cst : bf16 to vector<18x48x3xbf16>
    %c0 = arith.constant 0 : index
    %c0_0 = arith.constant 0 : index
    %c0_1 = arith.constant 0 : index
    %1 = vector.load %arg5[%c0, %c0_0, %c0_1] : memref<18x48x3xbf16, #tpu.memory_space<vmem>>, vector<18x48x3xbf16>
    tpu.vector_store %arg5[%c0, %c0_0, %c0_1], %0 {strides = array<i32>} : memref<18x48x3xbf16, #tpu.memory_space<vmem>>, vector<18x48x3xbf16>,
    %c0_2 = arith.constant 0 : index
    %c0_3 = arith.constant 0 : index
    %c0_4 = arith.constant 0 : index
    %c0_5 = arith.constant 0 : index
    %2 = vector.load %arg1[%c0_2, %c0_3, %c0_4, %c0_5] : memref<1x16x16x3xbf16, #tpu.memory_space<vmem>>, vector<1x16x16x3xbf16>
    %3 = vector.shape_cast %2 : vector<1x16x16x3xbf16> to vector<16x16x3xbf16>
    %c1 = arith.constant 1 : index
    %c16 = arith.constant 16 : index
    %c0_6 = arith.constant 0 : index
    %4 = vector.load %arg5[%c1, %c16, %c0_6] : memref<18x48x3xbf16, #tpu.memory_space<vmem>>, vector<16x16x3xbf16>
    tpu.vector_store %arg5[%c1, %c16, %c0_6], %3 {strides = array<i32>} : memref<18x48x3xbf16, #tpu.memory_space<vmem>>, vector<16x16x3xbf16>,
    %cst_7 = arith.constant 0.000000e+00 : f32
    %5 = vector.broadcast %cst_7 : f32 to vector<256x16xf32>
    %c0_8 = arith.constant 0 : index
    %c0_9 = arith.constant 0 : index
    %6 = vector.load %arg6[%c0_8, %c0_9] : memref<256x16xf32, #tpu.memory_space<vmem>>, vector<256x16xf32>
    tpu.vector_store %arg6[%c0_8, %c0_9], %5 {strides = array<i32>} : memref<256x16xf32, #tpu.memory_space<vmem>>, vector<256x16xf32>,
    %c0_10 = arith.constant 0 : index
    %c15 = arith.constant 15 : index
    %c0_11 = arith.constant 0 : index
    %7 = vector.load %arg5[%c0_10, %c15, %c0_11] : memref<18x48x3xbf16, #tpu.memory_space<vmem>>, vector<16x16x3xbf16>
    %8 = vector.shape_cast %7 : vector<16x16x3xbf16> to vector<256x3xbf16>
    %c0_12 = arith.constant 0 : index
    %c0_13 = arith.constant 0 : index
    %9 = vector.load %arg6[%c0_12, %c0_13] : memref<256x16xf32, #tpu.memory_space<vmem>>, vector<256x16xf32>
    %c0_14 = arith.constant 0 : index
    %c0_15 = arith.constant 0 : index
    %c0_16 = arith.constant 0 : index
    %10 = vector.load %arg2[%c0_14, %c0_15, %c0_16] : memref<9x3x16xbf16, #tpu.memory_space<vmem>>, vector<1x3x16xbf16>
    %11 = vector.shape_cast %10 : vector<1x3x16xbf16> to vector<3x16xbf16>
    %cst_17 = arith.constant dense<0.000000e+00> : vector<256x16xf32>
    %12 = tpu.matmul %8, %11, %cst_17 {dimension_numbers = #tpu.dot_dimension_numbers<[1], [0], [0], [1], [0, 0, 1, 1], [], []>} : vector<256x3xbf16>, vector<3x16xbf16>, vector<256x16xf32> -> vector<256x16xf32>
    %13 = arith.addf %9, %12 : vector<256x16xf32>
    %c0_18 = arith.constant 0 : index
    %c0_19 = arith.constant 0 : index
    %14 = vector.load %arg6[%c0_18, %c0_19] : memref<256x16xf32, #tpu.memory_space<vmem>>, vector<256x16xf32>
    tpu.vector_store %arg6[%c0_18, %c0_19], %13 {strides = array<i32>} : memref<256x16xf32, #tpu.memory_space<vmem>>, vector<256x16xf32>,
    %c0_20 = arith.constant 0 : index
    %c16_21 = arith.constant 16 : index
    %c0_22 = arith.constant 0 : index
    %15 = vector.load %arg5[%c0_20, %c16_21, %c0_22] : memref<18x48x3xbf16, #tpu.memory_space<vmem>>, vector<16x16x3xbf16>
    %16 = vector.shape_cast %15 : vector<16x16x3xbf16> to vector<256x3xbf16>
    %c0_23 = arith.constant 0 : index
    %c0_24 = arith.constant 0 : index
    %17 = vector.load %arg6[%c0_23, %c0_24] : memref<256x16xf32, #tpu.memory_space<vmem>>, vector<256x16xf32>
    %c1_25 = arith.constant 1 : index
    %c0_26 = arith.constant 0 : index
    %c0_27 = arith.constant 0 : index
    %18 = vector.load %arg2[%c1_25, %c0_26, %c0_27] : memref<9x3x16xbf16, #tpu.memory_space<vmem>>, vector<1x3x16xbf16>
    %19 = vector.shape_cast %18 : vector<1x3x16xbf16> to vector<3x16xbf16>
    %cst_28 = arith.constant dense<0.000000e+00> : vector<256x16xf32>
    %20 = tpu.matmul %16, %19, %cst_28 {dimension_numbers = #tpu.dot_dimension_numbers<[1], [0], [0], [1], [0, 0, 1, 1], [], []>} : vector<256x3xbf16>, vector<3x16xbf16>, vector<256x16xf32> -> vector<256x16xf32>
    %21 = arith.addf %17, %20 : vector<256x16xf32>
    %c0_29 = arith.constant 0 : index
    %c0_30 = arith.constant 0 : index
    %22 = vector.load %arg6[%c0_29, %c0_30] : memref<256x16xf32, #tpu.memory_space<vmem>>, vector<256x16xf32>
    tpu.vector_store %arg6[%c0_29, %c0_30], %21 {strides = array<i32>} : memref<256x16xf32, #tpu.memory_space<vmem>>, vector<256x16xf32>,
    %c0_31 = arith.constant 0 : index
    %c17 = arith.constant 17 : index
    %c0_32 = arith.constant 0 : index
    %23 = vector.load %arg5[%c0_31, %c17, %c0_32] : memref<18x48x3xbf16, #tpu.memory_space<vmem>>, vector<16x16x3xbf16>
    %24 = vector.shape_cast %23 : vector<16x16x3xbf16> to vector<256x3xbf16>
    %c0_33 = arith.constant 0 : index
    %c0_34 = arith.constant 0 : index
    %25 = vector.load %arg6[%c0_33, %c0_34] : memref<256x16xf32, #tpu.memory_space<vmem>>, vector<256x16xf32>
    %c2 = arith.constant 2 : index
    %c0_35 = arith.constant 0 : index
    %c0_36 = arith.constant 0 : index
    %26 = vector.load %arg2[%c2, %c0_35, %c0_36] : memref<9x3x16xbf16, #tpu.memory_space<vmem>>, vector<1x3x16xbf16>
    %27 = vector.shape_cast %26 : vector<1x3x16xbf16> to vector<3x16xbf16>
    %cst_37 = arith.constant dense<0.000000e+00> : vector<256x16xf32>
    %28 = tpu.matmul %24, %27, %cst_37 {dimension_numbers = #tpu.dot_dimension_numbers<[1], [0], [0], [1], [0, 0, 1, 1], [], []>} : vector<256x3xbf16>, vector<3x16xbf16>, vector<256x16xf32> -> vector<256x16xf32>
    %29 = arith.addf %25, %28 : vector<256x16xf32>
    %c0_38 = arith.constant 0 : index
    %c0_39 = arith.constant 0 : index
    %30 = vector.load %arg6[%c0_38, %c0_39] : memref<256x16xf32, #tpu.memory_space<vmem>>, vector<256x16xf32>
    tpu.vector_store %arg6[%c0_38, %c0_39], %29 {strides = array<i32>} : memref<256x16xf32, #tpu.memory_space<vmem>>, vector<256x16xf32>,
    %c1_40 = arith.constant 1 : index
    %c15_41 = arith.constant 15 : index
    %c0_42 = arith.constant 0 : index
    %31 = vector.load %arg5[%c1_40, %c15_41, %c0_42] : memref<18x48x3xbf16, #tpu.memory_space<vmem>>, vector<16x16x3xbf16>
    %32 = vector.shape_cast %31 : vector<16x16x3xbf16> to vector<256x3xbf16>
    %c0_43 = arith.constant 0 : index
    %c0_44 = arith.constant 0 : index
    %33 = vector.load %arg6[%c0_43, %c0_44] : memref<256x16xf32, #tpu.memory_space<vmem>>, vector<256x16xf32>
    %c3 = arith.constant 3 : index
    %c0_45 = arith.constant 0 : index
    %c0_46 = arith.constant 0 : index
    %34 = vector.load %arg2[%c3, %c0_45, %c0_46] : memref<9x3x16xbf16, #tpu.memory_space<vmem>>, vector<1x3x16xbf16>
    %35 = vector.shape_cast %34 : vector<1x3x16xbf16> to vector<3x16xbf16>
    %cst_47 = arith.constant dense<0.000000e+00> : vector<256x16xf32>
    %36 = tpu.matmul %32, %35, %cst_47 {dimension_numbers = #tpu.dot_dimension_numbers<[1], [0], [0], [1], [0, 0, 1, 1], [], []>} : vector<256x3xbf16>, vector<3x16xbf16>, vector<256x16xf32> -> vector<256x16xf32>
    %37 = arith.addf %33, %36 : vector<256x16xf32>
    %c0_48 = arith.constant 0 : index
    %c0_49 = arith.constant 0 : index
    %38 = vector.load %arg6[%c0_48, %c0_49] : memref<256x16xf32, #tpu.memory_space<vmem>>, vector<256x16xf32>
    tpu.vector_store %arg6[%c0_48, %c0_49], %37 {strides = array<i32>} : memref<256x16xf32, #tpu.memory_space<vmem>>, vector<256x16xf32>,
    %c1_50 = arith.constant 1 : index
    %c16_51 = arith.constant 16 : index
    %c0_52 = arith.constant 0 : index
    %39 = vector.load %arg5[%c1_50, %c16_51, %c0_52] : memref<18x48x3xbf16, #tpu.memory_space<vmem>>, vector<16x16x3xbf16>
    %40 = vector.shape_cast %39 : vector<16x16x3xbf16> to vector<256x3xbf16>
    %c0_53 = arith.constant 0 : index
    %c0_54 = arith.constant 0 : index
    %41 = vector.load %arg6[%c0_53, %c0_54] : memref<256x16xf32, #tpu.memory_space<vmem>>, vector<256x16xf32>
    %c4 = arith.constant 4 : index
    %c0_55 = arith.constant 0 : index
    %c0_56 = arith.constant 0 : index
    %42 = vector.load %arg2[%c4, %c0_55, %c0_56] : memref<9x3x16xbf16, #tpu.memory_space<vmem>>, vector<1x3x16xbf16>
    %43 = vector.shape_cast %42 : vector<1x3x16xbf16> to vector<3x16xbf16>
    %cst_57 = arith.constant dense<0.000000e+00> : vector<256x16xf32>
    %44 = tpu.matmul %40, %43, %cst_57 {dimension_numbers = #tpu.dot_dimension_numbers<[1], [0], [0], [1], [0, 0, 1, 1], [], []>} : vector<256x3xbf16>, vector<3x16xbf16>, vector<256x16xf32> -> vector<256x16xf32>
    %45 = arith.addf %41, %44 : vector<256x16xf32>
    %c0_58 = arith.constant 0 : index
    %c0_59 = arith.constant 0 : index
    %46 = vector.load %arg6[%c0_58, %c0_59] : memref<256x16xf32, #tpu.memory_space<vmem>>, vector<256x16xf32>
    tpu.vector_store %arg6[%c0_58, %c0_59], %45 {strides = array<i32>} : memref<256x16xf32, #tpu.memory_space<vmem>>, vector<256x16xf32>,
    %c1_60 = arith.constant 1 : index
    %c17_61 = arith.constant 17 : index
    %c0_62 = arith.constant 0 : index
    %47 = vector.load %arg5[%c1_60, %c17_61, %c0_62] : memref<18x48x3xbf16, #tpu.memory_space<vmem>>, vector<16x16x3xbf16>
    %48 = vector.shape_cast %47 : vector<16x16x3xbf16> to vector<256x3xbf16>
    %c0_63 = arith.constant 0 : index
    %c0_64 = arith.constant 0 : index
    %49 = vector.load %arg6[%c0_63, %c0_64] : memref<256x16xf32, #tpu.memory_space<vmem>>, vector<256x16xf32>
    %c5 = arith.constant 5 : index
    %c0_65 = arith.constant 0 : index
    %c0_66 = arith.constant 0 : index
    %50 = vector.load %arg2[%c5, %c0_65, %c0_66] : memref<9x3x16xbf16, #tpu.memory_space<vmem>>, vector<1x3x16xbf16>
    %51 = vector.shape_cast %50 : vector<1x3x16xbf16> to vector<3x16xbf16>
    %cst_67 = arith.constant dense<0.000000e+00> : vector<256x16xf32>
    %52 = tpu.matmul %48, %51, %cst_67 {dimension_numbers = #tpu.dot_dimension_numbers<[1], [0], [0], [1], [0, 0, 1, 1], [], []>} : vector<256x3xbf16>, vector<3x16xbf16>, vector<256x16xf32> -> vector<256x16xf32>
    %53 = arith.addf %49, %52 : vector<256x16xf32>
    %c0_68 = arith.constant 0 : index
    %c0_69 = arith.constant 0 : index
    %54 = vector.load %arg6[%c0_68, %c0_69] : memref<256x16xf32, #tpu.memory_space<vmem>>, vector<256x16xf32>
    tpu.vector_store %arg6[%c0_68, %c0_69], %53 {strides = array<i32>} : memref<256x16xf32, #tpu.memory_space<vmem>>, vector<256x16xf32>,
    %c2_70 = arith.constant 2 : index
    %c15_71 = arith.constant 15 : index
    %c0_72 = arith.constant 0 : index
    %55 = vector.load %arg5[%c2_70, %c15_71, %c0_72] : memref<18x48x3xbf16, #tpu.memory_space<vmem>>, vector<16x16x3xbf16>
    %56 = vector.shape_cast %55 : vector<16x16x3xbf16> to vector<256x3xbf16>
    %c0_73 = arith.constant 0 : index
    %c0_74 = arith.constant 0 : index
    %57 = vector.load %arg6[%c0_73, %c0_74] : memref<256x16xf32, #tpu.memory_space<vmem>>, vector<256x16xf32>
    %c6 = arith.constant 6 : index
    %c0_75 = arith.constant 0 : index
    %c0_76 = arith.constant 0 : index
    %58 = vector.load %arg2[%c6, %c0_75, %c0_76] : memref<9x3x16xbf16, #tpu.memory_space<vmem>>, vector<1x3x16xbf16>
    %59 = vector.shape_cast %58 : vector<1x3x16xbf16> to vector<3x16xbf16>
    %cst_77 = arith.constant dense<0.000000e+00> : vector<256x16xf32>
    %60 = tpu.matmul %56, %59, %cst_77 {dimension_numbers = #tpu.dot_dimension_numbers<[1], [0], [0], [1], [0, 0, 1, 1], [], []>} : vector<256x3xbf16>, vector<3x16xbf16>, vector<256x16xf32> -> vector<256x16xf32>
    %61 = arith.addf %57, %60 : vector<256x16xf32>
    %c0_78 = arith.constant 0 : index
    %c0_79 = arith.constant 0 : index
    %62 = vector.load %arg6[%c0_78, %c0_79] : memref<256x16xf32, #tpu.memory_space<vmem>>, vector<256x16xf32>
    tpu.vector_store %arg6[%c0_78, %c0_79], %61 {strides = array<i32>} : memref<256x16xf32, #tpu.memory_space<vmem>>, vector<256x16xf32>,
    %c2_80 = arith.constant 2 : index
    %c16_81 = arith.constant 16 : index
    %c0_82 = arith.constant 0 : index
    %63 = vector.load %arg5[%c2_80, %c16_81, %c0_82] : memref<18x48x3xbf16, #tpu.memory_space<vmem>>, vector<16x16x3xbf16>
    %64 = vector.shape_cast %63 : vector<16x16x3xbf16> to vector<256x3xbf16>
    %c0_83 = arith.constant 0 : index
    %c0_84 = arith.constant 0 : index
    %65 = vector.load %arg6[%c0_83, %c0_84] : memref<256x16xf32, #tpu.memory_space<vmem>>, vector<256x16xf32>
    %c7 = arith.constant 7 : index
    %c0_85 = arith.constant 0 : index
    %c0_86 = arith.constant 0 : index
    %66 = vector.load %arg2[%c7, %c0_85, %c0_86] : memref<9x3x16xbf16, #tpu.memory_space<vmem>>, vector<1x3x16xbf16>
    %67 = vector.shape_cast %66 : vector<1x3x16xbf16> to vector<3x16xbf16>
    %cst_87 = arith.constant dense<0.000000e+00> : vector<256x16xf32>
    %68 = tpu.matmul %64, %67, %cst_87 {dimension_numbers = #tpu.dot_dimension_numbers<[1], [0], [0], [1], [0, 0, 1, 1], [], []>} : vector<256x3xbf16>, vector<3x16xbf16>, vector<256x16xf32> -> vector<256x16xf32>
    %69 = arith.addf %65, %68 : vector<256x16xf32>
    %c0_88 = arith.constant 0 : index
    %c0_89 = arith.constant 0 : index
    %70 = vector.load %arg6[%c0_88, %c0_89] : memref<256x16xf32, #tpu.memory_space<vmem>>, vector<256x16xf32>
    tpu.vector_store %arg6[%c0_88, %c0_89], %69 {strides = array<i32>} : memref<256x16xf32, #tpu.memory_space<vmem>>, vector<256x16xf32>,
    %c2_90 = arith.constant 2 : index
    %c17_91 = arith.constant 17 : index
    %c0_92 = arith.constant 0 : index
    %71 = vector.load %arg5[%c2_90, %c17_91, %c0_92] : memref<18x48x3xbf16, #tpu.memory_space<vmem>>, vector<16x16x3xbf16>
    %72 = vector.shape_cast %71 : vector<16x16x3xbf16> to vector<256x3xbf16>
    %c0_93 = arith.constant 0 : index
    %c0_94 = arith.constant 0 : index
    %73 = vector.load %arg6[%c0_93, %c0_94] : memref<256x16xf32, #tpu.memory_space<vmem>>, vector<256x16xf32>
    %c8 = arith.constant 8 : index
    %c0_95 = arith.constant 0 : index
    %c0_96 = arith.constant 0 : index
    %74 = vector.load %arg2[%c8, %c0_95, %c0_96] : memref<9x3x16xbf16, #tpu.memory_space<vmem>>, vector<1x3x16xbf16>
    %75 = vector.shape_cast %74 : vector<1x3x16xbf16> to vector<3x16xbf16>
    %cst_97 = arith.constant dense<0.000000e+00> : vector<256x16xf32>
    %76 = tpu.matmul %72, %75, %cst_97 {dimension_numbers = #tpu.dot_dimension_numbers<[1], [0], [0], [1], [0, 0, 1, 1], [], []>} : vector<256x3xbf16>, vector<3x16xbf16>, vector<256x16xf32> -> vector<256x16xf32>
    %77 = arith.addf %73, %76 : vector<256x16xf32>
    %c0_98 = arith.constant 0 : index
    %c0_99 = arith.constant 0 : index
    %78 = vector.load %arg6[%c0_98, %c0_99] : memref<256x16xf32, #tpu.memory_space<vmem>>, vector<256x16xf32>
    tpu.vector_store %arg6[%c0_98, %c0_99], %77 {strides = array<i32>} : memref<256x16xf32, #tpu.memory_space<vmem>>, vector<256x16xf32>,
    %c0_100 = arith.constant 0 : index
    %c0_101 = arith.constant 0 : index
    %79 = vector.load %arg6[%c0_100, %c0_101] : memref<256x16xf32, #tpu.memory_space<vmem>>, vector<256x16xf32>
    %c0_102 = arith.constant 0 : index
    %c0_103 = arith.constant 0 : index
    %80 = vector.load %arg3[%c0_102, %c0_103] : memref<1x16xf32, #tpu.memory_space<vmem>>, vector<1x16xf32>
    %81 = vector.broadcast %80 : vector<1x16xf32> to vector<256x16xf32>
    %82 = arith.addf %79, %81 : vector<256x16xf32>
    %cst_104 = arith.constant 0.000000e+00 : f32
    %83 = vector.broadcast %cst_104 : f32 to vector<256x16xf32>
    %84 = arith.maximumf %82, %83 : vector<256x16xf32>
    %85 = vector.shape_cast %84 : vector<256x16xf32> to vector<16x16x16xf32>
    %86 = arith.truncf %85 : vector<16x16x16xf32> to vector<16x16x16xbf16>
    %c0_105 = arith.constant 0 : index
    %c0_106 = arith.constant 0 : index
    %c0_107 = arith.constant 0 : index
    %c0_108 = arith.constant 0 : index
    %87 = vector.load %arg4[%c0_105, %c0_106, %c0_107, %c0_108] : memref<1x16x16x16xbf16, #tpu.memory_space<vmem>>, vector<1x16x16x16xbf16>
    %88 = vector.shape_cast %87 : vector<1x16x16x16xbf16> to vector<16x16x16xbf16>
    %89 = vector.shape_cast %86 : vector<16x16x16xbf16> to vector<1x16x16x16xbf16>
    tpu.vector_store %arg4[%c0_105, %c0_106, %c0_107, %c0_108], %89 {strides = array<i32>} : memref<1x16x16x16xbf16, #tpu.memory_space<vmem>>, vector<1x16x16x16xbf16>,
    return
  }
  func.func @transform_0(%arg0: i32) -> (i32, i32, i32, i32) {
    %c0_i32 = arith.constant 0 : i32
    %c0_i32_0 = arith.constant 0 : i32
    %c0_i32_1 = arith.constant 0 : i32
    %c0_i32_2 = arith.constant 0 : i32
    return %arg0, %c0_i32, %c0_i32_0, %c0_i32_1 : i32, i32, i32, i32
  }
  func.func @transform_1(%arg0: i32) -> (i32, i32, i32) {
    %c0_i32 = arith.constant 0 : i32
    %c0_i32_0 = arith.constant 0 : i32
    %c0_i32_1 = arith.constant 0 : i32
    %c0_i32_2 = arith.constant 0 : i32
    return %c0_i32, %c0_i32_0, %c0_i32_1 : i32, i32, i32
  }
  func.func @transform_2(%arg0: i32) -> (i32, i32) {
    %c0_i32 = arith.constant 0 : i32
    %c0_i32_0 = arith.constant 0 : i32
    %c0_i32_1 = arith.constant 0 : i32
    return %c0_i32, %c0_i32_0 : i32, i32
  }
  func.func @transform_3(%arg0: i32) -> (i32, i32, i32, i32) {
    %c0_i32 = arith.constant 0 : i32
    %c0_i32_0 = arith.constant 0 : i32
    %c0_i32_1 = arith.constant 0 : i32
    %c0_i32_2 = arith.constant 0 : i32
    return %arg0, %c0_i32, %c0_i32_0, %c0_i32_1 : i32, i32, i32, i32
  }
}

module attributes {stable_mosaic.version = 11 : i64} {
  func.func @_conv_relu_kernel(%arg0: i32, %arg1: memref<1x8x8x64xbf16, #tpu.memory_space<vmem>>, %arg2: memref<4x64x32xbf16, #tpu.memory_space<vmem>>, %arg3: memref<1x32xf32, #tpu.memory_space<vmem>>, %arg4: memref<1x8x8x32xbf16, #tpu.memory_space<vmem>>, %arg5: memref<9x32x64xbf16, #tpu.memory_space<vmem>>, %arg6: memref<128x32xf32, #tpu.memory_space<vmem>>) attributes {dimension_semantics = [#tpu.dimension_semantics<parallel>], iteration_bounds = array<i64: 2>, scalar_prefetch = 0 : i64, scratch_operands = 2 : i64, tpu.core_type = #tpu.core_type<tc>, window_params = [{transform_indices = @transform_0, window_bounds = array<i64: 1, 8, 8, 64>}, {pipeline_mode = #tpu.pipeline_mode<synchronous>, transform_indices = @transform_1, window_bounds = array<i64: 4, 64, 32>}, {pipeline_mode = #tpu.pipeline_mode<synchronous>, transform_indices = @transform_2, window_bounds = array<i64: 1, 32>}, {transform_indices = @transform_3, window_bounds = array<i64: 1, 8, 8, 32>}]} {
    %cst = arith.constant 0.000000e+00 : bf16
    %0 = vector.broadcast %cst : bf16 to vector<9x32x64xbf16>
    %c0 = arith.constant 0 : index
    %c0_0 = arith.constant 0 : index
    %c0_1 = arith.constant 0 : index
    %1 = vector.load %arg5[%c0, %c0_0, %c0_1] : memref<9x32x64xbf16, #tpu.memory_space<vmem>>, vector<9x32x64xbf16>
    tpu.vector_store %arg5[%c0, %c0_0, %c0_1], %0 {strides = array<i32>} : memref<9x32x64xbf16, #tpu.memory_space<vmem>>, vector<9x32x64xbf16>,
    %c0_2 = arith.constant 0 : index
    %c0_3 = arith.constant 0 : index
    %c0_4 = arith.constant 0 : index
    %c0_5 = arith.constant 0 : index
    %2 = vector.load %arg1[%c0_2, %c0_3, %c0_4, %c0_5] : memref<1x8x8x64xbf16, #tpu.memory_space<vmem>>, vector<1x8x8x64xbf16>
    %3 = vector.shape_cast %2 : vector<1x8x8x64xbf16> to vector<8x8x64xbf16>
    %c1 = arith.constant 1 : index
    %c16 = arith.constant 16 : index
    %c0_6 = arith.constant 0 : index
    %4 = vector.load %arg5[%c1, %c16, %c0_6] : memref<9x32x64xbf16, #tpu.memory_space<vmem>>, vector<8x8x64xbf16>
    tpu.vector_store %arg5[%c1, %c16, %c0_6], %3 {strides = array<i32>} : memref<9x32x64xbf16, #tpu.memory_space<vmem>>, vector<8x8x64xbf16>,
    %cst_7 = arith.constant 0.000000e+00 : f32
    %5 = vector.broadcast %cst_7 : f32 to vector<128x32xf32>
    %c0_8 = arith.constant 0 : index
    %c0_9 = arith.constant 0 : index
    %6 = vector.load %arg6[%c0_8, %c0_9] : memref<128x32xf32, #tpu.memory_space<vmem>>, vector<128x32xf32>
    tpu.vector_store %arg6[%c0_8, %c0_9], %5 {strides = array<i32>} : memref<128x32xf32, #tpu.memory_space<vmem>>, vector<128x32xf32>,
    %c0_10 = arith.constant 0 : index
    %c15 = arith.constant 15 : index
    %c0_11 = arith.constant 0 : index
    %7 = vector.load %arg5[%c0_10, %c15, %c0_11] : memref<9x32x64xbf16, #tpu.memory_space<vmem>>, vector<8x16x64xbf16>
    %8 = vector.shape_cast %7 : vector<8x16x64xbf16> to vector<128x64xbf16>
    %c0_12 = arith.constant 0 : index
    %c0_13 = arith.constant 0 : index
    %9 = vector.load %arg6[%c0_12, %c0_13] : memref<128x32xf32, #tpu.memory_space<vmem>>, vector<128x32xf32>
    %c0_14 = arith.constant 0 : index
    %c0_15 = arith.constant 0 : index
    %c0_16 = arith.constant 0 : index
    %10 = vector.load %arg2[%c0_14, %c0_15, %c0_16] : memref<4x64x32xbf16, #tpu.memory_space<vmem>>, vector<1x64x32xbf16>
    %11 = vector.shape_cast %10 : vector<1x64x32xbf16> to vector<64x32xbf16>
    %cst_17 = arith.constant dense<0.000000e+00> : vector<128x32xf32>
    %12 = tpu.matmul %8, %11, %cst_17 {dimension_numbers = #tpu.dot_dimension_numbers<[1], [0], [0], [1], [0, 0, 1, 1], [], []>} : vector<128x64xbf16>, vector<64x32xbf16>, vector<128x32xf32> -> vector<128x32xf32>
    %13 = arith.addf %9, %12 : vector<128x32xf32>
    %c0_18 = arith.constant 0 : index
    %c0_19 = arith.constant 0 : index
    %14 = vector.load %arg6[%c0_18, %c0_19] : memref<128x32xf32, #tpu.memory_space<vmem>>, vector<128x32xf32>
    tpu.vector_store %arg6[%c0_18, %c0_19], %13 {strides = array<i32>} : memref<128x32xf32, #tpu.memory_space<vmem>>, vector<128x32xf32>,
    %c0_20 = arith.constant 0 : index
    %c16_21 = arith.constant 16 : index
    %c0_22 = arith.constant 0 : index
    %15 = vector.load %arg5[%c0_20, %c16_21, %c0_22] : memref<9x32x64xbf16, #tpu.memory_space<vmem>>, vector<8x16x64xbf16>
    %16 = vector.shape_cast %15 : vector<8x16x64xbf16> to vector<128x64xbf16>
    %c0_23 = arith.constant 0 : index
    %c0_24 = arith.constant 0 : index
    %17 = vector.load %arg6[%c0_23, %c0_24] : memref<128x32xf32, #tpu.memory_space<vmem>>, vector<128x32xf32>
    %c1_25 = arith.constant 1 : index
    %c0_26 = arith.constant 0 : index
    %c0_27 = arith.constant 0 : index
    %18 = vector.load %arg2[%c1_25, %c0_26, %c0_27] : memref<4x64x32xbf16, #tpu.memory_space<vmem>>, vector<1x64x32xbf16>
    %19 = vector.shape_cast %18 : vector<1x64x32xbf16> to vector<64x32xbf16>
    %cst_28 = arith.constant dense<0.000000e+00> : vector<128x32xf32>
    %20 = tpu.matmul %16, %19, %cst_28 {dimension_numbers = #tpu.dot_dimension_numbers<[1], [0], [0], [1], [0, 0, 1, 1], [], []>} : vector<128x64xbf16>, vector<64x32xbf16>, vector<128x32xf32> -> vector<128x32xf32>
    %21 = arith.addf %17, %20 : vector<128x32xf32>
    %c0_29 = arith.constant 0 : index
    %c0_30 = arith.constant 0 : index
    %22 = vector.load %arg6[%c0_29, %c0_30] : memref<128x32xf32, #tpu.memory_space<vmem>>, vector<128x32xf32>
    tpu.vector_store %arg6[%c0_29, %c0_30], %21 {strides = array<i32>} : memref<128x32xf32, #tpu.memory_space<vmem>>, vector<128x32xf32>,
    %c1_31 = arith.constant 1 : index
    %c15_32 = arith.constant 15 : index
    %c0_33 = arith.constant 0 : index
    %23 = vector.load %arg5[%c1_31, %c15_32, %c0_33] : memref<9x32x64xbf16, #tpu.memory_space<vmem>>, vector<8x16x64xbf16>
    %24 = vector.shape_cast %23 : vector<8x16x64xbf16> to vector<128x64xbf16>
    %c0_34 = arith.constant 0 : index
    %c0_35 = arith.constant 0 : index
    %25 = vector.load %arg6[%c0_34, %c0_35] : memref<128x32xf32, #tpu.memory_space<vmem>>, vector<128x32xf32>
    %c2 = arith.constant 2 : index
    %c0_36 = arith.constant 0 : index
    %c0_37 = arith.constant 0 : index
    %26 = vector.load %arg2[%c2, %c0_36, %c0_37] : memref<4x64x32xbf16, #tpu.memory_space<vmem>>, vector<1x64x32xbf16>
    %27 = vector.shape_cast %26 : vector<1x64x32xbf16> to vector<64x32xbf16>
    %cst_38 = arith.constant dense<0.000000e+00> : vector<128x32xf32>
    %28 = tpu.matmul %24, %27, %cst_38 {dimension_numbers = #tpu.dot_dimension_numbers<[1], [0], [0], [1], [0, 0, 1, 1], [], []>} : vector<128x64xbf16>, vector<64x32xbf16>, vector<128x32xf32> -> vector<128x32xf32>
    %29 = arith.addf %25, %28 : vector<128x32xf32>
    %c0_39 = arith.constant 0 : index
    %c0_40 = arith.constant 0 : index
    %30 = vector.load %arg6[%c0_39, %c0_40] : memref<128x32xf32, #tpu.memory_space<vmem>>, vector<128x32xf32>
    tpu.vector_store %arg6[%c0_39, %c0_40], %29 {strides = array<i32>} : memref<128x32xf32, #tpu.memory_space<vmem>>, vector<128x32xf32>,
    %c1_41 = arith.constant 1 : index
    %c16_42 = arith.constant 16 : index
    %c0_43 = arith.constant 0 : index
    %31 = vector.load %arg5[%c1_41, %c16_42, %c0_43] : memref<9x32x64xbf16, #tpu.memory_space<vmem>>, vector<8x16x64xbf16>
    %32 = vector.shape_cast %31 : vector<8x16x64xbf16> to vector<128x64xbf16>
    %c0_44 = arith.constant 0 : index
    %c0_45 = arith.constant 0 : index
    %33 = vector.load %arg6[%c0_44, %c0_45] : memref<128x32xf32, #tpu.memory_space<vmem>>, vector<128x32xf32>
    %c3 = arith.constant 3 : index
    %c0_46 = arith.constant 0 : index
    %c0_47 = arith.constant 0 : index
    %34 = vector.load %arg2[%c3, %c0_46, %c0_47] : memref<4x64x32xbf16, #tpu.memory_space<vmem>>, vector<1x64x32xbf16>
    %35 = vector.shape_cast %34 : vector<1x64x32xbf16> to vector<64x32xbf16>
    %cst_48 = arith.constant dense<0.000000e+00> : vector<128x32xf32>
    %36 = tpu.matmul %32, %35, %cst_48 {dimension_numbers = #tpu.dot_dimension_numbers<[1], [0], [0], [1], [0, 0, 1, 1], [], []>} : vector<128x64xbf16>, vector<64x32xbf16>, vector<128x32xf32> -> vector<128x32xf32>
    %37 = arith.addf %33, %36 : vector<128x32xf32>
    %c0_49 = arith.constant 0 : index
    %c0_50 = arith.constant 0 : index
    %38 = vector.load %arg6[%c0_49, %c0_50] : memref<128x32xf32, #tpu.memory_space<vmem>>, vector<128x32xf32>
    tpu.vector_store %arg6[%c0_49, %c0_50], %37 {strides = array<i32>} : memref<128x32xf32, #tpu.memory_space<vmem>>, vector<128x32xf32>,
    %c0_51 = arith.constant 0 : index
    %c0_52 = arith.constant 0 : index
    %39 = vector.load %arg6[%c0_51, %c0_52] : memref<128x32xf32, #tpu.memory_space<vmem>>, vector<128x32xf32>
    %c0_53 = arith.constant 0 : index
    %c0_54 = arith.constant 0 : index
    %40 = vector.load %arg3[%c0_53, %c0_54] : memref<1x32xf32, #tpu.memory_space<vmem>>, vector<1x32xf32>
    %41 = vector.broadcast %40 : vector<1x32xf32> to vector<128x32xf32>
    %42 = arith.addf %39, %41 : vector<128x32xf32>
    %cst_55 = arith.constant 0.000000e+00 : f32
    %43 = vector.broadcast %cst_55 : f32 to vector<128x32xf32>
    %44 = arith.maximumf %42, %43 : vector<128x32xf32>
    %45 = vector.shape_cast %44 : vector<128x32xf32> to vector<8x16x32xf32>
    %46 = vector.extract_strided_slice %45 {offsets = [0, 0, 0], sizes = [8, 8, 32], strides = [1, 1, 1]} : vector<8x16x32xf32> to vector<8x8x32xf32>
    %47 = arith.truncf %46 : vector<8x8x32xf32> to vector<8x8x32xbf16>
    %c0_56 = arith.constant 0 : index
    %c0_57 = arith.constant 0 : index
    %c0_58 = arith.constant 0 : index
    %c0_59 = arith.constant 0 : index
    %48 = vector.load %arg4[%c0_56, %c0_57, %c0_58, %c0_59] : memref<1x8x8x32xbf16, #tpu.memory_space<vmem>>, vector<1x8x8x32xbf16>
    %49 = vector.shape_cast %48 : vector<1x8x8x32xbf16> to vector<8x8x32xbf16>
    %50 = vector.shape_cast %47 : vector<8x8x32xbf16> to vector<1x8x8x32xbf16>
    tpu.vector_store %arg4[%c0_56, %c0_57, %c0_58, %c0_59], %50 {strides = array<i32>} : memref<1x8x8x32xbf16, #tpu.memory_space<vmem>>, vector<1x8x8x32xbf16>,
    return
  }
  func.func @transform_0(%arg0: i32) -> (i32, i32, i32, i32) {
    %c0_i32 = arith.constant 0 : i32
    %c0_i32_0 = arith.constant 0 : i32
    %c0_i32_1 = arith.constant 0 : i32
    %c0_i32_2 = arith.constant 0 : i32
    return %arg0, %c0_i32, %c0_i32_0, %c0_i32_1 : i32, i32, i32, i32
  }
  func.func @transform_1(%arg0: i32) -> (i32, i32, i32) {
    %c0_i32 = arith.constant 0 : i32
    %c0_i32_0 = arith.constant 0 : i32
    %c0_i32_1 = arith.constant 0 : i32
    %c0_i32_2 = arith.constant 0 : i32
    return %c0_i32, %c0_i32_0, %c0_i32_1 : i32, i32, i32
  }
  func.func @transform_2(%arg0: i32) -> (i32, i32) {
    %c0_i32 = arith.constant 0 : i32
    %c0_i32_0 = arith.constant 0 : i32
    %c0_i32_1 = arith.constant 0 : i32
    return %c0_i32, %c0_i32_0 : i32, i32
  }
  func.func @transform_3(%arg0: i32) -> (i32, i32, i32, i32) {
    %c0_i32 = arith.constant 0 : i32
    %c0_i32_0 = arith.constant 0 : i32
    %c0_i32_1 = arith.constant 0 : i32
    %c0_i32_2 = arith.constant 0 : i32
    return %arg0, %c0_i32, %c0_i32_0, %c0_i32_1 : i32, i32, i32, i32
  }
}

module attributes {stable_mosaic.version = 11 : i64} {
  func.func @_conv_relu_kernel(%arg0: i32, %arg1: memref<1x4x4x128xbf16, #tpu.memory_space<vmem>>, %arg2: memref<4x128x64xbf16, #tpu.memory_space<vmem>>, %arg3: memref<1x64xf32, #tpu.memory_space<vmem>>, %arg4: memref<1x4x4x64xbf16, #tpu.memory_space<vmem>>, %arg5: memref<5x32x128xbf16, #tpu.memory_space<vmem>>, %arg6: memref<64x64xf32, #tpu.memory_space<vmem>>) attributes {dimension_semantics = [#tpu.dimension_semantics<parallel>], iteration_bounds = array<i64: 2>, scalar_prefetch = 0 : i64, scratch_operands = 2 : i64, tpu.core_type = #tpu.core_type<tc>, window_params = [{transform_indices = @transform_0, window_bounds = array<i64: 1, 4, 4, 128>}, {pipeline_mode = #tpu.pipeline_mode<synchronous>, transform_indices = @transform_1, window_bounds = array<i64: 4, 128, 64>}, {pipeline_mode = #tpu.pipeline_mode<synchronous>, transform_indices = @transform_2, window_bounds = array<i64: 1, 64>}, {transform_indices = @transform_3, window_bounds = array<i64: 1, 4, 4, 64>}]} {
    %cst = arith.constant 0.000000e+00 : bf16
    %0 = vector.broadcast %cst : bf16 to vector<5x32x128xbf16>
    %c0 = arith.constant 0 : index
    %c0_0 = arith.constant 0 : index
    %c0_1 = arith.constant 0 : index
    %1 = vector.load %arg5[%c0, %c0_0, %c0_1] : memref<5x32x128xbf16, #tpu.memory_space<vmem>>, vector<5x32x128xbf16>
    tpu.vector_store %arg5[%c0, %c0_0, %c0_1], %0 {strides = array<i32>} : memref<5x32x128xbf16, #tpu.memory_space<vmem>>, vector<5x32x128xbf16>,
    %c0_2 = arith.constant 0 : index
    %c0_3 = arith.constant 0 : index
    %c0_4 = arith.constant 0 : index
    %c0_5 = arith.constant 0 : index
    %2 = vector.load %arg1[%c0_2, %c0_3, %c0_4, %c0_5] : memref<1x4x4x128xbf16, #tpu.memory_space<vmem>>, vector<1x4x4x128xbf16>
    %3 = vector.shape_cast %2 : vector<1x4x4x128xbf16> to vector<4x4x128xbf16>
    %c1 = arith.constant 1 : index
    %c16 = arith.constant 16 : index
    %c0_6 = arith.constant 0 : index
    %4 = vector.load %arg5[%c1, %c16, %c0_6] : memref<5x32x128xbf16, #tpu.memory_space<vmem>>, vector<4x4x128xbf16>
    tpu.vector_store %arg5[%c1, %c16, %c0_6], %3 {strides = array<i32>} : memref<5x32x128xbf16, #tpu.memory_space<vmem>>, vector<4x4x128xbf16>,
    %cst_7 = arith.constant 0.000000e+00 : f32
    %5 = vector.broadcast %cst_7 : f32 to vector<64x64xf32>
    %c0_8 = arith.constant 0 : index
    %c0_9 = arith.constant 0 : index
    %6 = vector.load %arg6[%c0_8, %c0_9] : memref<64x64xf32, #tpu.memory_space<vmem>>, vector<64x64xf32>
    tpu.vector_store %arg6[%c0_8, %c0_9], %5 {strides = array<i32>} : memref<64x64xf32, #tpu.memory_space<vmem>>, vector<64x64xf32>,
    %c0_10 = arith.constant 0 : index
    %c15 = arith.constant 15 : index
    %c0_11 = arith.constant 0 : index
    %7 = vector.load %arg5[%c0_10, %c15, %c0_11] : memref<5x32x128xbf16, #tpu.memory_space<vmem>>, vector<4x16x128xbf16>
    %8 = vector.shape_cast %7 : vector<4x16x128xbf16> to vector<64x128xbf16>
    %c0_12 = arith.constant 0 : index
    %c0_13 = arith.constant 0 : index
    %9 = vector.load %arg6[%c0_12, %c0_13] : memref<64x64xf32, #tpu.memory_space<vmem>>, vector<64x64xf32>
    %c0_14 = arith.constant 0 : index
    %c0_15 = arith.constant 0 : index
    %c0_16 = arith.constant 0 : index
    %10 = vector.load %arg2[%c0_14, %c0_15, %c0_16] : memref<4x128x64xbf16, #tpu.memory_space<vmem>>, vector<1x128x64xbf16>
    %11 = vector.shape_cast %10 : vector<1x128x64xbf16> to vector<128x64xbf16>
    %cst_17 = arith.constant dense<0.000000e+00> : vector<64x64xf32>
    %12 = tpu.matmul %8, %11, %cst_17 {dimension_numbers = #tpu.dot_dimension_numbers<[1], [0], [0], [1], [0, 0, 1, 1], [], []>} : vector<64x128xbf16>, vector<128x64xbf16>, vector<64x64xf32> -> vector<64x64xf32>
    %13 = arith.addf %9, %12 : vector<64x64xf32>
    %c0_18 = arith.constant 0 : index
    %c0_19 = arith.constant 0 : index
    %14 = vector.load %arg6[%c0_18, %c0_19] : memref<64x64xf32, #tpu.memory_space<vmem>>, vector<64x64xf32>
    tpu.vector_store %arg6[%c0_18, %c0_19], %13 {strides = array<i32>} : memref<64x64xf32, #tpu.memory_space<vmem>>, vector<64x64xf32>,
    %c0_20 = arith.constant 0 : index
    %c16_21 = arith.constant 16 : index
    %c0_22 = arith.constant 0 : index
    %15 = vector.load %arg5[%c0_20, %c16_21, %c0_22] : memref<5x32x128xbf16, #tpu.memory_space<vmem>>, vector<4x16x128xbf16>
    %16 = vector.shape_cast %15 : vector<4x16x128xbf16> to vector<64x128xbf16>
    %c0_23 = arith.constant 0 : index
    %c0_24 = arith.constant 0 : index
    %17 = vector.load %arg6[%c0_23, %c0_24] : memref<64x64xf32, #tpu.memory_space<vmem>>, vector<64x64xf32>
    %c1_25 = arith.constant 1 : index
    %c0_26 = arith.constant 0 : index
    %c0_27 = arith.constant 0 : index
    %18 = vector.load %arg2[%c1_25, %c0_26, %c0_27] : memref<4x128x64xbf16, #tpu.memory_space<vmem>>, vector<1x128x64xbf16>
    %19 = vector.shape_cast %18 : vector<1x128x64xbf16> to vector<128x64xbf16>
    %cst_28 = arith.constant dense<0.000000e+00> : vector<64x64xf32>
    %20 = tpu.matmul %16, %19, %cst_28 {dimension_numbers = #tpu.dot_dimension_numbers<[1], [0], [0], [1], [0, 0, 1, 1], [], []>} : vector<64x128xbf16>, vector<128x64xbf16>, vector<64x64xf32> -> vector<64x64xf32>
    %21 = arith.addf %17, %20 : vector<64x64xf32>
    %c0_29 = arith.constant 0 : index
    %c0_30 = arith.constant 0 : index
    %22 = vector.load %arg6[%c0_29, %c0_30] : memref<64x64xf32, #tpu.memory_space<vmem>>, vector<64x64xf32>
    tpu.vector_store %arg6[%c0_29, %c0_30], %21 {strides = array<i32>} : memref<64x64xf32, #tpu.memory_space<vmem>>, vector<64x64xf32>,
    %c1_31 = arith.constant 1 : index
    %c15_32 = arith.constant 15 : index
    %c0_33 = arith.constant 0 : index
    %23 = vector.load %arg5[%c1_31, %c15_32, %c0_33] : memref<5x32x128xbf16, #tpu.memory_space<vmem>>, vector<4x16x128xbf16>
    %24 = vector.shape_cast %23 : vector<4x16x128xbf16> to vector<64x128xbf16>
    %c0_34 = arith.constant 0 : index
    %c0_35 = arith.constant 0 : index
    %25 = vector.load %arg6[%c0_34, %c0_35] : memref<64x64xf32, #tpu.memory_space<vmem>>, vector<64x64xf32>
    %c2 = arith.constant 2 : index
    %c0_36 = arith.constant 0 : index
    %c0_37 = arith.constant 0 : index
    %26 = vector.load %arg2[%c2, %c0_36, %c0_37] : memref<4x128x64xbf16, #tpu.memory_space<vmem>>, vector<1x128x64xbf16>
    %27 = vector.shape_cast %26 : vector<1x128x64xbf16> to vector<128x64xbf16>
    %cst_38 = arith.constant dense<0.000000e+00> : vector<64x64xf32>
    %28 = tpu.matmul %24, %27, %cst_38 {dimension_numbers = #tpu.dot_dimension_numbers<[1], [0], [0], [1], [0, 0, 1, 1], [], []>} : vector<64x128xbf16>, vector<128x64xbf16>, vector<64x64xf32> -> vector<64x64xf32>
    %29 = arith.addf %25, %28 : vector<64x64xf32>
    %c0_39 = arith.constant 0 : index
    %c0_40 = arith.constant 0 : index
    %30 = vector.load %arg6[%c0_39, %c0_40] : memref<64x64xf32, #tpu.memory_space<vmem>>, vector<64x64xf32>
    tpu.vector_store %arg6[%c0_39, %c0_40], %29 {strides = array<i32>} : memref<64x64xf32, #tpu.memory_space<vmem>>, vector<64x64xf32>,
    %c1_41 = arith.constant 1 : index
    %c16_42 = arith.constant 16 : index
    %c0_43 = arith.constant 0 : index
    %31 = vector.load %arg5[%c1_41, %c16_42, %c0_43] : memref<5x32x128xbf16, #tpu.memory_space<vmem>>, vector<4x16x128xbf16>
    %32 = vector.shape_cast %31 : vector<4x16x128xbf16> to vector<64x128xbf16>
    %c0_44 = arith.constant 0 : index
    %c0_45 = arith.constant 0 : index
    %33 = vector.load %arg6[%c0_44, %c0_45] : memref<64x64xf32, #tpu.memory_space<vmem>>, vector<64x64xf32>
    %c3 = arith.constant 3 : index
    %c0_46 = arith.constant 0 : index
    %c0_47 = arith.constant 0 : index
    %34 = vector.load %arg2[%c3, %c0_46, %c0_47] : memref<4x128x64xbf16, #tpu.memory_space<vmem>>, vector<1x128x64xbf16>
    %35 = vector.shape_cast %34 : vector<1x128x64xbf16> to vector<128x64xbf16>
    %cst_48 = arith.constant dense<0.000000e+00> : vector<64x64xf32>
    %36 = tpu.matmul %32, %35, %cst_48 {dimension_numbers = #tpu.dot_dimension_numbers<[1], [0], [0], [1], [0, 0, 1, 1], [], []>} : vector<64x128xbf16>, vector<128x64xbf16>, vector<64x64xf32> -> vector<64x64xf32>
    %37 = arith.addf %33, %36 : vector<64x64xf32>
    %c0_49 = arith.constant 0 : index
    %c0_50 = arith.constant 0 : index
    %38 = vector.load %arg6[%c0_49, %c0_50] : memref<64x64xf32, #tpu.memory_space<vmem>>, vector<64x64xf32>
    tpu.vector_store %arg6[%c0_49, %c0_50], %37 {strides = array<i32>} : memref<64x64xf32, #tpu.memory_space<vmem>>, vector<64x64xf32>,
    %c0_51 = arith.constant 0 : index
    %c0_52 = arith.constant 0 : index
    %39 = vector.load %arg6[%c0_51, %c0_52] : memref<64x64xf32, #tpu.memory_space<vmem>>, vector<64x64xf32>
    %c0_53 = arith.constant 0 : index
    %c0_54 = arith.constant 0 : index
    %40 = vector.load %arg3[%c0_53, %c0_54] : memref<1x64xf32, #tpu.memory_space<vmem>>, vector<1x64xf32>
    %41 = vector.broadcast %40 : vector<1x64xf32> to vector<64x64xf32>
    %42 = arith.addf %39, %41 : vector<64x64xf32>
    %cst_55 = arith.constant 0.000000e+00 : f32
    %43 = vector.broadcast %cst_55 : f32 to vector<64x64xf32>
    %44 = arith.maximumf %42, %43 : vector<64x64xf32>
    %45 = vector.shape_cast %44 : vector<64x64xf32> to vector<4x16x64xf32>
    %46 = vector.extract_strided_slice %45 {offsets = [0, 0, 0], sizes = [4, 4, 64], strides = [1, 1, 1]} : vector<4x16x64xf32> to vector<4x4x64xf32>
    %47 = arith.truncf %46 : vector<4x4x64xf32> to vector<4x4x64xbf16>
    %c0_56 = arith.constant 0 : index
    %c0_57 = arith.constant 0 : index
    %c0_58 = arith.constant 0 : index
    %c0_59 = arith.constant 0 : index
    %48 = vector.load %arg4[%c0_56, %c0_57, %c0_58, %c0_59] : memref<1x4x4x64xbf16, #tpu.memory_space<vmem>>, vector<1x4x4x64xbf16>
    %49 = vector.shape_cast %48 : vector<1x4x4x64xbf16> to vector<4x4x64xbf16>
    %50 = vector.shape_cast %47 : vector<4x4x64xbf16> to vector<1x4x4x64xbf16>
    tpu.vector_store %arg4[%c0_56, %c0_57, %c0_58, %c0_59], %50 {strides = array<i32>} : memref<1x4x4x64xbf16, #tpu.memory_space<vmem>>, vector<1x4x4x64xbf16>,
    return
  }
  func.func @transform_0(%arg0: i32) -> (i32, i32, i32, i32) {
    %c0_i32 = arith.constant 0 : i32
    %c0_i32_0 = arith.constant 0 : i32
    %c0_i32_1 = arith.constant 0 : i32
    %c0_i32_2 = arith.constant 0 : i32
    return %arg0, %c0_i32, %c0_i32_0, %c0_i32_1 : i32, i32, i32, i32
  }
  func.func @transform_1(%arg0: i32) -> (i32, i32, i32) {
    %c0_i32 = arith.constant 0 : i32
    %c0_i32_0 = arith.constant 0 : i32
    %c0_i32_1 = arith.constant 0 : i32
    %c0_i32_2 = arith.constant 0 : i32
    return %c0_i32, %c0_i32_0, %c0_i32_1 : i32, i32, i32
  }
  func.func @transform_2(%arg0: i32) -> (i32, i32) {
    %c0_i32 = arith.constant 0 : i32
    %c0_i32_0 = arith.constant 0 : i32
    %c0_i32_1 = arith.constant 0 : i32
    return %c0_i32, %c0_i32_0 : i32, i32
  }
  func.func @transform_3(%arg0: i32) -> (i32, i32, i32, i32) {
    %c0_i32 = arith.constant 0 : i32
    %c0_i32_0 = arith.constant 0 : i32
    %c0_i32_1 = arith.constant 0 : i32
    %c0_i32_2 = arith.constant 0 : i32
    return %arg0, %c0_i32, %c0_i32_0, %c0_i32_1 : i32, i32, i32, i32
  }
}

module attributes {stable_mosaic.version = 11 : i64} {
  func.func @_conv_relu_kernel(%arg0: i32, %arg1: memref<1x2x2x256xbf16, #tpu.memory_space<vmem>>, %arg2: memref<4x256x32xbf16, #tpu.memory_space<vmem>>, %arg3: memref<1x32xf32, #tpu.memory_space<vmem>>, %arg4: memref<1x2x2x32xf32, #tpu.memory_space<vmem>>, %arg5: memref<3x32x256xbf16, #tpu.memory_space<vmem>>, %arg6: memref<32x32xf32, #tpu.memory_space<vmem>>) attributes {dimension_semantics = [#tpu.dimension_semantics<parallel>], iteration_bounds = array<i64: 2>, scalar_prefetch = 0 : i64, scratch_operands = 2 : i64, tpu.core_type = #tpu.core_type<tc>, window_params = [{transform_indices = @transform_0, window_bounds = array<i64: 1, 2, 2, 256>}, {pipeline_mode = #tpu.pipeline_mode<synchronous>, transform_indices = @transform_1, window_bounds = array<i64: 4, 256, 32>}, {pipeline_mode = #tpu.pipeline_mode<synchronous>, transform_indices = @transform_2, window_bounds = array<i64: 1, 32>}, {transform_indices = @transform_3, window_bounds = array<i64: 1, 2, 2, 32>}]} {
    %cst = arith.constant 0.000000e+00 : bf16
    %0 = vector.broadcast %cst : bf16 to vector<3x32x256xbf16>
    %c0 = arith.constant 0 : index
    %c0_0 = arith.constant 0 : index
    %c0_1 = arith.constant 0 : index
    %1 = vector.load %arg5[%c0, %c0_0, %c0_1] : memref<3x32x256xbf16, #tpu.memory_space<vmem>>, vector<3x32x256xbf16>
    tpu.vector_store %arg5[%c0, %c0_0, %c0_1], %0 {strides = array<i32>} : memref<3x32x256xbf16, #tpu.memory_space<vmem>>, vector<3x32x256xbf16>,
    %c0_2 = arith.constant 0 : index
    %c0_3 = arith.constant 0 : index
    %c0_4 = arith.constant 0 : index
    %c0_5 = arith.constant 0 : index
    %2 = vector.load %arg1[%c0_2, %c0_3, %c0_4, %c0_5] : memref<1x2x2x256xbf16, #tpu.memory_space<vmem>>, vector<1x2x2x256xbf16>
    %3 = vector.shape_cast %2 : vector<1x2x2x256xbf16> to vector<2x2x256xbf16>
    %c1 = arith.constant 1 : index
    %c16 = arith.constant 16 : index
    %c0_6 = arith.constant 0 : index
    %4 = vector.load %arg5[%c1, %c16, %c0_6] : memref<3x32x256xbf16, #tpu.memory_space<vmem>>, vector<2x2x256xbf16>
    tpu.vector_store %arg5[%c1, %c16, %c0_6], %3 {strides = array<i32>} : memref<3x32x256xbf16, #tpu.memory_space<vmem>>, vector<2x2x256xbf16>,
    %cst_7 = arith.constant 0.000000e+00 : f32
    %5 = vector.broadcast %cst_7 : f32 to vector<32x32xf32>
    %c0_8 = arith.constant 0 : index
    %c0_9 = arith.constant 0 : index
    %6 = vector.load %arg6[%c0_8, %c0_9] : memref<32x32xf32, #tpu.memory_space<vmem>>, vector<32x32xf32>
    tpu.vector_store %arg6[%c0_8, %c0_9], %5 {strides = array<i32>} : memref<32x32xf32, #tpu.memory_space<vmem>>, vector<32x32xf32>,
    %c0_10 = arith.constant 0 : index
    %c15 = arith.constant 15 : index
    %c0_11 = arith.constant 0 : index
    %7 = vector.load %arg5[%c0_10, %c15, %c0_11] : memref<3x32x256xbf16, #tpu.memory_space<vmem>>, vector<2x16x256xbf16>
    %8 = vector.shape_cast %7 : vector<2x16x256xbf16> to vector<32x256xbf16>
    %c0_12 = arith.constant 0 : index
    %c0_13 = arith.constant 0 : index
    %9 = vector.load %arg6[%c0_12, %c0_13] : memref<32x32xf32, #tpu.memory_space<vmem>>, vector<32x32xf32>
    %c0_14 = arith.constant 0 : index
    %c0_15 = arith.constant 0 : index
    %c0_16 = arith.constant 0 : index
    %10 = vector.load %arg2[%c0_14, %c0_15, %c0_16] : memref<4x256x32xbf16, #tpu.memory_space<vmem>>, vector<1x256x32xbf16>
    %11 = vector.shape_cast %10 : vector<1x256x32xbf16> to vector<256x32xbf16>
    %cst_17 = arith.constant dense<0.000000e+00> : vector<32x32xf32>
    %12 = tpu.matmul %8, %11, %cst_17 {dimension_numbers = #tpu.dot_dimension_numbers<[1], [0], [0], [1], [0, 0, 1, 1], [], []>} : vector<32x256xbf16>, vector<256x32xbf16>, vector<32x32xf32> -> vector<32x32xf32>
    %13 = arith.addf %9, %12 : vector<32x32xf32>
    %c0_18 = arith.constant 0 : index
    %c0_19 = arith.constant 0 : index
    %14 = vector.load %arg6[%c0_18, %c0_19] : memref<32x32xf32, #tpu.memory_space<vmem>>, vector<32x32xf32>
    tpu.vector_store %arg6[%c0_18, %c0_19], %13 {strides = array<i32>} : memref<32x32xf32, #tpu.memory_space<vmem>>, vector<32x32xf32>,
    %c0_20 = arith.constant 0 : index
    %c16_21 = arith.constant 16 : index
    %c0_22 = arith.constant 0 : index
    %15 = vector.load %arg5[%c0_20, %c16_21, %c0_22] : memref<3x32x256xbf16, #tpu.memory_space<vmem>>, vector<2x16x256xbf16>
    %16 = vector.shape_cast %15 : vector<2x16x256xbf16> to vector<32x256xbf16>
    %c0_23 = arith.constant 0 : index
    %c0_24 = arith.constant 0 : index
    %17 = vector.load %arg6[%c0_23, %c0_24] : memref<32x32xf32, #tpu.memory_space<vmem>>, vector<32x32xf32>
    %c1_25 = arith.constant 1 : index
    %c0_26 = arith.constant 0 : index
    %c0_27 = arith.constant 0 : index
    %18 = vector.load %arg2[%c1_25, %c0_26, %c0_27] : memref<4x256x32xbf16, #tpu.memory_space<vmem>>, vector<1x256x32xbf16>
    %19 = vector.shape_cast %18 : vector<1x256x32xbf16> to vector<256x32xbf16>
    %cst_28 = arith.constant dense<0.000000e+00> : vector<32x32xf32>
    %20 = tpu.matmul %16, %19, %cst_28 {dimension_numbers = #tpu.dot_dimension_numbers<[1], [0], [0], [1], [0, 0, 1, 1], [], []>} : vector<32x256xbf16>, vector<256x32xbf16>, vector<32x32xf32> -> vector<32x32xf32>
    %21 = arith.addf %17, %20 : vector<32x32xf32>
    %c0_29 = arith.constant 0 : index
    %c0_30 = arith.constant 0 : index
    %22 = vector.load %arg6[%c0_29, %c0_30] : memref<32x32xf32, #tpu.memory_space<vmem>>, vector<32x32xf32>
    tpu.vector_store %arg6[%c0_29, %c0_30], %21 {strides = array<i32>} : memref<32x32xf32, #tpu.memory_space<vmem>>, vector<32x32xf32>,
    %c1_31 = arith.constant 1 : index
    %c15_32 = arith.constant 15 : index
    %c0_33 = arith.constant 0 : index
    %23 = vector.load %arg5[%c1_31, %c15_32, %c0_33] : memref<3x32x256xbf16, #tpu.memory_space<vmem>>, vector<2x16x256xbf16>
    %24 = vector.shape_cast %23 : vector<2x16x256xbf16> to vector<32x256xbf16>
    %c0_34 = arith.constant 0 : index
    %c0_35 = arith.constant 0 : index
    %25 = vector.load %arg6[%c0_34, %c0_35] : memref<32x32xf32, #tpu.memory_space<vmem>>, vector<32x32xf32>
    %c2 = arith.constant 2 : index
    %c0_36 = arith.constant 0 : index
    %c0_37 = arith.constant 0 : index
    %26 = vector.load %arg2[%c2, %c0_36, %c0_37] : memref<4x256x32xbf16, #tpu.memory_space<vmem>>, vector<1x256x32xbf16>
    %27 = vector.shape_cast %26 : vector<1x256x32xbf16> to vector<256x32xbf16>
    %cst_38 = arith.constant dense<0.000000e+00> : vector<32x32xf32>
    %28 = tpu.matmul %24, %27, %cst_38 {dimension_numbers = #tpu.dot_dimension_numbers<[1], [0], [0], [1], [0, 0, 1, 1], [], []>} : vector<32x256xbf16>, vector<256x32xbf16>, vector<32x32xf32> -> vector<32x32xf32>
    %29 = arith.addf %25, %28 : vector<32x32xf32>
    %c0_39 = arith.constant 0 : index
    %c0_40 = arith.constant 0 : index
    %30 = vector.load %arg6[%c0_39, %c0_40] : memref<32x32xf32, #tpu.memory_space<vmem>>, vector<32x32xf32>
    tpu.vector_store %arg6[%c0_39, %c0_40], %29 {strides = array<i32>} : memref<32x32xf32, #tpu.memory_space<vmem>>, vector<32x32xf32>,
    %c1_41 = arith.constant 1 : index
    %c16_42 = arith.constant 16 : index
    %c0_43 = arith.constant 0 : index
    %31 = vector.load %arg5[%c1_41, %c16_42, %c0_43] : memref<3x32x256xbf16, #tpu.memory_space<vmem>>, vector<2x16x256xbf16>
    %32 = vector.shape_cast %31 : vector<2x16x256xbf16> to vector<32x256xbf16>
    %c0_44 = arith.constant 0 : index
    %c0_45 = arith.constant 0 : index
    %33 = vector.load %arg6[%c0_44, %c0_45] : memref<32x32xf32, #tpu.memory_space<vmem>>, vector<32x32xf32>
    %c3 = arith.constant 3 : index
    %c0_46 = arith.constant 0 : index
    %c0_47 = arith.constant 0 : index
    %34 = vector.load %arg2[%c3, %c0_46, %c0_47] : memref<4x256x32xbf16, #tpu.memory_space<vmem>>, vector<1x256x32xbf16>
    %35 = vector.shape_cast %34 : vector<1x256x32xbf16> to vector<256x32xbf16>
    %cst_48 = arith.constant dense<0.000000e+00> : vector<32x32xf32>
    %36 = tpu.matmul %32, %35, %cst_48 {dimension_numbers = #tpu.dot_dimension_numbers<[1], [0], [0], [1], [0, 0, 1, 1], [], []>} : vector<32x256xbf16>, vector<256x32xbf16>, vector<32x32xf32> -> vector<32x32xf32>
    %37 = arith.addf %33, %36 : vector<32x32xf32>
    %c0_49 = arith.constant 0 : index
    %c0_50 = arith.constant 0 : index
    %38 = vector.load %arg6[%c0_49, %c0_50] : memref<32x32xf32, #tpu.memory_space<vmem>>, vector<32x32xf32>
    tpu.vector_store %arg6[%c0_49, %c0_50], %37 {strides = array<i32>} : memref<32x32xf32, #tpu.memory_space<vmem>>, vector<32x32xf32>,
    %c0_51 = arith.constant 0 : index
    %c0_52 = arith.constant 0 : index
    %39 = vector.load %arg6[%c0_51, %c0_52] : memref<32x32xf32, #tpu.memory_space<vmem>>, vector<32x32xf32>
    %c0_53 = arith.constant 0 : index
    %c0_54 = arith.constant 0 : index
    %40 = vector.load %arg3[%c0_53, %c0_54] : memref<1x32xf32, #tpu.memory_space<vmem>>, vector<1x32xf32>
    %41 = vector.broadcast %40 : vector<1x32xf32> to vector<32x32xf32>
    %42 = arith.addf %39, %41 : vector<32x32xf32>
    %cst_55 = arith.constant 0.000000e+00 : f32
    %43 = vector.broadcast %cst_55 : f32 to vector<32x32xf32>
    %44 = arith.maximumf %42, %43 : vector<32x32xf32>
    %45 = vector.shape_cast %44 : vector<32x32xf32> to vector<2x16x32xf32>
    %46 = vector.extract_strided_slice %45 {offsets = [0, 0, 0], sizes = [2, 2, 32], strides = [1, 1, 1]} : vector<2x16x32xf32> to vector<2x2x32xf32>
    %c0_56 = arith.constant 0 : index
    %c0_57 = arith.constant 0 : index
    %c0_58 = arith.constant 0 : index
    %c0_59 = arith.constant 0 : index
    %47 = vector.load %arg4[%c0_56, %c0_57, %c0_58, %c0_59] : memref<1x2x2x32xf32, #tpu.memory_space<vmem>>, vector<1x2x2x32xf32>
    %48 = vector.shape_cast %47 : vector<1x2x2x32xf32> to vector<2x2x32xf32>
    %49 = vector.shape_cast %46 : vector<2x2x32xf32> to vector<1x2x2x32xf32>
    tpu.vector_store %arg4[%c0_56, %c0_57, %c0_58, %c0_59], %49 {strides = array<i32>} : memref<1x2x2x32xf32, #tpu.memory_space<vmem>>, vector<1x2x2x32xf32>,
    return
  }
  func.func @transform_0(%arg0: i32) -> (i32, i32, i32, i32) {
    %c0_i32 = arith.constant 0 : i32
    %c0_i32_0 = arith.constant 0 : i32
    %c0_i32_1 = arith.constant 0 : i32
    %c0_i32_2 = arith.constant 0 : i32
    return %arg0, %c0_i32, %c0_i32_0, %c0_i32_1 : i32, i32, i32, i32
  }
  func.func @transform_1(%arg0: i32) -> (i32, i32, i32) {
    %c0_i32 = arith.constant 0 : i32
    %c0_i32_0 = arith.constant 0 : i32
    %c0_i32_1 = arith.constant 0 : i32
    %c0_i32_2 = arith.constant 0 : i32
    return %c0_i32, %c0_i32_0, %c0_i32_1 : i32, i32, i32
  }
  func.func @transform_2(%arg0: i32) -> (i32, i32) {
    %c0_i32 = arith.constant 0 : i32
    %c0_i32_0 = arith.constant 0 : i32
    %c0_i32_1 = arith.constant 0 : i32
    return %c0_i32, %c0_i32_0 : i32, i32
  }
  func.func @transform_3(%arg0: i32) -> (i32, i32, i32, i32) {
    %c0_i32 = arith.constant 0 : i32
    %c0_i32_0 = arith.constant 0 : i32
    %c0_i32_1 = arith.constant 0 : i32
    %c0_i32_2 = arith.constant 0 : i32
    return %arg0, %c0_i32, %c0_i32_0, %c0_i32_1 : i32, i32, i32, i32
  }
}

</mosaic_0001>

<bundles_post_ra>
// kernel: encoder_forward.5
= control target key start
LH: loop header
LB: loop body
LE: loop exit
PB: predicated region body
PF: predicated region fallthrough
CT: control target
= control target key end

     0   :  { %s1663_s12 = smov 0   ;;  %s2007_s0 = inlined_call_operand.vmem [shape: bf16[2,8,8,64], index: 0, kind: input, shape index: {}]   ;;  %s2008_s1 = inlined_call_operand.vmem [shape: bf16[4,64,32], index: 1, kind: input, shape index: {}]   ;;  %s2009_s2 = inlined_call_operand.vmem [shape: f32[1,32], index: 2, kind: input, shape index: {}]   ;;  %s2010_s3 = inlined_call_operand.vmem [shape: bf16[2,8,8,32], index: 3, kind: output, shape index: {}]  }
   0x1 LB: > { %s1377_s13 = sadd.s32 4294967295, %s1639_s12   ;;  %p1381_p0 = scmp.ge.s32.totalorder %s1639_s12, 1  ;;  %s1639_s12 = sphi %s1663_s12, %s13_s12  }
   0x2   : > { %p137_p1 = scmp.lt.s32.totalorder %s1639_s12, 3 }
   0x4   : > { %p138_p2 = pnand %p1381_p0, %p137_p1 }
   0x5   : > { %v1617_v0 = vld [vmem:[%s2008_s1] sm:$0xff] (!%p138_p2)   ;;  %vm172_vm0 = vcmask (!%p138_p2), 523264   ;;  %v1618_v1 = vld [vmem:[%s2008_s1 + $0x8] sm:$0xff] (!%p138_p2)   ;;  %v1641_v2 = vmov (!%p138_p2), 0   ;;  %p161_p3 = scmp.lt.s32.totalorder (!%p138_p2), %s1377_s13, 1  ;;  %v1619_v4 = vld [vmem:[%s2008_s1 + $0x10] sm:$0xff] (!%p138_p2)  }
   0x6   : > { %141 = sbr.rel (%p138_p2) target bundleno = 334 (0x14e), region = 32  ;;  %1511 = vmatprep.subr.bf16.mxu0 (!%p138_p2), %v1617_v0  ;;  %173 = vst.msk [vmem:[#allocation2] sm:$0xff] (!%p138_p2), %vm172_vm0, %v1641_v2  ;;  %174 = vst.msk [vmem:[#allocation2 + $0x8] sm:$0xff] (!%p138_p2), %vm172_vm0, %v1641_v2  ;;  %v1620_v3 = vld [vmem:[%s2008_s1 + $0x20] sm:$0xff] (!%p138_p2)   ;;  %v1622_v5 = vld [vmem:[%s2008_s1 + $0x28] sm:$0xff] (!%p138_p2)   ;;  %vm200_vm1 = vcmask (!%p138_p2), 519168  }
   0x7   : > { %175 = vst.msk [vmem:[#allocation2 + $0x10] sm:$0xff] (!%p138_p2), %vm172_vm0, %v1641_v2  ;;  %176 = vst.msk [vmem:[#allocation2 + $0x18] sm:$0xff] (!%p138_p2), %vm172_vm0, %v1641_v2  ;;  %1512 = vmatpush3.bf16.msra.mxu0 (!%p138_p2), %v1617_v0  ;;  %1535 = vmatprep.subr.bf16.mxu1 (!%p138_p2), %v1620_v3  ;;  %vm209_vm2 = vcmask (!%p138_p2), 261120   ;;  %v1623_v6 = vld [vmem:[%s2008_s1 + $0x30] sm:$0xff] (!%p138_p2)   ;;  %v1621_v7 = vld [vmem:[%s2008_s1 + $0x18] sm:$0xff] (!%p138_p2)   ;;  %v1642_v11 = vmov (!%p138_p2), 0.0  }
   0x8   : > { %177 = vst.msk [vmem:[#allocation2 + $0x20] sm:$0xff] (!%p138_p2), %vm172_vm0, %v1641_v2  ;;  %178 = vst.msk [vmem:[#allocation2 + $0x28] sm:$0xff] (!%p138_p2), %vm172_vm0, %v1641_v2  ;;  %1513 = vmatprep.subr.bf16.mxu0 (!%p138_p2), %v1618_v1  ;;  %1536 = vmatpush3.bf16.msra.mxu1 (!%p138_p2), %v1620_v3  ;;  %vm242_vm3 = vsmask.f32 (!%p138_p2), 256  ;;  %v1625_v15 = vld [vmem:[%s2008_s1 + $0x38] sm:$0xff] (!%p138_p2)   ;;  %v1624_v19 = vld [vmem:[%s2008_s1 + $0x40] sm:$0xff] (!%p138_p2)  }
   0x9   : > { %179 = vst.msk [vmem:[#allocation2 + $0x30] sm:$0xff] (!%p138_p2), %vm172_vm0, %v1641_v2  ;;  %180 = vst.msk [vmem:[#allocation2 + $0x38] sm:$0xff] (!%p138_p2), %vm172_vm0, %v1641_v2  ;;  %1537 = vmatprep.subr.bf16.mxu1 (!%p138_p2), %v1622_v5  ;;  %v1627_v24 = vld [vmem:[%s2008_s1 + $0x60] sm:$0xff] (!%p138_p2)   ;;  %v1629_v34 = vld [vmem:[%s2008_s1 + $0x68] sm:$0xff] (!%p138_p2)   ;;  %vm1313_vm4 = vcmask (!%p138_p2), 257024  }
   0xa   : > { %181 = vst.msk [vmem:[#allocation2 + $0x40] sm:$0xff] (!%p138_p2), %vm172_vm0, %v1641_v2  ;;  %182 = vst.msk [vmem:[#allocation2 + $0x48] sm:$0xff] (!%p138_p2), %vm172_vm0, %v1641_v2  ;;  %v1626_v47 = vld [vmem:[%s2008_s1 + $0x48] sm:$0xff] (!%p138_p2)   ;;  %v1631_v53 = vld [vmem:[%s2008_s1 + $0x70] sm:$0xff] (!%p138_p2)  }
   0xb   : > { %183 = vst.msk [vmem:[#allocation2 + $0x50] sm:$0xff] (!%p138_p2), %vm172_vm0, %v1641_v2  ;;  %184 = vst.msk [vmem:[#allocation2 + $0x58] sm:$0xff] (!%p138_p2), %vm172_vm0, %v1641_v2  ;;  %1514 = vmatpush3.bf16.msra.mxu0 (!%p138_p2), %v1618_v1 }
   0xc   : > { %185 = vst.msk [vmem:[#allocation2 + $0x60] sm:$0xff] (!%p138_p2), %vm172_vm0, %v1641_v2  ;;  %186 = vst.msk [vmem:[#allocation2 + $0x68] sm:$0xff] (!%p138_p2), %vm172_vm0, %v1641_v2  ;;  %1515 = vmatprep.subr.bf16.mxu0 (!%p138_p2), %v1619_v4  ;;  %1538 = vmatpush3.bf16.msra.mxu1 (!%p138_p2), %v1622_v5 }
   0xd   : > { %187 = vst.msk [vmem:[#allocation2 + $0x70] sm:$0xff] %vm172_vm0, %v1641_v2  ;;  %188 = vst.msk [vmem:[#allocation2 + $0x78] sm:$0xff] %vm172_vm0, %v1641_v2  ;;  %s2012_s13 = smov (!%p161_p3, %s1377_s13), 1  ;;  %v226_v8 = vld [vmem:[#allocation2] sm:$0x80]  ;;  %v227_v9 = vld [vmem:[#allocation2 + $0x8] sm:$0xff]  ;;  %1539 = vmatprep.subr.bf16.mxu1 %v1623_v6 }
   0xe   : > { %189 = vst.msk [vmem:[#allocation2 + $0x80] sm:$0xff] %vm172_vm0, %v1641_v2  ;;  %190 = vst.msk [vmem:[#allocation2 + $0x88] sm:$0xff] %vm172_vm0, %v1641_v2  ;;  %s1461_s26 = sshll.u32 %s2012_s13, 5  ;;  %v244_v12 = vshrl.u32 %v226_v8, 16  ;;  %v248_v13 = vshrl.u32 %v227_v9, 16  ;;  %v251_v14 = vshll.u32 %v227_v9, 16  ;;  %1543 = vmatprep.mubr.msk.bf16.mxu1 %vm172_vm0, %v227_v9 }
   0xf   : > { %s1722_s4 = scalar_lea.vmem %s2007_s0, %s1461_s26  ;;  %212 = vst.msk [vmem:[#allocation3 + $0x10] sm:$0xff] %vm209_vm2, %v1642_v11  ;;  %210 = vst.msk [vmem:[#allocation3] sm:$0xff] %vm209_vm2, %v1642_v11  ;;  %1516 = vmatpush3.bf16.msra.mxu0 %v1619_v4  ;;  %v228_v20 = vld [vmem:[#allocation2 + $0x10] sm:$0x80]  ;;  %v230_v23 = vld [vmem:[#allocation2 + $0x20] sm:$0x80]  ;;  %s1963_s30 = scalar_lea.vmem %s2010_s3, %s1461_s26 }
  0x10   : > { %v191_v10 = vld [vmem:[%s1722_s4] sm:$0xf]  ;;  %211 = vst.msk [vmem:[#allocation3 + $0x8] sm:$0xff] %vm209_vm2, %v1642_v11  ;;  %213 = vst.msk [vmem:[#allocation3 + $0x18] sm:$0xff] %vm209_vm2, %v1642_v11  ;;  %v192_v16 = vld [vmem:[%s1722_s4 + $0x4] sm:$0xf]  ;;  %1517 = vmatprep.subr.bf16.mxu0 %v1621_v7  ;;  %1540 = vmatpush3.bf16.msra.mxu1 %v1623_v6 }
  0x11   : > { %214 = vst.msk [vmem:[#allocation3 + $0x20] sm:$0xff] %vm209_vm2, %v1642_v11  ;;  %215 = vst.msk [vmem:[#allocation3 + $0x28] sm:$0xff] %vm209_vm2, %v1642_v11  ;;  %v246_v17 = vrot.slane %v244_v12, 7  ;;  %v250_v18 = vrot.slane %v248_v13, 7  ;;  %v193_v21 = vld [vmem:[%s1722_s4 + $0x8] sm:$0xf]  ;;  %1541 = vmatprep.subr.bf16.mxu1 %v1625_v15 }
  0x12   : > { %216 = vst.msk [vmem:[#allocation3 + $0x30] sm:$0xff] %vm209_vm2, %v1642_v11  ;;  %217 = vst.msk [vmem:[#allocation3 + $0x38] sm:$0xff] %vm209_vm2, %v1642_v11  ;;  %v194_v25 = vld [vmem:[%s1722_s4 + $0xc] sm:$0xf]  ;;  %v256_v27 = vshrl.u32 %v228_v20, 16  ;;  %v268_v29 = vshrl.u32 %v230_v23, 16 }
  0x13   : > { %218 = vst.msk [vmem:[#allocation3 + $0x40] sm:$0xff] %vm209_vm2, %v1642_v11  ;;  %219 = vst.msk [vmem:[#allocation3 + $0x48] sm:$0xff] %vm209_vm2, %v1642_v11  ;;  %v253_v22 = vor.u32 %v251_v14, %v250_v18  ;;  %1518 = vmatpush3.bf16.msra.mxu0 %v1621_v7  ;;  %v232_v30 = vld [vmem:[#allocation2 + $0x30] sm:$0x80]  ;;  %v195_v31 = vld [vmem:[%s1722_s4 + $0x10] sm:$0xf] }
  0x14   : > { %220 = vst.msk [vmem:[#allocation3 + $0x50] sm:$0xff] %vm209_vm2, %v1642_v11  ;;  %221 = vst.msk [vmem:[#allocation3 + $0x58] sm:$0xff] %vm209_vm2, %v1642_v11  ;;  %1559 = vmatprep.subr.bf16.mxu0 %v1624_v19  ;;  %1542 = vmatpush3.bf16.msra.mxu1 %v1625_v15  ;;  %v234_v36 = vld [vmem:[#allocation2 + $0x40] sm:$0x80]  ;;  %v258_v37 = vrot.slane %v256_v27, 7  ;;  %v270_v42 = vrot.slane %v268_v29, 7 }
  0x15   : > { %222 = vst.msk [vmem:[#allocation3 + $0x60] sm:$0xff] %vm209_vm2, %v1642_v11  ;;  %223 = vst.msk [vmem:[#allocation3 + $0x68] sm:$0xff] %vm209_vm2, %v1642_v11  ;;  %v254_v26 = vsel %vm242_vm3, %v246_v17, %v253_v22  ;;  %1583 = vmatprep.subr.bf16.mxu1 %v1627_v24  ;;  %v196_v41 = vld [vmem:[%s1722_s4 + $0x14] sm:$0xf]  ;;  %v280_v44 = vshrl.u32 %v232_v30, 16  ;;  %v292_v51 = vshrl.u32 %v234_v36, 16 }
  0x16   : > { %224 = vst.msk [vmem:[#allocation3 + $0x70] sm:$0xff] %vm209_vm2, %v1642_v11  ;;  %225 = vst.msk [vmem:[#allocation3 + $0x78] sm:$0xff] %vm209_vm2, %v1642_v11  ;;  %1519 = vmatprep.mubr.msk.bf16.mxu0 %vm172_vm0, %v254_v26  ;;  %v197_v52 = vld [vmem:[%s1722_s4 + $0x18] sm:$0xf]  ;;  %v1628_v2 = vld [vmem:[%s2008_s1 + $0x50] sm:$0xff]  }
  0x17   : > { %201 = vst.msk [vmem:[#allocation2 + $0x18] sm:$0xf] %vm200_vm1, %v191_v10  ;;  %202 = vst.msk [vmem:[#allocation2 + $0x28] sm:$0xf] %vm200_vm1, %v192_v16  ;;  %v282_v58 = vrot.slane %v280_v44, 7  ;;  %v294_v1 = vrot.slane %v292_v51, 7 }
  0x18   : > { %203 = vst.msk [vmem:[#allocation2 + $0x38] sm:$0xf] %vm200_vm1, %v193_v21  ;;  %204 = vst.msk [vmem:[#allocation2 + $0x48] sm:$0xf] %vm200_vm1, %v194_v25  ;;  %v236_v3 = vld [vmem:[#allocation2 + $0x50] sm:$0x80] }
  0x19   : > { %205 = vst.msk [vmem:[#allocation2 + $0x58] sm:$0xf] %vm200_vm1, %v195_v31  ;;  %206 = vst.msk [vmem:[#allocation2 + $0x68] sm:$0xf] %vm200_vm1, %v196_v41  ;;  %v238_v5 = vld [vmem:[#allocation2 + $0x60] sm:$0x80] }
  0x1a   : > { %207 = vst.msk [vmem:[#allocation2 + $0x78] sm:$0xf] %vm200_vm1, %v197_v52  ;;  %v1632_v7 = vld [vmem:[%s2008_s1 + $0x78] sm:$0xff]   ;;  %v304_v10 = vshrl.u32 %v236_v3, 16  ;;  %v316_v15 = vshrl.u32 %v238_v5, 16 }
  0x1b   : > { %v1630_v13 = vld [vmem:[%s2008_s1 + $0x58] sm:$0xff]   ;;  %v240_v25 = vld [vmem:[#allocation2 + $0x70] sm:$0x80] }
  0x1c   : > { %v306_v20 = vrot.slane %v304_v10, 7  ;;  %v318_v23 = vrot.slane %v316_v15, 7  ;;  %v750_v26 = vld [vmem:[#allocation2 + $0x10] sm:$0x80]  ;;  %v328_v29 = vshrl.u32 %v240_v25, 16  ;;  %v345_v25 = vld [vmem:[#allocation3 + $0x30] sm:$0xff] }
  0x1e   : > { %v1760_v28 = vld [vmem:[#allocation2 + $0x18] sm:$0xff]  ;;  %v1769_v35 = vld [vmem:[#allocation2 + $0x28] sm:$0xff] }
  0x1f   : > { %v260_v32 = vshrl.u32 %v1760_v28, 16  ;;  %v263_v33 = vshll.u32 %v1760_v28, 16  ;;  %v272_v39 = vshrl.u32 %v1769_v35, 16  ;;  %v275_v40 = vshll.u32 %v1769_v35, 16  ;;  %1544 = vmatmul.mubr.msk.bf16.vlgmr.msra.gmra.mrb[0].mxu1 %vm172_vm0, %v1760_v28  ;;  %v1776_v43 = vld [vmem:[#allocation2 + $0x38] sm:$0xff]  ;;  %v1788_v50 = vld [vmem:[#allocation2 + $0x48] sm:$0xff] }
  0x20   : > { %v284_v48 = vshrl.u32 %v1776_v43, 16  ;;  %v287_v49 = vshll.u32 %v1776_v43, 16  ;;  %1584 = vmatpush3.bf16.msra.mxu1 %v1627_v24  ;;  %1547 = vmatprep.mubr.msk.bf16.mxu1 %vm172_vm0, %v1769_v35  ;;  %v296_v57 = vshrl.u32 %v1788_v50, 16  ;;  %v299_v59 = vshll.u32 %v1788_v50, 16  ;;  %v1802_v60 = vld [vmem:[#allocation2 + $0x58] sm:$0xff]  ;;  %v1815_v6 = vld [vmem:[#allocation2 + $0x68] sm:$0xff] }
  0x21   : > { %v262_v38 = vrot.slane %v260_v32, 7  ;;  %v274_v46 = vrot.slane %v272_v39, 7  ;;  %1585 = vmatprep.subr.bf16.mxu1 %v1629_v34  ;;  %v308_v0 = vshrl.u32 %v1802_v60, 16  ;;  %v320_v8 = vshrl.u32 %v1815_v6, 16  ;;  %v1834_v18 = vld [vmem:[#allocation2 + $0x78] sm:$0xff] }
  0x22   : > { %v286_v56 = vrot.slane %v284_v48, 7  ;;  %v298_v63 = vrot.slane %v296_v57, 7  ;;  %v311_v12 = vshll.u32 %v1802_v60, 16  ;;  %v323_v17 = vshll.u32 %v1815_v6, 16  ;;  %v754_v39 = vld [vmem:[#allocation2 + $0x30] sm:$0x80] }
  0x23   : > { %v1779_v45 = vor.u32 %v263_v33, %v262_v38  ;;  %v1796_v55 = vor.u32 %v275_v40, %v274_v46  ;;  %v310_v11 = vrot.slane %v308_v0, 7  ;;  %v322_v16 = vrot.slane %v320_v8, 7  ;;  %v752_v38 = vld [vmem:[#allocation2 + $0x20] sm:$0x80]  ;;  %v762_v57 = vld [vmem:[#allocation2 + $0x70] sm:$0x80] }
  0x24   : > { %v1806_v62 = vor.u32 %v287_v49, %v286_v56  ;;  %1586 = vmatpush3.bf16.msra.mxu1 %v1629_v34  ;;  %v1813_v4 = vor.u32 %v299_v59, %v298_v63  ;;  %v332_v22 = vshrl.u32 %v1834_v18, 16  ;;  %v335_v31 = vshll.u32 %v1834_v18, 16  ;;  %v756_v48 = vld [vmem:[#allocation2 + $0x40] sm:$0x80]  ;;  %v758_v49 = vld [vmem:[#allocation2 + $0x50] sm:$0x80] }
  0x25   : > { %v266_v54 = vsel %vm242_vm3, %v258_v37, %v1779_v45  ;;  %v278_v61 = vsel %vm242_vm3, %v270_v42, %v1796_v55  ;;  %1587 = vmatprep.subr.bf16.mxu1 %v1631_v53  ;;  %v313_v21 = vor.u32 %v311_v12, %v310_v11  ;;  %v325_v24 = vor.u32 %v323_v17, %v322_v16  ;;  %v760_v56 = vld [vmem:[#allocation2 + $0x60] sm:$0x80]  ;;  %v339_v11 = vld [vmem:[#allocation3] sm:$0xff]  ;;  %v340_v17 = vld [vmem:[#allocation3 + $0x8] sm:$0xff] }
  0x26   : > { %1520 = vmatmul.mubr.msk.bf16.vlgmr.msra.gmra.mrb[0].mxu0 %vm172_vm0, %v266_v54  ;;  %v290_v9 = vsel %vm242_vm3, %v282_v58, %v1806_v62  ;;  %v302_v14 = vsel %vm242_vm3, %v294_v1, %v1813_v4  ;;  %v334_v30 = vrot.slane %v332_v22, 7  ;;  %v767_v33 = vshrl.u32 %v750_v26, 16  ;;  %v764_v0 = vld [vmem:[#allocation2 + $0x80] sm:$0x80] }
  0x27   : > { %1560 = vmatpush3.bf16.msra.mxu0 %v1624_v19  ;;  %1523 = vmatprep.mubr.msk.bf16.mxu0 %vm172_vm0, %v278_v61  ;;  %v198_v19 = vld [vmem:[%s1722_s4 + $0x1c] sm:$0xf]  ;;  %v314_v27 = vsel %vm242_vm3, %v306_v20, %v313_v21  ;;  %v326_v32 = vsel %vm242_vm3, %v318_v23, %v325_v24  ;;  %v330_v34 = vrot.slane %v328_v29, 7  ;;  %v779_v41 = vshrl.u32 %v752_v38, 16 }
  0x28   : > { %1561 = vmatprep.subr.bf16.mxu0 %v1626_v47  ;;  %1548 = vmatmul.mubr.msk.bf16.gmra.mrb[4].mxu1 %vm172_vm0, %v1776_v43  ;;  %208 = vst.msk [vmem:[#allocation2 + $0x88] sm:$0xf] %vm200_vm1, %v198_v19  ;;  %v337_v36 = vor.u32 %v335_v31, %v334_v30  ;;  %v769_v37 = vrot.slane %v767_v33, 7  ;;  %v791_v44 = vshrl.u32 %v754_v39, 16  ;;  %v803_v52 = vshrl.u32 %v756_v48, 16  ;;  %v346_v31 = vld [vmem:[#allocation3 + $0x38] sm:$0xff] }
  0x29   : > { %1551 = vmatprep.mubr.msk.bf16.mxu1 %vm172_vm0, %v1788_v50  ;;  %1588 = vmatpush3.bf16.msra.mxu1 %v1631_v53  ;;  %v781_v46 = vrot.slane %v779_v41, 7  ;;  %v839_v58 = vshrl.u32 %v762_v57, 16  ;;  %v851_v1 = vshrl.u32 %v764_v0, 16 }
  0x2a   : > { %1589 = vmatprep.subr.bf16.mxu1 %v1632_v7  ;;  %v338_v40 = vsel %vm242_vm3, %v330_v34, %v337_v36  ;;  %v777_v42 = vsel %vm242_vm3, %v769_v37, %v1779_v45  ;;  %v815_v45 = vshrl.u32 %v758_v49, 16  ;;  %v805_v53 = vrot.slane %v803_v52, 7  ;;  %v344_v34 = vld [vmem:[#allocation3 + $0x28] sm:$0xff] }
  0x2b   : > { %1562 = vmatpush3.bf16.msra.mxu0 %v1626_v47  ;;  %v793_v47 = vrot.slane %v791_v44, 7  ;;  %v789_v51 = vsel %vm242_vm3, %v781_v46, %v1796_v55  ;;  %v827_v55 = vshrl.u32 %v760_v56, 16  ;;  %v841_v63 = vrot.slane %v839_v58, 7  ;;  %v348_v58 = vld [vmem:[#allocation3 + $0x48] sm:$0xff] }
  0x2c   : > { %1563 = vmatprep.subr.bf16.mxu0 %v1628_v2  ;;  %v817_v54 = vrot.slane %v815_v45, 7  ;;  %v349_v45 = vld [vmem:[#allocation3 + $0x50] sm:$0xff] }
  0x2d   : > { %1590 = vmatpush3.bf16.msra.mxu1 %v1632_v7  ;;  %v829_v61 = vrot.slane %v827_v55, 7  ;;  %v849_v3 = vsel %vm242_vm3, %v841_v63, %v337_v36 }
  0x2e   : > { %1524 = vmatmul.mubr.msk.bf16.gmra.mrb[4].mxu0 %vm172_vm0, %v290_v9  ;;  %v341_v9 = vld [vmem:[#allocation3 + $0x10] sm:$0xff] }
  0x2f   : > { %1527 = vmatprep.mubr.msk.bf16.mxu0 %vm172_vm0, %v302_v14  ;;  %1564 = vmatpush3.bf16.msra.mxu0 %v1628_v2  ;;  %v765_v59 = vld [vmem:[#allocation2 + $0x88] sm:$0xff] }
  0x30   : > { %1565 = vmatprep.subr.bf16.mxu0 %v1630_v13  ;;  %1552 = vmatmul.mubr.msk.bf16.gmra.mrb[8].mxu1 %vm172_vm0, %v1802_v60  ;;  %v342_v14 = vld [vmem:[#allocation3 + $0x18] sm:$0xff] }
  0x31   : > { %1555 = vmatprep.mubr.msk.bf16.mxu1 %vm172_vm0, %v1815_v6 }
  0x33   : > { %1566 = vmatpush3.bf16.msra.mxu0 %v1630_v13 }
  0x36   : > { %1528 = vmatmul.mubr.msk.bf16.gmra.mrb[8].mxu0 %vm172_vm0, %v314_v27  ;;  %v343_v27 = vld [vmem:[#allocation3 + $0x20] sm:$0xff] }
  0x37   : > { %1531 = vmatprep.mubr.msk.bf16.mxu0 %vm172_vm0, %v326_v32 }
  0x38   : > { %1556 = vmatmul.mubr.msk.bf16.gmra.mrb[12].mxu1 %vm172_vm0, %v1834_v18 }
  0x39   : > { %1591 = vmatprep.mubr.msk.bf16.mxu1 %vm172_vm0, %v1760_v28  ;;  %v801_v28 = vsel %vm242_vm3, %v793_v47, %v1806_v62  ;;  %v855_v62 = vshrl.u32 %v765_v59, 16 }
  0x3b   : > { %v857_v2 = vrot.slane %v855_v62, 7 }
  0x3e   : > { %1532 = vmatmul.mubr.msk.bf16.gmra.mrb[12].mxu0 %vm172_vm0, %v338_v40 }
  0x3f   : > { %1567 = vmatprep.mubr.msk.bf16.mxu0 %vm172_vm0, %v777_v42 }
  0x40   : > { %1592 = vmatmul.mubr.msk.bf16.vlgmr.msra.gmra.mrb[16].mxu1 %vm172_vm0, %v1769_v35  ;;  %v813_v35 = vsel %vm242_vm3, %v805_v53, %v1813_v4  ;;  %v853_v4 = vrot.slane %v851_v1, 7 }
  0x41   : > { %1595 = vmatprep.mubr.msk.bf16.mxu1 %vm172_vm0, %v1776_v43  ;;  %v825_v43 = vsel %vm242_vm3, %v817_v54, %v313_v21  ;;  %v347_v54 = vld [vmem:[#allocation3 + $0x40] sm:$0xff] }
  0x46   : > { %1568 = vmatmul.mubr.msk.bf16.vlgmr.msra.gmra.mrb[16].mxu0 %vm172_vm0, %v789_v51 }
  0x47   : > { %1571 = vmatprep.mubr.msk.bf16.mxu0 %vm172_vm0, %v801_v28 }
  0x48   : > { %1596 = vmatmul.mubr.msk.bf16.gmra.mrb[20].mxu1 %vm172_vm0, %v1788_v50  ;;  %v837_v50 = vsel %vm242_vm3, %v829_v61, %v325_v24 }
  0x49   : > { %1599 = vmatprep.mubr.msk.bf16.mxu1 %vm172_vm0, %v1802_v60  ;;  %v858_v60 = vshll.u32 %v765_v59, 16 }
  0x4b   : > { %v860_v5 = vor.u32 %v858_v60, %v857_v2 }
  0x4e   : > { %1572 = vmatmul.mubr.msk.bf16.gmra.mrb[20].mxu0 %vm172_vm0, %v813_v35  ;;  %v350_v35 = vld [vmem:[#allocation3 + $0x58] sm:$0xff] }
  0x4f   : > { %1575 = vmatprep.mubr.msk.bf16.mxu0 %vm172_vm0, %v825_v43 }
  0x50   : > { %1600 = vmatmul.mubr.msk.bf16.gmra.mrb[24].mxu1 %vm172_vm0, %v1815_v6  ;;  %v861_v6 = vsel %vm242_vm3, %v853_v4, %v860_v5 }
  0x51   : > { %1603 = vmatprep.mubr.msk.bf16.mxu1 %vm172_vm0, %v1834_v18 }
  0x56   : > { %1576 = vmatmul.mubr.msk.bf16.gmra.mrb[24].mxu0 %vm172_vm0, %v837_v50 }
  0x57   : > { %1579 = vmatprep.mubr.msk.bf16.mxu0 %vm172_vm0, %v849_v3 }
  0x58   : > { %1604 = vmatmul.mubr.msk.bf16.gmra.mrb[28].mxu1 %vm172_vm0, %v765_v59 }
  0x5e   : > { %1580 = vmatmul.mubr.msk.bf16.gmra.mrb[28].mxu0 %vm172_vm0, %v861_v6 }
  0xf2   : > { %v1545_v7 = vpop.f32.mrb[0].mxu1 }
  0xf3   : > { %v655_v8 = vpop.f32.mrb[1].mxu1 }
  0xf4   : > { %v1546_v10 = vpop.f32.mrb[2].mxu1 }
  0xf5   : > { %v658_v12 = vpop.f32.mrb[3].mxu1 }
  0xf9   : > { %v1521_v13 = vpop.f32.mrb[0].mxu0 }
  0xfa   : > { %v510_v15 = vadd.f32 %v1521_v13, %v341_v9  ;;  %v445_v16 = vpop.f32.mrb[1].mxu0  ;;  %v353_v9 = vld [vmem:[#allocation3 + $0x70] sm:$0xff] }
  0xfb   : > { %v508_v18 = vadd.f32 %v445_v16, %v339_v11  ;;  %v1522_v19 = vpop.f32.mrb[2].mxu0  ;;  %v1549_v23 = vpop.f32.mrb[4].mxu1  ;;  %v351_v11 = vld [vmem:[#allocation3 + $0x60] sm:$0xff] }
  0xfc   : > { %526 = vst.msk [vmem:[#allocation3 + $0x10] sm:$0xff] %vm209_vm2, %v510_v15  ;;  %v511_v20 = vadd.f32 %v1522_v19, %v342_v14  ;;  %v448_v21 = vpop.f32.mrb[3].mxu0  ;;  %v671_v24 = vpop.f32.mrb[5].mxu1  ;;  %v354_v14 = vld [vmem:[#allocation3 + $0x78] sm:$0xff] }
  0xfd   : > { %524 = vst.msk [vmem:[#allocation3] sm:$0xff] %vm209_vm2, %v508_v18  ;;  %v509_v22 = vadd.f32 %v448_v21, %v340_v17  ;;  %v1550_v26 = vpop.f32.mrb[6].mxu1  ;;  %v352_v17 = vld [vmem:[#allocation3 + $0x68] sm:$0xff] }
  0xfe   : > { %527 = vst.msk [vmem:[#allocation3 + $0x18] sm:$0xff] %vm209_vm2, %v511_v20  ;;  %v674_v29 = vpop.f32.mrb[7].mxu1 }
  0xff   : > { %525 = vst.msk [vmem:[#allocation3 + $0x8] sm:$0xff] %vm209_vm2, %v509_v22 }
 0x101   : > { %v1525_v30 = vpop.f32.mrb[4].mxu0 }
 0x102   : > { %v514_v32 = vadd.f32 %v1525_v30, %v345_v25  ;;  %v461_v33 = vpop.f32.mrb[5].mxu0 }
 0x103   : > { %v550_v36 = vld [vmem:[#allocation3 + $0x10] sm:$0xff]  ;;  %v512_v37 = vadd.f32 %v461_v33, %v343_v27  ;;  %v1526_v38 = vpop.f32.mrb[6].mxu0  ;;  %v1553_v48 = vpop.f32.mrb[8].mxu1 }
 0x104   : > { %v720_v39 = vadd.f32 %v1545_v7, %v550_v36  ;;  %530 = vst.msk [vmem:[#allocation3 + $0x30] sm:$0xff] %vm209_vm2, %v514_v32  ;;  %v548_v40 = vld [vmem:[#allocation3] sm:$0xff]  ;;  %v515_v41 = vadd.f32 %v1526_v38, %v346_v31  ;;  %v464_v42 = vpop.f32.mrb[7].mxu0  ;;  %v687_v52 = vpop.f32.mrb[9].mxu1 }
 0x105   : > { %v718_v44 = vadd.f32 %v655_v8, %v548_v40  ;;  %528 = vst.msk [vmem:[#allocation3 + $0x20] sm:$0xff] %vm209_vm2, %v512_v37  ;;  %v551_v46 = vld [vmem:[#allocation3 + $0x18] sm:$0xff]  ;;  %v513_v47 = vadd.f32 %v464_v42, %v344_v34  ;;  %v1554_v53 = vpop.f32.mrb[10].mxu1 }
 0x106   : > { %736 = vst.msk [vmem:[#allocation3 + $0x10] sm:$0xff] %vm209_vm2, %v720_v39  ;;  %v721_v49 = vadd.f32 %v1546_v10, %v551_v46  ;;  %531 = vst.msk [vmem:[#allocation3 + $0x38] sm:$0xff] %vm209_vm2, %v515_v41  ;;  %v549_v51 = vld [vmem:[#allocation3 + $0x8] sm:$0xff]  ;;  %v690_v56 = vpop.f32.mrb[11].mxu1 }
 0x107   : > { %734 = vst.msk [vmem:[#allocation3] sm:$0xff] %vm209_vm2, %v718_v44  ;;  %v719_v28 = vadd.f32 %v658_v12, %v549_v51  ;;  %529 = vst.msk [vmem:[#allocation3 + $0x28] sm:$0xff] %vm209_vm2, %v513_v47 }
 0x108   : > { %737 = vst.msk [vmem:[#allocation3 + $0x18] sm:$0xff] %vm209_vm2, %v721_v49 }
 0x109   : > { %735 = vst.msk [vmem:[#allocation3 + $0x8] sm:$0xff] %vm209_vm2, %v719_v28  ;;  %v1529_v57 = vpop.f32.mrb[8].mxu0 }
 0x10a   : > { %v518_v55 = vadd.f32 %v1529_v57, %v349_v45  ;;  %v477_v43 = vpop.f32.mrb[9].mxu0 }
 0x10b   : > { %v554_v59 = vld [vmem:[#allocation3 + $0x30] sm:$0xff]  ;;  %v516_v61 = vadd.f32 %v477_v43, %v347_v54  ;;  %v1530_v62 = vpop.f32.mrb[10].mxu0  ;;  %v1557_v4 = vpop.f32.mrb[12].mxu1 }
 0x10c   : > { %v724_v63 = vadd.f32 %v1549_v23, %v554_v59  ;;  %534 = vst.msk [vmem:[#allocation3 + $0x50] sm:$0xff] %vm209_vm2, %v518_v55  ;;  %v552_v0 = vld [vmem:[#allocation3 + $0x20] sm:$0xff]  ;;  %v519_v50 = vadd.f32 %v1530_v62, %v350_v35  ;;  %v480_v1 = vpop.f32.mrb[11].mxu0  ;;  %v703_v7 = vpop.f32.mrb[13].mxu1 }
 0x10d   : > { %v722_v2 = vadd.f32 %v671_v24, %v552_v0  ;;  %532 = vst.msk [vmem:[#allocation3 + $0x40] sm:$0xff] %vm209_vm2, %v516_v61  ;;  %v555_v60 = vld [vmem:[#allocation3 + $0x38] sm:$0xff]  ;;  %v517_v3 = vadd.f32 %v480_v1, %v348_v58  ;;  %v1558_v10 = vpop.f32.mrb[14].mxu1  ;;  %v864_v37 = vld [vmem:[#allocation3 + $0x10] sm:$0xff] }
 0x10e   : > { %740 = vst.msk [vmem:[#allocation3 + $0x30] sm:$0xff] %vm209_vm2, %v724_v63  ;;  %v725_v5 = vadd.f32 %v1550_v26, %v555_v60  ;;  %535 = vst.msk [vmem:[#allocation3 + $0x58] sm:$0xff] %vm209_vm2, %v519_v50  ;;  %v553_v6 = vld [vmem:[#allocation3 + $0x28] sm:$0xff]  ;;  %v706_v12 = vpop.f32.mrb[15].mxu1  ;;  %v862_v40 = vld [vmem:[#allocation3] sm:$0xff] }
 0x10f   : > { %738 = vst.msk [vmem:[#allocation3 + $0x20] sm:$0xff] %vm209_vm2, %v722_v2  ;;  %v723_v8 = vadd.f32 %v674_v29, %v553_v6  ;;  %533 = vst.msk [vmem:[#allocation3 + $0x48] sm:$0xff] %vm209_vm2, %v517_v3  ;;  %v865_v46 = vld [vmem:[#allocation3 + $0x18] sm:$0xff] }
 0x110   : > { %741 = vst.msk [vmem:[#allocation3 + $0x38] sm:$0xff] %vm209_vm2, %v725_v5 }
 0x111   : > { %739 = vst.msk [vmem:[#allocation3 + $0x28] sm:$0xff] %vm209_vm2, %v723_v8  ;;  %v1533_v13 = vpop.f32.mrb[12].mxu0 }
 0x112   : > { %v522_v15 = vadd.f32 %v1533_v13, %v353_v9  ;;  %v493_v16 = vpop.f32.mrb[13].mxu0 }
 0x113   : > { %v558_v18 = vld [vmem:[#allocation3 + $0x50] sm:$0xff]  ;;  %v520_v19 = vadd.f32 %v493_v16, %v351_v11  ;;  %v1534_v20 = vpop.f32.mrb[14].mxu0  ;;  %v1593_v29 = vpop.f32.mrb[16].mxu1 }
 0x114   : > { %v728_v21 = vadd.f32 %v1553_v48, %v558_v18  ;;  %538 = vst.msk [vmem:[#allocation3 + $0x70] sm:$0xff] %vm209_vm2, %v522_v15  ;;  %v556_v22 = vld [vmem:[#allocation3 + $0x40] sm:$0xff]  ;;  %v523_v23 = vadd.f32 %v1534_v20, %v354_v14  ;;  %v496_v24 = vpop.f32.mrb[15].mxu0  ;;  %v1179_v32 = vpop.f32.mrb[17].mxu1 }
 0x115   : > { %v726_v25 = vadd.f32 %v687_v52, %v556_v22  ;;  %536 = vst.msk [vmem:[#allocation3 + $0x60] sm:$0xff] %vm209_vm2, %v520_v19  ;;  %v559_v26 = vld [vmem:[#allocation3 + $0x58] sm:$0xff]  ;;  %v521_v27 = vadd.f32 %v496_v24, %v352_v17  ;;  %v1594_v34 = vpop.f32.mrb[18].mxu1  ;;  %v863_v52 = vld [vmem:[#allocation3 + $0x8] sm:$0xff]  ;;  %v868_v61 = vld [vmem:[#allocation3 + $0x30] sm:$0xff] }
 0x116   : > { %744 = vst.msk [vmem:[#allocation3 + $0x50] sm:$0xff] %vm209_vm2, %v728_v21  ;;  %v729_v30 = vadd.f32 %v1554_v53, %v559_v26  ;;  %539 = vst.msk [vmem:[#allocation3 + $0x78] sm:$0xff] %vm209_vm2, %v523_v23  ;;  %v557_v31 = vld [vmem:[#allocation3 + $0x48] sm:$0xff]  ;;  %v1182_v36 = vpop.f32.mrb[19].mxu1  ;;  %v866_v0 = vld [vmem:[#allocation3 + $0x20] sm:$0xff] }
 0x117   : > { %742 = vst.msk [vmem:[#allocation3 + $0x40] sm:$0xff] %vm209_vm2, %v726_v25  ;;  %v727_v33 = vadd.f32 %v690_v56, %v557_v31  ;;  %537 = vst.msk [vmem:[#allocation3 + $0x68] sm:$0xff] %vm209_vm2, %v521_v27  ;;  %v869_v60 = vld [vmem:[#allocation3 + $0x38] sm:$0xff]  ;;  %v1946_v24 = vld [vmem:[%s2009_s2] ss:$0 sm:$0xff] }
 0x118   : > { %745 = vst.msk [vmem:[#allocation3 + $0x58] sm:$0xff] %vm209_vm2, %v729_v30 }
 0x119   : > { %743 = vst.msk [vmem:[#allocation3 + $0x48] sm:$0xff] %vm209_vm2, %v727_v33  ;;  %v1569_v38 = vpop.f32.mrb[16].mxu0 }
 0x11a   : > { %v1034_v39 = vadd.f32 %v1569_v38, %v864_v37  ;;  %v969_v41 = vpop.f32.mrb[17].mxu0 }
 0x11b   : > { %v562_v42 = vld [vmem:[#allocation3 + $0x70] sm:$0xff]  ;;  %v1032_v44 = vadd.f32 %v969_v41, %v862_v40  ;;  %v1570_v47 = vpop.f32.mrb[18].mxu0  ;;  %v1597_v56 = vpop.f32.mrb[20].mxu1 }
 0x11c   : > { %v732_v48 = vadd.f32 %v1557_v4, %v562_v42  ;;  %v560_v49 = vld [vmem:[#allocation3 + $0x60] sm:$0xff]  ;;  %1050 = vst.msk [vmem:[#allocation3 + $0x10] sm:$0xff] %vm209_vm2, %v1034_v39  ;;  %v1035_v51 = vadd.f32 %v1570_v47, %v865_v46  ;;  %v972_v28 = vpop.f32.mrb[19].mxu0  ;;  %v1195_v55 = vpop.f32.mrb[21].mxu1 }
 0x11d   : > { %v730_v45 = vadd.f32 %v703_v7, %v560_v49  ;;  %v563_v53 = vld [vmem:[#allocation3 + $0x78] sm:$0xff]  ;;  %1048 = vst.msk [vmem:[#allocation3] sm:$0xff] %vm209_vm2, %v1032_v44  ;;  %v1033_v54 = vadd.f32 %v972_v28, %v863_v52  ;;  %v1598_v58 = vpop.f32.mrb[22].mxu1  ;;  %v867_v7 = vld [vmem:[#allocation3 + $0x28] sm:$0xff]  ;;  %v872_v19 = vld [vmem:[#allocation3 + $0x50] sm:$0xff] }
 0x11e   : > { %748 = vst.msk [vmem:[#allocation3 + $0x70] sm:$0xff] %vm209_vm2, %v732_v48  ;;  %v733_v57 = vadd.f32 %v1558_v10, %v563_v53  ;;  %v561_v35 = vld [vmem:[#allocation3 + $0x68] sm:$0xff]  ;;  %1051 = vst.msk [vmem:[#allocation3 + $0x18] sm:$0xff] %vm209_vm2, %v1035_v51  ;;  %v1924_v59 = vpop.f32.mrb[23].mxu1  ;;  %v870_v22 = vld [vmem:[#allocation3 + $0x40] sm:$0xff] }
 0x11f   : > { %746 = vst.msk [vmem:[#allocation3 + $0x60] sm:$0xff] %vm209_vm2, %v730_v45  ;;  %v731_v43 = vadd.f32 %v706_v12, %v561_v35  ;;  %1049 = vst.msk [vmem:[#allocation3 + $0x8] sm:$0xff] %vm209_vm2, %v1033_v54  ;;  %v873_v27 = vld [vmem:[#allocation3 + $0x58] sm:$0xff] }
 0x120   : > { %749 = vst.msk [vmem:[#allocation3 + $0x78] sm:$0xff] %vm209_vm2, %v733_v57  ;;  %v871_v33 = vld [vmem:[#allocation3 + $0x48] sm:$0xff] }
 0x121   : > { %747 = vst.msk [vmem:[#allocation3 + $0x68] sm:$0xff] %vm209_vm2, %v731_v43  ;;  %v1573_v62 = vpop.f32.mrb[20].mxu0 }
 0x122   : > { %v1038_v63 = vadd.f32 %v1573_v62, %v868_v61  ;;  %v985_v50 = vpop.f32.mrb[21].mxu0 }
 0x123   : > { %v1074_v1 = vld [vmem:[#allocation3 + $0x10] sm:$0xff]  ;;  %v1036_v2 = vadd.f32 %v985_v50, %v866_v0  ;;  %v1574_v3 = vpop.f32.mrb[22].mxu0  ;;  %v1929_v12 = vpop.f32.mrb[24].mxu1 }
 0x124   : > { %v1244_v4 = vadd.f32 %v1593_v29, %v1074_v1  ;;  %1054 = vst.msk [vmem:[#allocation3 + $0x30] sm:$0xff] %vm209_vm2, %v1038_v63  ;;  %v1072_v5 = vld [vmem:[#allocation3] sm:$0xff]  ;;  %v1039_v6 = vadd.f32 %v1574_v3, %v869_v60  ;;  %v988_v8 = vpop.f32.mrb[23].mxu0  ;;  %v1933_v15 = vpop.f32.mrb[25].mxu1 }
 0x125   : > { %v1242_v9 = vadd.f32 %v1179_v32, %v1072_v5  ;;  %1052 = vst.msk [vmem:[#allocation3 + $0x20] sm:$0xff] %vm209_vm2, %v1036_v2  ;;  %v1075_v10 = vld [vmem:[#allocation3 + $0x18] sm:$0xff]  ;;  %v1037_v11 = vadd.f32 %v988_v8, %v867_v7  ;;  %v1937_v17 = vpop.f32.mrb[26].mxu1  ;;  %v876_v53 = vld [vmem:[#allocation3 + $0x70] sm:$0xff] }
 0x126   : > { %1260 = vst.msk [vmem:[#allocation3 + $0x10] sm:$0xff] %vm209_vm2, %v1244_v4  ;;  %v1245_v13 = vadd.f32 %v1594_v34, %v1075_v10  ;;  %1055 = vst.msk [vmem:[#allocation3 + $0x38] sm:$0xff] %vm209_vm2, %v1039_v6  ;;  %v1073_v14 = vld [vmem:[#allocation3 + $0x8] sm:$0xff]  ;;  %v1940_v18 = vpop.f32.mrb[27].mxu1  ;;  %v874_v35 = vld [vmem:[#allocation3 + $0x60] sm:$0xff] }
 0x127   : > { %1258 = vst.msk [vmem:[#allocation3] sm:$0xff] %vm209_vm2, %v1242_v9  ;;  %v1243_v16 = vadd.f32 %v1182_v36, %v1073_v14  ;;  %1053 = vst.msk [vmem:[#allocation3 + $0x28] sm:$0xff] %vm209_vm2, %v1037_v11  ;;  %v877_v61 = vld [vmem:[#allocation3 + $0x78] sm:$0xff] }
 0x128   : > { %1261 = vst.msk [vmem:[#allocation3 + $0x18] sm:$0xff] %vm209_vm2, %v1245_v13  ;;  %v875_v1 = vld [vmem:[#allocation3 + $0x68] sm:$0xff] }
 0x129   : > { %1259 = vst.msk [vmem:[#allocation3 + $0x8] sm:$0xff] %vm209_vm2, %v1243_v16  ;;  %v1577_v20 = vpop.f32.mrb[24].mxu0 }
 0x12a   : > { %v1042_v21 = vadd.f32 %v1577_v20, %v872_v19  ;;  %v1001_v23 = vpop.f32.mrb[25].mxu0 }
 0x12b   : > { %v1078_v25 = vld [vmem:[#allocation3 + $0x30] sm:$0xff]  ;;  %v1040_v26 = vadd.f32 %v1001_v23, %v870_v22  ;;  %v1578_v29 = vpop.f32.mrb[26].mxu0  ;;  %v1605_v40 = vpop.f32.mrb[28].mxu1 }
 0x12c   : > { %v1248_v30 = vadd.f32 %v1597_v56, %v1078_v25  ;;  %1058 = vst.msk [vmem:[#allocation3 + $0x50] sm:$0xff] %vm209_vm2, %v1042_v21  ;;  %v1076_v31 = vld [vmem:[#allocation3 + $0x20] sm:$0xff]  ;;  %v1043_v32 = vadd.f32 %v1578_v29, %v873_v27  ;;  %v1004_v34 = vpop.f32.mrb[27].mxu0  ;;  %v1227_v47 = vpop.f32.mrb[29].mxu1 }
 0x12d   : > { %v1275_v36 = vld [vmem:[#allocation3 + $0x10] sm:$0xff]  ;;  %v1246_v37 = vadd.f32 %v1195_v55, %v1076_v31  ;;  %1056 = vst.msk [vmem:[#allocation3 + $0x40] sm:$0xff] %vm209_vm2, %v1040_v26  ;;  %v1079_v38 = vld [vmem:[#allocation3 + $0x38] sm:$0xff]  ;;  %v1041_v39 = vadd.f32 %v1004_v34, %v871_v33  ;;  %v1606_v51 = vpop.f32.mrb[30].mxu1 }
 0x12e   : > { %v1290_v41 = vadd.f32 %v1946_v24, %v1275_v36  ;;  %v1274_v42 = vld [vmem:[#allocation3] sm:$0xff]  ;;  %1264 = vst.msk [vmem:[#allocation3 + $0x30] sm:$0xff] %vm209_vm2, %v1248_v30  ;;  %v1249_v44 = vadd.f32 %v1598_v58, %v1079_v38  ;;  %1059 = vst.msk [vmem:[#allocation3 + $0x58] sm:$0xff] %vm209_vm2, %v1043_v32  ;;  %v1077_v46 = vld [vmem:[#allocation3 + $0x28] sm:$0xff]  ;;  %v1230_v28 = vpop.f32.mrb[31].mxu1 }
 0x12f   : > { %v1289_v48 = vadd.f32 %v1946_v24, %v1274_v42  ;;  %1262 = vst.msk [vmem:[#allocation3 + $0x20] sm:$0xff] %vm209_vm2, %v1246_v37  ;;  %v1247_v49 = vadd.f32 %v1924_v59, %v1077_v46  ;;  %1057 = vst.msk [vmem:[#allocation3 + $0x48] sm:$0xff] %vm209_vm2, %v1041_v39 }
 0x130   : > { %v1298_v52 = vmax.f32 %v1290_v41, 0.0  ;;  %1265 = vst.msk [vmem:[#allocation3 + $0x38] sm:$0xff] %vm209_vm2, %v1249_v44 }
 0x131   : > { %v1297_v45 = vmax.f32 %v1289_v48, 0.0  ;;  %1263 = vst.msk [vmem:[#allocation3 + $0x28] sm:$0xff] %vm209_vm2, %v1247_v49  ;;  %v1581_v54 = vpop.f32.mrb[28].mxu0 }
 0x132   : > { %v1306_v56 = vpack.c.bf16 %v1298_v52, %v1298_v52  ;;  %v1046_v57 = vadd.f32 %v1581_v54, %v876_v53  ;;  %v1017_v55 = vpop.f32.mrb[29].mxu0 }
 0x133   : > { %v1305_v43 = vpack.c.bf16 %v1297_v45, %v1297_v45  ;;  %v1082_v58 = vld [vmem:[#allocation3 + $0x50] sm:$0xff]  ;;  %v1044_v59 = vadd.f32 %v1017_v55, %v874_v35  ;;  %v1582_v62 = vpop.f32.mrb[30].mxu0 }
 0x134   : > { %1315 = vst.msk [vmem:[%s1963_s30 + $0x4] sm:$0xf] %vm1313_vm4, %v1306_v56  ;;  %v1252_v63 = vadd.f32 %v1929_v12, %v1082_v58  ;;  %v1080_v0 = vld [vmem:[#allocation3 + $0x40] sm:$0xff]  ;;  %v1047_v50 = vadd.f32 %v1582_v62, %v877_v61  ;;  %v1020_v2 = vpop.f32.mrb[31].mxu0 }
 0x135   : > { %1062 = vst.msk [vmem:[#allocation3 + $0x70] sm:$0xff] %vm209_vm2, %v1046_v57  ;;  %v1277_v60 = vld [vmem:[#allocation3 + $0x30] sm:$0xff]  ;;  %v1250_v3 = vadd.f32 %v1933_v15, %v1080_v0  ;;  %1060 = vst.msk [vmem:[#allocation3 + $0x60] sm:$0xff] %vm209_vm2, %v1044_v59  ;;  %v1083_v4 = vld [vmem:[#allocation3 + $0x58] sm:$0xff]  ;;  %v1045_v5 = vadd.f32 %v1020_v2, %v875_v1 }
 0x136   : > { %1314 = vst.msk [vmem:[%s1963_s30] sm:$0xf] %vm1313_vm4, %v1305_v43  ;;  %v1292_v6 = vadd.f32 %v1946_v24, %v1277_v60  ;;  %v1276_v7 = vld [vmem:[#allocation3 + $0x20] sm:$0xff]  ;;  %v1253_v8 = vadd.f32 %v1937_v17, %v1083_v4  ;;  %v1081_v9 = vld [vmem:[#allocation3 + $0x48] sm:$0xff] }
 0x137   : > { %1268 = vst.msk [vmem:[#allocation3 + $0x50] sm:$0xff] %vm209_vm2, %v1252_v63  ;;  %1063 = vst.msk [vmem:[#allocation3 + $0x78] sm:$0xff] %vm209_vm2, %v1047_v50  ;;  %v1291_v10 = vadd.f32 %v1946_v24, %v1276_v7  ;;  %v1251_v11 = vadd.f32 %v1940_v18, %v1081_v9 }
 0x138   : > { %1266 = vst.msk [vmem:[#allocation3 + $0x40] sm:$0xff] %vm209_vm2, %v1250_v3  ;;  %1061 = vst.msk [vmem:[#allocation3 + $0x68] sm:$0xff] %vm209_vm2, %v1045_v5  ;;  %v1300_v12 = vmax.f32 %v1292_v6, 0.0 }
 0x139   : > { %1269 = vst.msk [vmem:[#allocation3 + $0x58] sm:$0xff] %vm209_vm2, %v1253_v8  ;;  %v1299_v13 = vmax.f32 %v1291_v10, 0.0  ;;  %1267 = vst.msk [vmem:[#allocation3 + $0x48] sm:$0xff] %vm209_vm2, %v1251_v11 }
 0x13a   : > { %v1308_v14 = vpack.c.bf16 %v1300_v12, %v1300_v12 }
 0x13b   : > { %v1307_v15 = vpack.c.bf16 %v1299_v13, %v1299_v13 }
 0x13c   : > { %v1086_v16 = vld [vmem:[#allocation3 + $0x70] sm:$0xff]  ;;  %1317 = vst.msk [vmem:[%s1963_s30 + $0xc] sm:$0xf] %vm1313_vm4, %v1308_v14  ;;  %v1084_v19 = vld [vmem:[#allocation3 + $0x60] sm:$0xff] }
 0x13d   : > { %v1256_v17 = vadd.f32 %v1605_v40, %v1086_v16  ;;  %1316 = vst.msk [vmem:[%s1963_s30 + $0x8] sm:$0xf] %vm1313_vm4, %v1307_v15  ;;  %v1254_v21 = vadd.f32 %v1227_v47, %v1084_v19 }
 0x13e   : > { %v1279_v20 = vld [vmem:[#allocation3 + $0x50] sm:$0xff]  ;;  %v1087_v18 = vld [vmem:[#allocation3 + $0x78] sm:$0xff] }
 0x13f   : > { %v1294_v22 = vadd.f32 %v1946_v24, %v1279_v20  ;;  %v1278_v23 = vld [vmem:[#allocation3 + $0x40] sm:$0xff]  ;;  %1272 = vst.msk [vmem:[#allocation3 + $0x70] sm:$0xff] %vm209_vm2, %v1256_v17  ;;  %v1257_v25 = vadd.f32 %v1606_v51, %v1087_v18  ;;  %v1085_v26 = vld [vmem:[#allocation3 + $0x68] sm:$0xff]  ;;  %1270 = vst.msk [vmem:[#allocation3 + $0x60] sm:$0xff] %vm209_vm2, %v1254_v21 }
 0x140   : > { %v1293_v27 = vadd.f32 %v1946_v24, %v1278_v23  ;;  %v1255_v29 = vadd.f32 %v1230_v28, %v1085_v26 }
 0x141   : > { %v1302_v30 = vmax.f32 %v1294_v22, 0.0  ;;  %1273 = vst.msk [vmem:[#allocation3 + $0x78] sm:$0xff] %vm209_vm2, %v1257_v25 }
 0x142   : > { %v1301_v31 = vmax.f32 %v1293_v27, 0.0  ;;  %1271 = vst.msk [vmem:[#allocation3 + $0x68] sm:$0xff] %vm209_vm2, %v1255_v29 }
 0x143   : > { %v1310_v32 = vpack.c.bf16 %v1302_v30, %v1302_v30 }
 0x144   : > { %v1309_v33 = vpack.c.bf16 %v1301_v31, %v1301_v31 }
 0x145   : > { %1319 = vst.msk [vmem:[%s1963_s30 + $0x14] sm:$0xf] %vm1313_vm4, %v1310_v32 }
 0x146   : > { %1318 = vst.msk [vmem:[%s1963_s30 + $0x10] sm:$0xf] %vm1313_vm4, %v1309_v33  ;;  %v1281_v34 = vld [vmem:[#allocation3 + $0x70] sm:$0xff]  ;;  %v1280_v37 = vld [vmem:[#allocation3 + $0x60] sm:$0xff] }
 0x147   : > { %v1296_v36 = vadd.f32 %v1946_v24, %v1281_v34  ;;  %v1295_v38 = vadd.f32 %v1946_v24, %v1280_v37 }
 0x149   : > { %v1304_v39 = vmax.f32 %v1296_v36, 0.0  ;;  %v1303_v40 = vmax.f32 %v1295_v38, 0.0 }
 0x14b   : > { %v1312_v41 = vpack.c.bf16 %v1304_v39, %v1304_v39  ;;  %v1311_v42 = vpack.c.bf16 %v1303_v40, %v1303_v40 }
 0x14d   : > { %1321 = vst.msk [vmem:[%s1963_s30 + $0x1c] sm:$0xf] %vm1313_vm4, %v1312_v41  ;;  %1320 = vst.msk [vmem:[%s1963_s30 + $0x18] sm:$0xf] %vm1313_vm4, %v1311_v42 }
 0x14e PF: > { %s13_s12 = sadd.s32 1, %s1639_s12  }
 0x14f   : > { %p10_p4 = scmp.ge.s32.totalorder %s13_s12, 4  }
 0x151   :  { %12 = sbr.rel (!%p10_p4) target bundleno = 1 (0x1), region = 66 }

// kernel: encoder_forward.6
= control target key start
LH: loop header
LB: loop body
LE: loop exit
PB: predicated region body
PF: predicated region fallthrough
CT: control target
= control target key end

     0   :  { %s1337_s12 = smov 0   ;;  %s1540_s0 = inlined_call_operand.vmem [shape: bf16[2,4,4,128], index: 0, kind: input, shape index: {}]   ;;  %s1541_s1 = inlined_call_operand.vmem [shape: bf16[4,128,64], index: 1, kind: input, shape index: {}]   ;;  %s1542_s2 = inlined_call_operand.vmem [shape: f32[1,64], index: 2, kind: input, shape index: {}]   ;;  %s1543_s3 = inlined_call_operand.vmem [shape: bf16[2,4,4,64], index: 3, kind: output, shape index: {}]  }
   0x1 LB: > { %s1027_s13 = sadd.s32 4294967295, %s1313_s12   ;;  %p1031_p0 = scmp.ge.s32.totalorder %s1313_s12, 1  ;;  %s1313_s12 = sphi %s1337_s12, %s13_s12  }
   0x2   : > { %p137_p1 = scmp.lt.s32.totalorder %s1313_s12, 3 }
   0x4   : > { %p138_p2 = pnand %p1031_p0, %p137_p1 }
   0x5   : > { %v1275_v0 = vld [vmem:[%s1541_s1] sm:$0xff] (!%p138_p2)   ;;  %v1276_v1 = vld [vmem:[%s1541_s1 + $0x8] sm:$0xff] (!%p138_p2)   ;;  %v1315_v2 = vmov (!%p138_p2), 0   ;;  %v1278_v4 = vld [vmem:[%s1541_s1 + $0x10] sm:$0xff] (!%p138_p2)   ;;  %p161_p3 = scmp.lt.s32.totalorder (!%p138_p2), %s1027_s13, 1  ;;  %vm191_vm0 = vcmask (!%p138_p2), 523264  }
   0x6   : > { %141 = sbr.rel (%p138_p2) target bundleno = 318 (0x13e), region = 32  ;;  %172 = vst [vmem:[#allocation2] sm:$0xff] (!%p138_p2), %v1315_v2  ;;  %174 = vst [vmem:[#allocation2 + $0x10] sm:$0xff] (!%p138_p2), %v1315_v2  ;;  %1209 = vmatprep.mubr.bf16.mxu1 (!%p138_p2), %v1315_v2  ;;  %1169 = vmatprep.subr.bf16.mxu0 (!%p138_p2), %v1275_v0  ;;  %v1277_v3 = vld [vmem:[%s1541_s1 + $0x40] sm:$0xff] (!%p138_p2)   ;;  %v1279_v5 = vld [vmem:[%s1541_s1 + $0x48] sm:$0xff] (!%p138_p2)   ;;  %v1316_v8 = vmov (!%p138_p2), 0.0  }
   0x7   : > { %175 = vst [vmem:[#allocation2 + $0x18] sm:$0xff] (!%p138_p2), %v1315_v2  ;;  %176 = vst [vmem:[#allocation2 + $0x20] sm:$0xff] (!%p138_p2), %v1315_v2  ;;  %1170 = vmatpush3.bf16.msra.mxu0 (!%p138_p2), %v1275_v0  ;;  %1193 = vmatprep.subr.bf16.mxu1 (!%p138_p2), %v1277_v3  ;;  %v1281_v6 = vld [vmem:[%s1541_s1 + $0x50] sm:$0xff] (!%p138_p2)   ;;  %v1280_v7 = vld [vmem:[%s1541_s1 + $0x18] sm:$0xff] (!%p138_p2)   ;;  %v216_v10 = vrot.slane (!%p138_p2), %v1315_v2, 7  ;;  %vm967_vm2 = vcmask (!%p138_p2), 517120  }
   0x8   : > { %177 = vst [vmem:[#allocation2 + $0x28] sm:$0xff] (!%p138_p2), %v1315_v2  ;;  %178 = vst [vmem:[#allocation2 + $0x30] sm:$0xff] (!%p138_p2), %v1315_v2  ;;  %1171 = vmatprep.subr.bf16.mxu0 (!%p138_p2), %v1276_v1  ;;  %1194 = vmatpush3.bf16.msra.mxu1 (!%p138_p2), %v1277_v3  ;;  %v1283_v9 = vld [vmem:[%s1541_s1 + $0x58] sm:$0xff] (!%p138_p2)   ;;  %v1282_v11 = vld [vmem:[%s1541_s1 + $0x20] sm:$0xff] (!%p138_p2)   ;;  %vm208_vm1 = vsmask.f32 (!%p138_p2), 256 }
   0x9   : > { %179 = vst [vmem:[#allocation2 + $0x38] sm:$0xff] (!%p138_p2), %v1315_v2  ;;  %180 = vst [vmem:[#allocation2 + $0x40] sm:$0xff] (!%p138_p2), %v1315_v2  ;;  %1195 = vmatprep.subr.bf16.mxu1 (!%p138_p2), %v1279_v5  ;;  %v1285_v12 = vld [vmem:[%s1541_s1 + $0x60] sm:$0xff] (!%p138_p2)   ;;  %v1284_v14 = vld [vmem:[%s1541_s1 + $0x28] sm:$0xff] (!%p138_p2)  }
   0xa   : > { %181 = vst [vmem:[#allocation2 + $0x48] sm:$0xff] (!%p138_p2), %v1315_v2  ;;  %194 = vst.msk [vmem:[#allocation3 + $0x10] sm:$0xff] (!%p138_p2), %vm191_vm0, %v1316_v8  ;;  %v1287_v17 = vld [vmem:[%s1541_s1 + $0x68] sm:$0xff] (!%p138_p2)   ;;  %v1286_v19 = vld [vmem:[%s1541_s1 + $0x30] sm:$0xff] (!%p138_p2)  }
   0xb   : > { %1172 = vmatpush3.bf16.msra.mxu0 (!%p138_p2), %v1276_v1  ;;  %192 = vst.msk [vmem:[#allocation3] sm:$0xff] (!%p138_p2), %vm191_vm0, %v1316_v8  ;;  %193 = vst.msk [vmem:[#allocation3 + $0x8] sm:$0xff] (!%p138_p2), %vm191_vm0, %v1316_v8  ;;  %v1289_v22 = vld [vmem:[%s1541_s1 + $0x70] sm:$0xff] (!%p138_p2)   ;;  %v1288_v25 = vld [vmem:[%s1541_s1 + $0x38] sm:$0xff] (!%p138_p2)  }
   0xc   : > { %1173 = vmatprep.subr.bf16.mxu0 (!%p138_p2), %v1278_v4  ;;  %195 = vst.msk [vmem:[#allocation3 + $0x18] sm:$0xff] (!%p138_p2), %vm191_vm0, %v1316_v8  ;;  %196 = vst.msk [vmem:[#allocation3 + $0x20] sm:$0xff] (!%p138_p2), %vm191_vm0, %v1316_v8  ;;  %1196 = vmatpush3.bf16.msra.mxu1 (!%p138_p2), %v1279_v5  ;;  %v1291_v30 = vld [vmem:[%s1541_s1 + $0x78] sm:$0xff] (!%p138_p2)   ;;  %v1290_v33 = vld [vmem:[%s1541_s1 + $0x80] sm:$0xff] (!%p138_p2)  }
   0xd   : > { %s1545_s13 = smov (!%p161_p3, %s1027_s13), 1  ;;  %197 = vst.msk [vmem:[#allocation3 + $0x28] sm:$0xff] %vm191_vm0, %v1316_v8  ;;  %198 = vst.msk [vmem:[#allocation3 + $0x30] sm:$0xff] %vm191_vm0, %v1316_v8  ;;  %1197 = vmatprep.subr.bf16.mxu1 %v1281_v6  ;;  %v200_v13 = vld [vmem:[#allocation2] sm:$0x80]  ;;  %v1292_v39 = vld [vmem:[%s1541_s1 + $0x88] sm:$0xff]  }
   0xe   : > { %199 = vst.msk [vmem:[#allocation3 + $0x38] sm:$0xff] %vm191_vm0, %v1316_v8  ;;  %s1119_s28 = sshll.u32 %s1545_s13, 3  ;;  %v210_v15 = vshrl.u32 %v200_v13, 16  ;;  %v202_v21 = vld [vmem:[#allocation2 + $0x10] sm:$0x80]  ;;  %v1293_v35 = vld [vmem:[%s1541_s1 + $0xc0] sm:$0xff]  }
   0xf   : > { %1174 = vmatpush3.bf16.msra.mxu0 %v1278_v4  ;;  %s1392_s8 = scalar_lea.vmem %s1540_s0, %s1119_s28  ;;  %v222_v24 = vshrl.u32 %v202_v21, 16  ;;  %v204_v36 = vld [vmem:[#allocation2 + $0x20] sm:$0x80]  ;;  %v206_v37 = vld [vmem:[#allocation2 + $0x30] sm:$0x80]  ;;  %v1295_v41 = vld [vmem:[%s1541_s1 + $0xc8] sm:$0xff]   ;;  %s170_s14 = scalar_lea.vmem %s1543_s3, %s1119_s28 }
  0x10   : > { %1175 = vmatprep.subr.bf16.mxu0 %v1280_v7  ;;  %1198 = vmatpush3.bf16.msra.mxu1 %v1281_v6  ;;  %v182_v16 = vld [vmem:[%s1392_s8] sm:$0x3]  ;;  %v212_v18 = vrot.slane %v210_v15, 7  ;;  %v183_v28 = vld [vmem:[%s1392_s8 + $0x2] sm:$0x3]  ;;  %v234_v40 = vshrl.u32 %v204_v36, 16 }
  0x11   : > { %1199 = vmatprep.subr.bf16.mxu1 %v1283_v9  ;;  %187 = vst [vmem:[#allocation2 + $0x18] sm:$0x3] %v182_v16  ;;  %188 = vst [vmem:[#allocation2 + $0x28] sm:$0x3] %v183_v28  ;;  %v184_v31 = vld [vmem:[%s1392_s8 + $0x4] sm:$0x3] }
  0x12   : > { %v220_v20 = vsel %vm208_vm1, %v212_v18, %v216_v10  ;;  %v224_v32 = vrot.slane %v222_v24, 7  ;;  %189 = vst [vmem:[#allocation2 + $0x38] sm:$0x3] %v184_v31  ;;  %v246_v43 = vshrl.u32 %v206_v37, 16  ;;  %v572_v44 = vld [vmem:[#allocation2 + $0x10] sm:$0x80] }
  0x13   : > { %1176 = vmatpush3.bf16.msra.mxu0 %v1280_v7  ;;  %1185 = vmatprep.mubr.bf16.mxu0 %v220_v20  ;;  %v581_v48 = vshrl.u32 %v572_v44, 16  ;;  %v1294_v51 = vld [vmem:[%s1541_s1 + $0x90] sm:$0xff]   ;;  %v236_v52 = vrot.slane %v234_v40, 7  ;;  %v185_v59 = vld [vmem:[%s1392_s8 + $0x6] sm:$0x3]  ;;  %v1296_v61 = vld [vmem:[%s1541_s1 + $0x98] sm:$0xff]  }
  0x14   : > { %1177 = vmatprep.subr.bf16.mxu0 %v1282_v11  ;;  %1200 = vmatpush3.bf16.msra.mxu1 %v1283_v9  ;;  %v248_v55 = vrot.slane %v246_v43, 7  ;;  %v1297_v57 = vld [vmem:[%s1541_s1 + $0xd0] sm:$0xff]   ;;  %190 = vst [vmem:[#allocation2 + $0x48] sm:$0x3] %v185_v59  ;;  %v1299_v1 = vld [vmem:[%s1541_s1 + $0xd8] sm:$0xff]   ;;  %v1298_v2 = vld [vmem:[%s1541_s1 + $0xa0] sm:$0xff]  }
  0x15   : > { %1201 = vmatprep.subr.bf16.mxu1 %v1285_v12  ;;  %v583_v54 = vrot.slane %v581_v48, 7  ;;  %v1301_v3 = vld [vmem:[%s1541_s1 + $0xe0] sm:$0xff]   ;;  %v1300_v4 = vld [vmem:[%s1541_s1 + $0xa8] sm:$0xff]   ;;  %v1302_v6 = vld [vmem:[%s1541_s1 + $0xb0] sm:$0xff]  }
  0x16   : > { %v1303_v5 = vld [vmem:[%s1541_s1 + $0xe8] sm:$0xff]   ;;  %v574_v7 = vld [vmem:[#allocation2 + $0x20] sm:$0x80]  ;;  %v576_v8 = vld [vmem:[#allocation2 + $0x30] sm:$0x80] }
  0x17   : > { %1178 = vmatpush3.bf16.msra.mxu0 %v1282_v11  ;;  %v1305_v9 = vld [vmem:[%s1541_s1 + $0xf0] sm:$0xff]   ;;  %v593_v10 = vshrl.u32 %v574_v7, 16  ;;  %v1304_v11 = vld [vmem:[%s1541_s1 + $0xb8] sm:$0xff]   ;;  %v578_v18 = vld [vmem:[#allocation2 + $0x40] sm:$0x80] }
  0x18   : > { %1179 = vmatprep.subr.bf16.mxu0 %v1284_v14  ;;  %1202 = vmatpush3.bf16.msra.mxu1 %v1285_v12  ;;  %v1411_v23 = vld [vmem:[#allocation2 + $0x18] sm:$0xff]  ;;  %v1436_v42 = vld [vmem:[#allocation2 + $0x28] sm:$0xff]  ;;  %v605_v12 = vshrl.u32 %v576_v8, 16  ;;  %v617_v20 = vshrl.u32 %v578_v18, 16  ;;  %v261_v28 = vld [vmem:[#allocation3] sm:$0xff] }
  0x19   : > { %1203 = vmatprep.subr.bf16.mxu1 %v1287_v17  ;;  %v226_v26 = vshrl.u32 %v1411_v23, 16  ;;  %v229_v27 = vshll.u32 %v1411_v23, 16  ;;  %v238_v45 = vshrl.u32 %v1436_v42, 16  ;;  %v241_v46 = vshll.u32 %v1436_v42, 16  ;;  %v1440_v47 = vld [vmem:[#allocation2 + $0x38] sm:$0xff]  ;;  %v267_v43 = vld [vmem:[#allocation3 + $0x30] sm:$0xff] }
  0x1a   : > { %v250_v49 = vshrl.u32 %v1440_v47, 16  ;;  %v253_v50 = vshll.u32 %v1440_v47, 16  ;;  %v595_v15 = vrot.slane %v593_v10, 7  ;;  %v619_v24 = vrot.slane %v617_v20, 7  ;;  %v265_v44 = vld [vmem:[#allocation3 + $0x20] sm:$0xff] }
  0x1b   : > { %1180 = vmatpush3.bf16.msra.mxu0 %v1284_v14  ;;  %v228_v29 = vrot.slane %v226_v26, 7  ;;  %v240_v53 = vrot.slane %v238_v45, 7  ;;  %v579_v13 = vld [vmem:[#allocation2 + $0x48] sm:$0xff]  ;;  %v1306_v14 = vld [vmem:[%s1541_s1 + $0xf8] sm:$0xff]  }
  0x1c   : > { %1181 = vmatprep.subr.bf16.mxu0 %v1286_v19  ;;  %1204 = vmatpush3.bf16.msra.mxu1 %v1287_v17  ;;  %v252_v56 = vrot.slane %v250_v49, 7  ;;  %v621_v16 = vshrl.u32 %v579_v13, 16  ;;  %v607_v17 = vrot.slane %v605_v12, 7  ;;  %v266_v49 = vld [vmem:[#allocation3 + $0x28] sm:$0xff] }
  0x1d   : > { %1205 = vmatprep.subr.bf16.mxu1 %v1289_v22  ;;  %v231_v34 = vor.u32 %v229_v27, %v228_v29  ;;  %v243_v58 = vor.u32 %v241_v46, %v240_v53  ;;  %v263_v27 = vld [vmem:[#allocation3 + $0x10] sm:$0xff]  ;;  %v268_v46 = vld [vmem:[#allocation3 + $0x38] sm:$0xff] }
  0x1e   : > { %v255_v60 = vor.u32 %v253_v50, %v252_v56  ;;  %v623_v21 = vrot.slane %v621_v16, 7 }
  0x1f   : > { %1182 = vmatpush3.bf16.msra.mxu0 %v1286_v19  ;;  %v232_v38 = vsel %vm208_vm1, %v224_v32, %v231_v34  ;;  %v244_v62 = vsel %vm208_vm1, %v236_v52, %v243_v58  ;;  %v591_v63 = vsel %vm208_vm1, %v583_v54, %v231_v34  ;;  %v603_v19 = vsel %vm208_vm1, %v595_v15, %v243_v58 }
  0x20   : > { %1183 = vmatprep.subr.bf16.mxu0 %v1288_v25  ;;  %1206 = vmatpush3.bf16.msra.mxu1 %v1289_v22  ;;  %v256_v0 = vsel %vm208_vm1, %v248_v55, %v255_v60  ;;  %v624_v22 = vshll.u32 %v579_v13, 16 }
  0x21   : > { %1207 = vmatprep.subr.bf16.mxu1 %v1291_v30 }
  0x23   : > { %1184 = vmatpush3.bf16.msra.mxu0 %v1288_v25  ;;  %v626_v25 = vor.u32 %v624_v22, %v623_v21 }
  0x24   : > { %1217 = vmatprep.subr.bf16.mxu0 %v1290_v33  ;;  %1208 = vmatpush3.bf16.msra.mxu1 %v1291_v30  ;;  %v264_v30 = vld [vmem:[#allocation3 + $0x18] sm:$0xff] }
  0x25   : > { %1241 = vmatprep.subr.bf16.mxu1 %v1293_v35  ;;  %v627_v26 = vsel %vm208_vm1, %v619_v24, %v626_v25 }
  0x26   : > { %1186 = vmatmul.mubr.bf16.vlgmr.msra.gmra.mrb[0].mxu0 %v232_v38 }
  0x27   : > { %1218 = vmatpush3.bf16.msra.mxu0 %v1290_v33  ;;  %1210 = vmatmul.mubr.bf16.vlgmr.msra.gmra.mrb[0].mxu1 %v1411_v23  ;;  %v262_v33 = vld [vmem:[#allocation3 + $0x8] sm:$0xff] }
  0x28   : > { %1219 = vmatprep.subr.bf16.mxu0 %v1292_v39  ;;  %1242 = vmatpush3.bf16.msra.mxu1 %v1293_v35 }
  0x29   : > { %1213 = vmatprep.mubr.bf16.mxu1 %v1436_v42  ;;  %1243 = vmatprep.subr.bf16.mxu1 %v1295_v41 }
  0x2a   : > { %1189 = vmatprep.mubr.bf16.mxu0 %v244_v62 }
  0x2b   : > { %1220 = vmatpush3.bf16.msra.mxu0 %v1292_v39 }
  0x2c   : > { %1221 = vmatprep.subr.bf16.mxu0 %v1294_v51  ;;  %1244 = vmatpush3.bf16.msra.mxu1 %v1295_v41 }
  0x2d   : > { %1245 = vmatprep.subr.bf16.mxu1 %v1297_v57 }
  0x2e   : > { %1190 = vmatmul.mubr.bf16.gmra.mrb[4].mxu0 %v256_v0 }
  0x2f   : > { %1222 = vmatpush3.bf16.msra.mxu0 %v1294_v51  ;;  %1233 = vmatprep.mubr.bf16.mxu0 %v591_v63 }
  0x30   : > { %1223 = vmatprep.subr.bf16.mxu0 %v1296_v61  ;;  %1214 = vmatmul.mubr.bf16.gmra.mrb[4].mxu1 %v1440_v47 }
  0x31   : > { %1246 = vmatpush3.bf16.msra.mxu1 %v1297_v57  ;;  %1257 = vmatprep.mubr.bf16.mxu1 %v1411_v23  ;;  %v615_v23 = vsel %vm208_vm1, %v607_v17, %v255_v60 }
  0x32   : > { %1247 = vmatprep.subr.bf16.mxu1 %v1299_v1 }
  0x33   : > { %1224 = vmatpush3.bf16.msra.mxu0 %v1296_v61 }
  0x34   : > { %1225 = vmatprep.subr.bf16.mxu0 %v1298_v2 }
  0x35   : > { %1248 = vmatpush3.bf16.msra.mxu1 %v1299_v1 }
  0x36   : > { %1249 = vmatprep.subr.bf16.mxu1 %v1301_v3 }
  0x37   : > { %1226 = vmatpush3.bf16.msra.mxu0 %v1298_v2 }
  0x38   : > { %1227 = vmatprep.subr.bf16.mxu0 %v1300_v4 }
  0x39   : > { %1250 = vmatpush3.bf16.msra.mxu1 %v1301_v3 }
  0x3a   : > { %1251 = vmatprep.subr.bf16.mxu1 %v1303_v5 }
  0x3b   : > { %1228 = vmatpush3.bf16.msra.mxu0 %v1300_v4 }
  0x3c   : > { %1229 = vmatprep.subr.bf16.mxu0 %v1302_v6 }
  0x3d   : > { %1252 = vmatpush3.bf16.msra.mxu1 %v1303_v5 }
  0x3e   : > { %1253 = vmatprep.subr.bf16.mxu1 %v1305_v9 }
  0x3f   : > { %1230 = vmatpush3.bf16.msra.mxu0 %v1302_v6 }
  0x40   : > { %1231 = vmatprep.subr.bf16.mxu0 %v1304_v11 }
  0x41   : > { %1254 = vmatpush3.bf16.msra.mxu1 %v1305_v9 }
  0x42   : > { %1255 = vmatprep.subr.bf16.mxu1 %v1306_v14 }
  0x43   : > { %1232 = vmatpush3.bf16.msra.mxu0 %v1304_v11 }
  0x45   : > { %1256 = vmatpush3.bf16.msra.mxu1 %v1306_v14 }
  0x46   : > { %1234 = vmatmul.mubr.bf16.vlgmr.msra.gmra.mrb[8].mxu0 %v603_v19 }
  0x47   : > { %1237 = vmatprep.mubr.bf16.mxu0 %v615_v23 }
  0x48   : > { %1258 = vmatmul.mubr.bf16.vlgmr.msra.gmra.mrb[8].mxu1 %v1436_v42 }
  0x49   : > { %1261 = vmatprep.mubr.bf16.mxu1 %v1440_v47 }
  0x4e   : > { %1238 = vmatmul.mubr.bf16.gmra.mrb[12].mxu0 %v627_v26 }
  0x50   : > { %1262 = vmatmul.mubr.bf16.gmra.mrb[12].mxu1 %v579_v13 }
  0xf9   : > { %v1187_v29 = vpop.f32.mrb[0].mxu0 }
  0xfa   : > { %v400_v31 = vadd.f32 %v1187_v29, %v263_v27  ;;  %v367_v32 = vpop.f32.mrb[1].mxu0  ;;  %v1211_v36 = vpop.f32.mrb[0].mxu1 }
  0xfb   : > { %v398_v34 = vadd.f32 %v367_v32, %v261_v28  ;;  %v1188_v35 = vpop.f32.mrb[2].mxu0  ;;  %v525_v39 = vpop.f32.mrb[1].mxu1 }
  0xfc   : > { %408 = vst.msk [vmem:[#allocation3 + $0x10] sm:$0xff] %vm191_vm0, %v400_v31  ;;  %v401_v37 = vadd.f32 %v1188_v35, %v264_v30  ;;  %v370_v38 = vpop.f32.mrb[3].mxu0  ;;  %v1212_v41 = vpop.f32.mrb[2].mxu1 }
  0xfd   : > { %406 = vst.msk [vmem:[#allocation3] sm:$0xff] %vm191_vm0, %v398_v34  ;;  %v399_v40 = vadd.f32 %v370_v38, %v262_v33  ;;  %v528_v42 = vpop.f32.mrb[3].mxu1 }
  0xfe   : > { %409 = vst.msk [vmem:[#allocation3 + $0x18] sm:$0xff] %vm191_vm0, %v401_v37 }
  0xff   : > { %407 = vst.msk [vmem:[#allocation3 + $0x8] sm:$0xff] %vm191_vm0, %v399_v40 }
 0x101   : > { %v1191_v45 = vpop.f32.mrb[4].mxu0 }
 0x102   : > { %v404_v47 = vadd.f32 %v1191_v45, %v267_v43  ;;  %v383_v48 = vpop.f32.mrb[5].mxu0 }
 0x103   : > { %v420_v50 = vld [vmem:[#allocation3 + $0x10] sm:$0xff]  ;;  %v402_v51 = vadd.f32 %v383_v48, %v265_v44  ;;  %v1192_v52 = vpop.f32.mrb[6].mxu0  ;;  %v1215_v53 = vpop.f32.mrb[4].mxu1 }
 0x104   : > { %v558_v54 = vadd.f32 %v1211_v36, %v420_v50  ;;  %v418_v55 = vld [vmem:[#allocation3] sm:$0xff]  ;;  %412 = vst.msk [vmem:[#allocation3 + $0x30] sm:$0xff] %vm191_vm0, %v404_v47  ;;  %v405_v56 = vadd.f32 %v1192_v52, %v268_v46  ;;  %v386_v57 = vpop.f32.mrb[7].mxu0  ;;  %v541_v58 = vpop.f32.mrb[5].mxu1 }
 0x105   : > { %v556_v59 = vadd.f32 %v525_v39, %v418_v55  ;;  %v421_v60 = vld [vmem:[#allocation3 + $0x18] sm:$0xff]  ;;  %410 = vst.msk [vmem:[#allocation3 + $0x20] sm:$0xff] %vm191_vm0, %v402_v51  ;;  %v403_v61 = vadd.f32 %v386_v57, %v266_v49  ;;  %v1216_v62 = vpop.f32.mrb[6].mxu1  ;;  %v1116_v51 = vld [vmem:[%s1542_s2] ss:$0 sm:$0xff] }
 0x106   : > { %566 = vst.msk [vmem:[#allocation3 + $0x10] sm:$0xff] %vm191_vm0, %v558_v54  ;;  %v559_v63 = vadd.f32 %v1212_v41, %v421_v60  ;;  %v419_v0 = vld [vmem:[#allocation3 + $0x8] sm:$0xff]  ;;  %413 = vst.msk [vmem:[#allocation3 + $0x38] sm:$0xff] %vm191_vm0, %v405_v56  ;;  %v544_v1 = vpop.f32.mrb[7].mxu1 }
 0x107   : > { %564 = vst.msk [vmem:[#allocation3] sm:$0xff] %vm191_vm0, %v556_v59  ;;  %v557_v2 = vadd.f32 %v528_v42, %v419_v0  ;;  %411 = vst.msk [vmem:[#allocation3 + $0x28] sm:$0xff] %vm191_vm0, %v403_v61 }
 0x108   : > { %567 = vst.msk [vmem:[#allocation3 + $0x18] sm:$0xff] %vm191_vm0, %v559_v63 }
 0x109   : > { %565 = vst.msk [vmem:[#allocation3 + $0x8] sm:$0xff] %vm191_vm0, %v557_v2 }
 0x10b   : > { %v424_v3 = vld [vmem:[#allocation3 + $0x30] sm:$0xff] }
 0x10c   : > { %v562_v4 = vadd.f32 %v1215_v53, %v424_v3  ;;  %v422_v5 = vld [vmem:[#allocation3 + $0x20] sm:$0xff] }
 0x10d   : > { %v560_v6 = vadd.f32 %v541_v58, %v422_v5  ;;  %v425_v7 = vld [vmem:[#allocation3 + $0x38] sm:$0xff]  ;;  %v634_v11 = vld [vmem:[#allocation3 + $0x10] sm:$0xff] }
 0x10e   : > { %570 = vst.msk [vmem:[#allocation3 + $0x30] sm:$0xff] %vm191_vm0, %v562_v4  ;;  %v563_v8 = vadd.f32 %v1216_v62, %v425_v7  ;;  %v423_v9 = vld [vmem:[#allocation3 + $0x28] sm:$0xff]  ;;  %v632_v14 = vld [vmem:[#allocation3] sm:$0xff] }
 0x10f   : > { %568 = vst.msk [vmem:[#allocation3 + $0x20] sm:$0xff] %vm191_vm0, %v560_v6  ;;  %v561_v10 = vadd.f32 %v544_v1, %v423_v9  ;;  %v635_v17 = vld [vmem:[#allocation3 + $0x18] sm:$0xff] }
 0x110   : > { %571 = vst.msk [vmem:[#allocation3 + $0x38] sm:$0xff] %vm191_vm0, %v563_v8  ;;  %v633_v21 = vld [vmem:[#allocation3 + $0x8] sm:$0xff] }
 0x111   : > { %569 = vst.msk [vmem:[#allocation3 + $0x28] sm:$0xff] %vm191_vm0, %v561_v10 }
 0x115   : > { %v638_v27 = vld [vmem:[#allocation3 + $0x30] sm:$0xff] }
 0x116   : > { %v636_v28 = vld [vmem:[#allocation3 + $0x20] sm:$0xff] }
 0x117   : > { %v639_v34 = vld [vmem:[#allocation3 + $0x38] sm:$0xff] }
 0x118   : > { %v637_v40 = vld [vmem:[#allocation3 + $0x28] sm:$0xff] }
 0x119   : > { %v1235_v12 = vpop.f32.mrb[8].mxu0 }
 0x11a   : > { %v772_v13 = vadd.f32 %v1235_v12, %v634_v11  ;;  %v739_v15 = vpop.f32.mrb[9].mxu0 }
 0x11b   : > { %v770_v16 = vadd.f32 %v739_v15, %v632_v14  ;;  %v1236_v18 = vpop.f32.mrb[10].mxu0  ;;  %v1259_v19 = vpop.f32.mrb[8].mxu1 }
 0x11c   : > { %780 = vst.msk [vmem:[#allocation3 + $0x10] sm:$0xff] %vm191_vm0, %v772_v13  ;;  %v773_v20 = vadd.f32 %v1236_v18, %v635_v17  ;;  %v742_v22 = vpop.f32.mrb[11].mxu0  ;;  %v897_v23 = vpop.f32.mrb[9].mxu1 }
 0x11d   : > { %778 = vst.msk [vmem:[#allocation3] sm:$0xff] %vm191_vm0, %v770_v16  ;;  %v771_v24 = vadd.f32 %v742_v22, %v633_v21  ;;  %v1260_v25 = vpop.f32.mrb[10].mxu1 }
 0x11e   : > { %781 = vst.msk [vmem:[#allocation3 + $0x18] sm:$0xff] %vm191_vm0, %v773_v20  ;;  %v900_v26 = vpop.f32.mrb[11].mxu1 }
 0x11f   : > { %779 = vst.msk [vmem:[#allocation3 + $0x8] sm:$0xff] %vm191_vm0, %v771_v24 }
 0x121   : > { %v1239_v29 = vpop.f32.mrb[12].mxu0 }
 0x122   : > { %v776_v30 = vadd.f32 %v1239_v29, %v638_v27  ;;  %v755_v31 = vpop.f32.mrb[13].mxu0 }
 0x123   : > { %v792_v32 = vld [vmem:[#allocation3 + $0x10] sm:$0xff]  ;;  %v774_v33 = vadd.f32 %v755_v31, %v636_v28  ;;  %v1240_v35 = vpop.f32.mrb[14].mxu0  ;;  %v1263_v36 = vpop.f32.mrb[12].mxu1 }
 0x124   : > { %v930_v37 = vadd.f32 %v1259_v19, %v792_v32  ;;  %784 = vst.msk [vmem:[#allocation3 + $0x30] sm:$0xff] %vm191_vm0, %v776_v30  ;;  %v790_v38 = vld [vmem:[#allocation3] sm:$0xff]  ;;  %v777_v39 = vadd.f32 %v1240_v35, %v639_v34  ;;  %v758_v41 = vpop.f32.mrb[15].mxu0  ;;  %v913_v42 = vpop.f32.mrb[13].mxu1 }
 0x125   : > { %v928_v43 = vadd.f32 %v897_v23, %v790_v38  ;;  %782 = vst.msk [vmem:[#allocation3 + $0x20] sm:$0xff] %vm191_vm0, %v774_v33  ;;  %v793_v44 = vld [vmem:[#allocation3 + $0x18] sm:$0xff]  ;;  %v775_v45 = vadd.f32 %v758_v41, %v637_v40  ;;  %v1264_v46 = vpop.f32.mrb[14].mxu1 }
 0x126   : > { %938 = vst.msk [vmem:[#allocation3 + $0x10] sm:$0xff] %vm191_vm0, %v930_v37  ;;  %v931_v47 = vadd.f32 %v1260_v25, %v793_v44  ;;  %785 = vst.msk [vmem:[#allocation3 + $0x38] sm:$0xff] %vm191_vm0, %v777_v39  ;;  %v791_v48 = vld [vmem:[#allocation3 + $0x8] sm:$0xff]  ;;  %v916_v49 = vpop.f32.mrb[15].mxu1 }
 0x127   : > { %936 = vst.msk [vmem:[#allocation3] sm:$0xff] %vm191_vm0, %v928_v43  ;;  %v929_v50 = vadd.f32 %v900_v26, %v791_v48  ;;  %783 = vst.msk [vmem:[#allocation3 + $0x28] sm:$0xff] %vm191_vm0, %v775_v45 }
 0x128   : > { %939 = vst.msk [vmem:[#allocation3 + $0x18] sm:$0xff] %vm191_vm0, %v931_v47 }
 0x129   : > { %937 = vst.msk [vmem:[#allocation3 + $0x8] sm:$0xff] %vm191_vm0, %v929_v50 }
 0x12b   : > { %v796_v52 = vld [vmem:[#allocation3 + $0x30] sm:$0xff] }
 0x12c   : > { %v934_v53 = vadd.f32 %v1263_v36, %v796_v52  ;;  %v794_v54 = vld [vmem:[#allocation3 + $0x20] sm:$0xff] }
 0x12d   : > { %v945_v55 = vld [vmem:[#allocation3 + $0x10] sm:$0xff]  ;;  %v932_v56 = vadd.f32 %v913_v42, %v794_v54  ;;  %v797_v57 = vld [vmem:[#allocation3 + $0x38] sm:$0xff] }
 0x12e   : > { %v956_v58 = vadd.f32 %v1116_v51, %v945_v55  ;;  %v944_v59 = vld [vmem:[#allocation3] sm:$0xff]  ;;  %942 = vst.msk [vmem:[#allocation3 + $0x30] sm:$0xff] %vm191_vm0, %v934_v53  ;;  %v935_v60 = vadd.f32 %v1264_v46, %v797_v57  ;;  %v795_v61 = vld [vmem:[#allocation3 + $0x28] sm:$0xff] }
 0x12f   : > { %v955_v62 = vadd.f32 %v1116_v51, %v944_v59  ;;  %940 = vst.msk [vmem:[#allocation3 + $0x20] sm:$0xff] %vm191_vm0, %v932_v56  ;;  %v933_v63 = vadd.f32 %v916_v49, %v795_v61 }
 0x130   : > { %v960_v0 = vmax.f32 %v956_v58, 0.0  ;;  %943 = vst.msk [vmem:[#allocation3 + $0x38] sm:$0xff] %vm191_vm0, %v935_v60 }
 0x131   : > { %v959_v1 = vmax.f32 %v955_v62, 0.0  ;;  %941 = vst.msk [vmem:[#allocation3 + $0x28] sm:$0xff] %vm191_vm0, %v933_v63 }
 0x132   : > { %v964_v2 = vpack.c.bf16 %v960_v0, %v960_v0 }
 0x133   : > { %v963_v3 = vpack.c.bf16 %v959_v1, %v959_v1 }
 0x134   : > { %969 = vst.msk [vmem:[%s170_s14 + $0x2] sm:$0x3] %vm967_vm2, %v964_v2 }
 0x135   : > { %968 = vst.msk [vmem:[%s170_s14] sm:$0x3] %vm967_vm2, %v963_v3  ;;  %v947_v4 = vld [vmem:[#allocation3 + $0x30] sm:$0xff] }
 0x136   : > { %v958_v5 = vadd.f32 %v1116_v51, %v947_v4  ;;  %v946_v6 = vld [vmem:[#allocation3 + $0x20] sm:$0xff] }
 0x137   : > { %v957_v7 = vadd.f32 %v1116_v51, %v946_v6 }
 0x138   : > { %v962_v8 = vmax.f32 %v958_v5, 0.0 }
 0x139   : > { %v961_v9 = vmax.f32 %v957_v7, 0.0 }
 0x13a   : > { %v966_v10 = vpack.c.bf16 %v962_v8, %v962_v8 }
 0x13b   : > { %v965_v11 = vpack.c.bf16 %v961_v9, %v961_v9 }
 0x13c   : > { %971 = vst.msk [vmem:[%s170_s14 + $0x6] sm:$0x3] %vm967_vm2, %v966_v10 }
 0x13d   : > { %970 = vst.msk [vmem:[%s170_s14 + $0x4] sm:$0x3] %vm967_vm2, %v965_v11 }
 0x13e PF: > { %s13_s12 = sadd.s32 1, %s1313_s12  }
 0x13f   : > { %p10_p4 = scmp.ge.s32.totalorder %s13_s12, 4  }
 0x141   :  { %12 = sbr.rel (!%p10_p4) target bundleno = 1 (0x1), region = 66 }

// kernel: encoder_forward.7
= control target key start
LH: loop header
LB: loop body
LE: loop exit
PB: predicated region body
PF: predicated region fallthrough
CT: control target
= control target key end

     0   :  { %8 = vsyncpa [#allocation5], 0  ;;  %s2055_s0 = inlined_call_operand.vmem [shape: bf16[2,2,2,256], index: 0, kind: input, shape index: {}]   ;;  %s2056_s1 = inlined_call_operand.vmem [shape: bf16[4,256,32], index: 1, kind: input, shape index: {}]   ;;  %s2057_s2 = inlined_call_operand.vmem [shape: f32[1,32], index: 2, kind: input, shape index: {}]   ;;  %s2058_s3 = inlined_call_operand.hbm [shape: f32[2,2,2,32], index: 3, kind: output, shape index: {}]  }
   0x1   :  { %10 = vsyncpa [#allocation5 + $0x1], 0  ;;  %s1708_s12 = smov 0   ;;  %s1710_s13 = smov 0  }
   0x2   :  { %s1712_s14 = smov 0   ;;  %s1714_s15 = smov 0  }
   0x3 LB: > { %s1729_s16 = sadd.s32 4294967295, %s1681_s15   ;;  %s1221_s17 = sadd.s32 4294967294, %s1681_s15   ;;  %s1681_s15 = sphi %s1714_s15, %s2064_s15   ;;  %s1677_s14 = sphi %s1712_s14, %s2063_s14   ;;  %s1673_s13 = sphi %s1710_s13, %s2062_s13   ;;  %s1669_s12 = sphi %s1708_s12, %s2061_s12  }
   0x4   : > { %s1733_s18 = sadd.s32 1, %s1681_s15   ;;  %s91_s19 = sadd.s32 1, %s1677_s14 }
   0x5   : > { %s88_s20 = ssub.s32 %s1681_s15, %s1733_s18  ;;  %p101_p0 = scmp.ne.s32.totalorder %s1677_s14, %s1673_s13 }
   0x6   : > { %p89_p1 = scmp.eq.s32.totalorder %s88_s20, 0  ;;  %p102_p2 = scmp.eq.s32.totalorder %s1729_s16, 1 }
   0x7   : > { %p107_p3 = scmp.ne.s32.totalorder %s1673_s13, %s1669_s12  ;;  %p108_p4 = scmp.eq.s32.totalorder %s1221_s17, 1 }
   0x8   : > { %s1744_s21 = scalar_select %p89_p1, %s1677_s14, %s91_s19  }
   0x9   : > { %p1746_p5 = por %p102_p2, %p101_p0  ;;  %p1750_p6 = por %p108_p4, %p107_p3 }
   0xa   : > { %p1224_p7 = scmp.ge.s32.totalorder %s1681_s15, 1  ;;  %p139_p8 = scmp.lt.s32.totalorder %s1681_s15, 3 }
   0xc   : > { %p140_p9 = pnand %p1224_p7, %p139_p8 }
   0xd   : > { %v1555_v0 = vld [vmem:[%s2056_s1 + $0x40] sm:$0xff] (!%p140_p9)   ;;  %v1683_v2 = vmov (!%p140_p9), 0   ;;  %v1557_v3 = vld [vmem:[%s2056_s1 + $0x48] sm:$0xff] (!%p140_p9)   ;;  %v1560_v6 = vld [vmem:[%s2056_s1 + $0x50] sm:$0xff] (!%p140_p9)   ;;  %p162_p10 = scmp.lt.s32.totalorder (!%p140_p9), %s1729_s16, 1  ;;  %vm236_vm1 = vcmask (!%p140_p9), 261120  }
   0xe   : > { %143 = sbr.rel (%p140_p9) target bundleno = 340 (0x154), region = 32  ;;  %v1556_v1 = vld [vmem:[%s2056_s1] sm:$0xff] (!%p140_p9)   ;;  %168 = vst [vmem:[#allocation2 + $0x8] sm:$0xff] (!%p140_p9), %v1683_v2  ;;  %167 = vst [vmem:[#allocation2] sm:$0xff] (!%p140_p9), %v1683_v2  ;;  %660 = vmatprep.mubr.bf16.mxu1 (!%p140_p9), %v1683_v2  ;;  %1400 = vmatprep.subr.bf16.mxu0 (!%p140_p9), %v1555_v0  ;;  %v1558_v4 = vld [vmem:[%s2056_s1 + $0x8] sm:$0xff] (!%p140_p9)   ;;  %v269_v27 = vrot.slane (!%p140_p9), %v1683_v2, 7 }
   0xf   : > { %171 = vst [vmem:[#allocation2 + $0x20] sm:$0xff] (!%p140_p9), %v1683_v2  ;;  %172 = vst [vmem:[#allocation2 + $0x28] sm:$0xff] (!%p140_p9), %v1683_v2  ;;  %1401 = vmatpush3.bf16.msra.mxu0 (!%p140_p9), %v1556_v1  ;;  %v1559_v5 = vld [vmem:[%s2056_s1 + $0xc0] sm:$0xff] (!%p140_p9)   ;;  %v1562_v8 = vld [vmem:[%s2056_s1 + $0x10] sm:$0xff] (!%p140_p9)   ;;  %vm249_vm0 = vsmask.f32 (!%p140_p9), 256 }
  0x10   : > { %173 = vst [vmem:[#allocation2 + $0x30] sm:$0xff] (!%p140_p9), %v1683_v2  ;;  %174 = vst [vmem:[#allocation2 + $0x38] sm:$0xff] (!%p140_p9), %v1683_v2  ;;  %1402 = vmatprep.subr.bf16.mxu0 (!%p140_p9), %v1557_v3  ;;  %1428 = vmatprep.subr.bf16.mxu1 (!%p140_p9), %v1559_v5  ;;  %v1561_v7 = vld [vmem:[%s2056_s1 + $0x80] sm:$0xff] (!%p140_p9)   ;;  %v1563_v9 = vld [vmem:[%s2056_s1 + $0xc8] sm:$0xff] (!%p140_p9)   ;;  %vm1142_vm2 = vcmask (!%p140_p9), 254976   ;;  %s1399_s10 = sshll.u32 (!%p140_p9), %s1729_s16, 6 }
  0x11   : > { %175 = vst [vmem:[#allocation2 + $0x40] sm:$0xff] (!%p140_p9), %v1683_v2  ;;  %176 = vst [vmem:[#allocation2 + $0x48] sm:$0xff] (!%p140_p9), %v1683_v2  ;;  %1429 = vmatpush3.bf16.msra.mxu1 (!%p140_p9), %v1561_v7  ;;  %v1564_v10 = vld [vmem:[%s2056_s1 + $0x58] sm:$0xff] (!%p140_p9)   ;;  %v1565_v11 = vld [vmem:[%s2056_s1 + $0x88] sm:$0xff] (!%p140_p9)   ;;  %s2009_s20 = scalar_lea.hbm (!%p140_p9), %s2058_s3, %s1399_s10 }
  0x12   : > { %177 = vst [vmem:[#allocation2 + $0x50] sm:$0xff] (!%p140_p9), %v1683_v2  ;;  %178 = vst [vmem:[#allocation2 + $0x58] sm:$0xff] (!%p140_p9), %v1683_v2  ;;  %1430 = vmatprep.subr.bf16.mxu1 (!%p140_p9), %v1563_v9  ;;  %v1566_v12 = vld [vmem:[%s2056_s1 + $0x18] sm:$0xff] (!%p140_p9)   ;;  %v1567_v13 = vld [vmem:[%s2056_s1 + $0xd0] sm:$0xff] (!%p140_p9)  }
  0x13   : > { %1403 = vmatpush3.bf16.msra.mxu0 (!%p140_p9), %v1558_v4  ;;  %v1568_v14 = vld [vmem:[%s2056_s1 + $0x60] sm:$0xff] (!%p140_p9)   ;;  %v1569_v15 = vld [vmem:[%s2056_s1 + $0x90] sm:$0xff] (!%p140_p9)   ;;  %v1571_v17 = vld [vmem:[%s2056_s1 + $0xd8] sm:$0xff] (!%p140_p9)  }
  0x14   : > { %1404 = vmatprep.subr.bf16.mxu0 (!%p140_p9), %v1560_v6  ;;  %v1570_v16 = vld [vmem:[%s2056_s1 + $0x20] sm:$0xff] (!%p140_p9)   ;;  %v1572_v18 = vld [vmem:[%s2056_s1 + $0x68] sm:$0xff] (!%p140_p9)   ;;  %v1573_v19 = vld [vmem:[%s2056_s1 + $0x98] sm:$0xff] (!%p140_p9)  }
  0x15   : > { %1431 = vmatpush3.bf16.msra.mxu1 %v1565_v11  ;;  %v1574_v20 = vld [vmem:[%s2056_s1 + $0x28] sm:$0xff]   ;;  %v1575_v21 = vld [vmem:[%s2056_s1 + $0xe0] sm:$0xff]   ;;  %v1576_v22 = vld [vmem:[%s2056_s1 + $0x70] sm:$0xff]   ;;  %s163_s24 = scalar_select %p162_p10, %s1729_s16, 1 }
  0x16   : > { %1432 = vmatprep.subr.bf16.mxu1 %v1567_v13  ;;  %v1577_v23 = vld [vmem:[%s2056_s1 + $0xa0] sm:$0xff]   ;;  %v1578_v24 = vld [vmem:[%s2056_s1 + $0x30] sm:$0xff]   ;;  %v1579_v25 = vld [vmem:[%s2056_s1 + $0xe8] sm:$0xff]   ;;  %s1685_s16 = smov [#allocation4]  }
  0x17   : > { %1405 = vmatpush3.bf16.msra.mxu0 %v1562_v8  ;;  %v1580_v26 = vld [vmem:[%s2056_s1 + $0x78] sm:$0xff]   ;;  %v1581_v28 = vld [vmem:[%s2056_s1 + $0xa8] sm:$0xff]   ;;  %v1583_v32 = vld [vmem:[%s2056_s1 + $0xf0] sm:$0xff]   ;;  %s1226_s6 = sshll.u32 %s163_s24, 2  ;;  %s1623_s27 = sshll.u32 %s1685_s16, 4  ;;  %s1624_s27 = int_to_ptr.vmem [resolvable:$false] %s1623_s27 }
  0x18   : > { %1406 = vmatprep.subr.bf16.mxu0 %v1564_v10  ;;  %v1582_v29 = vld [vmem:[%s2056_s1 + $0x38] sm:$0xff]   ;;  %v242_v30 = vld [vmem:[#allocation2 + $0x8] sm:$0x80]  ;;  %v241_v33 = vld [vmem:[#allocation2] sm:$0x80]  ;;  %s1907_s25 = scalar_lea.vmem %s2055_s0, %s1226_s6  ;;  %s1625_s28 = scalar_lea.vmem %s1624_s27, 128 }
  0x19   : > { %1433 = vmatpush3.bf16.msra.mxu1 %v1569_v15  ;;  %v263_v31 = vshrl.u32 %v242_v30, 16  ;;  %v251_v34 = vshrl.u32 %v241_v33, 16  ;;  %v1584_v35 = vld [vmem:[%s2056_s1 + $0xb0] sm:$0xff]   ;;  %v1585_v37 = vld [vmem:[%s2056_s1 + $0x140] sm:$0xff]   ;;  %v1587_v41 = vld [vmem:[%s2056_s1 + $0xf8] sm:$0xff]  }
  0x1a   : > { %1434 = vmatprep.subr.bf16.mxu1 %v1571_v17  ;;  %v1586_v39 = vld [vmem:[%s2056_s1 + $0x100] sm:$0xff]   ;;  %v1588_v43 = vld [vmem:[%s2056_s1 + $0xb8] sm:$0xff]   ;;  %v1589_v44 = vld [vmem:[%s2056_s1 + $0x148] sm:$0xff]  }
  0x1b   : > { %1407 = vmatpush3.bf16.msra.mxu0 %v1566_v12  ;;  %v265_v36 = vrot.slane %v263_v31, 7  ;;  %v253_v38 = vrot.slane %v251_v34, 7  ;;  %v1590_v45 = vld [vmem:[%s2056_s1 + $0x108] sm:$0xff]   ;;  %v1591_v46 = vld [vmem:[%s2056_s1 + $0x1c0] sm:$0xff]   ;;  %v1592_v47 = vld [vmem:[%s2056_s1 + $0x150] sm:$0xff]  }
  0x1c   : > { %1408 = vmatprep.subr.bf16.mxu0 %v1568_v14  ;;  %v1593_v48 = vld [vmem:[%s2056_s1 + $0x180] sm:$0xff]   ;;  %v1594_v49 = vld [vmem:[%s2056_s1 + $0x110] sm:$0xff]   ;;  %v1595_v50 = vld [vmem:[%s2056_s1 + $0x1c8] sm:$0xff]  }
  0x1d   : > { %1435 = vmatpush3.bf16.msra.mxu1 %v1573_v19  ;;  %v273_v40 = vsel %vm249_vm0, %v265_v36, %v269_v27  ;;  %v261_v42 = vsel %vm249_vm0, %v253_v38, %v269_v27  ;;  %v1596_v51 = vld [vmem:[%s2056_s1 + $0x158] sm:$0xff]   ;;  %v1597_v52 = vld [vmem:[%s2056_s1 + $0x188] sm:$0xff]   ;;  %v1599_v54 = vld [vmem:[%s2056_s1 + $0x1d0] sm:$0xff]  }
  0x1e   : > { %1436 = vmatprep.subr.bf16.mxu1 %v1575_v21  ;;  %466 = vmatprep.mubr.bf16.mxu0 %v273_v40  ;;  %v1598_v53 = vld [vmem:[%s2056_s1 + $0x118] sm:$0xff]   ;;  %v1227_v55 = vld.sshfl [vmem:[%s1907_s25] sm:$0x11 pattern:$0x75316420]  ;;  %v1601_v59 = vld [vmem:[%s2056_s1 + $0x190] sm:$0xff]  }
  0x1f   : > { %1409 = vmatpush3.bf16.msra.mxu0 %v1570_v16  ;;  %v246_v56 = vld [vmem:[#allocation2 + $0x28] sm:$0x80]  ;;  %v190_v57 = vcombine.high %v1227_v55, %v1227_v55  ;;  %1229 = vst.sshfl [vmem:[#allocation2 + $0x30] sm:$0x1 pattern:$0x73625140] %v1227_v55 }
  0x20   : > { %1410 = vmatprep.subr.bf16.mxu0 %v1572_v18  ;;  %v1600_v58 = vld [vmem:[%s2056_s1 + $0x160] sm:$0xff]   ;;  %v287_v62 = vshrl.u32 %v246_v56, 16  ;;  %v1603_v63 = vld [vmem:[%s2056_s1 + $0x1d8] sm:$0xff]   ;;  %v1604_v1 = vld [vmem:[%s2056_s1 + $0x168] sm:$0xff]  }
  0x21   : > { %1437 = vmatpush3.bf16.msra.mxu1 %v1577_v23  ;;  %1230 = vst.sshfl [vmem:[#allocation2 + $0x38] sm:$0x1 pattern:$0x73625140] %v190_v57  ;;  %v245_v60 = vld [vmem:[#allocation2 + $0x20] sm:$0x80] }
  0x22   : > { %1438 = vmatprep.subr.bf16.mxu1 %v1579_v25  ;;  %v1602_v61 = vld [vmem:[%s2056_s1 + $0x120] sm:$0xff]   ;;  %v275_v0 = vshrl.u32 %v245_v60, 16  ;;  %v289_v3 = vrot.slane %v287_v62, 7  ;;  %v1606_v5 = vld [vmem:[%s2056_s1 + $0x128] sm:$0xff]   ;;  %v1608_v9 = vld [vmem:[%s2056_s1 + $0x170] sm:$0xff]  }
  0x23   : > { %1411 = vmatpush3.bf16.msra.mxu0 %v1574_v20  ;;  %v1607_v8 = vld [vmem:[%s2056_s1 + $0x1e0] sm:$0xff]   ;;  %v1610_v18 = vld [vmem:[%s2056_s1 + $0x130] sm:$0xff]   ;;  %v1611_v19 = vld [vmem:[%s2056_s1 + $0x1e8] sm:$0xff]  }
  0x24   : > { %1412 = vmatprep.subr.bf16.mxu0 %v1576_v22  ;;  %v277_v11 = vrot.slane %v275_v0, 7  ;;  %v1609_v15 = vld [vmem:[%s2056_s1 + $0x1a0] sm:$0xff]   ;;  %v1612_v21 = vld [vmem:[%s2056_s1 + $0x178] sm:$0xff]   ;;  %v1613_v23 = vld [vmem:[%s2056_s1 + $0x1a8] sm:$0xff]  }
  0x25   : > { %1439 = vmatpush3.bf16.msra.mxu1 %v1581_v28  ;;  %v1614_v25 = vld [vmem:[%s2056_s1 + $0x138] sm:$0xff]   ;;  %v1615_v28 = vld [vmem:[%s2056_s1 + $0x1f0] sm:$0xff]   ;;  %v689_v40 = vld [vmem:[#allocation2 + $0x40] sm:$0x80] }
  0x26   : > { %1440 = vmatprep.subr.bf16.mxu1 %v1583_v32  ;;  %v247_v4 = vld [vmem:[#allocation2 + $0x30] sm:$0xff]  ;;  %v1617_v33 = vld [vmem:[%s2056_s1 + $0x1f8] sm:$0xff]  }
  0x27   : > { %1413 = vmatpush3.bf16.msra.mxu0 %v1578_v24  ;;  %v279_v6 = vshrl.u32 %v247_v4, 16  ;;  %v282_v7 = vshll.u32 %v247_v4, 16  ;;  %v1616_v31 = vld [vmem:[%s2056_s1 + $0x1b0] sm:$0xff]   ;;  %v1618_v36 = vld [vmem:[%s2056_s1 + $0x1b8] sm:$0xff]  }
  0x28   : > { %1414 = vmatprep.subr.bf16.mxu0 %v1580_v26  ;;  %v248_v10 = vld [vmem:[#allocation2 + $0x38] sm:$0xff]  ;;  %v686_v26 = vld [vmem:[#allocation2 + $0x28] sm:$0x80] }
  0x29   : > { %1441 = vmatpush3.bf16.msra.mxu1 %v1584_v35  ;;  %v291_v12 = vshrl.u32 %v248_v10, 16  ;;  %v294_v13 = vshll.u32 %v248_v10, 16  ;;  %v281_v14 = vrot.slane %v279_v6, 7  ;;  %v706_v27 = vshrl.u32 %v686_v26, 16 }
  0x2a   : > { %1442 = vmatprep.subr.bf16.mxu1 %v1587_v41  ;;  %v690_v41 = vld [vmem:[#allocation2 + $0x48] sm:$0x80] }
  0x2b   : > { %1415 = vmatpush3.bf16.msra.mxu0 %v1582_v29  ;;  %v293_v16 = vrot.slane %v291_v12, 7  ;;  %v284_v17 = vor.u32 %v282_v7, %v281_v14  ;;  %v685_v29 = vld [vmem:[#allocation2 + $0x20] sm:$0x80]  ;;  %v708_v32 = vrot.slane %v706_v27, 7 }
  0x2c   : > { %1456 = vmatprep.subr.bf16.mxu0 %v1585_v37  ;;  %v694_v30 = vshrl.u32 %v685_v29, 16  ;;  %v1228_v37 = vld.sshfl [vmem:[%s1907_s25 + $0x2] sm:$0x11 pattern:$0x75316420]  ;;  %s159_s25 = sand.u32 1, %s1673_s13  }
  0x2d   : > { %1443 = vmatpush3.bf16.msra.mxu1 %v1588_v43  ;;  %v296_v20 = vor.u32 %v294_v13, %v293_v16  ;;  %v285_v22 = vsel %vm249_vm0, %v277_v11, %v284_v17  ;;  %v212_v38 = vcombine.high %v1228_v37, %v1228_v37  ;;  %1231 = vst.sshfl [vmem:[#allocation2 + $0x50] sm:$0x1 pattern:$0x73625140] %v1228_v37  ;;  %v718_v43 = vshrl.u32 %v689_v40, 16  ;;  %s1225_s8 = sshll.u32 %s159_s25, 2 }
  0x2e   : > { %467 = vmatmul.mubr.bf16.vlgmr.msra.gmra.mrb[0].mxu0 %v261_v42  ;;  %1484 = vmatprep.subr.bf16.mxu1 %v1591_v46  ;;  %v696_v34 = vrot.slane %v694_v30, 7  ;;  %s161_s9 = scalar_lea.vmem [#allocation4], %s1225_s8  ;;  %s2014_s24 = scalar_lea.sflag [#allocation5], %s159_s25 }
  0x2f   : > { %1457 = vmatpush3.bf16.msra.mxu0 %v1586_v39  ;;  %v297_v24 = vsel %vm249_vm0, %v289_v3, %v296_v20  ;;  %v716_v35 = vsel %vm249_vm0, %v708_v32, %v296_v20  ;;  %1232 = vst.sshfl [vmem:[#allocation2 + $0x58] sm:$0x1 pattern:$0x73625140] %v212_v38  ;;  %s1159_s11 = sshll.u32 %s161_s9, 4  ;;  %s2011_s11 = int_to_ptr.vmem [resolvable:$true] %s1159_s11 }
  0x30   : > { %1458 = vmatprep.subr.bf16.mxu0 %v1589_v44  ;;  %661 = vmatmul.mubr.bf16.vlgmr.msra.gmra.mrb[0].mxu1 %v1683_v2  ;;  %v1605_v2 = vld [vmem:[%s2056_s1 + $0x198] sm:$0xff]   ;;  %v704_v39 = vsel %vm249_vm0, %v696_v34, %v284_v17  ;;  %v730_v44 = vshrl.u32 %v690_v41, 16  ;;  %s1619_s26 = scalar_lea.vmem %s2011_s11, 64  ;;  %p1626_p0 = scmp.lt.s32.totalorder %s2011_s11, %s1624_s27 }
  0x31   : > { %1485 = vmatpush3.bf16.msra.mxu1 %v1593_v48  ;;  %668 = vmatprep.mubr.bf16.mxu1 %v248_v10  ;;  %p1620_p11 = scmp.ne.s32.totalorder %s2011_s11, %s1619_s26  ;;  %p1627_p1 = scmp.lt.s32.totalorder %s1625_s28, %s1619_s26 }
  0x32   : > { %1486 = vmatprep.subr.bf16.mxu1 %v1595_v50  ;;  %474 = vmatprep.mubr.bf16.mxu0 %v297_v24 }
  0x33   : > { %1459 = vmatpush3.bf16.msra.mxu0 %v1590_v45  ;;  %p1621_p12 = pnand %p1620_p11, %p1746_p5  ;;  %p1628_p2 = por %p1627_p1, %p1626_p0 }
  0x34   : > { %1460 = vmatprep.subr.bf16.mxu0 %v1592_v47  ;;  %v691_v42 = vld [vmem:[#allocation2 + $0x50] sm:$0xff] }
  0x35   : > { %1487 = vmatpush3.bf16.msra.mxu1 %v1597_v52  ;;  %v722_v45 = vshrl.u32 %v691_v42, 16  ;;  %v725_v46 = vshll.u32 %v691_v42, 16  ;;  %v732_v52 = vrot.slane %v730_v44, 7  ;;  %p1622_p13 = pneg %p1621_p12 }
  0x36   : > { %1488 = vmatprep.subr.bf16.mxu1 %v1599_v54  ;;  %475 = vmatmul.mubr.bf16.gmra.mrb[4].mxu0 %v285_v22  ;;  %v692_v47 = vld [vmem:[#allocation2 + $0x58] sm:$0xff] }
  0x37   : > { %1461 = vmatpush3.bf16.msra.mxu0 %v1594_v49  ;;  %910 = vmatprep.mubr.bf16.mxu0 %v716_v35  ;;  %v734_v48 = vshrl.u32 %v692_v47, 16  ;;  %v737_v49 = vshll.u32 %v692_v47, 16  ;;  %v724_v50 = vrot.slane %v722_v45, 7  ;;  %p1629_p3 = pnand %p1628_p2, %p1622_p13 }
  0x38   : > { %1462 = vmatprep.subr.bf16.mxu0 %v1596_v51  ;;  %669 = vmatmul.mubr.bf16.gmra.mrb[4].mxu1 %v247_v4  ;;  %v720_v51 = vrot.slane %v718_v43, 7 }
  0x39   : > { %1489 = vmatpush3.bf16.msra.mxu1 %v1601_v59  ;;  %1104 = vmatprep.mubr.bf16.mxu1 %v248_v10  ;;  %v727_v54 = vor.u32 %v725_v46, %v724_v50 }
  0x3a   : > { %1490 = vmatprep.subr.bf16.mxu1 %v1603_v63 }
  0x3b   : > { %1463 = vmatpush3.bf16.msra.mxu0 %v1598_v53  ;;  %v736_v53 = vrot.slane %v734_v48, 7  ;;  %v728_v56 = vsel %vm249_vm0, %v720_v51, %v727_v54 }
  0x3c   : > { %1464 = vmatprep.subr.bf16.mxu0 %v1600_v58  ;;  %v1684_v58 = vmov 0.0  }
  0x3d   : > { %1491 = vmatpush3.bf16.msra.mxu1 %v1605_v2  ;;  %v739_v55 = vor.u32 %v737_v49, %v736_v53  ;;  %237 = vst.msk [vmem:[#allocation3] sm:$0xff] %vm236_vm1, %v1684_v58  ;;  %238 = vst.msk [vmem:[#allocation3 + $0x8] sm:$0xff] %vm236_vm1, %v1684_v58 }
  0x3e   : > { %1492 = vmatprep.subr.bf16.mxu1 %v1607_v8  ;;  %239 = vst.msk [vmem:[#allocation3 + $0x10] sm:$0xff] %vm236_vm1, %v1684_v58  ;;  %240 = vst.msk [vmem:[#allocation3 + $0x18] sm:$0xff] %vm236_vm1, %v1684_v58 }
  0x3f   : > { %1465 = vmatpush3.bf16.msra.mxu0 %v1602_v61  ;;  %v740_v57 = vsel %vm249_vm0, %v732_v52, %v739_v55 }
  0x40   : > { %1466 = vmatprep.subr.bf16.mxu0 %v1604_v1 }
  0x41   : > { %1493 = vmatpush3.bf16.msra.mxu1 %v1609_v15 }
  0x42   : > { %1494 = vmatprep.subr.bf16.mxu1 %v1611_v19 }
  0x43   : > { %1467 = vmatpush3.bf16.msra.mxu0 %v1606_v5 }
  0x44   : > { %1468 = vmatprep.subr.bf16.mxu0 %v1608_v9  ;;  %v302_v60 = vld [vmem:[#allocation3] sm:$0xff]  ;;  %v303_v0 = vld [vmem:[#allocation3 + $0x8] sm:$0xff] }
  0x45   : > { %1495 = vmatpush3.bf16.msra.mxu1 %v1613_v23  ;;  %v304_v22 = vld [vmem:[#allocation3 + $0x10] sm:$0xff]  ;;  %v305_v26 = vld [vmem:[#allocation3 + $0x18] sm:$0xff] }
  0x46   : > { %1496 = vmatprep.subr.bf16.mxu1 %v1615_v28 }
  0x47   : > { %1469 = vmatpush3.bf16.msra.mxu0 %v1610_v18 }
  0x48   : > { %1470 = vmatprep.subr.bf16.mxu0 %v1612_v21 }
  0x49   : > { %1497 = vmatpush3.bf16.msra.mxu1 %v1616_v31 }
  0x4a   : > { %1498 = vmatprep.subr.bf16.mxu1 %v1617_v33 }
  0x4b   : > { %1471 = vmatpush3.bf16.msra.mxu0 %v1614_v25 }
  0x4d   : > { %1499 = vmatpush3.bf16.msra.mxu1 %v1618_v36 }
  0x4e   : > { %911 = vmatmul.mubr.bf16.vlgmr.msra.gmra.mrb[8].mxu0 %v704_v39 }
  0x4f   : > { %918 = vmatprep.mubr.bf16.mxu0 %v740_v57 }
  0x50   : > { %1105 = vmatmul.mubr.bf16.vlgmr.msra.gmra.mrb[8].mxu1 %v247_v4 }
  0x51   : > { %1112 = vmatprep.mubr.bf16.mxu1 %v692_v47 }
  0x56   : > { %919 = vmatmul.mubr.bf16.gmra.mrb[12].mxu0 %v728_v56 }
  0x58   : > { %1113 = vmatmul.mubr.bf16.gmra.mrb[12].mxu1 %v691_v42 }
 0x101   : > { %v1416_v59 = vpop.f32.mrb[0].mxu0 }
 0x102   : > { %v1417_v61 = vpop.f32.mrb[1].mxu0 }
 0x103   : > { %v1418_v62 = vadd.f32 %v1417_v61, %v1416_v59  ;;  %v1419_v63 = vpop.f32.mrb[2].mxu0  ;;  %v1444_v4 = vpop.f32.mrb[0].mxu1 }
 0x104   : > { %v1420_v1 = vpop.f32.mrb[3].mxu0  ;;  %v1445_v5 = vpop.f32.mrb[1].mxu1 }
 0x105   : > { %v483_v2 = vadd.f32 %v1418_v62, %v302_v60  ;;  %v1421_v3 = vadd.f32 %v1420_v1, %v1419_v63  ;;  %v1446_v7 = vadd.f32 %v1445_v5, %v1444_v4  ;;  %v1447_v8 = vpop.f32.mrb[2].mxu1 }
 0x106   : > { %v1448_v9 = vpop.f32.mrb[3].mxu1 }
 0x107   : > { %487 = vst.msk [vmem:[#allocation3] sm:$0xff] %vm236_vm1, %v483_v2  ;;  %v484_v6 = vadd.f32 %v1421_v3, %v303_v0  ;;  %v1449_v10 = vadd.f32 %v1448_v9, %v1447_v8 }
 0x109   : > { %488 = vst.msk [vmem:[#allocation3 + $0x8] sm:$0xff] %vm236_vm1, %v484_v6  ;;  %v1422_v21 = vpop.f32.mrb[4].mxu0 }
 0x10a   : > { %v1423_v23 = vpop.f32.mrb[5].mxu0 }
 0x10b   : > { %v1450_v15 = vpop.f32.mrb[4].mxu1  ;;  %v1424_v24 = vadd.f32 %v1423_v23, %v1422_v21  ;;  %v1425_v25 = vpop.f32.mrb[6].mxu0 }
 0x10c   : > { %v1451_v16 = vpop.f32.mrb[5].mxu1  ;;  %v1426_v27 = vpop.f32.mrb[7].mxu0 }
 0x10d   : > { %v1452_v17 = vadd.f32 %v1451_v16, %v1450_v15  ;;  %v1453_v18 = vpop.f32.mrb[6].mxu1  ;;  %v485_v28 = vadd.f32 %v1424_v24, %v304_v22  ;;  %v1427_v29 = vadd.f32 %v1426_v27, %v1425_v25 }
 0x10e   : > { %v495_v11 = vld [vmem:[#allocation3] sm:$0xff]  ;;  %v1454_v19 = vpop.f32.mrb[7].mxu1 }
 0x10f   : > { %v677_v12 = vadd.f32 %v1446_v7, %v495_v11  ;;  %v1455_v20 = vadd.f32 %v1454_v19, %v1453_v18  ;;  %489 = vst.msk [vmem:[#allocation3 + $0x10] sm:$0xff] %vm236_vm1, %v485_v28  ;;  %v486_v30 = vadd.f32 %v1427_v29, %v305_v26  ;;  %v1393_v7 = vld [vmem:[%s2057_s2] ss:$0 sm:$0xff] }
 0x110   : > { %v496_v13 = vld [vmem:[#allocation3 + $0x8] sm:$0xff] }
 0x111   : > { %681 = vst.msk [vmem:[#allocation3] sm:$0xff] %vm236_vm1, %v677_v12  ;;  %v678_v14 = vadd.f32 %v1449_v10, %v496_v13  ;;  %490 = vst.msk [vmem:[#allocation3 + $0x18] sm:$0xff] %vm236_vm1, %v486_v30 }
 0x113   : > { %682 = vst.msk [vmem:[#allocation3 + $0x8] sm:$0xff] %vm236_vm1, %v678_v14 }
 0x116   : > { %v497_v43 = vld [vmem:[#allocation3 + $0x10] sm:$0xff] }
 0x117   : > { %v679_v46 = vadd.f32 %v1452_v17, %v497_v43 }
 0x118   : > { %v745_v36 = vld [vmem:[#allocation3] sm:$0xff]  ;;  %v498_v49 = vld [vmem:[#allocation3 + $0x18] sm:$0xff] }
 0x119   : > { %683 = vst.msk [vmem:[#allocation3 + $0x10] sm:$0xff] %vm236_vm1, %v679_v46  ;;  %v680_v50 = vadd.f32 %v1455_v20, %v498_v49 }
 0x11a   : > { %v746_v44 = vld [vmem:[#allocation3 + $0x8] sm:$0xff] }
 0x11b   : > { %684 = vst.msk [vmem:[#allocation3 + $0x18] sm:$0xff] %vm236_vm1, %v680_v50 }
 0x120   : > { %v747_v60 = vld [vmem:[#allocation3 + $0x10] sm:$0xff] }
 0x121   : > { %v1472_v31 = vpop.f32.mrb[8].mxu0 }
 0x122   : > { %v1473_v32 = vpop.f32.mrb[9].mxu0  ;;  %v748_v5 = vld [vmem:[#allocation3 + $0x18] sm:$0xff] }
 0x123   : > { %v1474_v33 = vadd.f32 %v1473_v32, %v1472_v31  ;;  %v1475_v34 = vpop.f32.mrb[10].mxu0  ;;  %v1500_v35 = vpop.f32.mrb[8].mxu1 }
 0x124   : > { %v1476_v37 = vpop.f32.mrb[11].mxu0  ;;  %v1501_v38 = vpop.f32.mrb[9].mxu1 }
 0x125   : > { %v927_v39 = vadd.f32 %v1474_v33, %v745_v36  ;;  %v1477_v40 = vadd.f32 %v1476_v37, %v1475_v34  ;;  %v1502_v41 = vadd.f32 %v1501_v38, %v1500_v35  ;;  %v1503_v42 = vpop.f32.mrb[10].mxu1 }
 0x126   : > { %v1504_v45 = vpop.f32.mrb[11].mxu1 }
 0x127   : > { %931 = vst.msk [vmem:[#allocation3] sm:$0xff] %vm236_vm1, %v927_v39  ;;  %v928_v47 = vadd.f32 %v1477_v40, %v746_v44  ;;  %v1505_v48 = vadd.f32 %v1504_v45, %v1503_v42 }
 0x129   : > { %932 = vst.msk [vmem:[#allocation3 + $0x8] sm:$0xff] %vm236_vm1, %v928_v47  ;;  %v1478_v57 = vpop.f32.mrb[12].mxu0 }
 0x12a   : > { %v1479_v61 = vpop.f32.mrb[13].mxu0 }
 0x12b   : > { %v1506_v51 = vpop.f32.mrb[12].mxu1  ;;  %v1480_v63 = vadd.f32 %v1479_v61, %v1478_v57  ;;  %v1481_v0 = vpop.f32.mrb[14].mxu0 }
 0x12c   : > { %v1507_v52 = vpop.f32.mrb[13].mxu1  ;;  %v1482_v2 = vpop.f32.mrb[15].mxu0 }
 0x12d   : > { %v1508_v53 = vadd.f32 %v1507_v52, %v1506_v51  ;;  %v1509_v54 = vpop.f32.mrb[14].mxu1  ;;  %v929_v3 = vadd.f32 %v1480_v63, %v747_v60  ;;  %v1483_v4 = vadd.f32 %v1482_v2, %v1481_v0 }
 0x12e   : > { %v939_v55 = vld [vmem:[#allocation3] sm:$0xff]  ;;  %v1510_v56 = vpop.f32.mrb[15].mxu1 }
 0x12f   : > { %v1121_v58 = vadd.f32 %v1502_v41, %v939_v55  ;;  %v1511_v59 = vadd.f32 %v1510_v56, %v1509_v54  ;;  %933 = vst.msk [vmem:[#allocation3 + $0x10] sm:$0xff] %vm236_vm1, %v929_v3  ;;  %v930_v6 = vadd.f32 %v1483_v4, %v748_v5 }
 0x130   : > { %v940_v62 = vld [vmem:[#allocation3 + $0x8] sm:$0xff] }
 0x131   : > { %1125 = vst.msk [vmem:[#allocation3] sm:$0xff] %vm236_vm1, %v1121_v58  ;;  %v1122_v1 = vadd.f32 %v1505_v48, %v940_v62  ;;  %934 = vst.msk [vmem:[#allocation3 + $0x18] sm:$0xff] %vm236_vm1, %v930_v6 }
 0x133   : > { %1126 = vst.msk [vmem:[#allocation3 + $0x8] sm:$0xff] %vm236_vm1, %v1122_v1 }
 0x136   : > { %v941_v11 = vld [vmem:[#allocation3 + $0x10] sm:$0xff] }
 0x137   : > { %v1123_v12 = vadd.f32 %v1508_v53, %v941_v11 }
 0x138   : > { %v1129_v8 = vld [vmem:[#allocation3] sm:$0xff]  ;;  %v942_v13 = vld [vmem:[#allocation3 + $0x18] sm:$0xff] }
 0x139   : > { %v1138_v9 = vadd.f32 %v1393_v7, %v1129_v8  ;;  %1127 = vst.msk [vmem:[#allocation3 + $0x10] sm:$0xff] %vm236_vm1, %v1123_v12  ;;  %v1124_v14 = vadd.f32 %v1511_v59, %v942_v13 }
 0x13b   : > { %v1140_v10 = vmax.f32 %v1138_v9, 0.0  ;;  %1128 = vst.msk [vmem:[#allocation3 + $0x18] sm:$0xff] %vm236_vm1, %v1124_v14 }
 0x13d   : > { %1143 = vst.msk [vmem:[%s161_s9] sm:$0x3] %vm1142_vm2, %v1140_v10 }
 0x140   : > { %v1130_v15 = vld [vmem:[#allocation3 + $0x10] sm:$0xff] }
 0x141   : > { %v1139_v16 = vadd.f32 %v1393_v7, %v1130_v15 }
 0x143   : > { %v1141_v17 = vmax.f32 %v1139_v16, 0.0 }
 0x145   : > { %1144 = vst.msk [vmem:[%s161_s9 + $0x2] sm:$0x3] %vm1142_vm2, %v1141_v17 }
 0x146   : > { %1632 = shalt.err (!%p1629_p3)
}
 0x147   : > { %s1633_s29 = scalar_lea.hbm %s2009_s20, 64  ;;  %s1637_s5 = scalar_lea.hbm %s2058_s3, 128 }
 0x148   : > { %p1634_p4 = scmp.ne.s32.totalorder %s2009_s20, %s1633_s29  ;;  %p1638_p9 = scmp.lt.u32.totalorder %s2009_s20, %s2058_s3 }
 0x149   : > { %p1639_p10 = scmp.lt.u32.totalorder %s1637_s5, %s1633_s29  ;;  %p1641_p12 = scmp.lt.u32.totalorder %s1633_s29, %s2009_s20 }
 0x14a   : > { %p1635_p7 = pnand %p1634_p4, %p1746_p5 }
 0x14b   : > { %p1640_p11 = por %p1639_p10, %p1638_p9 }
 0x14c   : > { %p1636_p8 = pneg %p1635_p7 }
 0x14d   : > { %p1642_p13 = por %p1641_p12, %p1640_p11 }
 0x14f   : > { %p1643_p0 = pnand %p1642_p13, %p1636_p8 }
 0x151   : > { %1646 = shalt.err (!%p1643_p0)
}
 0x152   : > { %s1686_s7 = smov 32   ;;  %s1687_s8 = smov 2  }
 0x153   : > { %1512 = dma.vmem_to_hbm [thread:$0]  (%p1746_p5), %s2011_s11, 64, %s2009_s20, %s2014_s24, %s1686_s7, %s1686_s7, %s1687_s8  }
 0x154 PF: > { %p1518_p1 = scmp.ge.s32.totalorder %s1681_s15, 2  ;;  %s1174_s9 = sand.u32 1, %s1669_s12  }
 0x155   : > { %s1175_s10 = scalar_lea.sflag [#allocation5], %s1174_s9 }
 0x156   : > { %p1515_p2 = pnand %p1518_p1, %p1750_p6 }
 0x158   : > { %1664 = dma.done.wait (!%p1515_p2), %s1175_s10, 64  }
 0x159   : > { %1666 = vsyncadd (!%p1515_p2), %s1175_s10, 4294967232  ;;  %p13_p3 = scmp.ge.s32.totalorder %s1733_s18, 4   ;;  %s2061_s12 = smov %s1673_s13 }
 0x15a   : > { %s2062_s13 = smov %s1677_s14  ;;  %s2063_s14 = smov %s1744_s21 }
 0x15b   : > { %s2064_s15 = smov %s1733_s18  ;;  %15 = sbr.rel (!%p13_p3) target bundleno = 3 (0x3), region = 71 }
 0x162   :  { %1180 = vsyncpa [#allocation5], 1 }
 0x163   :  { %1182 = vsyncpa [#allocation5 + $0x1], 1 }

// kernel: encoder_forward.4
= control target key start
LH: loop header
LB: loop body
LE: loop exit
PB: predicated region body
PF: predicated region fallthrough
CT: control target
= control target key end

     0   :  { %s5677_s12 = smov 0   ;;  %s6991_s0 = inlined_call_operand.vmem [shape: bf16[2,16,16,3], index: 0, kind: input, shape index: {}]   ;;  %s6992_s1 = inlined_call_operand.vmem [shape: bf16[9,3,16], index: 1, kind: input, shape index: {}]   ;;  %s6993_s2 = inlined_call_operand.vmem [shape: f32[1,16], index: 2, kind: input, shape index: {}]   ;;  %s6994_s3 = inlined_call_operand.vmem [shape: bf16[2,16,16,16], index: 3, kind: output, shape index: {}]  }
   0x1 LB: > { %s4912_s13 = sadd.s32 4294967295, %s5652_s12   ;;  %p4916_p0 = scmp.ge.s32.totalorder %s5652_s12, 1  ;;  %s5652_s12 = sphi %s5677_s12, %s13_s12  }
   0x2   : > { %p137_p1 = scmp.lt.s32.totalorder %s5652_s12, 3 }
   0x4   : > { %p138_p2 = pnand %p4916_p0, %p137_p1 }
   0x5   : > { %v5688_v0 = vld [vmem:[%s6992_s1] sm:$0x3] (!%p138_p2)  ;;  %vm711_vm0 = vcmask (!%p138_p2), 1040384   ;;  %vm712_vm1 = vcmask (!%p138_p2), 1041408   ;;  %p161_p3 = scmp.lt.s32.totalorder (!%p138_p2), %s4912_s13, 1  ;;  %v5654_v1 = vmov (!%p138_p2), 65535  }
   0x6   : > { %141 = sbr.rel (%p138_p2) target bundleno = 575 (0x23f), region = 32  ;;  %v713_v2 = vsel (!%p138_p2), %vm711_vm0, 4294967295, %v5654_v1  ;;  %vm172_vm2 = vcmask (!%p138_p2), 23552   ;;  %v5655_v4 = vmov (!%p138_p2), 0   ;;  %v4953_v5 = vld [vmem:[%s6992_s1 + $0x2] sm:$0x3] (!%p138_p2) }
   0x7   : > { %v5690_v3 = vsel (!%p138_p2), %vm712_vm1, %v713_v2, 0  ;;  %197 = vst.msk [vmem:[#allocation2 + $0xc0] sm:$0xff] (!%p138_p2), %vm172_vm2, %v5655_v4  ;;  %198 = vst.msk [vmem:[#allocation2 + $0xc8] sm:$0xff] (!%p138_p2), %vm172_vm2, %v5655_v4  ;;  %v4970_v6 = vld [vmem:[%s6992_s1 + $0x4] sm:$0x3] (!%p138_p2)  ;;  %vm372_vm5 = vcmask (!%p138_p2), 130048  }
   0x8   : > { %173 = vst.msk [vmem:[#allocation2] sm:$0xff] (!%p138_p2), %vm172_vm2, %v5655_v4  ;;  %174 = vst.msk [vmem:[#allocation2 + $0x8] sm:$0xff] (!%p138_p2), %vm172_vm2, %v5655_v4  ;;  %v716_v7 = vand.u32 (!%p138_p2), %v5690_v3, %v5688_v0  ;;  %v5757_v8 = vand.u32 (!%p138_p2), %v4953_v5, %v5690_v3  ;;  %v5760_v9 = vand.u32 (!%p138_p2), %v4970_v6, %v5690_v3  ;;  %vm437_vm3 = vsmask.f32 (!%p138_p2), 256  ;;  %v4987_v36 = vld [vmem:[%s6992_s1 + $0x6] sm:$0x3] (!%p138_p2) }
   0x9   : > { %175 = vst.msk [vmem:[#allocation2 + $0x10] sm:$0xff] (!%p138_p2), %vm172_vm2, %v5655_v4  ;;  %176 = vst.msk [vmem:[#allocation2 + $0x18] sm:$0xff] (!%p138_p2), %vm172_vm2, %v5655_v4  ;;  %v5004_v42 = vld [vmem:[%s6992_s1 + $0x8] sm:$0x3] (!%p138_p2)  ;;  %v5824_v60 = vand.u32 (!%p138_p2), %v4987_v36, %v5690_v3  ;;  %vm1301_vm4 = vsmask.f32 (!%p138_p2), 7424 }
   0xa   : > { %177 = vst.msk [vmem:[#allocation2 + $0x20] sm:$0xff] (!%p138_p2), %vm172_vm2, %v5655_v4  ;;  %178 = vst.msk [vmem:[#allocation2 + $0x28] sm:$0xff] (!%p138_p2), %vm172_vm2, %v5655_v4  ;;  %5617 = vmatprep.subr.bf16.mxu1 (!%p138_p2), %v716_v7  ;;  %5311 = vmatprep.subr.bf16.mxu0 (!%p138_p2), %v716_v7  ;;  %vm4824_vm6 = vcmask (!%p138_p2), 125952  }
   0xb   : > { %179 = vst.msk [vmem:[#allocation2 + $0x30] sm:$0xff] (!%p138_p2), %vm172_vm2, %v5655_v4  ;;  %180 = vst.msk [vmem:[#allocation2 + $0x38] sm:$0xff] (!%p138_p2), %vm172_vm2, %v5655_v4  ;;  %5618 = vmatpush3.bf16.msra.mxu1 (!%p138_p2), %v716_v7  ;;  %5312 = vmatpush3.bf16.msra.mxu0 (!%p138_p2), %v716_v7 }
   0xc   : > { %181 = vst.msk [vmem:[#allocation2 + $0x40] sm:$0xff] (!%p138_p2), %vm172_vm2, %v5655_v4  ;;  %182 = vst.msk [vmem:[#allocation2 + $0x48] sm:$0xff] (!%p138_p2), %vm172_vm2, %v5655_v4  ;;  %5345 = vmatprep.subr.bf16.mxu1 (!%p138_p2), %v5757_v8  ;;  %5379 = vmatprep.subr.bf16.mxu0 (!%p138_p2), %v5760_v9 }
   0xd   : > { %s7024_s13 = smov (!%p161_p3, %s4912_s13), 1  ;;  %183 = vst.msk [vmem:[#allocation2 + $0x50] sm:$0xff] %vm172_vm2, %v5655_v4  ;;  %184 = vst.msk [vmem:[#allocation2 + $0x58] sm:$0xff] %vm172_vm2, %v5655_v4 }
   0xe   : > { %185 = vst.msk [vmem:[#allocation2 + $0x60] sm:$0xff] %vm172_vm2, %v5655_v4  ;;  %186 = vst.msk [vmem:[#allocation2 + $0x68] sm:$0xff] %vm172_vm2, %v5655_v4  ;;  %s5124_s20 = sshll.u32 %s7024_s13, 7  ;;  %v421_v13 = vld [vmem:[#allocation2 + $0xc0] sm:$0x80] }
   0xf   : > { %187 = vst.msk [vmem:[#allocation2 + $0x70] sm:$0xff] %vm172_vm2, %v5655_v4  ;;  %188 = vst.msk [vmem:[#allocation2 + $0x78] sm:$0xff] %vm172_vm2, %v5655_v4  ;;  %s5768_s23 = scalar_lea.vmem %s6991_s0, %s5124_s20  ;;  %v405_v15 = vld [vmem:[#allocation2] sm:$0x80]  ;;  %v535_v16 = vshrl.u32 %v421_v13, 16  ;;  %v5777_v17 = vld [vmem:[#allocation2 + $0x8] sm:$0xff]  ;;  %s6848_s15 = scalar_lea.vmem %s6994_s3, %s5124_s20 }
  0x10   : > { %189 = vst.msk [vmem:[#allocation2 + $0x80] sm:$0xff] %vm172_vm2, %v5655_v4  ;;  %190 = vst.msk [vmem:[#allocation2 + $0x88] sm:$0xff] %vm172_vm2, %v5655_v4  ;;  %v5630_v10 = vld [vmem:[%s5768_s23 + $0x38] sm:$0xff]   ;;  %v5631_v11 = vld [vmem:[%s5768_s23 + $0x40] sm:$0xff]   ;;  %v439_v18 = vshrl.u32 %v405_v15, 16  ;;  %v443_v20 = vshrl.u32 %v5777_v17, 16 }
  0x11   : > { %191 = vst.msk [vmem:[#allocation2 + $0x90] sm:$0xff] %vm172_vm2, %v5655_v4  ;;  %192 = vst.msk [vmem:[#allocation2 + $0x98] sm:$0xff] %vm172_vm2, %v5655_v4  ;;  %v5632_v12 = vld [vmem:[%s5768_s23] sm:$0xff]   ;;  %v407_v19 = vld [vmem:[#allocation2 + $0x18] sm:$0x80]  ;;  %v446_v21 = vshll.u32 %v5777_v17, 16 }
  0x12   : > { %193 = vst.msk [vmem:[#allocation2 + $0xa0] sm:$0xff] %vm172_vm2, %v5655_v4  ;;  %194 = vst.msk [vmem:[#allocation2 + $0xa8] sm:$0xff] %vm172_vm2, %v5655_v4  ;;  %v5633_v22 = vld [vmem:[%s5768_s23 + $0x48] sm:$0xff]   ;;  %v537_v23 = vrot.slane %v535_v16, 7  ;;  %v451_v25 = vshrl.u32 %v407_v19, 16  ;;  %v5634_v26 = vld [vmem:[%s5768_s23 + $0x50] sm:$0xff]  }
  0x13   : > { %195 = vst.msk [vmem:[#allocation2 + $0xb0] sm:$0xff] %vm172_vm2, %v5655_v4  ;;  %196 = vst.msk [vmem:[#allocation2 + $0xb8] sm:$0xff] %vm172_vm2, %v5655_v4  ;;  %v441_v27 = vrot.slane %v439_v18, 7  ;;  %v445_v28 = vrot.slane %v443_v20, 7  ;;  %v5635_v32 = vld [vmem:[%s5768_s23 + $0x8] sm:$0xff]   ;;  %v5636_v55 = vld [vmem:[%s5768_s23 + $0x10] sm:$0xff]  }
  0x14   : > { %199 = vst.msk [vmem:[#allocation2 + $0xd0] sm:$0xff] %vm172_vm2, %v5655_v4  ;;  %200 = vst.msk [vmem:[#allocation2 + $0xd8] sm:$0xff] %vm172_vm2, %v5655_v4  ;;  %v409_v41 = vld [vmem:[#allocation2 + $0x30] sm:$0x80]  ;;  %v453_v47 = vrot.slane %v451_v25, 7  ;;  %v5637_v1 = vld [vmem:[%s5768_s23 + $0x58] sm:$0xff]  }
  0x15   : > { %201 = vst.msk [vmem:[#allocation2 + $0xe0] sm:$0xff] %vm172_vm2, %v5655_v4  ;;  %202 = vst.msk [vmem:[#allocation2 + $0xe8] sm:$0xff] %vm172_vm2, %v5655_v4  ;;  %v448_v34 = vor.u32 %v446_v21, %v445_v28  ;;  %v463_v54 = vshrl.u32 %v409_v41, 16  ;;  %v411_v59 = vld [vmem:[#allocation2 + $0x48] sm:$0x80]  ;;  %v5638_v16 = vld [vmem:[%s5768_s23 + $0x60] sm:$0xff]  }
  0x16   : > { %203 = vst.msk [vmem:[#allocation2 + $0xf0] sm:$0xff] %vm172_vm2, %v5655_v4  ;;  %204 = vst.msk [vmem:[#allocation2 + $0xf8] sm:$0xff] %vm172_vm2, %v5655_v4  ;;  %v475_v15 = vshrl.u32 %v411_v59, 16  ;;  %v5639_v18 = vld [vmem:[%s5768_s23 + $0x18] sm:$0xff]  }
  0x17   : > { %205 = vst.msk [vmem:[#allocation2 + $0x100] sm:$0xff] %vm172_vm2, %v5655_v4  ;;  %206 = vst.msk [vmem:[#allocation2 + $0x108] sm:$0xff] %vm172_vm2, %v5655_v4  ;;  %v449_v45 = vsel %vm437_vm3, %v441_v27, %v448_v34 }
  0x18   : > { %207 = vst.msk [vmem:[#allocation2 + $0x110] sm:$0xff] %vm172_vm2, %v5655_v4  ;;  %208 = vst.msk [vmem:[#allocation2 + $0x118] sm:$0xff] %vm172_vm2, %v5655_v4  ;;  %5313 = vmatprep.mubr.msk.bf16.mxu0 %vm172_vm2, %v449_v45 }
  0x19   : > { %209 = vst.msk [vmem:[#allocation2 + $0x120] sm:$0xff] %vm172_vm2, %v5655_v4  ;;  %210 = vst.msk [vmem:[#allocation2 + $0x128] sm:$0xff] %vm172_vm2, %v5655_v4 }
  0x1a   : > { %211 = vst.msk [vmem:[#allocation2 + $0x130] sm:$0xff] %vm172_vm2, %v5655_v4  ;;  %212 = vst.msk [vmem:[#allocation2 + $0x138] sm:$0xff] %vm172_vm2, %v5655_v4 }
  0x1b   : > { %213 = vst.msk [vmem:[#allocation2 + $0x140] sm:$0xff] %vm172_vm2, %v5655_v4  ;;  %214 = vst.msk [vmem:[#allocation2 + $0x148] sm:$0xff] %vm172_vm2, %v5655_v4  ;;  %v423_v14 = vld [vmem:[#allocation2 + $0xd8] sm:$0x80] }
  0x1c   : > { %215 = vst.msk [vmem:[#allocation2 + $0x150] sm:$0xff] %vm172_vm2, %v5655_v4  ;;  %216 = vst.msk [vmem:[#allocation2 + $0x158] sm:$0xff] %vm172_vm2, %v5655_v4  ;;  %v547_v24 = vshrl.u32 %v423_v14, 16  ;;  %v465_v14 = vrot.slane %v463_v54, 7  ;;  %v5642_v54 = vld [vmem:[%s5768_s23 + $0x70] sm:$0xff]  }
  0x1d   : > { %217 = vst.msk [vmem:[#allocation2 + $0x160] sm:$0xff] %vm172_vm2, %v5655_v4  ;;  %218 = vst.msk [vmem:[#allocation2 + $0x168] sm:$0xff] %vm172_vm2, %v5655_v4  ;;  %v425_v29 = vld [vmem:[#allocation2 + $0xf0] sm:$0x80] }
  0x1e   : > { %219 = vst.msk [vmem:[#allocation2 + $0x170] sm:$0xff] %vm172_vm2, %v5655_v4  ;;  %220 = vst.msk [vmem:[#allocation2 + $0x178] sm:$0xff] %vm172_vm2, %v5655_v4  ;;  %v559_v30 = vshrl.u32 %v425_v29, 16  ;;  %v427_v31 = vld [vmem:[#allocation2 + $0x108] sm:$0x80]  ;;  %v549_v40 = vrot.slane %v547_v24, 7 }
  0x1f   : > { %221 = vst.msk [vmem:[#allocation2 + $0x180] sm:$0xff] %vm172_vm2, %v5655_v4  ;;  %222 = vst.msk [vmem:[#allocation2 + $0x188] sm:$0xff] %vm172_vm2, %v5655_v4  ;;  %v571_v35 = vshrl.u32 %v427_v31, 16  ;;  %v413_v31 = vld [vmem:[#allocation2 + $0x60] sm:$0x80] }
  0x20   : > { %223 = vst.msk [vmem:[#allocation2 + $0x190] sm:$0xff] %vm172_vm2, %v5655_v4  ;;  %224 = vst.msk [vmem:[#allocation2 + $0x198] sm:$0xff] %vm172_vm2, %v5655_v4  ;;  %v561_v51 = vrot.slane %v559_v30, 7  ;;  %v429_v2 = vld [vmem:[#allocation2 + $0x120] sm:$0x80]  ;;  %v487_v36 = vshrl.u32 %v413_v31, 16 }
  0x21   : > { %225 = vst.msk [vmem:[#allocation2 + $0x1a0] sm:$0xff] %vm172_vm2, %v5655_v4  ;;  %226 = vst.msk [vmem:[#allocation2 + $0x1a8] sm:$0xff] %vm172_vm2, %v5655_v4  ;;  %v573_v53 = vrot.slane %v571_v35, 7  ;;  %v5837_v4 = vand.u32 %v5004_v42, %v5690_v3  ;;  %v431_v25 = vld [vmem:[#allocation2 + $0x138] sm:$0x80]  ;;  %v583_v28 = vshrl.u32 %v429_v2, 16 }
  0x22   : > { %363 = vst.msk [vmem:[#allocation2 + $0xc8] sm:$0xff] %vm172_vm2, %v5630_v10  ;;  %364 = vst.msk [vmem:[#allocation2 + $0xe0] sm:$0xff] %vm172_vm2, %v5631_v11  ;;  %v595_v29 = vshrl.u32 %v431_v25, 16  ;;  %v477_v35 = vrot.slane %v475_v15, 7  ;;  %v489_v59 = vrot.slane %v487_v36, 7 }
  0x23   : > { %356 = vst.msk [vmem:[#allocation2 + $0x20] sm:$0xff] %vm172_vm2, %v5632_v12  ;;  %365 = vst.msk [vmem:[#allocation2 + $0xf8] sm:$0xff] %vm172_vm2, %v5633_v22 }
  0x24   : > { %366 = vst.msk [vmem:[#allocation2 + $0x110] sm:$0xff] %vm172_vm2, %v5634_v26  ;;  %357 = vst.msk [vmem:[#allocation2 + $0x38] sm:$0xff] %vm172_vm2, %v5635_v32  ;;  %v5640_v26 = vld [vmem:[%s5768_s23 + $0x20] sm:$0xff]   ;;  %v5641_v32 = vld [vmem:[%s5768_s23 + $0x68] sm:$0xff]  }
  0x25   : > { %358 = vst.msk [vmem:[#allocation2 + $0x50] sm:$0xff] %vm172_vm2, %v5636_v55  ;;  %367 = vst.msk [vmem:[#allocation2 + $0x128] sm:$0xff] %vm172_vm2, %v5637_v1  ;;  %v5643_v1 = vld [vmem:[%s5768_s23 + $0x28] sm:$0xff]  }
  0x26   : > { %368 = vst.msk [vmem:[#allocation2 + $0x140] sm:$0xff] %vm172_vm2, %v5638_v16  ;;  %359 = vst.msk [vmem:[#allocation2 + $0x68] sm:$0xff] %vm172_vm2, %v5639_v18  ;;  %v435_v18 = vld [vmem:[#allocation2 + $0x168] sm:$0x80] }
  0x27   : > { %360 = vst.msk [vmem:[#allocation2 + $0x80] sm:$0xff] %vm172_vm2, %v5640_v26  ;;  %369 = vst.msk [vmem:[#allocation2 + $0x158] sm:$0xff] %vm172_vm2, %v5641_v32 }
  0x28   : > { %370 = vst.msk [vmem:[#allocation2 + $0x170] sm:$0xff] %vm172_vm2, %v5642_v54  ;;  %361 = vst.msk [vmem:[#allocation2 + $0x98] sm:$0xff] %vm172_vm2, %v5643_v1 }
  0x29   : > { %v5789_v33 = vld [vmem:[#allocation2 + $0xc8] sm:$0xff]  ;;  %v5798_v39 = vld [vmem:[#allocation2 + $0xe0] sm:$0xff] }
  0x2a   : > { %v6997_v37 = vshrl.u32 %v5789_v33, 16  ;;  %v6998_v38 = vshll.u32 %v5789_v33, 16  ;;  %v551_v43 = vshrl.u32 %v5798_v39, 16  ;;  %v554_v44 = vshll.u32 %v5798_v39, 16  ;;  %v5807_v46 = vld [vmem:[#allocation2 + $0x20] sm:$0xff]  ;;  %v5821_v58 = vld [vmem:[#allocation2 + $0xf8] sm:$0xff] }
  0x2b   : > { %v455_v49 = vshrl.u32 %v5807_v46, 16  ;;  %v458_v50 = vshll.u32 %v5807_v46, 16  ;;  %v563_v62 = vshrl.u32 %v5821_v58, 16  ;;  %v566_v63 = vshll.u32 %v5821_v58, 16  ;;  %v5832_v0 = vld [vmem:[#allocation2 + $0x110] sm:$0xff]  ;;  %v5851_v13 = vld [vmem:[#allocation2 + $0x38] sm:$0xff] }
  0x2c   : > { %v541_v48 = vrot.slane %v6997_v37, 7  ;;  %v553_v52 = vrot.slane %v551_v43, 7  ;;  %v575_v7 = vshrl.u32 %v5832_v0, 16  ;;  %v578_v10 = vshll.u32 %v5832_v0, 16  ;;  %v5890_v41 = vld [vmem:[#allocation2 + $0x50] sm:$0xff] }
  0x2d   : > { %v457_v57 = vrot.slane %v455_v49, 7  ;;  %v565_v12 = vrot.slane %v563_v62, 7  ;;  %v470_v24 = vshll.u32 %v5851_v13, 16 }
  0x2e   : > { %v544_v56 = vor.u32 %v6998_v38, %v541_v48  ;;  %v5828_v61 = vor.u32 %v554_v44, %v553_v52  ;;  %v577_v22 = vrot.slane %v575_v7, 7  ;;  %v482_v48 = vshll.u32 %v5890_v41, 16  ;;  %v433_v52 = vld [vmem:[#allocation2 + $0x150] sm:$0x80] }
  0x2f   : > { %v5842_v6 = vor.u32 %v458_v50, %v457_v57  ;;  %v5868_v27 = vor.u32 %v566_v63, %v565_v12  ;;  %v597_v57 = vrot.slane %v595_v29, 7  ;;  %v5911_v12 = vld [vmem:[#allocation2 + $0x140] sm:$0xff]  ;;  %v607_v16 = vshrl.u32 %v433_v52, 16  ;;  %v417_v52 = vld [vmem:[#allocation2 + $0x90] sm:$0x80] }
  0x30   : > { %v545_v5 = vsel %vm437_vm3, %v537_v23, %v544_v56  ;;  %v557_v11 = vsel %vm437_vm3, %v549_v40, %v5828_v61  ;;  %v467_v23 = vshrl.u32 %v5851_v13, 16  ;;  %v5874_v30 = vor.u32 %v578_v10, %v577_v22  ;;  %v415_v40 = vld [vmem:[#allocation2 + $0x78] sm:$0x80]  ;;  %v5900_v56 = vld [vmem:[#allocation2 + $0x128] sm:$0xff] }
  0x31   : > { %5329 = vmatprep.mubr.msk.bf16.mxu1 %vm172_vm2, %v545_v5  ;;  %v461_v19 = vsel %vm437_vm3, %v453_v47, %v5842_v6  ;;  %v569_v34 = vsel %vm437_vm3, %v561_v51, %v5868_v27  ;;  %v499_v42 = vshrl.u32 %v415_v40, 16  ;;  %v7004_v47 = vshrl.u32 %v5890_v41, 16 }
  0x32   : > { %5330 = vmatmul.mubr.msk.bf16.vlgmr.msra.gmra.mrb[0].mxu1 %vm172_vm2, %v557_v11  ;;  %5314 = vmatmul.mubr.msk.bf16.vlgmr.msra.gmra.mrb[0].mxu0 %vm172_vm2, %v461_v19  ;;  %v581_v45 = vsel %vm437_vm3, %v573_v53, %v5874_v30  ;;  %v585_v51 = vrot.slane %v583_v28, 7  ;;  %v6995_v2 = vshrl.u32 %v5900_v56, 16  ;;  %v6996_v5 = vshll.u32 %v5900_v56, 16  ;;  %v5644_v11 = vld [vmem:[%s5768_s23 + $0x30] sm:$0xff]   ;;  %v5924_v28 = vld [vmem:[#allocation2 + $0x80] sm:$0xff] }
  0x33   : > { %5346 = vmatpush3.bf16.msra.mxu1 %v5757_v8  ;;  %5380 = vmatpush3.bf16.msra.mxu0 %v5760_v9  ;;  %v469_v8 = vrot.slane %v467_v23, 7  ;;  %v481_v53 = vrot.slane %v7004_v47, 7  ;;  %v501_v15 = vrot.slane %v499_v42, 7  ;;  %v7003_v25 = vshrl.u32 %v5911_v12, 16  ;;  %362 = vst.msk [vmem:[#allocation2 + $0xb0] sm:$0xff] %vm172_vm2, %v5644_v11  ;;  %v5939_v42 = vld [vmem:[#allocation2 + $0x158] sm:$0xff] }
  0x34   : > { %5413 = vmatprep.subr.bf16.mxu1 %v5824_v60  ;;  %5447 = vmatprep.subr.bf16.mxu0 %v5837_v4  ;;  %v589_v22 = vrot.slane %v6995_v2, 7  ;;  %v602_v26 = vshll.u32 %v5911_v12, 16  ;;  %v6999_v31 = vshrl.u32 %v5924_v28, 16  ;;  %v7000_v32 = vshll.u32 %v5924_v28, 16 }
  0x35   : > { %5333 = vmatprep.mubr.msk.bf16.mxu1 %vm172_vm2, %v569_v34  ;;  %v5888_v9 = vor.u32 %v470_v24, %v469_v8  ;;  %v5918_v19 = vor.u32 %v482_v48, %v481_v53  ;;  %v601_v40 = vrot.slane %v7003_v25, 7  ;;  %v7006_v1 = vshll.u32 %v5939_v42, 16 }
  0x36   : > { %v5935_v36 = vor.u32 %v6996_v5, %v589_v22  ;;  %v419_v22 = vld [vmem:[#allocation2 + $0xa8] sm:$0x80] }
  0x37   : > { %v473_v55 = vsel %vm437_vm3, %v465_v14, %v5888_v9  ;;  %v5913_v14 = vld [vmem:[#allocation2 + $0x68] sm:$0xff]  ;;  %v485_v34 = vsel %vm437_vm3, %v477_v35, %v5918_v19  ;;  %v7001_v35 = vshrl.u32 %v5939_v42, 16  ;;  %v5952_v11 = vor.u32 %v602_v26, %v601_v40  ;;  %v5967_v40 = vld [vmem:[#allocation2 + $0x170] sm:$0xff] }
  0x38   : > { %5317 = vmatprep.mubr.msk.bf16.mxu0 %vm172_vm2, %v473_v55  ;;  %v7002_v29 = vshrl.u32 %v5913_v14, 16  ;;  %v494_v8 = vshll.u32 %v5913_v14, 16  ;;  %v505_v55 = vrot.slane %v6999_v31, 7  ;;  %v593_v53 = vsel %vm437_vm3, %v585_v51, %v5935_v36 }
  0x39   : > { %v613_v51 = vrot.slane %v7001_v35, 7  ;;  %v605_v37 = vsel %vm437_vm3, %v597_v57, %v5952_v11  ;;  %v626_v38 = vshll.u32 %v5967_v40, 16  ;;  %v523_v57 = vshrl.u32 %v419_v22, 16 }
  0x3a   : > { %5334 = vmatmul.mubr.msk.bf16.gmra.mrb[4].mxu1 %vm172_vm2, %v581_v45  ;;  %v619_v45 = vshrl.u32 %v435_v18, 16  ;;  %5318 = vmatmul.mubr.msk.bf16.gmra.mrb[4].mxu0 %vm172_vm2, %v485_v34  ;;  %v493_v54 = vrot.slane %v7002_v29, 7  ;;  %v609_v18 = vrot.slane %v607_v16, 7  ;;  %v1307_v34 = vrot.slane %v446_v21, 1 }
  0x3b   : > { %5337 = vmatprep.mubr.msk.bf16.mxu1 %vm172_vm2, %v593_v53  ;;  %v5963_v5 = vor.u32 %v7000_v32, %v505_v55  ;;  %v511_v16 = vshrl.u32 %v417_v52, 16  ;;  %v7005_v53 = vshrl.u32 %v5967_v40, 16  ;;  %v5980_v31 = vor.u32 %v7006_v1, %v613_v51  ;;  %v5983_v32 = vld [vmem:[#allocation2 + $0xb0] sm:$0xff]  ;;  %v5645_v1 = vld [vmem:[%s5768_s23 + $0x78] sm:$0xff]  }
  0x3c   : > { %v5959_v2 = vor.u32 %v494_v8, %v493_v54  ;;  %v621_v21 = vrot.slane %v619_v45, 7  ;;  %v5973_v54 = vld [vmem:[#allocation2 + $0x98] sm:$0xff]  ;;  %v1270_v45 = vld [vmem:[#allocation2 + $0x10] sm:$0x1]  ;;  %v7008_v51 = vshrl.u32 %v5983_v32, 16  ;;  %v530_v47 = vshll.u32 %v5983_v32, 16 }
  0x3d   : > { %v7007_v52 = vshrl.u32 %v5973_v54, 16  ;;  %v509_v35 = vsel %vm437_vm3, %v501_v15, %v5963_v5  ;;  %v617_v29 = vsel %vm437_vm3, %v609_v18, %v5980_v31  ;;  %v513_v25 = vrot.slane %v511_v16, 7  ;;  %371 = vst.msk [vmem:[#allocation2 + $0x188] sm:$0xff] %vm172_vm2, %v5645_v1 }
  0x3e   : > { %v497_v55 = vsel %vm437_vm3, %v489_v59, %v5959_v2  ;;  %v518_v59 = vshll.u32 %v5973_v54, 16 }
  0x3f   : > { %5321 = vmatprep.mubr.msk.bf16.mxu0 %vm172_vm2, %v497_v55  ;;  %v517_v22 = vrot.slane %v7007_v52, 7  ;;  %v529_v55 = vrot.slane %v7008_v51, 7  ;;  %v525_v52 = vrot.slane %v523_v57, 7  ;;  %v1272_v51 = vld [vmem:[#allocation2 + $0x28] sm:$0x1] }
  0x40   : > { %v1322_v1 = vshll.u32 %v1272_v51, 16  ;;  %v5021_v57 = vld [vmem:[%s6992_s1 + $0xa] sm:$0x3] }
  0x41   : > { %v6008_v18 = vor.u32 %v518_v59, %v517_v22  ;;  %v1274_v22 = vld [vmem:[#allocation2 + $0x40] sm:$0x1] }
  0x42   : > { %5338 = vmatmul.mubr.msk.bf16.gmra.mrb[8].mxu1 %vm172_vm2, %v605_v37  ;;  %v625_v37 = vrot.slane %v7005_v53, 7  ;;  %v1310_v53 = vshll.u32 %v1270_v45, 16  ;;  %5322 = vmatmul.mubr.msk.bf16.gmra.mrb[8].mxu0 %vm172_vm2, %v509_v35  ;;  %v1308_v35 = vor.u32 %v1307_v34, %v443_v20  ;;  %v1331_v34 = vrot.slane %v470_v24, 1 }
  0x43   : > { %5341 = vmatprep.mubr.msk.bf16.mxu1 %vm172_vm2, %v617_v29  ;;  %v6014_v29 = vor.u32 %v530_v47, %v529_v55  ;;  %v521_v45 = vsel %vm437_vm3, %v513_v25, %v6008_v18  ;;  %v1319_v25 = vrot.slane %v458_v50, 1  ;;  %v5038_v50 = vld [vmem:[%s6992_s1 + $0xc] sm:$0x3]  ;;  %v1276_v55 = vld [vmem:[#allocation2 + $0x58] sm:$0x1] }
  0x44   : > { %v6000_v15 = vor.u32 %v626_v38, %v625_v37  ;;  %v1312_v37 = vrot.slane %v1310_v53, 1  ;;  %5325 = vmatprep.mubr.msk.bf16.mxu0 %vm172_vm2, %v521_v45  ;;  %v1334_v53 = vshll.u32 %v1274_v22, 16  ;;  %v1332_v24 = vor.u32 %v1331_v34, %v467_v23 }
  0x45   : > { %v6047_v45 = vand.u32 %v5021_v57, %v5690_v3  ;;  %v1439_v23 = vrot.slane %v578_v10, 1  ;;  %v6060_v22 = vand.u32 %v5038_v50, %v5690_v3 }
  0x46   : > { %v629_v16 = vsel %vm437_vm3, %v621_v21, %v6000_v15  ;;  %v533_v21 = vsel %vm437_vm3, %v525_v52, %v6014_v29  ;;  %v1313_v20 = vsel %vm1301_vm4, %v1308_v35, %v1312_v37  ;;  %v1324_v52 = vrot.slane %v1322_v1, 1  ;;  %v1278_v35 = vld [vmem:[#allocation2 + $0x70] sm:$0x1] }
  0x47   : > { %v1336_v51 = vrot.slane %v1334_v53, 1  ;;  %v1358_v1 = vshll.u32 %v1278_v35, 16 }
  0x49   : > { %v1337_v10 = vsel %vm1301_vm4, %v1332_v24, %v1336_v51  ;;  %v1360_v50 = vrot.slane %v1358_v1, 1  ;;  %v1280_v24 = vld [vmem:[#allocation2 + $0x88] sm:$0x1] }
  0x4a   : > { %5342 = vmatmul.mubr.msk.bf16.gmra.mrb[12].mxu1 %vm172_vm2, %v629_v16  ;;  %5326 = vmatmul.mubr.msk.bf16.gmra.mrb[12].mxu0 %vm172_vm2, %v533_v21  ;;  %v1415_v16 = vrot.slane %v554_v44, 1  ;;  %v1346_v21 = vshll.u32 %v1276_v55, 16  ;;  %v1282_v55 = vld [vmem:[#allocation2 + $0xa0] sm:$0x1] }
  0x4b   : > { %5347 = vmatprep.mubr.msk.bf16.mxu1 %vm172_vm2, %v5777_v17  ;;  %5381 = vmatprep.mubr.msk.bf16.mxu0 %vm172_vm2, %v1313_v20  ;;  %v1320_v17 = vor.u32 %v1319_v25, %v455_v49  ;;  %v1427_v49 = vrot.slane %v566_v63, 1  ;;  %v1343_v63 = vrot.slane %v482_v48, 1  ;;  %v1355_v25 = vrot.slane %v494_v8, 1 }
  0x4c   : > { %v6055_v37 = vor.u32 %v1415_v16, %v551_v43  ;;  %v1463_v48 = vrot.slane %v602_v26, 1  ;;  %v7010_v8 = vshrl.u32 %v5890_v41, 16  ;;  %v1348_v53 = vrot.slane %v1346_v21, 1 }
  0x4d   : > { %v1325_v44 = vsel %vm1301_vm4, %v1320_v17, %v1324_v52  ;;  %v6070_v43 = vor.u32 %v1427_v49, %v563_v62  ;;  %v7009_v62 = vshll.u32 %v5939_v42, 16  ;;  %v1487_v26 = vrot.slane %v626_v38, 1 }
  0x4e   : > { %v1344_v34 = vor.u32 %v1343_v63, %v7010_v8  ;;  %v7012_v17 = vshrl.u32 %v5913_v14, 16  ;;  %v7014_v16 = vshrl.u32 %v5967_v40, 16  ;;  %v7015_v49 = vshll.u32 %v5924_v28, 16 }
  0x4f   : > { %v1475_v20 = vrot.slane %v7009_v62, 1  ;;  %v1379_v21 = vrot.slane %v518_v59, 1  ;;  %v7017_v62 = vshrl.u32 %v5973_v54, 16 }
  0x50   : > { %v1356_v52 = vor.u32 %v1355_v25, %v7012_v17  ;;  %v6104_v35 = vor.u32 %v1487_v26, %v7014_v16  ;;  %v1349_v38 = vsel %vm1301_vm4, %v1344_v34, %v1348_v53  ;;  %v7016_v25 = vshrl.u32 %v5924_v28, 16  ;;  %v1284_v34 = vld [vmem:[#allocation2 + $0xb8] sm:$0x1]  ;;  %v1286_v53 = vld [vmem:[#allocation2 + $0xd0] sm:$0x1] }
  0x51   : > { %v1394_v26 = vshll.u32 %v1284_v34, 16 }
  0x52   : > { %5348 = vmatmul.mubr.msk.bf16.vlgmr.msra.gmra.mrb[16].mxu1 %vm172_vm2, %v5807_v46  ;;  %5382 = vmatmul.mubr.msk.bf16.vlgmr.msra.gmra.mrb[16].mxu0 %vm172_vm2, %v1325_v44  ;;  %v1370_v44 = vshll.u32 %v1280_v24, 16  ;;  %v1361_v63 = vsel %vm1301_vm4, %v1356_v52, %v1360_v50  ;;  %v7018_v52 = vshll.u32 %v5789_v33, 16  ;;  %v1406_v24 = vshll.u32 %v1286_v53, 16 }
  0x53   : > { %5414 = vmatpush3.bf16.msra.mxu1 %v5824_v60  ;;  %5351 = vmatprep.mubr.msk.bf16.mxu1 %vm172_vm2, %v5851_v13  ;;  %v6077_v60 = vor.u32 %v1439_v23, %v575_v7  ;;  %v7011_v7 = vshrl.u32 %v5911_v12, 16  ;;  %v1367_v23 = vrot.slane %v7015_v49, 1  ;;  %v1396_v16 = vrot.slane %v1394_v26, 1 }
  0x54   : > { %5481 = vmatprep.subr.bf16.mxu1 %v6047_v45  ;;  %5448 = vmatpush3.bf16.msra.mxu0 %v5837_v4  ;;  %v7013_v4 = vshrl.u32 %v5939_v42, 16  ;;  %v1403_v50 = vrot.slane %v7018_v52, 1  ;;  %v7021_v53 = vshll.u32 %v5900_v56, 16 }
  0x55   : > { %5385 = vmatprep.mubr.msk.bf16.mxu0 %vm172_vm2, %v1337_v10  ;;  %v6091_v57 = vor.u32 %v1463_v48, %v7011_v7  ;;  %5515 = vmatprep.subr.bf16.mxu0 %v6060_v22  ;;  %v1382_v10 = vshll.u32 %v1282_v55, 16  ;;  %v1368_v1 = vor.u32 %v1367_v23, %v7016_v25  ;;  %v1372_v48 = vrot.slane %v1370_v44, 1  ;;  %v1290_v44 = vld [vmem:[#allocation2 + $0x100] sm:$0x1] }
  0x56   : > { %v6099_v51 = vor.u32 %v1475_v20, %v7013_v4  ;;  %v1380_v20 = vor.u32 %v1379_v21, %v7017_v62  ;;  %v1391_v7 = vrot.slane %v530_v47, 1  ;;  %v7019_v4 = vshrl.u32 %v5983_v32, 16  ;;  %v1288_v47 = vld [vmem:[#allocation2 + $0xe8] sm:$0x1]  ;;  %v1292_v62 = vld [vmem:[#allocation2 + $0x118] sm:$0x1] }
  0x57   : > { %v1384_v8 = vrot.slane %v1382_v10, 1  ;;  %v1373_v59 = vsel %vm1301_vm4, %v1368_v1, %v1372_v48  ;;  %v1408_v23 = vrot.slane %v1406_v24, 1  ;;  %v1418_v21 = vshll.u32 %v1288_v47, 16  ;;  %v1298_v24 = vld [vmem:[#allocation2 + $0x160] sm:$0x1] }
  0x58   : > { %v1392_v55 = vor.u32 %v1391_v7, %v7019_v4  ;;  %v1430_v25 = vshll.u32 %v1290_v44, 16 }
  0x59   : > { %v1385_v17 = vsel %vm1301_vm4, %v1380_v20, %v1384_v8  ;;  %v1420_v1 = vrot.slane %v1418_v21, 1  ;;  %v1294_v20 = vld [vmem:[#allocation2 + $0x130] sm:$0x1]  ;;  %v1442_v8 = vshll.u32 %v1292_v62, 16 }
  0x5a   : > { %5352 = vmatmul.mubr.msk.bf16.gmra.mrb[20].mxu1 %vm172_vm2, %v5890_v41  ;;  %5386 = vmatmul.mubr.msk.bf16.gmra.mrb[20].mxu0 %vm172_vm2, %v1349_v38  ;;  %v7020_v38 = vshrl.u32 %v5789_v33, 16  ;;  %v1432_v48 = vrot.slane %v1430_v25, 1  ;;  %v1454_v7 = vshll.u32 %v1294_v20, 16  ;;  %v1808_v25 = vld [vmem:[#allocation2 + $0x48] sm:$0x80] }
  0x5b   : > { %5355 = vmatprep.mubr.msk.bf16.mxu1 %vm172_vm2, %v5913_v14  ;;  %5389 = vmatprep.mubr.msk.bf16.mxu0 %vm172_vm2, %v1361_v63  ;;  %v1397_v63 = vsel %vm1301_vm4, %v1392_v55, %v1396_v16  ;;  %v1444_v26 = vrot.slane %v1442_v8, 1  ;;  %v1478_v55 = vshll.u32 %v1298_v24, 16  ;;  %v1804_v16 = vld [vmem:[#allocation2 + $0x18] sm:$0x80]  ;;  %v1861_v20 = vshrl.u32 %v1808_v25, 16  ;;  %v6283_v25 = vld [vmem:[#allocation2 + $0xe0] sm:$0xff] }
  0x5c   : > { %v1404_v49 = vor.u32 %v1403_v50, %v7020_v38  ;;  %v1433_v34 = vsel %vm1301_vm4, %v6070_v43, %v1432_v48  ;;  %v1456_v52 = vrot.slane %v1454_v7, 1  ;;  %v1296_v50 = vld [vmem:[#allocation2 + $0x148] sm:$0x1]  ;;  %v1837_v47 = vshrl.u32 %v1804_v16, 16  ;;  %v1810_v8 = vld [vmem:[#allocation2 + $0x60] sm:$0x80] }
  0x5d   : > { %v1466_v43 = vshll.u32 %v1296_v50, 16  ;;  %v1816_v50 = vld [vmem:[#allocation2 + $0xa8] sm:$0x80] }
  0x5e   : > { %v1409_v10 = vsel %vm1301_vm4, %v1404_v49, %v1408_v23  ;;  %v1480_v49 = vrot.slane %v1478_v55, 1  ;;  %v1300_v23 = vld [vmem:[#allocation2 + $0x178] sm:$0x1]  ;;  %v1839_v21 = vrot.slane %v1837_v47, 7  ;;  %v1820_v55 = vld [vmem:[#allocation2 + $0xd8] sm:$0x80] }
  0x5f   : > { %v1468_v38 = vrot.slane %v1466_v43, 1  ;;  %v1490_v44 = vshll.u32 %v1300_v23, 16  ;;  %v1909_v43 = vshrl.u32 %v1816_v50, 16  ;;  %v1933_v23 = vshrl.u32 %v1820_v55, 16  ;;  %v1822_v47 = vld [vmem:[#allocation2 + $0xf0] sm:$0x80] }
  0x60   : > { %v1847_v62 = vsel %vm437_vm3, %v1839_v21, %v5842_v6 }
  0x62   : > { %5356 = vmatmul.mubr.msk.bf16.gmra.mrb[24].mxu1 %vm172_vm2, %v5924_v28  ;;  %5390 = vmatmul.mubr.msk.bf16.gmra.mrb[24].mxu0 %vm172_vm2, %v1373_v59  ;;  %v1451_v59 = vrot.slane %v7021_v53, 1  ;;  %v5055_v53 = vld [vmem:[%s6992_s1 + $0xe] sm:$0x3] }
  0x63   : > { %5359 = vmatprep.mubr.msk.bf16.mxu1 %vm172_vm2, %v5973_v54  ;;  %5393 = vmatprep.mubr.msk.bf16.mxu0 %vm172_vm2, %v1385_v17  ;;  %v6229_v7 = vand.u32 %v5055_v53, %v5690_v3 }
  0x6a   : > { %5360 = vmatmul.mubr.msk.bf16.gmra.mrb[28].mxu1 %vm172_vm2, %v5983_v32  ;;  %5394 = vmatmul.mubr.msk.bf16.gmra.mrb[28].mxu0 %vm172_vm2, %v1397_v63  ;;  %v1481_v63 = vsel %vm1301_vm4, %v6099_v51, %v1480_v49 }
  0x6b   : > { %5363 = vmatprep.mubr.msk.bf16.mxu1 %vm172_vm2, %v5789_v33  ;;  %5397 = vmatprep.mubr.msk.bf16.mxu0 %vm172_vm2, %v1409_v10  ;;  %v1421_v33 = vsel %vm1301_vm4, %v6055_v37, %v1420_v1  ;;  %v1445_v37 = vsel %vm1301_vm4, %v6077_v60, %v1444_v26  ;;  %v1469_v60 = vsel %vm1301_vm4, %v6091_v57, %v1468_v38  ;;  %v1806_v10 = vld [vmem:[#allocation2 + $0x30] sm:$0x80]  ;;  %v1492_v1 = vrot.slane %v1490_v44, 1  ;;  %v5072_v26 = vld [vmem:[%s6992_s1 + $0x10] sm:$0x3] }
  0x6c   : > { %v1849_v48 = vshrl.u32 %v1806_v10, 16 }
  0x6d   : > { %v1493_v57 = vsel %vm1301_vm4, %v6104_v35, %v1492_v1  ;;  %v1873_v35 = vshrl.u32 %v1810_v8, 16  ;;  %v1832_v8 = vld [vmem:[#allocation2 + $0x168] sm:$0x80] }
  0x6e   : > { %v1851_v51 = vrot.slane %v1849_v48, 7  ;;  %v1828_v48 = vld [vmem:[#allocation2 + $0x138] sm:$0x80]  ;;  %v2005_v53 = vshrl.u32 %v1832_v8, 16 }
  0x70   : > { %v1859_v6 = vsel %vm437_vm3, %v1851_v51, %v5888_v9 }
  0x72   : > { %5364 = vmatmul.mubr.msk.bf16.gmra.mrb[32].mxu1 %vm172_vm2, %v5798_v39  ;;  %5398 = vmatmul.mubr.msk.bf16.gmra.mrb[32].mxu0 %vm172_vm2, %v1421_v33  ;;  %v7022_v39 = vshrl.u32 %v5900_v56, 16  ;;  %v1863_v33 = vrot.slane %v1861_v20, 7  ;;  %v1981_v20 = vshrl.u32 %v1828_v48, 16 }
  0x73   : > { %5367 = vmatprep.mubr.msk.bf16.mxu1 %vm172_vm2, %v5821_v58  ;;  %5401 = vmatprep.mubr.msk.bf16.mxu0 %vm172_vm2, %v1433_v34  ;;  %v1812_v34 = vld [vmem:[#allocation2 + $0x78] sm:$0x80] }
  0x74   : > { %v1452_v17 = vor.u32 %v1451_v59, %v7022_v39  ;;  %v5656_v59 = vmov 0.0   ;;  %v1885_v9 = vshrl.u32 %v1812_v34, 16  ;;  %v1875_v39 = vrot.slane %v1873_v35, 7  ;;  %v2664_v35 = vld [vmem:[#allocation2 + $0x20] sm:$0xff] }
  0x75   : > { %391 = vst.msk [vmem:[#allocation3 + $0x90] sm:$0xff] %vm372_vm5, %v5656_v59  ;;  %373 = vst.msk [vmem:[#allocation3] sm:$0xff] %vm372_vm5, %v5656_v59  ;;  %v1983_v51 = vrot.slane %v1981_v20, 7 }
  0x76   : > { %v1457_v4 = vsel %vm1301_vm4, %v1452_v17, %v1456_v52  ;;  %374 = vst.msk [vmem:[#allocation3 + $0x8] sm:$0xff] %vm372_vm5, %v5656_v59  ;;  %375 = vst.msk [vmem:[#allocation3 + $0x10] sm:$0xff] %vm372_vm5, %v5656_v59  ;;  %v1887_v17 = vrot.slane %v1885_v9, 7  ;;  %v1814_v52 = vld [vmem:[#allocation2 + $0x90] sm:$0x80]  ;;  %v1883_v24 = vsel %vm437_vm3, %v1875_v39, %v5959_v2  ;;  %v1911_v2 = vrot.slane %v1909_v43, 7 }
  0x77   : > { %376 = vst.msk [vmem:[#allocation3 + $0x18] sm:$0xff] %vm372_vm5, %v5656_v59  ;;  %377 = vst.msk [vmem:[#allocation3 + $0x20] sm:$0xff] %vm372_vm5, %v5656_v59  ;;  %v2699_v9 = vshll.u32 %v2664_v35, 16 }
  0x78   : > { %378 = vst.msk [vmem:[#allocation3 + $0x28] sm:$0xff] %vm372_vm5, %v5656_v59  ;;  %379 = vst.msk [vmem:[#allocation3 + $0x30] sm:$0xff] %vm372_vm5, %v5656_v59  ;;  %v1919_v49 = vsel %vm437_vm3, %v1911_v2, %v6014_v29  ;;  %v1945_v29 = vshrl.u32 %v1822_v47, 16 }
  0x79   : > { %380 = vst.msk [vmem:[#allocation3 + $0x38] sm:$0xff] %vm372_vm5, %v5656_v59  ;;  %381 = vst.msk [vmem:[#allocation3 + $0x40] sm:$0xff] %vm372_vm5, %v5656_v59 }
  0x7a   : > { %5368 = vmatmul.mubr.msk.bf16.gmra.mrb[36].mxu1 %vm172_vm2, %v5832_v0  ;;  %5402 = vmatmul.mubr.msk.bf16.gmra.mrb[36].mxu0 %vm172_vm2, %v1445_v37  ;;  %382 = vst.msk [vmem:[#allocation3 + $0x48] sm:$0xff] %vm372_vm5, %v5656_v59  ;;  %383 = vst.msk [vmem:[#allocation3 + $0x50] sm:$0xff] %vm372_vm5, %v5656_v59  ;;  %v1895_v37 = vsel %vm437_vm3, %v1887_v17, %v5963_v5  ;;  %v1947_v10 = vrot.slane %v1945_v29, 7  ;;  %v6339_v29 = vld [vmem:[#allocation2 + $0x68] sm:$0xff] }
  0x7b   : > { %5371 = vmatprep.mubr.msk.bf16.mxu1 %vm172_vm2, %v5900_v56  ;;  %5405 = vmatprep.mubr.msk.bf16.mxu0 %vm172_vm2, %v1457_v4  ;;  %384 = vst.msk [vmem:[#allocation3 + $0x58] sm:$0xff] %vm372_vm5, %v5656_v59  ;;  %385 = vst.msk [vmem:[#allocation3 + $0x60] sm:$0xff] %vm372_vm5, %v5656_v59  ;;  %v6250_v4 = vld [vmem:[#allocation2 + $0xc8] sm:$0xff] }
  0x7c   : > { %386 = vst.msk [vmem:[#allocation3 + $0x68] sm:$0xff] %vm372_vm5, %v5656_v59  ;;  %387 = vst.msk [vmem:[#allocation3 + $0x70] sm:$0xff] %vm372_vm5, %v5656_v59  ;;  %v1928_v38 = vshll.u32 %v6250_v4, 16 }
  0x7d   : > { %388 = vst.msk [vmem:[#allocation3 + $0x78] sm:$0xff] %vm372_vm5, %v5656_v59  ;;  %389 = vst.msk [vmem:[#allocation3 + $0x80] sm:$0xff] %vm372_vm5, %v5656_v59 }
  0x7e   : > { %390 = vst.msk [vmem:[#allocation3 + $0x88] sm:$0xff] %vm372_vm5, %v5656_v59  ;;  %392 = vst.msk [vmem:[#allocation3 + $0x98] sm:$0xff] %vm372_vm5, %v5656_v59 }
  0x7f   : > { %393 = vst.msk [vmem:[#allocation3 + $0xa0] sm:$0xff] %vm372_vm5, %v5656_v59  ;;  %394 = vst.msk [vmem:[#allocation3 + $0xa8] sm:$0xff] %vm372_vm5, %v5656_v59 }
  0x80   : > { %395 = vst.msk [vmem:[#allocation3 + $0xb0] sm:$0xff] %vm372_vm5, %v5656_v59  ;;  %396 = vst.msk [vmem:[#allocation3 + $0xb8] sm:$0xff] %vm372_vm5, %v5656_v59 }
  0x81   : > { %397 = vst.msk [vmem:[#allocation3 + $0xc0] sm:$0xff] %vm372_vm5, %v5656_v59  ;;  %398 = vst.msk [vmem:[#allocation3 + $0xc8] sm:$0xff] %vm372_vm5, %v5656_v59 }
  0x82   : > { %5372 = vmatmul.mubr.msk.bf16.gmra.mrb[40].mxu1 %vm172_vm2, %v5911_v12  ;;  %5406 = vmatmul.mubr.msk.bf16.gmra.mrb[40].mxu0 %vm172_vm2, %v1469_v60  ;;  %399 = vst.msk [vmem:[#allocation3 + $0xd0] sm:$0xff] %vm372_vm5, %v5656_v59  ;;  %400 = vst.msk [vmem:[#allocation3 + $0xd8] sm:$0xff] %vm372_vm5, %v5656_v59  ;;  %v1824_v60 = vld [vmem:[#allocation2 + $0x108] sm:$0x80] }
  0x83   : > { %5375 = vmatprep.mubr.msk.bf16.mxu1 %vm172_vm2, %v5939_v42  ;;  %5409 = vmatprep.mubr.msk.bf16.mxu0 %vm172_vm2, %v1481_v63  ;;  %401 = vst.msk [vmem:[#allocation3 + $0xe0] sm:$0xff] %vm372_vm5, %v5656_v59  ;;  %402 = vst.msk [vmem:[#allocation3 + $0xe8] sm:$0xff] %vm372_vm5, %v5656_v59  ;;  %v1957_v21 = vshrl.u32 %v1824_v60, 16 }
  0x84   : > { %403 = vst.msk [vmem:[#allocation3 + $0xf0] sm:$0xff] %vm372_vm5, %v5656_v59  ;;  %404 = vst.msk [vmem:[#allocation3 + $0xf8] sm:$0xff] %vm372_vm5, %v5656_v59 }
  0x85   : > { %v1959_v1 = vrot.slane %v1957_v21, 7 }
  0x8a   : > { %5376 = vmatmul.mubr.msk.bf16.gmra.mrb[44].mxu1 %vm172_vm2, %v5967_v40  ;;  %5410 = vmatmul.mubr.msk.bf16.gmra.mrb[44].mxu0 %vm172_vm2, %v1493_v57 }
  0x8b   : > { %5415 = vmatprep.mubr.msk.bf16.mxu1 %vm172_vm2, %v1847_v62  ;;  %5449 = vmatprep.mubr.msk.bf16.mxu0 %vm172_vm2, %v5807_v46  ;;  %v1871_v46 = vsel %vm437_vm3, %v1863_v33, %v5918_v19  ;;  %v6239_v19 = vand.u32 %v5072_v26, %v5690_v3  ;;  %v1967_v62 = vsel %vm437_vm3, %v1959_v1, %v5874_v30  ;;  %v1830_v33 = vld [vmem:[#allocation2 + $0x150] sm:$0x80]  ;;  %v2665_v26 = vld [vmem:[#allocation2 + $0x28] sm:$0x1]  ;;  %v3201_v1 = vld [vmem:[#allocation2 + $0x48] sm:$0x80] }
  0x8c   : > { %v1993_v34 = vshrl.u32 %v1830_v33, 16  ;;  %v1991_v30 = vsel %vm437_vm3, %v1983_v51, %v5952_v11  ;;  %v3244_v51 = vshrl.u32 %v3201_v1, 16 }
  0x8e   : > { %v1995_v59 = vrot.slane %v1993_v34, 7 }
  0x92   : > { %5416 = vmatmul.mubr.msk.bf16.vlgmr.msra.gmra.mrb[48].mxu1 %vm172_vm2, %v1859_v6  ;;  %5450 = vmatmul.mubr.msk.bf16.vlgmr.msra.gmra.mrb[48].mxu0 %vm172_vm2, %v5851_v13  ;;  %v1925_v13 = vshrl.u32 %v6250_v4, 16  ;;  %v6303_v6 = vld [vmem:[#allocation2 + $0x188] sm:$0xff] }
  0x93   : > { %5482 = vmatpush3.bf16.msra.mxu1 %v6047_v45  ;;  %5419 = vmatprep.mubr.msk.bf16.mxu1 %vm172_vm2, %v1871_v46  ;;  %v1897_v45 = vshrl.u32 %v1814_v52, 16  ;;  %v2007_v46 = vrot.slane %v2005_v53, 7  ;;  %v2024_v17 = vshll.u32 %v6303_v6, 16  ;;  %v6317_v52 = vld [vmem:[#allocation2 + $0x38] sm:$0xff] }
  0x94   : > { %5549 = vmatprep.subr.bf16.mxu1 %v6229_v7  ;;  %5516 = vmatpush3.bf16.msra.mxu0 %v6060_v22  ;;  %v1818_v22 = vld [vmem:[#allocation2 + $0xc0] sm:$0x80]  ;;  %v1927_v16 = vrot.slane %v1925_v13, 7  ;;  %v2711_v43 = vshll.u32 %v6317_v52, 16 }
  0x95   : > { %5453 = vmatprep.mubr.msk.bf16.mxu0 %vm172_vm2, %v5890_v41  ;;  %5583 = vmatprep.subr.bf16.mxu0 %v6239_v19  ;;  %v1899_v3 = vrot.slane %v1897_v45, 7  ;;  %v1921_v5 = vshrl.u32 %v1818_v22, 16  ;;  %v2015_v50 = vsel %vm437_vm3, %v2007_v46, %v6000_v15  ;;  %v2701_v45 = vrot.slane %v2699_v9, 1  ;;  %v2667_v15 = vld [vmem:[#allocation2 + $0x40] sm:$0x1] }
  0x97   : > { %v1907_v41 = vsel %vm437_vm3, %v1899_v3, %v6008_v18  ;;  %v6271_v18 = vor.u32 %v1928_v38, %v1927_v16 }
  0x9a   : > { %5420 = vmatmul.mubr.msk.bf16.gmra.mrb[52].mxu1 %vm172_vm2, %v1883_v24  ;;  %5454 = vmatmul.mubr.msk.bf16.gmra.mrb[52].mxu0 %vm172_vm2, %v5913_v14  ;;  %v1923_v14 = vrot.slane %v1921_v5, 7  ;;  %v2697_v24 = vshrl.u32 %v2664_v35, 16  ;;  %v2673_v35 = vld [vmem:[#allocation2 + $0x88] sm:$0x1] }
  0x9b   : > { %5423 = vmatprep.mubr.msk.bf16.mxu1 %vm172_vm2, %v1895_v37  ;;  %5457 = vmatprep.mubr.msk.bf16.mxu0 %vm172_vm2, %v5924_v28  ;;  %v1935_v28 = vrot.slane %v1933_v23, 7  ;;  %v6321_v37 = vld [vmem:[#allocation2 + $0x50] sm:$0xff]  ;;  %v2713_v23 = vrot.slane %v2711_v43, 1 }
  0x9c   : > { %v1931_v44 = vsel %vm437_vm3, %v1923_v14, %v6271_v18  ;;  %v2723_v22 = vshll.u32 %v6321_v37, 16  ;;  %v2702_v55 = vor.u32 %v2701_v45, %v2697_v24  ;;  %v2716_v14 = vshll.u32 %v2667_v15, 16 }
  0x9d   : > { %v1943_v63 = vsel %vm437_vm3, %v1935_v28, %v5828_v61  ;;  %v2721_v47 = vshrl.u32 %v6321_v37, 16 }
  0x9e   : > { %v2725_v60 = vrot.slane %v2723_v22, 1 }
  0x9f   : > { %v3250_v33 = vrot.slane %v2721_v47, 7 }
  0xa0   : > { %v6350_v20 = vor.u32 %v2725_v60, %v2721_v47  ;;  %v2675_v47 = vld [vmem:[#allocation2 + $0xa0] sm:$0x1] }
  0xa1   : > { %v2764_v1 = vshll.u32 %v2675_v47, 16 }
  0xa2   : > { %5424 = vmatmul.mubr.msk.bf16.gmra.mrb[56].mxu1 %vm172_vm2, %v1907_v41  ;;  %5458 = vmatmul.mubr.msk.bf16.gmra.mrb[56].mxu0 %vm172_vm2, %v5973_v54  ;;  %v1826_v54 = vld [vmem:[#allocation2 + $0x120] sm:$0x80] }
  0xa3   : > { %5427 = vmatprep.mubr.msk.bf16.mxu1 %vm172_vm2, %v1919_v49  ;;  %5461 = vmatprep.mubr.msk.bf16.mxu0 %vm172_vm2, %v5983_v32  ;;  %v1955_v32 = vsel %vm437_vm3, %v1947_v10, %v5868_v27  ;;  %v1969_v61 = vshrl.u32 %v1826_v54, 16  ;;  %v2669_v49 = vld [vmem:[#allocation2 + $0x58] sm:$0x1]  ;;  %v6342_v54 = vld [vmem:[#allocation2 + $0x80] sm:$0xff] }
  0xa4   : > { %v2745_v46 = vshrl.u32 %v6342_v54, 16 }
  0xa5   : > { %v1971_v57 = vrot.slane %v1969_v61, 7  ;;  %v2733_v61 = vshrl.u32 %v6339_v29, 16 }
  0xa7   : > { %v1979_v27 = vsel %vm437_vm3, %v1971_v57, %v5935_v36  ;;  %v1834_v36 = vld [vmem:[#allocation2 + $0x180] sm:$0x80]  ;;  %v3262_v34 = vrot.slane %v2733_v61, 7 }
  0xa8   : > { %v2017_v11 = vshrl.u32 %v1834_v36, 16 }
  0xaa   : > { %5428 = vmatmul.mubr.msk.bf16.gmra.mrb[60].mxu1 %vm172_vm2, %v1931_v44  ;;  %5462 = vmatmul.mubr.msk.bf16.gmra.mrb[60].mxu0 %vm172_vm2, %v6250_v4  ;;  %v2019_v3 = vrot.slane %v2017_v11, 7  ;;  %v2728_v44 = vshll.u32 %v2669_v49, 16  ;;  %v3205_v11 = vld [vmem:[#allocation2 + $0x78] sm:$0x80] }
  0xab   : > { %5431 = vmatprep.mubr.msk.bf16.mxu1 %vm172_vm2, %v1943_v63  ;;  %5465 = vmatprep.mubr.msk.bf16.mxu0 %vm172_vm2, %v6283_v25 }
  0xac   : > { %v2730_v57 = vrot.slane %v2728_v44, 1  ;;  %v2677_v44 = vld [vmem:[#allocation2 + $0xb8] sm:$0x1] }
  0xae   : > { %v2731_v9 = vsel %vm1301_vm4, %v6350_v20, %v2730_v57  ;;  %v2776_v57 = vshll.u32 %v2677_v44, 16  ;;  %v2683_v44 = vld [vmem:[#allocation2 + $0x100] sm:$0x1] }
  0xb2   : > { %5432 = vmatmul.mubr.msk.bf16.gmra.mrb[64].mxu1 %vm172_vm2, %v1955_v32  ;;  %5466 = vmatmul.mubr.msk.bf16.gmra.mrb[64].mxu0 %vm172_vm2, %v5821_v58  ;;  %v2021_v58 = vshrl.u32 %v6303_v6, 16  ;;  %v2718_v32 = vrot.slane %v2716_v14, 1 }
  0xb3   : > { %5435 = vmatprep.mubr.msk.bf16.mxu1 %vm172_vm2, %v1967_v62  ;;  %5469 = vmatprep.mubr.msk.bf16.mxu0 %vm172_vm2, %v5832_v0  ;;  %v2003_v0 = vsel %vm437_vm3, %v1995_v59, %v5980_v31  ;;  %v3199_v31 = vld [vmem:[#allocation2 + $0x30] sm:$0x80]  ;;  %v2735_v62 = vshll.u32 %v6339_v29, 16 }
  0xb4   : > { %v2023_v39 = vrot.slane %v2021_v58, 7  ;;  %v3232_v5 = vshrl.u32 %v3199_v31, 16  ;;  %v3207_v31 = vld [vmem:[#allocation2 + $0x90] sm:$0x80] }
  0xb5   : > { %v2737_v59 = vrot.slane %v2735_v62, 1  ;;  %v3265_v24 = vor.u32 %v3262_v34, %v2735_v62 }
  0xb6   : > { %v6329_v2 = vor.u32 %v2024_v17, %v2023_v39  ;;  %v3234_v21 = vrot.slane %v3232_v5, 7  ;;  %v6362_v39 = vld [vmem:[#allocation2 + $0x98] sm:$0xff] }
  0xb7   : > { %v6368_v15 = vor.u32 %v2737_v59, %v2733_v61  ;;  %v2778_v59 = vrot.slane %v2776_v57, 1 }
  0xb8   : > { %v2027_v28 = vsel %vm437_vm3, %v2019_v3, %v6329_v2  ;;  %v6365_v3 = vld [vmem:[#allocation2 + $0xb0] sm:$0xff] }
  0xb9   : > { %v2771_v60 = vshll.u32 %v6365_v3, 16 }
  0xba   : > { %5436 = vmatmul.mubr.msk.bf16.gmra.mrb[68].mxu1 %vm172_vm2, %v1979_v27  ;;  %5470 = vmatmul.mubr.msk.bf16.gmra.mrb[68].mxu0 %vm172_vm2, %v5900_v56  ;;  %v2704_v56 = vshll.u32 %v2665_v26, 16  ;;  %v3246_v26 = vrot.slane %v3244_v51, 7  ;;  %v3209_v51 = vld [vmem:[#allocation2 + $0xa8] sm:$0x80] }
  0xbb   : > { %5439 = vmatprep.mubr.msk.bf16.mxu1 %vm172_vm2, %v1991_v30  ;;  %5473 = vmatprep.mubr.msk.bf16.mxu0 %vm172_vm2, %v5911_v12  ;;  %v2709_v12 = vshrl.u32 %v6317_v52, 16  ;;  %v2747_v30 = vshll.u32 %v6342_v54, 16  ;;  %v2773_v62 = vrot.slane %v2771_v60, 1 }
  0xbc   : > { %v2706_v41 = vrot.slane %v2704_v56, 1  ;;  %v2752_v56 = vshll.u32 %v2673_v35, 16 }
  0xbd   : > { %v3238_v16 = vrot.slane %v2709_v12, 7  ;;  %v6345_v48 = vor.u32 %v2713_v23, %v2709_v12  ;;  %v2749_v45 = vrot.slane %v2747_v30, 1 }
  0xbe   : > { %v2707_v63 = vsel %vm1301_vm4, %v2702_v55, %v2706_v41  ;;  %v3268_v55 = vshrl.u32 %v3205_v11, 16  ;;  %v3274_v41 = vrot.slane %v2745_v46, 7  ;;  %v2793_v11 = vshrl.u32 %v6283_v25, 16 }
  0xbf   : > { %v3241_v10 = vor.u32 %v3238_v16, %v2711_v43  ;;  %v2719_v36 = vsel %vm1301_vm4, %v6345_v48, %v2718_v32  ;;  %v2757_v43 = vshrl.u32 %v6362_v39, 16  ;;  %v3280_v16 = vshrl.u32 %v3207_v31, 16  ;;  %v3213_v31 = vld [vmem:[#allocation2 + $0xd8] sm:$0x80] }
  0xc0   : > { %v6375_v14 = vor.u32 %v2749_v45, %v2745_v46  ;;  %v2679_v46 = vld [vmem:[#allocation2 + $0xd0] sm:$0x1] }
  0xc1   : > { %v3242_v8 = vsel %vm437_vm3, %v3234_v21, %v3241_v10  ;;  %v3286_v49 = vrot.slane %v2757_v43, 7  ;;  %v3277_v21 = vor.u32 %v3274_v41, %v2747_v30  ;;  %v3292_v30 = vshrl.u32 %v3209_v51, 16 }
  0xc2   : > { %5440 = vmatmul.mubr.msk.bf16.gmra.mrb[72].mxu1 %vm172_vm2, %v2003_v0  ;;  %5474 = vmatmul.mubr.msk.bf16.gmra.mrb[72].mxu0 %vm172_vm2, %v5939_v42  ;;  %v3203_v42 = vld [vmem:[#allocation2 + $0x60] sm:$0x80]  ;;  %v3253_v0 = vor.u32 %v3250_v33, %v2723_v22  ;;  %v2759_v22 = vshll.u32 %v6362_v39, 16 }
  0xc3   : > { %5443 = vmatprep.mubr.msk.bf16.mxu1 %vm172_vm2, %v2015_v50  ;;  %5477 = vmatprep.mubr.msk.bf16.mxu0 %vm172_vm2, %v5967_v40  ;;  %v2671_v40 = vld [vmem:[#allocation2 + $0x70] sm:$0x1]  ;;  %v3256_v27 = vshrl.u32 %v3203_v42, 16  ;;  %v3282_v42 = vrot.slane %v3280_v16, 7  ;;  %v3211_v33 = vld [vmem:[#allocation2 + $0xc0] sm:$0x80] }
  0xc4   : > { %v2740_v53 = vshll.u32 %v2671_v40, 16  ;;  %v3254_v5 = vsel %vm437_vm3, %v3246_v26, %v3253_v0  ;;  %v2761_v10 = vrot.slane %v2759_v22, 1  ;;  %v3289_v32 = vor.u32 %v3286_v49, %v2759_v22  ;;  %v2681_v26 = vld [vmem:[#allocation2 + $0xe8] sm:$0x1] }
  0xc5   : > { %v3258_v50 = vrot.slane %v3256_v27, 7  ;;  %v2769_v40 = vshrl.u32 %v6365_v3, 16  ;;  %v2785_v0 = vrot.slane %v1928_v38, 1  ;;  %v2800_v22 = vshll.u32 %v2681_v26, 16  ;;  %v3215_v38 = vld [vmem:[#allocation2 + $0xf0] sm:$0x80] }
  0xc6   : > { %v2742_v12 = vrot.slane %v2740_v53, 1  ;;  %v6388_v27 = vor.u32 %v2761_v10, %v2757_v43  ;;  %v3290_v34 = vsel %vm437_vm3, %v3282_v42, %v3289_v32  ;;  %v3316_v49 = vshrl.u32 %v3213_v31, 16 }
  0xc7   : > { %v3266_v23 = vsel %vm437_vm3, %v3258_v50, %v3265_v24  ;;  %v3298_v53 = vrot.slane %v2769_v40, 7  ;;  %v6392_v35 = vor.u32 %v2773_v62, %v2769_v40  ;;  %v3294_v24 = vrot.slane %v3292_v30, 7  ;;  %v6419_v62 = vld [vmem:[#allocation2 + $0x128] sm:$0xff] }
  0xc8   : > { %v2786_v16 = vor.u32 %v2785_v0, %v1925_v13  ;;  %v2685_v13 = vld [vmem:[#allocation2 + $0x118] sm:$0x1]  ;;  %v3318_v42 = vrot.slane %v3316_v49, 7  ;;  %v3217_v30 = vld [vmem:[#allocation2 + $0x108] sm:$0x80]  ;;  %v2829_v0 = vshrl.u32 %v6419_v62, 16 }
  0xc9   : > { %v3301_v45 = vor.u32 %v3298_v53, %v2771_v60  ;;  %v2779_v43 = vsel %vm1301_vm4, %v6392_v35, %v2778_v59  ;;  %v6425_v53 = vld [vmem:[#allocation2 + $0x140] sm:$0xff]  ;;  %v2831_v59 = vshll.u32 %v6419_v62, 16 }
  0xca   : > { %5444 = vmatmul.mubr.msk.bf16.gmra.mrb[76].mxu1 %vm172_vm2, %v2027_v28  ;;  %5478 = vmatmul.mubr.msk.bf16.gmra.mrb[76].mxu0 %vm172_vm2, %v6303_v6  ;;  %v2754_v28 = vrot.slane %v2752_v56, 1  ;;  %v2788_v56 = vshll.u32 %v2679_v46, 16  ;;  %v3219_v46 = vld [vmem:[#allocation2 + $0x120] sm:$0x80]  ;;  %v2841_v49 = vshrl.u32 %v6425_v53, 16 }
  0xcb   : > { %5483 = vmatprep.mubr.msk.bf16.mxu1 %vm172_vm2, %v2707_v63  ;;  %5517 = vmatprep.mubr.msk.bf16.mxu0 %vm172_vm2, %v3242_v8  ;;  %v3270_v63 = vrot.slane %v3268_v55, 7  ;;  %v3302_v47 = vsel %vm437_vm3, %v3294_v24, %v3301_v45  ;;  %v2687_v45 = vld [vmem:[#allocation2 + $0x130] sm:$0x1] }
  0xcc   : > { %v2755_v61 = vsel %vm1301_vm4, %v6375_v14, %v2754_v28  ;;  %v2790_v60 = vrot.slane %v2788_v56, 1  ;;  %v2843_v56 = vshll.u32 %v6425_v53, 16 }
  0xcd   : > { %v3278_v8 = vsel %vm437_vm3, %v3270_v63, %v3277_v21 }
  0xce   : > { %v2791_v57 = vsel %vm1301_vm4, %v2786_v16, %v2790_v60  ;;  %v2836_v16 = vshll.u32 %v2687_v45, 16 }
  0xd2   : > { %5484 = vmatmul.mubr.msk.bf16.vlgmr.msra.gmra.mrb[80].mxu1 %vm172_vm2, %v2719_v36  ;;  %5518 = vmatmul.mubr.msk.bf16.vlgmr.msra.gmra.mrb[80].mxu0 %vm172_vm2, %v3254_v5  ;;  %v3304_v36 = vshrl.u32 %v3211_v33, 16  ;;  %v6407_v5 = vld [vmem:[#allocation2 + $0x110] sm:$0xff] }
  0xd3   : > { %5550 = vmatpush3.bf16.msra.mxu1 %v6229_v7  ;;  %5487 = vmatprep.mubr.msk.bf16.mxu1 %vm172_vm2, %v2731_v9  ;;  %v2743_v7 = vsel %vm1301_vm4, %v6368_v15, %v2742_v12  ;;  %v2795_v9 = vshll.u32 %v6283_v25, 16  ;;  %v6402_v12 = vld [vmem:[#allocation2 + $0xf8] sm:$0xff]  ;;  %v2819_v4 = vshll.u32 %v6407_v5, 16 }
  0xd4   : > { %5584 = vmatpush3.bf16.msra.mxu0 %v6239_v19  ;;  %5521 = vmatprep.mubr.msk.bf16.mxu0 %vm172_vm2, %v3266_v23  ;;  %v2766_v19 = vrot.slane %v2764_v1, 1  ;;  %v3306_v55 = vrot.slane %v3304_v36, 7  ;;  %v2805_v25 = vshrl.u32 %v6402_v12, 16  ;;  %v3322_v23 = vrot.slane %v2793_v11, 7 }
  0xd5   : > { %v2797_v41 = vrot.slane %v2795_v9, 1  ;;  %v2807_v28 = vshll.u32 %v6402_v12, 16  ;;  %v2802_v1 = vrot.slane %v2800_v22, 1  ;;  %v2689_v22 = vld [vmem:[#allocation2 + $0x148] sm:$0x1] }
  0xd6   : > { %v2767_v50 = vsel %vm1301_vm4, %v6388_v27, %v2766_v19  ;;  %v3334_v63 = vrot.slane %v2805_v25, 7  ;;  %v3314_v21 = vsel %vm437_vm3, %v3306_v55, %v6271_v18  ;;  %v3325_v32 = vor.u32 %v3322_v23, %v2795_v9 }
  0xd7   : > { %v2798_v10 = vor.u32 %v2797_v41, %v2793_v11  ;;  %v2809_v40 = vrot.slane %v2807_v28, 1  ;;  %v2817_v18 = vshrl.u32 %v6407_v5, 16  ;;  %v2821_v19 = vrot.slane %v2819_v4, 1 }
  0xd8   : > { %v3337_v33 = vor.u32 %v3334_v63, %v2807_v28  ;;  %v3326_v36 = vsel %vm437_vm3, %v3318_v42, %v3325_v32  ;;  %v3352_v55 = vshrl.u32 %v3219_v46, 16  ;;  %v3358_v41 = vrot.slane %v2829_v0, 7  ;;  %v6449_v42 = vld [vmem:[#allocation2 + $0x170] sm:$0xff]  ;;  %v2693_v46 = vld [vmem:[#allocation2 + $0x178] sm:$0x1] }
  0xd9   : > { %v6430_v9 = vor.u32 %v2809_v40, %v2805_v25  ;;  %v3346_v24 = vrot.slane %v2817_v18, 7  ;;  %v6436_v31 = vor.u32 %v2821_v19, %v2817_v18  ;;  %v2848_v60 = vshll.u32 %v2689_v22, 16  ;;  %v2691_v19 = vld [vmem:[#allocation2 + $0x160] sm:$0x1] }
  0xda   : > { %5488 = vmatmul.mubr.msk.bf16.gmra.mrb[84].mxu1 %vm172_vm2, %v2743_v7  ;;  %5522 = vmatmul.mubr.msk.bf16.gmra.mrb[84].mxu0 %vm172_vm2, %v3278_v8  ;;  %v3328_v7 = vshrl.u32 %v3215_v38, 16  ;;  %v2803_v8 = vsel %vm1301_vm4, %v2798_v10, %v2802_v1  ;;  %v2833_v38 = vrot.slane %v2831_v59, 1  ;;  %v3354_v63 = vrot.slane %v3352_v55, 7  ;;  %v6445_v10 = vld [vmem:[#allocation2 + $0x158] sm:$0xff] }
  0xdb   : > { %5491 = vmatprep.mubr.msk.bf16.mxu1 %vm172_vm2, %v2755_v61  ;;  %5525 = vmatprep.mubr.msk.bf16.mxu0 %vm172_vm2, %v3290_v34  ;;  %v2812_v61 = vshll.u32 %v2683_v44, 16  ;;  %v2824_v34 = vshll.u32 %v2685_v13, 16  ;;  %v3349_v28 = vor.u32 %v3346_v24, %v2819_v4  ;;  %v3221_v44 = vld [vmem:[#allocation2 + $0x138] sm:$0x80]  ;;  %v3223_v13 = vld [vmem:[#allocation2 + $0x150] sm:$0x80] }
  0xdc   : > { %v3330_v51 = vrot.slane %v3328_v7, 7  ;;  %v6447_v1 = vor.u32 %v2833_v38, %v2829_v0  ;;  %v2838_v32 = vrot.slane %v2836_v16, 1  ;;  %v3364_v40 = vshrl.u32 %v3221_v44, 16  ;;  %v3225_v38 = vld [vmem:[#allocation2 + $0x168] sm:$0x80] }
  0xdd   : > { %v2814_v26 = vrot.slane %v2812_v61, 1  ;;  %v3370_v4 = vrot.slane %v2841_v49, 7  ;;  %v2853_v61 = vshrl.u32 %v6445_v10, 16  ;;  %v2855_v18 = vshll.u32 %v6445_v10, 16 }
  0xde   : > { %v3338_v11 = vsel %vm437_vm3, %v3330_v51, %v3337_v33  ;;  %v2850_v33 = vrot.slane %v2848_v60, 1  ;;  %v2860_v24 = vshll.u32 %v2691_v19, 16  ;;  %v2865_v45 = vshrl.u32 %v6449_v42, 16  ;;  %v4060_v19 = vld [vmem:[#allocation2 + $0x40] sm:$0x1] }
  0xdf   : > { %v2815_v25 = vsel %vm1301_vm4, %v6430_v9, %v2814_v26  ;;  %v3366_v26 = vrot.slane %v3364_v40, 7  ;;  %v3373_v0 = vor.u32 %v3370_v4, %v2843_v56  ;;  %v2872_v22 = vshll.u32 %v2693_v46, 16 }
  0xe1   : > { %v3374_v16 = vsel %vm437_vm3, %v3366_v26, %v3373_v0  ;;  %v646_v0 = vld [vmem:[#allocation3 + $0x80] sm:$0xff] }
  0xe2   : > { %5492 = vmatmul.mubr.msk.bf16.gmra.mrb[88].mxu1 %vm172_vm2, %v2767_v50  ;;  %5526 = vmatmul.mubr.msk.bf16.gmra.mrb[88].mxu0 %vm172_vm2, %v3302_v47  ;;  %v3340_v50 = vshrl.u32 %v3217_v30, 16  ;;  %v2845_v47 = vrot.slane %v2843_v56, 1  ;;  %v3382_v30 = vrot.slane %v2853_v61, 7 }
  0xe3   : > { %5495 = vmatprep.mubr.msk.bf16.mxu1 %vm172_vm2, %v2779_v43  ;;  %5529 = vmatprep.mubr.msk.bf16.mxu0 %vm172_vm2, %v3314_v21  ;;  %v2826_v43 = vrot.slane %v2824_v34, 1  ;;  %v3361_v21 = vor.u32 %v3358_v41, %v2831_v59  ;;  %v3376_v34 = vshrl.u32 %v3223_v13, 16  ;;  %v2867_v59 = vshll.u32 %v6449_v42, 16 }
  0xe4   : > { %v3342_v23 = vrot.slane %v3340_v50, 7  ;;  %v6455_v51 = vor.u32 %v2845_v47, %v2841_v49  ;;  %v2857_v50 = vrot.slane %v2855_v18, 1  ;;  %v3385_v55 = vor.u32 %v3382_v30, %v2855_v18  ;;  %v2695_v47 = vld [vmem:[#allocation2 + $0x190] sm:$0x1]  ;;  %v648_v30 = vld [vmem:[#allocation3 + $0x90] sm:$0xff] }
  0xe5   : > { %v2827_v7 = vsel %vm1301_vm4, %v6436_v31, %v2826_v43  ;;  %v3378_v43 = vrot.slane %v3376_v34, 7  ;;  %v2869_v41 = vrot.slane %v2867_v59, 1  ;;  %v2862_v49 = vrot.slane %v2860_v24, 1 }
  0xe6   : > { %v2858_v56 = vor.u32 %v2857_v50, %v2853_v61  ;;  %v2881_v13 = vrot.slane %v2024_v17, 1  ;;  %v4099_v24 = vshll.u32 %v4060_v19, 16  ;;  %v652_v19 = vld [vmem:[#allocation3 + $0xb0] sm:$0xff] }
  0xe7   : > { %v3386_v60 = vsel %vm437_vm3, %v3378_v43, %v3385_v55  ;;  %v6471_v44 = vor.u32 %v2869_v41, %v2865_v45  ;;  %v647_v41 = vld [vmem:[#allocation3 + $0x88] sm:$0xff] }
  0xe8   : > { %v2863_v40 = vsel %vm1301_vm4, %v2858_v56, %v2862_v49  ;;  %v2882_v17 = vor.u32 %v2881_v13, %v2021_v58  ;;  %v649_v58 = vld [vmem:[#allocation3 + $0x98] sm:$0xff] }
  0xea   : > { %5496 = vmatmul.mubr.msk.bf16.gmra.mrb[92].mxu1 %vm172_vm2, %v2791_v57  ;;  %5530 = vmatmul.mubr.msk.bf16.gmra.mrb[92].mxu0 %vm172_vm2, %v3326_v36  ;;  %v3350_v57 = vsel %vm437_vm3, %v3342_v23, %v3349_v28  ;;  %v2839_v36 = vsel %vm1301_vm4, %v6447_v1, %v2838_v32  ;;  %v3388_v23 = vshrl.u32 %v3225_v38, 16  ;;  %v3394_v28 = vrot.slane %v2865_v45, 7  ;;  %v630_v45 = vld [vmem:[#allocation3] sm:$0xff] }
  0xeb   : > { %5499 = vmatprep.mubr.msk.bf16.mxu1 %vm172_vm2, %v2803_v8  ;;  %5533 = vmatprep.mubr.msk.bf16.mxu0 %vm172_vm2, %v3338_v11  ;;  %v3362_v8 = vsel %vm437_vm3, %v3354_v63, %v3361_v21  ;;  %v2851_v11 = vsel %vm1301_vm4, %v6455_v51, %v2850_v33  ;;  %v6473_v21 = vld [vmem:[#allocation2 + $0x1a0] sm:$0xff]  ;;  %v2884_v32 = vshll.u32 %v2695_v47, 16 }
  0xec   : > { %v3390_v4 = vrot.slane %v3388_v23, 7  ;;  %v3397_v61 = vor.u32 %v3394_v28, %v2867_v59  ;;  %v3419_v26 = vshll.u32 %v6473_v21, 16  ;;  %v631_v28 = vld [vmem:[#allocation3 + $0x8] sm:$0xff] }
  0xed   : > { %v2886_v34 = vrot.slane %v2884_v32, 1  ;;  %v4101_v32 = vrot.slane %v4099_v24, 1  ;;  %v651_v24 = vld [vmem:[#allocation3 + $0xa8] sm:$0xff] }
  0xee   : > { %v3398_v46 = vsel %vm437_vm3, %v3390_v4, %v3397_v61 }
  0xf2   : > { %5500 = vmatmul.mubr.msk.bf16.gmra.mrb[96].mxu1 %vm172_vm2, %v2815_v25  ;;  %5534 = vmatmul.mubr.msk.bf16.gmra.mrb[96].mxu0 %vm172_vm2, %v3350_v57  ;;  %v3227_v25 = vld [vmem:[#allocation2 + $0x180] sm:$0x80]  ;;  %v3416_v57 = vshrl.u32 %v6473_v21, 16 }
  0xf3   : > { %5503 = vmatprep.mubr.msk.bf16.mxu1 %vm172_vm2, %v2827_v7  ;;  %5537 = vmatprep.mubr.msk.bf16.mxu0 %vm172_vm2, %v3362_v8  ;;  %v2874_v7 = vrot.slane %v2872_v22, 1  ;;  %v3400_v63 = vshrl.u32 %v3227_v25, 16  ;;  %v3229_v8 = vld [vmem:[#allocation2 + $0x198] sm:$0x80]  ;;  %v2887_v22 = vsel %vm1301_vm4, %v2882_v17, %v2886_v34  ;;  %v633_v25 = vld [vmem:[#allocation3 + $0x18] sm:$0xff] }
  0xf4   : > { %v3412_v59 = vshrl.u32 %v3229_v8, 16 }
  0xf5   : > { %v2875_v33 = vsel %vm1301_vm4, %v6471_v44, %v2874_v7  ;;  %v3402_v18 = vrot.slane %v3400_v63, 7 }
  0xf7   : > { %v3410_v50 = vsel %vm437_vm3, %v3402_v18, %v6329_v2  ;;  %v3414_v2 = vrot.slane %v3412_v59, 7  ;;  %v4064_v18 = vld [vmem:[#allocation2 + $0x70] sm:$0x1] }
  0xf8   : > { %v4123_v59 = vshll.u32 %v4064_v18, 16  ;;  %v657_v18 = vld [vmem:[#allocation3 + $0xd8] sm:$0xff] }
  0xfa   : > { %5504 = vmatmul.mubr.msk.bf16.gmra.mrb[100].mxu1 %vm172_vm2, %v2839_v36  ;;  %5538 = vmatmul.mubr.msk.bf16.gmra.mrb[100].mxu0 %vm172_vm2, %v3374_v16  ;;  %v3418_v36 = vrot.slane %v3416_v57, 7 }
  0xfb   : > { %5507 = vmatprep.mubr.msk.bf16.mxu1 %vm172_vm2, %v2851_v11  ;;  %5541 = vmatprep.mubr.msk.bf16.mxu0 %vm172_vm2, %v3386_v60  ;;  %v632_v11 = vld [vmem:[#allocation3 + $0x10] sm:$0xff] }
  0xfc   : > { %v3421_v47 = vor.u32 %v3419_v26, %v3418_v36 }
  0xfe   : > { %v3422_v17 = vsel %vm437_vm3, %v3414_v2, %v3421_v47  ;;  %v656_v47 = vld [vmem:[#allocation3 + $0xd0] sm:$0xff] }
 0x102   : > { %5508 = vmatmul.mubr.msk.bf16.gmra.mrb[104].mxu1 %vm172_vm2, %v2863_v40  ;;  %5542 = vmatmul.mubr.msk.bf16.gmra.mrb[104].mxu0 %vm172_vm2, %v3398_v46  ;;  %v4062_v40 = vld [vmem:[#allocation2 + $0x58] sm:$0x1]  ;;  %v4102_v46 = vsel %vm1301_vm4, %v6345_v48, %v4101_v32  ;;  %v4125_v48 = vrot.slane %v4123_v59, 1 }
 0x103   : > { %5511 = vmatprep.mubr.msk.bf16.mxu1 %vm172_vm2, %v2875_v33  ;;  %5545 = vmatprep.mubr.msk.bf16.mxu0 %vm172_vm2, %v3410_v50  ;;  %v4111_v34 = vshll.u32 %v4062_v40, 16  ;;  %v4070_v59 = vld [vmem:[#allocation2 + $0xb8] sm:$0x1] }
 0x105   : > { %v5331_v6 = vpop.f32.mrb[0].mxu1  ;;  %v5315_v38 = vpop.f32.mrb[0].mxu0 }
 0x106   : > { %v897_v43 = vadd.f32 %v5331_v6, %v648_v30  ;;  %v816_v55 = vpop.f32.mrb[1].mxu1  ;;  %v881_v49 = vadd.f32 %v5315_v38, %v632_v11  ;;  %v752_v23 = vpop.f32.mrb[1].mxu0  ;;  %v650_v30 = vld [vmem:[#allocation3 + $0xa0] sm:$0xff]  ;;  %v4068_v38 = vld [vmem:[#allocation2 + $0xa0] sm:$0x1] }
 0x107   : > { %v895_v16 = vadd.f32 %v816_v55, %v646_v0  ;;  %v5332_v56 = vpop.f32.mrb[2].mxu1  ;;  %v879_v63 = vadd.f32 %v752_v23, %v630_v45  ;;  %v5316_v13 = vpop.f32.mrb[2].mxu0  ;;  %v653_v0 = vld [vmem:[#allocation3 + $0xb8] sm:$0xff]  ;;  %v636_v45 = vld [vmem:[#allocation3 + $0x30] sm:$0xff] }
 0x108   : > { %929 = vst.msk [vmem:[#allocation3 + $0x90] sm:$0xff] %vm372_vm5, %v897_v43  ;;  %v898_v60 = vadd.f32 %v5332_v56, %v649_v58  ;;  %v819_v7 = vpop.f32.mrb[3].mxu1  ;;  %913 = vst.msk [vmem:[#allocation3 + $0x10] sm:$0xff] %vm372_vm5, %v881_v49  ;;  %v882_v61 = vadd.f32 %v5316_v13, %v633_v25  ;;  %v755_v33 = vpop.f32.mrb[3].mxu0  ;;  %v634_v43 = vld [vmem:[#allocation3 + $0x20] sm:$0xff]  ;;  %v637_v56 = vld [vmem:[#allocation3 + $0x38] sm:$0xff] }
 0x109   : > { %927 = vst.msk [vmem:[#allocation3 + $0x80] sm:$0xff] %vm372_vm5, %v895_v16  ;;  %v896_v4 = vadd.f32 %v819_v7, %v647_v41  ;;  %911 = vst.msk [vmem:[#allocation3] sm:$0xff] %vm372_vm5, %v879_v63  ;;  %v880_v8 = vadd.f32 %v755_v33, %v631_v28  ;;  %v635_v28 = vld [vmem:[#allocation3 + $0x28] sm:$0xff]  ;;  %v4147_v13 = vshll.u32 %v4068_v38, 16 }
 0x10a   : > { %930 = vst.msk [vmem:[#allocation3 + $0x98] sm:$0xff] %vm372_vm5, %v898_v60  ;;  %5512 = vmatmul.mubr.msk.bf16.gmra.mrb[108].mxu1 %vm172_vm2, %v2887_v22  ;;  %914 = vst.msk [vmem:[#allocation3 + $0x18] sm:$0xff] %vm372_vm5, %v882_v61  ;;  %5546 = vmatmul.mubr.msk.bf16.gmra.mrb[108].mxu0 %vm172_vm2, %v3422_v17  ;;  %v4066_v22 = vld [vmem:[#allocation2 + $0x88] sm:$0x1] }
 0x10b   : > { %928 = vst.msk [vmem:[#allocation3 + $0x88] sm:$0xff] %vm372_vm5, %v896_v4  ;;  %5551 = vmatprep.mubr.msk.bf16.mxu1 %vm172_vm2, %v6317_v52  ;;  %912 = vst.msk [vmem:[#allocation3 + $0x8] sm:$0xff] %vm372_vm5, %v880_v8  ;;  %5585 = vmatprep.mubr.msk.bf16.mxu0 %vm172_vm2, %v4102_v46  ;;  %v4113_v52 = vrot.slane %v4111_v34, 1  ;;  %v4135_v63 = vshll.u32 %v4066_v22, 16  ;;  %v4126_v4 = vsel %vm1301_vm4, %v6368_v15, %v4125_v48  ;;  %v6528_v8 = vld [vmem:[#allocation2 + $0xc8] sm:$0xff]  ;;  %v4149_v46 = vrot.slane %v4147_v13, 1 }
 0x10c   : > { %v660_v22 = vld [vmem:[#allocation3 + $0xf0] sm:$0xff] }
 0x10d   : > { %v5335_v36 = vpop.f32.mrb[4].mxu1  ;;  %v5319_v16 = vpop.f32.mrb[4].mxu0  ;;  %v4114_v7 = vsel %vm1301_vm4, %v6350_v20, %v4113_v52  ;;  %v4137_v15 = vrot.slane %v4135_v63, 1  ;;  %v659_v63 = vld [vmem:[#allocation3 + $0xe8] sm:$0xff] }
 0x10e   : > { %v901_v11 = vadd.f32 %v5335_v36, %v652_v19  ;;  %v832_v50 = vpop.f32.mrb[5].mxu1  ;;  %v885_v49 = vadd.f32 %v5319_v16, %v636_v45  ;;  %v768_v23 = vpop.f32.mrb[5].mxu0  ;;  %v655_v19 = vld [vmem:[#allocation3 + $0xc8] sm:$0xff]  ;;  %v4072_v45 = vld [vmem:[#allocation2 + $0xd0] sm:$0x1]  ;;  %v4150_v16 = vsel %vm1301_vm4, %v6388_v27, %v4149_v46 }
 0x10f   : > { %v899_v6 = vadd.f32 %v832_v50, %v650_v30  ;;  %v5336_v58 = vpop.f32.mrb[6].mxu1  ;;  %v883_v2 = vadd.f32 %v768_v23, %v634_v43  ;;  %v5320_v60 = vpop.f32.mrb[6].mxu0  ;;  %v640_v30 = vld [vmem:[#allocation3 + $0x50] sm:$0xff]  ;;  %v4166_v50 = vshll.u32 %v6528_v8, 16 }
 0x110   : > { %933 = vst.msk [vmem:[#allocation3 + $0xb0] sm:$0xff] %vm372_vm5, %v901_v11  ;;  %v902_v55 = vadd.f32 %v5336_v58, %v653_v0  ;;  %v835_v41 = vpop.f32.mrb[7].mxu1  ;;  %917 = vst.msk [vmem:[#allocation3 + $0x30] sm:$0xff] %vm372_vm5, %v885_v49  ;;  %v886_v32 = vadd.f32 %v5320_v60, %v637_v56  ;;  %v771_v40 = vpop.f32.mrb[7].mxu0  ;;  %v638_v11 = vld [vmem:[#allocation3 + $0x40] sm:$0xff]  ;;  %v641_v58 = vld [vmem:[#allocation3 + $0x58] sm:$0xff] }
 0x111   : > { %931 = vst.msk [vmem:[#allocation3 + $0xa0] sm:$0xff] %vm372_vm5, %v899_v6  ;;  %v900_v25 = vadd.f32 %v835_v41, %v651_v24  ;;  %915 = vst.msk [vmem:[#allocation3 + $0x20] sm:$0xff] %vm372_vm5, %v883_v2  ;;  %v884_v33 = vadd.f32 %v771_v40, %v635_v28  ;;  %v4159_v41 = vshll.u32 %v4070_v59, 16  ;;  %v658_v56 = vld [vmem:[#allocation3 + $0xe0] sm:$0xff]  ;;  %v6548_v23 = vld [vmem:[#allocation2 + $0xe0] sm:$0xff]  ;;  %v4164_v28 = vshrl.u32 %v6528_v8, 16 }
 0x112   : > { %934 = vst.msk [vmem:[#allocation3 + $0xb8] sm:$0xff] %vm372_vm5, %v902_v55  ;;  %5552 = vmatmul.mubr.msk.bf16.vlgmr.msra.gmra.mrb[112].mxu1 %vm172_vm2, %v6321_v37  ;;  %v654_v37 = vld [vmem:[#allocation3 + $0xc0] sm:$0xff]  ;;  %918 = vst.msk [vmem:[#allocation3 + $0x38] sm:$0xff] %vm372_vm5, %v886_v32  ;;  %5586 = vmatmul.mubr.msk.bf16.vlgmr.msra.gmra.mrb[112].mxu0 %vm172_vm2, %v4114_v7  ;;  %v639_v55 = vld [vmem:[#allocation3 + $0x48] sm:$0xff]  ;;  %v4168_v2 = vrot.slane %v4166_v50, 1 }
 0x113   : > { %932 = vst.msk [vmem:[#allocation3 + $0xa8] sm:$0xff] %vm372_vm5, %v900_v25  ;;  %5555 = vmatprep.mubr.msk.bf16.mxu1 %vm172_vm2, %v6339_v29  ;;  %916 = vst.msk [vmem:[#allocation3 + $0x28] sm:$0xff] %vm372_vm5, %v884_v33  ;;  %5589 = vmatprep.mubr.msk.bf16.mxu0 %vm172_vm2, %v4126_v4  ;;  %v4138_v25 = vsel %vm1301_vm4, %v6375_v14, %v4137_v15  ;;  %v661_v7 = vld [vmem:[#allocation3 + $0xf8] sm:$0xff]  ;;  %v4161_v13 = vrot.slane %v4159_v41, 1  ;;  %v644_v40 = vld [vmem:[#allocation3 + $0x70] sm:$0xff]  ;;  %v4178_v4 = vshll.u32 %v6548_v23, 16 }
 0x114   : > { %v4076_v15 = vld [vmem:[#allocation2 + $0x100] sm:$0x1] }
 0x115   : > { %v5339_v61 = vpop.f32.mrb[8].mxu1  ;;  %v5323_v6 = vpop.f32.mrb[8].mxu0 }
 0x116   : > { %v905_v29 = vadd.f32 %v5339_v61, %v656_v47  ;;  %v848_v20 = vpop.f32.mrb[9].mxu1  ;;  %v889_v43 = vadd.f32 %v5323_v6, %v640_v30  ;;  %v784_v52 = vpop.f32.mrb[9].mxu0  ;;  %v4171_v47 = vshll.u32 %v4072_v45, 16  ;;  %v645_v30 = vld [vmem:[#allocation3 + $0x78] sm:$0xff]  ;;  %v4180_v6 = vrot.slane %v4178_v4, 1 }
 0x117   : > { %v903_v17 = vadd.f32 %v848_v20, %v654_v37  ;;  %v5340_v34 = vpop.f32.mrb[10].mxu1  ;;  %v887_v48 = vadd.f32 %v784_v52, %v638_v11  ;;  %v5324_v38 = vpop.f32.mrb[10].mxu0  ;;  %v4195_v52 = vshll.u32 %v4076_v15, 16 }
 0x118   : > { %937 = vst.msk [vmem:[#allocation3 + $0xd0] sm:$0xff] %vm372_vm5, %v905_v29  ;;  %v906_v36 = vadd.f32 %v5340_v34, %v657_v18  ;;  %v851_v0 = vpop.f32.mrb[11].mxu1  ;;  %921 = vst.msk [vmem:[#allocation3 + $0x50] sm:$0xff] %vm372_vm5, %v889_v43  ;;  %v787_v49 = vpop.f32.mrb[11].mxu0  ;;  %v642_v18 = vld [vmem:[#allocation3 + $0x60] sm:$0xff]  ;;  %v4169_v29 = vor.u32 %v4168_v2, %v4164_v28  ;;  %v4173_v20 = vrot.slane %v4171_v47, 1 }
 0x119   : > { %935 = vst.msk [vmem:[#allocation3 + $0xc0] sm:$0xff] %vm372_vm5, %v903_v17  ;;  %v904_v24 = vadd.f32 %v851_v0, %v655_v19  ;;  %919 = vst.msk [vmem:[#allocation3 + $0x40] sm:$0xff] %vm372_vm5, %v887_v48  ;;  %v888_v60 = vadd.f32 %v787_v49, %v639_v55  ;;  %v4074_v19 = vld [vmem:[#allocation2 + $0xe8] sm:$0x1]  ;;  %v4162_v0 = vsel %vm1301_vm4, %v6392_v35, %v4161_v13  ;;  %v961_v35 = vld [vmem:[#allocation3 + $0x10] sm:$0xff] }
 0x11a   : > { %938 = vst.msk [vmem:[#allocation3 + $0xd8] sm:$0xff] %vm372_vm5, %v906_v36  ;;  %5556 = vmatmul.mubr.msk.bf16.gmra.mrb[116].mxu1 %vm172_vm2, %v6342_v54  ;;  %v890_v54 = vadd.f32 %v5324_v38, %v641_v58  ;;  %5590 = vmatmul.mubr.msk.bf16.gmra.mrb[116].mxu0 %vm172_vm2, %v4138_v25  ;;  %v643_v36 = vld [vmem:[#allocation3 + $0x68] sm:$0xff]  ;;  %v4183_v58 = vshll.u32 %v4074_v19, 16  ;;  %v4174_v43 = vsel %vm1301_vm4, %v4169_v29, %v4173_v20  ;;  %v962_v25 = vld [vmem:[#allocation3 + $0x18] sm:$0xff] }
 0x11b   : > { %936 = vst.msk [vmem:[#allocation3 + $0xc8] sm:$0xff] %vm372_vm5, %v904_v24  ;;  %5559 = vmatprep.mubr.msk.bf16.mxu1 %vm172_vm2, %v6362_v39  ;;  %920 = vst.msk [vmem:[#allocation3 + $0x48] sm:$0xff] %vm372_vm5, %v888_v60  ;;  %5593 = vmatprep.mubr.msk.bf16.mxu0 %vm172_vm2, %v4150_v16  ;;  %v4176_v24 = vshrl.u32 %v6548_v23, 16  ;;  %v4078_v49 = vld [vmem:[#allocation2 + $0x118] sm:$0x1] }
 0x11c   : > { %922 = vst.msk [vmem:[#allocation3 + $0x58] sm:$0xff] %vm372_vm5, %v890_v54  ;;  %v960_v2 = vld [vmem:[#allocation3 + $0x8] sm:$0xff] }
 0x11d   : > { %v5343_v39 = vpop.f32.mrb[12].mxu1  ;;  %v5327_v34 = vpop.f32.mrb[12].mxu0  ;;  %v4181_v54 = vor.u32 %v4180_v6, %v4176_v24 }
 0x11e   : > { %v909_v14 = vadd.f32 %v5343_v39, %v660_v22  ;;  %v864_v27 = vpop.f32.mrb[13].mxu1  ;;  %v893_v46 = vadd.f32 %v5327_v34, %v644_v40  ;;  %v800_v59 = vpop.f32.mrb[13].mxu0  ;;  %v4197_v39 = vrot.slane %v4195_v52, 1 }
 0x11f   : > { %v907_v32 = vadd.f32 %v864_v27, %v658_v56  ;;  %v5344_v37 = vpop.f32.mrb[14].mxu1  ;;  %v891_v11 = vadd.f32 %v800_v59, %v642_v18  ;;  %v5328_v50 = vpop.f32.mrb[14].mxu0  ;;  %v4185_v56 = vrot.slane %v4183_v58, 1 }
 0x120   : > { %941 = vst.msk [vmem:[#allocation3 + $0xf0] sm:$0xff] %vm372_vm5, %v909_v14  ;;  %v910_v61 = vadd.f32 %v5344_v37, %v661_v7  ;;  %v867_v33 = vpop.f32.mrb[15].mxu1  ;;  %925 = vst.msk [vmem:[#allocation3 + $0x70] sm:$0xff] %vm372_vm5, %v893_v46  ;;  %v803_v45 = vpop.f32.mrb[15].mxu0  ;;  %v4080_v14 = vld [vmem:[#allocation2 + $0x130] sm:$0x1]  ;;  %v4198_v40 = vsel %vm1301_vm4, %v6430_v9, %v4197_v39 }
 0x121   : > { %939 = vst.msk [vmem:[#allocation3 + $0xe0] sm:$0xff] %vm372_vm5, %v907_v32  ;;  %v908_v17 = vadd.f32 %v867_v33, %v659_v63  ;;  %923 = vst.msk [vmem:[#allocation3 + $0x60] sm:$0xff] %vm372_vm5, %v891_v11  ;;  %v892_v41 = vadd.f32 %v803_v45, %v643_v36  ;;  %v4207_v63 = vshll.u32 %v4078_v49, 16  ;;  %v4186_v32 = vsel %vm1301_vm4, %v4181_v54, %v4185_v56  ;;  %v965_v33 = vld [vmem:[#allocation3 + $0x30] sm:$0xff]  ;;  %v964_v36 = vld [vmem:[#allocation3 + $0x28] sm:$0xff] }
 0x122   : > { %942 = vst.msk [vmem:[#allocation3 + $0xf8] sm:$0xff] %vm372_vm5, %v910_v61  ;;  %5560 = vmatmul.mubr.msk.bf16.gmra.mrb[120].mxu1 %vm172_vm2, %v6365_v3  ;;  %v894_v3 = vadd.f32 %v5328_v50, %v645_v30  ;;  %5594 = vmatmul.mubr.msk.bf16.gmra.mrb[120].mxu0 %vm172_vm2, %v4162_v0  ;;  %v4219_v4 = vshll.u32 %v4080_v14, 16  ;;  %v4083_v61 = vld [vmem:[#allocation2 + $0x158] sm:$0xff]  ;;  %v966_v30 = vld [vmem:[#allocation3 + $0x38] sm:$0xff]  ;;  %v4084_v45 = vld [vmem:[#allocation2 + $0x160] sm:$0x1] }
 0x123   : > { %940 = vst.msk [vmem:[#allocation3 + $0xe8] sm:$0xff] %vm372_vm5, %v908_v17  ;;  %5563 = vmatprep.mubr.msk.bf16.mxu1 %vm172_vm2, %v6528_v8  ;;  %v959_v8 = vld [vmem:[#allocation3] sm:$0xff]  ;;  %924 = vst.msk [vmem:[#allocation3 + $0x68] sm:$0xff] %vm372_vm5, %v892_v41  ;;  %5597 = vmatprep.mubr.msk.bf16.mxu0 %vm172_vm2, %v4174_v43  ;;  %v4209_v19 = vrot.slane %v4207_v63, 1  ;;  %v4238_v15 = vshll.u32 %v4083_v61, 16  ;;  %v6604_v56 = vld [vmem:[#allocation2 + $0x188] sm:$0xff] }
 0x124   : > { %926 = vst.msk [vmem:[#allocation3 + $0x78] sm:$0xff] %vm372_vm5, %v894_v3  ;;  %v4221_v11 = vrot.slane %v4219_v4, 1  ;;  %v4082_v50 = vld [vmem:[#allocation2 + $0x148] sm:$0x1]  ;;  %v4086_v14 = vld [vmem:[#allocation2 + $0x178] sm:$0x1] }
 0x125   : > { %v5349_v55 = vpop.f32.mrb[16].mxu1  ;;  %v5383_v7 = vpop.f32.mrb[16].mxu0  ;;  %v970_v39 = vld [vmem:[#allocation3 + $0x58] sm:$0xff]  ;;  %v4262_v4 = vshll.u32 %v6604_v56, 16 }
 0x126   : > { %v1207_v48 = vadd.f32 %v5349_v55, %v961_v35  ;;  %v1078_v22 = vpop.f32.mrb[17].mxu1  ;;  %v1613_v27 = vpop.f32.mrb[17].mxu0  ;;  %v4210_v55 = vsel %vm1301_vm4, %v6436_v31, %v4209_v19  ;;  %v969_v31 = vld [vmem:[#allocation3 + $0x50] sm:$0xff] }
 0x127   : > { %v1205_v38 = vadd.f32 %v1078_v22, %v959_v8  ;;  %v5350_v16 = vpop.f32.mrb[18].mxu1  ;;  %v5384_v13 = vpop.f32.mrb[18].mxu0  ;;  %v4231_v8 = vshll.u32 %v4082_v50, 16  ;;  %v4236_v22 = vshrl.u32 %v4083_v61, 16 }
 0x128   : > { %1239 = vst.msk [vmem:[#allocation3 + $0x10] sm:$0xff] %vm372_vm5, %v1207_v48  ;;  %v1208_v28 = vadd.f32 %v5350_v16, %v962_v25  ;;  %v1081_v47 = vpop.f32.mrb[19].mxu1  ;;  %v1616_v37 = vpop.f32.mrb[19].mxu0  ;;  %v4243_v16 = vshll.u32 %v4084_v45, 16 }
 0x129   : > { %1237 = vst.msk [vmem:[#allocation3] sm:$0xff] %vm372_vm5, %v1205_v38  ;;  %v1206_v60 = vadd.f32 %v1081_v47, %v960_v2  ;;  %v4240_v38 = vrot.slane %v4238_v15, 1  ;;  %v4255_v15 = vshll.u32 %v4086_v14, 16 }
 0x12a   : > { %1240 = vst.msk [vmem:[#allocation3 + $0x18] sm:$0xff] %vm372_vm5, %v1208_v28  ;;  %5564 = vmatmul.mubr.msk.bf16.gmra.mrb[124].mxu1 %vm172_vm2, %v6548_v23  ;;  %v963_v23 = vld [vmem:[#allocation3 + $0x20] sm:$0xff]  ;;  %5598 = vmatmul.mubr.msk.bf16.gmra.mrb[124].mxu0 %vm172_vm2, %v4186_v32  ;;  %v968_v32 = vld [vmem:[#allocation3 + $0x48] sm:$0xff] }
 0x12b   : > { %1238 = vst.msk [vmem:[#allocation3 + $0x8] sm:$0xff] %vm372_vm5, %v1206_v60  ;;  %5567 = vmatprep.mubr.msk.bf16.mxu1 %vm172_vm2, %v6402_v12  ;;  %5601 = vmatprep.mubr.msk.bf16.mxu0 %vm172_vm2, %v4198_v40  ;;  %v967_v28 = vld [vmem:[#allocation3 + $0x40] sm:$0xff]  ;;  %v4245_v40 = vrot.slane %v4243_v16, 1  ;;  %v4257_v45 = vrot.slane %v4255_v15, 1 }
 0x12d   : > { %v5353_v18 = vpop.f32.mrb[20].mxu1  ;;  %v5387_v3 = vpop.f32.mrb[20].mxu0 }
 0x12e   : > { %v1211_v29 = vadd.f32 %v5353_v18, %v965_v33  ;;  %v1094_v20 = vpop.f32.mrb[21].mxu1  ;;  %v1629_v35 = vpop.f32.mrb[21].mxu0 }
 0x12f   : > { %v1496_v17 = vld [vmem:[#allocation3 + $0x10] sm:$0xff]  ;;  %v1209_v34 = vadd.f32 %v1094_v20, %v963_v23  ;;  %v5354_v12 = vpop.f32.mrb[22].mxu1  ;;  %v5388_v48 = vpop.f32.mrb[22].mxu0  ;;  %v4088_v23 = vld [vmem:[#allocation2 + $0x190] sm:$0x1] }
 0x130   : > { %v1742_v46 = vadd.f32 %v5383_v7, %v1496_v17  ;;  %1243 = vst.msk [vmem:[#allocation3 + $0x30] sm:$0xff] %vm372_vm5, %v1211_v29  ;;  %v1494_v9 = vld [vmem:[#allocation3] sm:$0xff]  ;;  %v1212_v59 = vadd.f32 %v5354_v12, %v966_v30  ;;  %v1097_v0 = vpop.f32.mrb[23].mxu1  ;;  %v1632_v25 = vpop.f32.mrb[23].mxu0  ;;  %v4233_v7 = vrot.slane %v4231_v8, 1 }
 0x131   : > { %v1740_v24 = vadd.f32 %v1613_v27, %v1494_v9  ;;  %1241 = vst.msk [vmem:[#allocation3 + $0x20] sm:$0xff] %vm372_vm5, %v1209_v34  ;;  %v1497_v6 = vld [vmem:[#allocation3 + $0x18] sm:$0xff]  ;;  %v1210_v58 = vadd.f32 %v1097_v0, %v964_v36  ;;  %v4267_v36 = vshll.u32 %v4088_v23, 16  ;;  %v973_v0 = vld [vmem:[#allocation3 + $0x70] sm:$0xff] }
 0x132   : > { %1774 = vst.msk [vmem:[#allocation3 + $0x10] sm:$0xff] %vm372_vm5, %v1742_v46  ;;  %v1743_v43 = vadd.f32 %v5384_v13, %v1497_v6  ;;  %1244 = vst.msk [vmem:[#allocation3 + $0x38] sm:$0xff] %vm372_vm5, %v1212_v59  ;;  %v1495_v52 = vld [vmem:[#allocation3 + $0x8] sm:$0xff]  ;;  %5568 = vmatmul.mubr.msk.bf16.gmra.mrb[128].mxu1 %vm172_vm2, %v6407_v5  ;;  %v4222_v5 = vsel %vm1301_vm4, %v6447_v1, %v4221_v11  ;;  %5602 = vmatmul.mubr.msk.bf16.gmra.mrb[128].mxu0 %vm172_vm2, %v4210_v55  ;;  %v4264_v59 = vrot.slane %v4262_v4, 1 }
 0x133   : > { %1772 = vst.msk [vmem:[#allocation3] sm:$0xff] %vm372_vm5, %v1740_v24  ;;  %v1741_v41 = vadd.f32 %v1616_v37, %v1495_v52  ;;  %1242 = vst.msk [vmem:[#allocation3 + $0x28] sm:$0xff] %vm372_vm5, %v1210_v58  ;;  %5571 = vmatprep.mubr.msk.bf16.mxu1 %vm172_vm2, %v6419_v62  ;;  %5605 = vmatprep.mubr.msk.bf16.mxu0 %vm172_vm2, %v4222_v5  ;;  %v4241_v1 = vor.u32 %v4240_v38, %v4236_v22  ;;  %v971_v24 = vld [vmem:[#allocation3 + $0x60] sm:$0xff]  ;;  %v974_v58 = vld [vmem:[#allocation3 + $0x78] sm:$0xff]  ;;  %v4269_v8 = vrot.slane %v4267_v36, 1 }
 0x134   : > { %1775 = vst.msk [vmem:[#allocation3 + $0x18] sm:$0xff] %vm372_vm5, %v1743_v43  ;;  %v4234_v12 = vsel %vm1301_vm4, %v6455_v51, %v4233_v7  ;;  %v972_v55 = vld [vmem:[#allocation3 + $0x68] sm:$0xff]  ;;  %v4090_v22 = vld [vmem:[#allocation2 + $0x1a8] sm:$0x1]  ;;  %v977_v7 = vld [vmem:[#allocation3 + $0x90] sm:$0xff] }
 0x135   : > { %1773 = vst.msk [vmem:[#allocation3 + $0x8] sm:$0xff] %vm372_vm5, %v1741_v41  ;;  %v5357_v54 = vpop.f32.mrb[24].mxu1  ;;  %v5391_v29 = vpop.f32.mrb[24].mxu0  ;;  %v4246_v9 = vsel %vm1301_vm4, %v4241_v1, %v4245_v40  ;;  %v979_v36 = vld [vmem:[#allocation3 + $0xa0] sm:$0xff] }
 0x136   : > { %v1215_v49 = vadd.f32 %v5357_v54, %v969_v31  ;;  %v1110_v2 = vpop.f32.mrb[25].mxu1  ;;  %v1645_v17 = vpop.f32.mrb[25].mxu0 }
 0x137   : > { %v1500_v62 = vld [vmem:[#allocation3 + $0x30] sm:$0xff]  ;;  %v1213_v47 = vadd.f32 %v1110_v2, %v967_v28  ;;  %v5358_v60 = vpop.f32.mrb[26].mxu1  ;;  %v5392_v30 = vpop.f32.mrb[26].mxu0 }
 0x138   : > { %v1746_v27 = vadd.f32 %v5387_v3, %v1500_v62  ;;  %1247 = vst.msk [vmem:[#allocation3 + $0x50] sm:$0xff] %vm372_vm5, %v1215_v49  ;;  %v1498_v63 = vld [vmem:[#allocation3 + $0x20] sm:$0xff]  ;;  %v1216_v13 = vadd.f32 %v5358_v60, %v970_v39  ;;  %v1113_v37 = vpop.f32.mrb[27].mxu1  ;;  %v1648_v46 = vpop.f32.mrb[27].mxu0  ;;  %v4258_v62 = vsel %vm1301_vm4, %v6471_v44, %v4257_v45  ;;  %v4279_v39 = vshll.u32 %v4090_v22, 16 }
 0x139   : > { %v1744_v61 = vadd.f32 %v1629_v35, %v1498_v63  ;;  %1245 = vst.msk [vmem:[#allocation3 + $0x40] sm:$0xff] %vm372_vm5, %v1213_v47  ;;  %v1501_v33 = vld [vmem:[#allocation3 + $0x38] sm:$0xff]  ;;  %v1214_v18 = vadd.f32 %v1113_v37, %v968_v32  ;;  %v4276_v47 = vrot.slane %v3419_v26, 1 }
 0x13a   : > { %1778 = vst.msk [vmem:[#allocation3 + $0x30] sm:$0xff] %vm372_vm5, %v1746_v27  ;;  %v1747_v20 = vadd.f32 %v5388_v48, %v1501_v33  ;;  %1248 = vst.msk [vmem:[#allocation3 + $0x58] sm:$0xff] %vm372_vm5, %v1216_v13  ;;  %v1499_v19 = vld [vmem:[#allocation3 + $0x28] sm:$0xff]  ;;  %5572 = vmatmul.mubr.msk.bf16.gmra.mrb[132].mxu1 %vm172_vm2, %v6425_v53  ;;  %v4260_v53 = vshrl.u32 %v6604_v56, 16  ;;  %5606 = vmatmul.mubr.msk.bf16.gmra.mrb[132].mxu0 %vm172_vm2, %v4234_v12  ;;  %v975_v27 = vld [vmem:[#allocation3 + $0x80] sm:$0xff]  ;;  %v4281_v37 = vrot.slane %v4279_v39, 1 }
 0x13b   : > { %1776 = vst.msk [vmem:[#allocation3 + $0x20] sm:$0xff] %vm372_vm5, %v1744_v61  ;;  %v1745_v34 = vadd.f32 %v1632_v25, %v1499_v19  ;;  %1246 = vst.msk [vmem:[#allocation3 + $0x48] sm:$0xff] %vm372_vm5, %v1214_v18  ;;  %5575 = vmatprep.mubr.msk.bf16.mxu1 %vm172_vm2, %v6445_v10  ;;  %5609 = vmatprep.mubr.msk.bf16.mxu0 %vm172_vm2, %v4246_v9  ;;  %v978_v13 = vld [vmem:[#allocation3 + $0x98] sm:$0xff]  ;;  %v4277_v26 = vor.u32 %v4276_v47, %v3416_v57  ;;  %v976_v33 = vld [vmem:[#allocation3 + $0x88] sm:$0xff] }
 0x13c   : > { %1779 = vst.msk [vmem:[#allocation3 + $0x38] sm:$0xff] %vm372_vm5, %v1747_v20  ;;  %v4265_v48 = vor.u32 %v4264_v59, %v4260_v53  ;;  %v981_v9 = vld [vmem:[#allocation3 + $0xb0] sm:$0xff] }
 0x13d   : > { %1777 = vst.msk [vmem:[#allocation3 + $0x28] sm:$0xff] %vm372_vm5, %v1745_v34  ;;  %v5361_v11 = vpop.f32.mrb[28].mxu1  ;;  %v5395_v16 = vpop.f32.mrb[28].mxu0  ;;  %v4282_v15 = vsel %vm1301_vm4, %v4277_v26, %v4281_v37 }
 0x13e   : > { %v1219_v50 = vadd.f32 %v5361_v11, %v973_v0  ;;  %v1126_v10 = vpop.f32.mrb[29].mxu1  ;;  %v1661_v49 = vpop.f32.mrb[29].mxu0  ;;  %v4270_v60 = vsel %vm1301_vm4, %v4265_v48, %v4269_v8 }
 0x13f   : > { %v1504_v51 = vld [vmem:[#allocation3 + $0x50] sm:$0xff]  ;;  %v1217_v6 = vadd.f32 %v1126_v10, %v971_v24  ;;  %v5362_v3 = vpop.f32.mrb[30].mxu1  ;;  %v5396_v2 = vpop.f32.mrb[30].mxu0 }
 0x140   : > { %v1750_v43 = vadd.f32 %v5391_v29, %v1504_v51  ;;  %1251 = vst.msk [vmem:[#allocation3 + $0x70] sm:$0xff] %vm372_vm5, %v1219_v50  ;;  %v1502_v52 = vld [vmem:[#allocation3 + $0x40] sm:$0xff]  ;;  %v1220_v35 = vadd.f32 %v5362_v3, %v974_v58  ;;  %v1129_v41 = vpop.f32.mrb[31].mxu1  ;;  %v982_v50 = vld [vmem:[#allocation3 + $0xb8] sm:$0xff]  ;;  %v980_v58 = vld [vmem:[#allocation3 + $0xa8] sm:$0xff] }
 0x141   : > { %v1748_v38 = vadd.f32 %v1645_v17, %v1502_v52  ;;  %1249 = vst.msk [vmem:[#allocation3 + $0x60] sm:$0xff] %vm372_vm5, %v1217_v6  ;;  %v1505_v25 = vld [vmem:[#allocation3 + $0x58] sm:$0xff]  ;;  %v1218_v5 = vadd.f32 %v1129_v41, %v972_v55 }
 0x142   : > { %1782 = vst.msk [vmem:[#allocation3 + $0x50] sm:$0xff] %vm372_vm5, %v1750_v43  ;;  %v1751_v31 = vadd.f32 %v5392_v30, %v1505_v25  ;;  %1252 = vst.msk [vmem:[#allocation3 + $0x78] sm:$0xff] %vm372_vm5, %v1220_v35  ;;  %v1503_v54 = vld [vmem:[#allocation3 + $0x48] sm:$0xff]  ;;  %5576 = vmatmul.mubr.msk.bf16.gmra.mrb[136].mxu1 %vm172_vm2, %v6449_v42  ;;  %v1664_v42 = vpop.f32.mrb[31].mxu0  ;;  %5610 = vmatmul.mubr.msk.bf16.gmra.mrb[136].mxu0 %vm172_vm2, %v4258_v62  ;;  %v985_v25 = vld [vmem:[#allocation3 + $0xd0] sm:$0xff] }
 0x143   : > { %1780 = vst.msk [vmem:[#allocation3 + $0x40] sm:$0xff] %vm372_vm5, %v1748_v38  ;;  %v1749_v28 = vadd.f32 %v1648_v46, %v1503_v54  ;;  %1250 = vst.msk [vmem:[#allocation3 + $0x68] sm:$0xff] %vm372_vm5, %v1218_v5  ;;  %5579 = vmatprep.mubr.msk.bf16.mxu1 %vm172_vm2, %v6604_v56  ;;  %5613 = vmatprep.mubr.msk.bf16.mxu0 %vm172_vm2, %v4270_v60  ;;  %v984_v60 = vld [vmem:[#allocation3 + $0xc8] sm:$0xff] }
 0x144   : > { %1783 = vst.msk [vmem:[#allocation3 + $0x58] sm:$0xff] %vm372_vm5, %v1751_v31  ;;  %v983_v31 = vld [vmem:[#allocation3 + $0xc0] sm:$0xff] }
 0x145   : > { %1781 = vst.msk [vmem:[#allocation3 + $0x48] sm:$0xff] %vm372_vm5, %v1749_v28  ;;  %v5365_v1 = vpop.f32.mrb[32].mxu1  ;;  %v5399_v19 = vpop.f32.mrb[32].mxu0 }
 0x146   : > { %v1223_v14 = vadd.f32 %v5365_v1, %v977_v7  ;;  %v1142_v63 = vpop.f32.mrb[33].mxu1  ;;  %v1677_v34 = vpop.f32.mrb[33].mxu0 }
 0x147   : > { %v1508_v56 = vld [vmem:[#allocation3 + $0x70] sm:$0xff]  ;;  %v1221_v44 = vadd.f32 %v1142_v63, %v975_v27  ;;  %v5366_v32 = vpop.f32.mrb[34].mxu1  ;;  %v5400_v12 = vpop.f32.mrb[34].mxu0 }
 0x148   : > { %v1754_v40 = vadd.f32 %v5395_v16, %v1508_v56  ;;  %1255 = vst.msk [vmem:[#allocation3 + $0x90] sm:$0xff] %vm372_vm5, %v1223_v14  ;;  %v1506_v4 = vld [vmem:[#allocation3 + $0x60] sm:$0xff]  ;;  %v1224_v61 = vadd.f32 %v5366_v32, %v978_v13  ;;  %v1145_v18 = vpop.f32.mrb[35].mxu1  ;;  %v1680_v46 = vpop.f32.mrb[35].mxu0 }
 0x149   : > { %v1752_v29 = vadd.f32 %v1661_v49, %v1506_v4  ;;  %1253 = vst.msk [vmem:[#allocation3 + $0x80] sm:$0xff] %vm372_vm5, %v1221_v44  ;;  %v1509_v23 = vld [vmem:[#allocation3 + $0x78] sm:$0xff]  ;;  %v1222_v20 = vadd.f32 %v1145_v18, %v976_v33  ;;  %v987_v33 = vld [vmem:[#allocation3 + $0xe0] sm:$0xff] }
 0x14a   : > { %1786 = vst.msk [vmem:[#allocation3 + $0x70] sm:$0xff] %vm372_vm5, %v1754_v40  ;;  %v1755_v17 = vadd.f32 %v5396_v2, %v1509_v23  ;;  %1256 = vst.msk [vmem:[#allocation3 + $0x98] sm:$0xff] %vm372_vm5, %v1224_v61  ;;  %v1507_v57 = vld [vmem:[#allocation3 + $0x68] sm:$0xff]  ;;  %5580 = vmatmul.mubr.msk.bf16.gmra.mrb[140].mxu1 %vm172_vm2, %v6473_v21  ;;  %5614 = vmatmul.mubr.msk.bf16.gmra.mrb[140].mxu0 %vm172_vm2, %v4282_v15  ;;  %v986_v2 = vld [vmem:[#allocation3 + $0xd8] sm:$0xff] }
 0x14b   : > { %1784 = vst.msk [vmem:[#allocation3 + $0x60] sm:$0xff] %vm372_vm5, %v1752_v29  ;;  %v1753_v30 = vadd.f32 %v1664_v42, %v1507_v57  ;;  %1254 = vst.msk [vmem:[#allocation3 + $0x88] sm:$0xff] %vm372_vm5, %v1222_v20  ;;  %v989_v40 = vld [vmem:[#allocation3 + $0xf0] sm:$0xff]  ;;  %v990_v20 = vld [vmem:[#allocation3 + $0xf8] sm:$0xff] }
 0x14c   : > { %1787 = vst.msk [vmem:[#allocation3 + $0x78] sm:$0xff] %vm372_vm5, %v1755_v17 }
 0x14d   : > { %1785 = vst.msk [vmem:[#allocation3 + $0x68] sm:$0xff] %vm372_vm5, %v1753_v30  ;;  %v5369_v53 = vpop.f32.mrb[36].mxu1  ;;  %v5403_v35 = vpop.f32.mrb[36].mxu0  ;;  %v988_v30 = vld [vmem:[#allocation3 + $0xe8] sm:$0xff] }
 0x14e   : > { %v1227_v59 = vadd.f32 %v5369_v53, %v981_v9  ;;  %v1158_v0 = vpop.f32.mrb[37].mxu1  ;;  %v1693_v48 = vpop.f32.mrb[37].mxu0 }
 0x14f   : > { %v1512_v21 = vld [vmem:[#allocation3 + $0x90] sm:$0xff]  ;;  %v1225_v11 = vadd.f32 %v1158_v0, %v979_v36  ;;  %v5370_v24 = vpop.f32.mrb[38].mxu1  ;;  %v5404_v22 = vpop.f32.mrb[38].mxu0 }
 0x150   : > { %v1758_v10 = vadd.f32 %v5399_v19, %v1512_v21  ;;  %1259 = vst.msk [vmem:[#allocation3 + $0xb0] sm:$0xff] %vm372_vm5, %v1227_v59  ;;  %v1510_v51 = vld [vmem:[#allocation3 + $0x80] sm:$0xff]  ;;  %v1228_v6 = vadd.f32 %v5370_v24, %v982_v50  ;;  %v1161_v3 = vpop.f32.mrb[39].mxu1  ;;  %v1696_v38 = vpop.f32.mrb[39].mxu0  ;;  %v2030_v24 = vld [vmem:[#allocation3 + $0x10] sm:$0xff] }
 0x151   : > { %v1756_v45 = vadd.f32 %v1677_v34, %v1510_v51  ;;  %1257 = vst.msk [vmem:[#allocation3 + $0xa0] sm:$0xff] %vm372_vm5, %v1225_v11  ;;  %v1513_v43 = vld [vmem:[#allocation3 + $0x98] sm:$0xff]  ;;  %v1226_v52 = vadd.f32 %v1161_v3, %v980_v58 }
 0x152   : > { %1790 = vst.msk [vmem:[#allocation3 + $0x90] sm:$0xff] %vm372_vm5, %v1758_v10  ;;  %v1759_v55 = vadd.f32 %v5400_v12, %v1513_v43  ;;  %1260 = vst.msk [vmem:[#allocation3 + $0xb8] sm:$0xff] %vm372_vm5, %v1228_v6  ;;  %v1511_v41 = vld [vmem:[#allocation3 + $0x88] sm:$0xff]  ;;  %v2028_v6 = vld [vmem:[#allocation3] sm:$0xff] }
 0x153   : > { %1788 = vst.msk [vmem:[#allocation3 + $0x80] sm:$0xff] %vm372_vm5, %v1756_v45  ;;  %v1757_v8 = vadd.f32 %v1680_v46, %v1511_v41  ;;  %1258 = vst.msk [vmem:[#allocation3 + $0xa8] sm:$0xff] %vm372_vm5, %v1226_v52  ;;  %v2031_v43 = vld [vmem:[#allocation3 + $0x18] sm:$0xff] }
 0x154   : > { %1791 = vst.msk [vmem:[#allocation3 + $0x98] sm:$0xff] %vm372_vm5, %v1759_v55 }
 0x155   : > { %1789 = vst.msk [vmem:[#allocation3 + $0x88] sm:$0xff] %vm372_vm5, %v1757_v8  ;;  %v5373_v5 = vpop.f32.mrb[40].mxu1  ;;  %v5407_v63 = vpop.f32.mrb[40].mxu0 }
 0x156   : > { %v1231_v16 = vadd.f32 %v5373_v5, %v985_v25  ;;  %v1174_v54 = vpop.f32.mrb[41].mxu1  ;;  %v1709_v13 = vpop.f32.mrb[41].mxu0 }
 0x157   : > { %v1516_v49 = vld [vmem:[#allocation3 + $0xb0] sm:$0xff]  ;;  %v1229_v28 = vadd.f32 %v1174_v54, %v983_v31  ;;  %v5374_v62 = vpop.f32.mrb[42].mxu1  ;;  %v5408_v26 = vpop.f32.mrb[42].mxu0 }
 0x158   : > { %v1762_v47 = vadd.f32 %v5403_v35, %v1516_v49  ;;  %1263 = vst.msk [vmem:[#allocation3 + $0xd0] sm:$0xff] %vm372_vm5, %v1231_v16  ;;  %v1514_v39 = vld [vmem:[#allocation3 + $0xa0] sm:$0xff]  ;;  %v1232_v42 = vadd.f32 %v5374_v62, %v986_v2  ;;  %v1177_v7 = vpop.f32.mrb[43].mxu1  ;;  %v1712_v37 = vpop.f32.mrb[43].mxu0  ;;  %v2034_v62 = vld [vmem:[#allocation3 + $0x30] sm:$0xff] }
 0x159   : > { %v1760_v1 = vadd.f32 %v1693_v48, %v1514_v39  ;;  %1261 = vst.msk [vmem:[#allocation3 + $0xc0] sm:$0xff] %vm372_vm5, %v1229_v28  ;;  %v1517_v14 = vld [vmem:[#allocation3 + $0xb8] sm:$0xff]  ;;  %v1230_v27 = vadd.f32 %v1177_v7, %v984_v60  ;;  %v2029_v48 = vld [vmem:[#allocation3 + $0x8] sm:$0xff] }
 0x15a   : > { %1794 = vst.msk [vmem:[#allocation3 + $0xb0] sm:$0xff] %vm372_vm5, %v1762_v47  ;;  %v1763_v56 = vadd.f32 %v5404_v22, %v1517_v14  ;;  %1264 = vst.msk [vmem:[#allocation3 + $0xd8] sm:$0xff] %vm372_vm5, %v1232_v42  ;;  %v1515_v44 = vld [vmem:[#allocation3 + $0xa8] sm:$0xff]  ;;  %v2032_v42 = vld [vmem:[#allocation3 + $0x20] sm:$0xff] }
 0x15b   : > { %1792 = vst.msk [vmem:[#allocation3 + $0xa0] sm:$0xff] %vm372_vm5, %v1760_v1  ;;  %v1761_v32 = vadd.f32 %v1696_v38, %v1515_v44  ;;  %1262 = vst.msk [vmem:[#allocation3 + $0xc8] sm:$0xff] %vm372_vm5, %v1230_v27  ;;  %v2035_v14 = vld [vmem:[#allocation3 + $0x38] sm:$0xff] }
 0x15c   : > { %1795 = vst.msk [vmem:[#allocation3 + $0xb8] sm:$0xff] %vm372_vm5, %v1763_v56 }
 0x15d   : > { %1793 = vst.msk [vmem:[#allocation3 + $0xa8] sm:$0xff] %vm372_vm5, %v1761_v32  ;;  %v5377_v4 = vpop.f32.mrb[44].mxu1  ;;  %v5411_v53 = vpop.f32.mrb[44].mxu0 }
 0x15e   : > { %v1235_v61 = vadd.f32 %v5377_v4, %v989_v40  ;;  %v1190_v18 = vpop.f32.mrb[45].mxu1  ;;  %v1725_v0 = vpop.f32.mrb[45].mxu0 }
 0x15f   : > { %v1520_v29 = vld [vmem:[#allocation3 + $0xd0] sm:$0xff]  ;;  %v1233_v23 = vadd.f32 %v1190_v18, %v987_v33  ;;  %v5378_v19 = vpop.f32.mrb[46].mxu1  ;;  %v5412_v11 = vpop.f32.mrb[46].mxu0 }
 0x160   : > { %v1766_v17 = vadd.f32 %v5407_v63, %v1520_v29  ;;  %1267 = vst.msk [vmem:[#allocation3 + $0xf0] sm:$0xff] %vm372_vm5, %v1235_v61  ;;  %v1518_v57 = vld [vmem:[#allocation3 + $0xc0] sm:$0xff]  ;;  %v1236_v34 = vadd.f32 %v5378_v19, %v990_v20  ;;  %v1193_v12 = vpop.f32.mrb[47].mxu1  ;;  %v1728_v50 = vpop.f32.mrb[47].mxu0  ;;  %v2038_v19 = vld [vmem:[#allocation3 + $0x50] sm:$0xff] }
 0x161   : > { %v1764_v15 = vadd.f32 %v1709_v13, %v1518_v57  ;;  %1265 = vst.msk [vmem:[#allocation3 + $0xe0] sm:$0xff] %vm372_vm5, %v1233_v23  ;;  %v1521_v46 = vld [vmem:[#allocation3 + $0xd8] sm:$0xff]  ;;  %v1234_v9 = vadd.f32 %v1193_v12, %v988_v30  ;;  %v2033_v13 = vld [vmem:[#allocation3 + $0x28] sm:$0xff] }
 0x162   : > { %1798 = vst.msk [vmem:[#allocation3 + $0xd0] sm:$0xff] %vm372_vm5, %v1766_v17  ;;  %v1767_v59 = vadd.f32 %v5408_v26, %v1521_v46  ;;  %1268 = vst.msk [vmem:[#allocation3 + $0xf8] sm:$0xff] %vm372_vm5, %v1236_v34  ;;  %v1519_v36 = vld [vmem:[#allocation3 + $0xc8] sm:$0xff]  ;;  %v2036_v34 = vld [vmem:[#allocation3 + $0x40] sm:$0xff] }
 0x163   : > { %1796 = vst.msk [vmem:[#allocation3 + $0xc0] sm:$0xff] %vm372_vm5, %v1764_v15  ;;  %v1765_v21 = vadd.f32 %v1712_v37, %v1519_v36  ;;  %1266 = vst.msk [vmem:[#allocation3 + $0xe8] sm:$0xff] %vm372_vm5, %v1234_v9  ;;  %v2039_v46 = vld [vmem:[#allocation3 + $0x58] sm:$0xff] }
 0x164   : > { %1799 = vst.msk [vmem:[#allocation3 + $0xd8] sm:$0xff] %vm372_vm5, %v1767_v59 }
 0x165   : > { %1797 = vst.msk [vmem:[#allocation3 + $0xc8] sm:$0xff] %vm372_vm5, %v1765_v21  ;;  %v5417_v10 = vpop.f32.mrb[48].mxu1  ;;  %v5451_v5 = vpop.f32.mrb[48].mxu0 }
 0x166   : > { %v2276_v51 = vadd.f32 %v5417_v10, %v2030_v24  ;;  %v2147_v58 = vpop.f32.mrb[49].mxu1  ;;  %v2473_v54 = vpop.f32.mrb[49].mxu0 }
 0x167   : > { %v1524_v3 = vld [vmem:[#allocation3 + $0xf0] sm:$0xff]  ;;  %v2274_v45 = vadd.f32 %v2147_v58, %v2028_v6  ;;  %v5418_v52 = vpop.f32.mrb[50].mxu1  ;;  %v5452_v28 = vpop.f32.mrb[50].mxu0 }
 0x168   : > { %v1770_v35 = vadd.f32 %v5411_v53, %v1524_v3  ;;  %v1522_v55 = vld [vmem:[#allocation3 + $0xe0] sm:$0xff]  ;;  %2308 = vst.msk [vmem:[#allocation3 + $0x10] sm:$0xff] %vm372_vm5, %v2276_v51  ;;  %v2277_v41 = vadd.f32 %v5418_v52, %v2031_v43  ;;  %v2150_v8 = vpop.f32.mrb[51].mxu1  ;;  %v2476_v2 = vpop.f32.mrb[51].mxu0  ;;  %v2042_v52 = vld [vmem:[#allocation3 + $0x70] sm:$0xff] }
 0x169   : > { %v1768_v22 = vadd.f32 %v1725_v0, %v1522_v55  ;;  %v1525_v38 = vld [vmem:[#allocation3 + $0xf8] sm:$0xff]  ;;  %2306 = vst.msk [vmem:[#allocation3] sm:$0xff] %vm372_vm5, %v2274_v45  ;;  %v2275_v25 = vadd.f32 %v2150_v8, %v2029_v48  ;;  %v2037_v0 = vld [vmem:[#allocation3 + $0x48] sm:$0xff] }
 0x16a   : > { %1802 = vst.msk [vmem:[#allocation3 + $0xf0] sm:$0xff] %vm372_vm5, %v1770_v35  ;;  %v1771_v16 = vadd.f32 %v5412_v11, %v1525_v38  ;;  %v1523_v31 = vld [vmem:[#allocation3 + $0xe8] sm:$0xff]  ;;  %2309 = vst.msk [vmem:[#allocation3 + $0x18] sm:$0xff] %vm372_vm5, %v2277_v41  ;;  %v2040_v41 = vld [vmem:[#allocation3 + $0x60] sm:$0xff] }
 0x16b   : > { %1800 = vst.msk [vmem:[#allocation3 + $0xe0] sm:$0xff] %vm372_vm5, %v1768_v22  ;;  %v1769_v49 = vadd.f32 %v1728_v50, %v1523_v31  ;;  %2307 = vst.msk [vmem:[#allocation3 + $0x8] sm:$0xff] %vm372_vm5, %v2275_v25  ;;  %v2043_v38 = vld [vmem:[#allocation3 + $0x78] sm:$0xff] }
 0x16c   : > { %1803 = vst.msk [vmem:[#allocation3 + $0xf8] sm:$0xff] %vm372_vm5, %v1771_v16 }
 0x16d   : > { %1801 = vst.msk [vmem:[#allocation3 + $0xe8] sm:$0xff] %vm372_vm5, %v1769_v49  ;;  %v5421_v47 = vpop.f32.mrb[52].mxu1  ;;  %v5455_v4 = vpop.f32.mrb[52].mxu0 }
 0x16e   : > { %v2280_v39 = vadd.f32 %v5421_v47, %v2034_v62  ;;  %v2163_v60 = vpop.f32.mrb[53].mxu1  ;;  %v2489_v18 = vpop.f32.mrb[53].mxu0 }
 0x16f   : > { %v2356_v7 = vld [vmem:[#allocation3 + $0x10] sm:$0xff]  ;;  %v2278_v1 = vadd.f32 %v2163_v60, %v2032_v42  ;;  %v5422_v27 = vpop.f32.mrb[54].mxu1  ;;  %v5456_v23 = vpop.f32.mrb[54].mxu0 }
 0x170   : > { %v2602_v63 = vadd.f32 %v5451_v5, %v2356_v7  ;;  %2312 = vst.msk [vmem:[#allocation3 + $0x30] sm:$0xff] %vm372_vm5, %v2280_v39  ;;  %v2354_v56 = vld [vmem:[#allocation3] sm:$0xff]  ;;  %v2281_v44 = vadd.f32 %v5422_v27, %v2035_v14  ;;  %v2166_v32 = vpop.f32.mrb[55].mxu1  ;;  %v2492_v20 = vpop.f32.mrb[55].mxu0  ;;  %v2046_v27 = vld [vmem:[#allocation3 + $0x90] sm:$0xff] }
 0x171   : > { %v2600_v26 = vadd.f32 %v2473_v54, %v2354_v56  ;;  %2310 = vst.msk [vmem:[#allocation3 + $0x20] sm:$0xff] %vm372_vm5, %v2278_v1  ;;  %v2357_v37 = vld [vmem:[#allocation3 + $0x18] sm:$0xff]  ;;  %v2279_v40 = vadd.f32 %v2166_v32, %v2033_v13  ;;  %v2041_v54 = vld [vmem:[#allocation3 + $0x68] sm:$0xff] }
 0x172   : > { %2634 = vst.msk [vmem:[#allocation3 + $0x10] sm:$0xff] %vm372_vm5, %v2602_v63  ;;  %v2603_v61 = vadd.f32 %v5452_v28, %v2357_v37  ;;  %2313 = vst.msk [vmem:[#allocation3 + $0x38] sm:$0xff] %vm372_vm5, %v2281_v44  ;;  %v2355_v33 = vld [vmem:[#allocation3 + $0x8] sm:$0xff]  ;;  %v2044_v44 = vld [vmem:[#allocation3 + $0x80] sm:$0xff] }
 0x173   : > { %2632 = vst.msk [vmem:[#allocation3] sm:$0xff] %vm372_vm5, %v2600_v26  ;;  %v2601_v29 = vadd.f32 %v2476_v2, %v2355_v33  ;;  %2311 = vst.msk [vmem:[#allocation3 + $0x28] sm:$0xff] %vm372_vm5, %v2279_v40  ;;  %v2047_v37 = vld [vmem:[#allocation3 + $0x98] sm:$0xff] }
 0x174   : > { %2635 = vst.msk [vmem:[#allocation3 + $0x18] sm:$0xff] %vm372_vm5, %v2603_v61 }
 0x175   : > { %2633 = vst.msk [vmem:[#allocation3 + $0x8] sm:$0xff] %vm372_vm5, %v2601_v29  ;;  %v5425_v17 = vpop.f32.mrb[56].mxu1  ;;  %v5459_v10 = vpop.f32.mrb[56].mxu0 }
 0x176   : > { %v2284_v57 = vadd.f32 %v5425_v17, %v2038_v19  ;;  %v2179_v30 = vpop.f32.mrb[57].mxu1  ;;  %v2505_v58 = vpop.f32.mrb[57].mxu0 }
 0x177   : > { %v2360_v12 = vld [vmem:[#allocation3 + $0x30] sm:$0xff]  ;;  %v2282_v15 = vadd.f32 %v2179_v30, %v2036_v34  ;;  %v5426_v9 = vpop.f32.mrb[58].mxu1  ;;  %v5460_v45 = vpop.f32.mrb[58].mxu0 }
 0x178   : > { %v2606_v53 = vadd.f32 %v5455_v4, %v2360_v12  ;;  %2316 = vst.msk [vmem:[#allocation3 + $0x50] sm:$0xff] %vm372_vm5, %v2284_v57  ;;  %v2358_v59 = vld [vmem:[#allocation3 + $0x20] sm:$0xff]  ;;  %v2285_v36 = vadd.f32 %v5426_v9, %v2039_v46  ;;  %v2182_v21 = vpop.f32.mrb[59].mxu1  ;;  %v2508_v43 = vpop.f32.mrb[59].mxu0  ;;  %v2050_v9 = vld [vmem:[#allocation3 + $0xb0] sm:$0xff] }
 0x179   : > { %v2604_v11 = vadd.f32 %v2489_v18, %v2358_v59  ;;  %2314 = vst.msk [vmem:[#allocation3 + $0x40] sm:$0xff] %vm372_vm5, %v2282_v15  ;;  %v2361_v50 = vld [vmem:[#allocation3 + $0x38] sm:$0xff]  ;;  %v2283_v24 = vadd.f32 %v2182_v21, %v2037_v0  ;;  %v2045_v18 = vld [vmem:[#allocation3 + $0x88] sm:$0xff] }
 0x17a   : > { %2638 = vst.msk [vmem:[#allocation3 + $0x30] sm:$0xff] %vm372_vm5, %v2606_v53  ;;  %v2607_v51 = vadd.f32 %v5456_v23, %v2361_v50  ;;  %2317 = vst.msk [vmem:[#allocation3 + $0x58] sm:$0xff] %vm372_vm5, %v2285_v36  ;;  %v2359_v6 = vld [vmem:[#allocation3 + $0x28] sm:$0xff]  ;;  %v2048_v36 = vld [vmem:[#allocation3 + $0xa0] sm:$0xff] }
 0x17b   : > { %2636 = vst.msk [vmem:[#allocation3 + $0x20] sm:$0xff] %vm372_vm5, %v2604_v11  ;;  %v2605_v3 = vadd.f32 %v2492_v20, %v2359_v6  ;;  %2315 = vst.msk [vmem:[#allocation3 + $0x48] sm:$0xff] %vm372_vm5, %v2283_v24  ;;  %v2051_v50 = vld [vmem:[#allocation3 + $0xb8] sm:$0xff] }
 0x17c   : > { %2639 = vst.msk [vmem:[#allocation3 + $0x38] sm:$0xff] %vm372_vm5, %v2607_v51 }
 0x17d   : > { %2637 = vst.msk [vmem:[#allocation3 + $0x28] sm:$0xff] %vm372_vm5, %v2605_v3  ;;  %v5429_v35 = vpop.f32.mrb[60].mxu1  ;;  %v5463_v47 = vpop.f32.mrb[60].mxu0 }
 0x17e   : > { %v2288_v55 = vadd.f32 %v5429_v35, %v2042_v52  ;;  %v2195_v48 = vpop.f32.mrb[61].mxu1  ;;  %v2521_v60 = vpop.f32.mrb[61].mxu0 }
 0x17f   : > { %v2364_v8 = vld [vmem:[#allocation3 + $0x50] sm:$0xff]  ;;  %v2286_v22 = vadd.f32 %v2195_v48, %v2040_v41  ;;  %v5430_v25 = vpop.f32.mrb[62].mxu1  ;;  %v5464_v1 = vpop.f32.mrb[62].mxu0 }
 0x180   : > { %v2610_v5 = vadd.f32 %v5459_v10, %v2364_v8  ;;  %2320 = vst.msk [vmem:[#allocation3 + $0x70] sm:$0xff] %vm372_vm5, %v2288_v55  ;;  %v2362_v16 = vld [vmem:[#allocation3 + $0x40] sm:$0xff]  ;;  %v2289_v31 = vadd.f32 %v5430_v25, %v2043_v38  ;;  %v2198_v49 = vpop.f32.mrb[63].mxu1  ;;  %v2524_v14 = vpop.f32.mrb[63].mxu0  ;;  %v2054_v25 = vld [vmem:[#allocation3 + $0xd0] sm:$0xff] }
 0x181   : > { %v2608_v28 = vadd.f32 %v2505_v58, %v2362_v16  ;;  %2318 = vst.msk [vmem:[#allocation3 + $0x60] sm:$0xff] %vm372_vm5, %v2286_v22  ;;  %v2365_v2 = vld [vmem:[#allocation3 + $0x58] sm:$0xff]  ;;  %v2287_v62 = vadd.f32 %v2198_v49, %v2041_v54  ;;  %v2049_v58 = vld [vmem:[#allocation3 + $0xa8] sm:$0xff] }
 0x182   : > { %2642 = vst.msk [vmem:[#allocation3 + $0x50] sm:$0xff] %vm372_vm5, %v2610_v5  ;;  %v2611_v39 = vadd.f32 %v5460_v45, %v2365_v2  ;;  %2321 = vst.msk [vmem:[#allocation3 + $0x78] sm:$0xff] %vm372_vm5, %v2289_v31  ;;  %v2363_v42 = vld [vmem:[#allocation3 + $0x48] sm:$0xff]  ;;  %v2052_v31 = vld [vmem:[#allocation3 + $0xc0] sm:$0xff] }
 0x183   : > { %2640 = vst.msk [vmem:[#allocation3 + $0x40] sm:$0xff] %vm372_vm5, %v2608_v28  ;;  %v2609_v7 = vadd.f32 %v2508_v43, %v2363_v42  ;;  %2319 = vst.msk [vmem:[#allocation3 + $0x68] sm:$0xff] %vm372_vm5, %v2287_v62  ;;  %v2055_v2 = vld [vmem:[#allocation3 + $0xd8] sm:$0xff] }
 0x184   : > { %2643 = vst.msk [vmem:[#allocation3 + $0x58] sm:$0xff] %vm372_vm5, %v2611_v39 }
 0x185   : > { %2641 = vst.msk [vmem:[#allocation3 + $0x48] sm:$0xff] %vm372_vm5, %v2609_v7  ;;  %v5433_v63 = vpop.f32.mrb[64].mxu1  ;;  %v5467_v17 = vpop.f32.mrb[64].mxu0 }
 0x186   : > { %v2292_v56 = vadd.f32 %v5433_v63, %v2046_v27  ;;  %v2211_v13 = vpop.f32.mrb[65].mxu1  ;;  %v2537_v30 = vpop.f32.mrb[65].mxu0 }
 0x187   : > { %v2368_v32 = vld [vmem:[#allocation3 + $0x70] sm:$0xff]  ;;  %v2290_v26 = vadd.f32 %v2211_v13, %v2044_v44  ;;  %v5434_v40 = vpop.f32.mrb[66].mxu1  ;;  %v5468_v15 = vpop.f32.mrb[66].mxu0 }
 0x188   : > { %v2614_v4 = vadd.f32 %v5463_v47, %v2368_v32  ;;  %2324 = vst.msk [vmem:[#allocation3 + $0x90] sm:$0xff] %vm372_vm5, %v2292_v56  ;;  %v2366_v61 = vld [vmem:[#allocation3 + $0x60] sm:$0xff]  ;;  %v2293_v33 = vadd.f32 %v5434_v40, %v2047_v37  ;;  %v2214_v29 = vpop.f32.mrb[67].mxu1  ;;  %v2540_v46 = vpop.f32.mrb[67].mxu0  ;;  %v2058_v40 = vld [vmem:[#allocation3 + $0xf0] sm:$0xff] }
 0x189   : > { %v2612_v23 = vadd.f32 %v2521_v60, %v2366_v61  ;;  %2322 = vst.msk [vmem:[#allocation3 + $0x80] sm:$0xff] %vm372_vm5, %v2290_v26  ;;  %v2369_v20 = vld [vmem:[#allocation3 + $0x78] sm:$0xff]  ;;  %v2291_v19 = vadd.f32 %v2214_v29, %v2045_v18  ;;  %v2053_v60 = vld [vmem:[#allocation3 + $0xc8] sm:$0xff] }
 0x18a   : > { %2646 = vst.msk [vmem:[#allocation3 + $0x70] sm:$0xff] %vm372_vm5, %v2614_v4  ;;  %v2615_v57 = vadd.f32 %v5464_v1, %v2369_v20  ;;  %2325 = vst.msk [vmem:[#allocation3 + $0x98] sm:$0xff] %vm372_vm5, %v2293_v33  ;;  %v2367_v34 = vld [vmem:[#allocation3 + $0x68] sm:$0xff]  ;;  %v2056_v33 = vld [vmem:[#allocation3 + $0xe0] sm:$0xff] }
 0x18b   : > { %2644 = vst.msk [vmem:[#allocation3 + $0x60] sm:$0xff] %vm372_vm5, %v2612_v23  ;;  %v2613_v12 = vadd.f32 %v2524_v14, %v2367_v34  ;;  %2323 = vst.msk [vmem:[#allocation3 + $0x88] sm:$0xff] %vm372_vm5, %v2291_v19  ;;  %v2059_v20 = vld [vmem:[#allocation3 + $0xf8] sm:$0xff] }
 0x18c   : > { %2647 = vst.msk [vmem:[#allocation3 + $0x78] sm:$0xff] %vm372_vm5, %v2615_v57 }
 0x18d   : > { %2645 = vst.msk [vmem:[#allocation3 + $0x68] sm:$0xff] %vm372_vm5, %v2613_v12  ;;  %v5437_v53 = vpop.f32.mrb[68].mxu1  ;;  %v5471_v35 = vpop.f32.mrb[68].mxu0 }
 0x18e   : > { %v2296_v59 = vadd.f32 %v5437_v53, %v2050_v9  ;;  %v2227_v0 = vpop.f32.mrb[69].mxu1  ;;  %v2553_v48 = vpop.f32.mrb[69].mxu0 }
 0x18f   : > { %v2372_v21 = vld [vmem:[#allocation3 + $0x90] sm:$0xff]  ;;  %v2294_v11 = vadd.f32 %v2227_v0, %v2048_v36  ;;  %v5438_v24 = vpop.f32.mrb[70].mxu1  ;;  %v5472_v22 = vpop.f32.mrb[70].mxu0 }
 0x190   : > { %v2618_v10 = vadd.f32 %v5467_v17, %v2372_v21  ;;  %2328 = vst.msk [vmem:[#allocation3 + $0xb0] sm:$0xff] %vm372_vm5, %v2296_v59  ;;  %v2370_v51 = vld [vmem:[#allocation3 + $0x80] sm:$0xff]  ;;  %v2297_v6 = vadd.f32 %v5438_v24, %v2051_v50  ;;  %v2230_v3 = vpop.f32.mrb[71].mxu1  ;;  %v2556_v38 = vpop.f32.mrb[71].mxu0  ;;  %v2890_v24 = vld [vmem:[#allocation3 + $0x10] sm:$0xff] }
 0x191   : > { %v2616_v45 = vadd.f32 %v2537_v30, %v2370_v51  ;;  %2326 = vst.msk [vmem:[#allocation3 + $0xa0] sm:$0xff] %vm372_vm5, %v2294_v11  ;;  %v2373_v43 = vld [vmem:[#allocation3 + $0x98] sm:$0xff]  ;;  %v2295_v52 = vadd.f32 %v2230_v3, %v2049_v58  ;;  %v2057_v30 = vld [vmem:[#allocation3 + $0xe8] sm:$0xff] }
 0x192   : > { %2650 = vst.msk [vmem:[#allocation3 + $0x90] sm:$0xff] %vm372_vm5, %v2618_v10  ;;  %v2619_v55 = vadd.f32 %v5468_v15, %v2373_v43  ;;  %2329 = vst.msk [vmem:[#allocation3 + $0xb8] sm:$0xff] %vm372_vm5, %v2297_v6  ;;  %v2371_v41 = vld [vmem:[#allocation3 + $0x88] sm:$0xff]  ;;  %v2888_v6 = vld [vmem:[#allocation3] sm:$0xff] }
 0x193   : > { %2648 = vst.msk [vmem:[#allocation3 + $0x80] sm:$0xff] %vm372_vm5, %v2616_v45  ;;  %v2617_v8 = vadd.f32 %v2540_v46, %v2371_v41  ;;  %2327 = vst.msk [vmem:[#allocation3 + $0xa8] sm:$0xff] %vm372_vm5, %v2295_v52  ;;  %v2891_v43 = vld [vmem:[#allocation3 + $0x18] sm:$0xff] }
 0x194   : > { %2651 = vst.msk [vmem:[#allocation3 + $0x98] sm:$0xff] %vm372_vm5, %v2619_v55 }
 0x195   : > { %2649 = vst.msk [vmem:[#allocation3 + $0x88] sm:$0xff] %vm372_vm5, %v2617_v8  ;;  %v5441_v5 = vpop.f32.mrb[72].mxu1  ;;  %v5475_v63 = vpop.f32.mrb[72].mxu0 }
 0x196   : > { %v2300_v16 = vadd.f32 %v5441_v5, %v2054_v25  ;;  %v2243_v54 = vpop.f32.mrb[73].mxu1  ;;  %v2569_v13 = vpop.f32.mrb[73].mxu0 }
 0x197   : > { %v2376_v49 = vld [vmem:[#allocation3 + $0xb0] sm:$0xff]  ;;  %v2298_v28 = vadd.f32 %v2243_v54, %v2052_v31  ;;  %v5442_v62 = vpop.f32.mrb[74].mxu1  ;;  %v5476_v26 = vpop.f32.mrb[74].mxu0 }
 0x198   : > { %v2622_v47 = vadd.f32 %v5471_v35, %v2376_v49  ;;  %2332 = vst.msk [vmem:[#allocation3 + $0xd0] sm:$0xff] %vm372_vm5, %v2300_v16  ;;  %v2374_v39 = vld [vmem:[#allocation3 + $0xa0] sm:$0xff]  ;;  %v2301_v42 = vadd.f32 %v5442_v62, %v2055_v2  ;;  %v2246_v7 = vpop.f32.mrb[75].mxu1  ;;  %v2572_v37 = vpop.f32.mrb[75].mxu0  ;;  %v2894_v62 = vld [vmem:[#allocation3 + $0x30] sm:$0xff] }
 0x199   : > { %v2620_v1 = vadd.f32 %v2553_v48, %v2374_v39  ;;  %2330 = vst.msk [vmem:[#allocation3 + $0xc0] sm:$0xff] %vm372_vm5, %v2298_v28  ;;  %v2377_v14 = vld [vmem:[#allocation3 + $0xb8] sm:$0xff]  ;;  %v2299_v27 = vadd.f32 %v2246_v7, %v2053_v60  ;;  %v2889_v48 = vld [vmem:[#allocation3 + $0x8] sm:$0xff] }
 0x19a   : > { %2654 = vst.msk [vmem:[#allocation3 + $0xb0] sm:$0xff] %vm372_vm5, %v2622_v47  ;;  %v2623_v56 = vadd.f32 %v5472_v22, %v2377_v14  ;;  %2333 = vst.msk [vmem:[#allocation3 + $0xd8] sm:$0xff] %vm372_vm5, %v2301_v42  ;;  %v2375_v44 = vld [vmem:[#allocation3 + $0xa8] sm:$0xff]  ;;  %v2892_v42 = vld [vmem:[#allocation3 + $0x20] sm:$0xff] }
 0x19b   : > { %2652 = vst.msk [vmem:[#allocation3 + $0xa0] sm:$0xff] %vm372_vm5, %v2620_v1  ;;  %v2621_v32 = vadd.f32 %v2556_v38, %v2375_v44  ;;  %2331 = vst.msk [vmem:[#allocation3 + $0xc8] sm:$0xff] %vm372_vm5, %v2299_v27  ;;  %v2895_v14 = vld [vmem:[#allocation3 + $0x38] sm:$0xff] }
 0x19c   : > { %2655 = vst.msk [vmem:[#allocation3 + $0xb8] sm:$0xff] %vm372_vm5, %v2623_v56 }
 0x19d   : > { %2653 = vst.msk [vmem:[#allocation3 + $0xa8] sm:$0xff] %vm372_vm5, %v2621_v32  ;;  %v5445_v4 = vpop.f32.mrb[76].mxu1  ;;  %v5479_v53 = vpop.f32.mrb[76].mxu0 }
 0x19e   : > { %v2304_v61 = vadd.f32 %v5445_v4, %v2058_v40  ;;  %v2259_v18 = vpop.f32.mrb[77].mxu1  ;;  %v2585_v0 = vpop.f32.mrb[77].mxu0 }
 0x19f   : > { %v2380_v29 = vld [vmem:[#allocation3 + $0xd0] sm:$0xff]  ;;  %v2302_v23 = vadd.f32 %v2259_v18, %v2056_v33  ;;  %v5446_v19 = vpop.f32.mrb[78].mxu1  ;;  %v5480_v11 = vpop.f32.mrb[78].mxu0 }
 0x1a0   : > { %v2626_v17 = vadd.f32 %v5475_v63, %v2380_v29  ;;  %2336 = vst.msk [vmem:[#allocation3 + $0xf0] sm:$0xff] %vm372_vm5, %v2304_v61  ;;  %v2378_v57 = vld [vmem:[#allocation3 + $0xc0] sm:$0xff]  ;;  %v2305_v34 = vadd.f32 %v5446_v19, %v2059_v20  ;;  %v2262_v12 = vpop.f32.mrb[79].mxu1  ;;  %v2588_v50 = vpop.f32.mrb[79].mxu0  ;;  %v2898_v19 = vld [vmem:[#allocation3 + $0x50] sm:$0xff] }
 0x1a1   : > { %v2624_v15 = vadd.f32 %v2569_v13, %v2378_v57  ;;  %2334 = vst.msk [vmem:[#allocation3 + $0xe0] sm:$0xff] %vm372_vm5, %v2302_v23  ;;  %v2381_v46 = vld [vmem:[#allocation3 + $0xd8] sm:$0xff]  ;;  %v2303_v9 = vadd.f32 %v2262_v12, %v2057_v30  ;;  %v2893_v13 = vld [vmem:[#allocation3 + $0x28] sm:$0xff] }
 0x1a2   : > { %2658 = vst.msk [vmem:[#allocation3 + $0xd0] sm:$0xff] %vm372_vm5, %v2626_v17  ;;  %v2627_v59 = vadd.f32 %v5476_v26, %v2381_v46  ;;  %2337 = vst.msk [vmem:[#allocation3 + $0xf8] sm:$0xff] %vm372_vm5, %v2305_v34  ;;  %v2379_v36 = vld [vmem:[#allocation3 + $0xc8] sm:$0xff]  ;;  %v2896_v34 = vld [vmem:[#allocation3 + $0x40] sm:$0xff] }
 0x1a3   : > { %2656 = vst.msk [vmem:[#allocation3 + $0xc0] sm:$0xff] %vm372_vm5, %v2624_v15  ;;  %v2625_v21 = vadd.f32 %v2572_v37, %v2379_v36  ;;  %2335 = vst.msk [vmem:[#allocation3 + $0xe8] sm:$0xff] %vm372_vm5, %v2303_v9  ;;  %v2899_v46 = vld [vmem:[#allocation3 + $0x58] sm:$0xff] }
 0x1a4   : > { %2659 = vst.msk [vmem:[#allocation3 + $0xd8] sm:$0xff] %vm372_vm5, %v2627_v59 }
 0x1a5   : > { %2657 = vst.msk [vmem:[#allocation3 + $0xc8] sm:$0xff] %vm372_vm5, %v2625_v21  ;;  %v5485_v10 = vpop.f32.mrb[80].mxu1  ;;  %v5519_v5 = vpop.f32.mrb[80].mxu0 }
 0x1a6   : > { %v3136_v51 = vadd.f32 %v5485_v10, %v2890_v24  ;;  %v3007_v58 = vpop.f32.mrb[81].mxu1  ;;  %v3542_v54 = vpop.f32.mrb[81].mxu0 }
 0x1a7   : > { %v2384_v3 = vld [vmem:[#allocation3 + $0xf0] sm:$0xff]  ;;  %v3134_v45 = vadd.f32 %v3007_v58, %v2888_v6  ;;  %v5486_v52 = vpop.f32.mrb[82].mxu1  ;;  %v5520_v28 = vpop.f32.mrb[82].mxu0 }
 0x1a8   : > { %v2630_v35 = vadd.f32 %v5479_v53, %v2384_v3  ;;  %v2382_v55 = vld [vmem:[#allocation3 + $0xe0] sm:$0xff]  ;;  %3168 = vst.msk [vmem:[#allocation3 + $0x10] sm:$0xff] %vm372_vm5, %v3136_v51  ;;  %v3137_v41 = vadd.f32 %v5486_v52, %v2891_v43  ;;  %v3010_v8 = vpop.f32.mrb[83].mxu1  ;;  %v3545_v2 = vpop.f32.mrb[83].mxu0  ;;  %v2902_v52 = vld [vmem:[#allocation3 + $0x70] sm:$0xff] }
 0x1a9   : > { %v2628_v22 = vadd.f32 %v2585_v0, %v2382_v55  ;;  %v2385_v38 = vld [vmem:[#allocation3 + $0xf8] sm:$0xff]  ;;  %3166 = vst.msk [vmem:[#allocation3] sm:$0xff] %vm372_vm5, %v3134_v45  ;;  %v3135_v25 = vadd.f32 %v3010_v8, %v2889_v48  ;;  %v2897_v0 = vld [vmem:[#allocation3 + $0x48] sm:$0xff] }
 0x1aa   : > { %2662 = vst.msk [vmem:[#allocation3 + $0xf0] sm:$0xff] %vm372_vm5, %v2630_v35  ;;  %v2631_v16 = vadd.f32 %v5480_v11, %v2385_v38  ;;  %v2383_v31 = vld [vmem:[#allocation3 + $0xe8] sm:$0xff]  ;;  %3169 = vst.msk [vmem:[#allocation3 + $0x18] sm:$0xff] %vm372_vm5, %v3137_v41  ;;  %v2900_v41 = vld [vmem:[#allocation3 + $0x60] sm:$0xff] }
 0x1ab   : > { %2660 = vst.msk [vmem:[#allocation3 + $0xe0] sm:$0xff] %vm372_vm5, %v2628_v22  ;;  %v2629_v49 = vadd.f32 %v2588_v50, %v2383_v31  ;;  %3167 = vst.msk [vmem:[#allocation3 + $0x8] sm:$0xff] %vm372_vm5, %v3135_v25  ;;  %v2903_v38 = vld [vmem:[#allocation3 + $0x78] sm:$0xff] }
 0x1ac   : > { %2663 = vst.msk [vmem:[#allocation3 + $0xf8] sm:$0xff] %vm372_vm5, %v2631_v16 }
 0x1ad   : > { %2661 = vst.msk [vmem:[#allocation3 + $0xe8] sm:$0xff] %vm372_vm5, %v2629_v49  ;;  %v5489_v47 = vpop.f32.mrb[84].mxu1  ;;  %v5523_v4 = vpop.f32.mrb[84].mxu0 }
 0x1ae   : > { %v3140_v39 = vadd.f32 %v5489_v47, %v2894_v62  ;;  %v3023_v60 = vpop.f32.mrb[85].mxu1  ;;  %v3558_v18 = vpop.f32.mrb[85].mxu0 }
 0x1af   : > { %v3425_v7 = vld [vmem:[#allocation3 + $0x10] sm:$0xff]  ;;  %v3138_v1 = vadd.f32 %v3023_v60, %v2892_v42  ;;  %v5490_v27 = vpop.f32.mrb[86].mxu1  ;;  %v5524_v23 = vpop.f32.mrb[86].mxu0 }
 0x1b0   : > { %v3671_v63 = vadd.f32 %v5519_v5, %v3425_v7  ;;  %3172 = vst.msk [vmem:[#allocation3 + $0x30] sm:$0xff] %vm372_vm5, %v3140_v39  ;;  %v3423_v56 = vld [vmem:[#allocation3] sm:$0xff]  ;;  %v3141_v44 = vadd.f32 %v5490_v27, %v2895_v14  ;;  %v3026_v32 = vpop.f32.mrb[87].mxu1  ;;  %v3561_v20 = vpop.f32.mrb[87].mxu0  ;;  %v2906_v27 = vld [vmem:[#allocation3 + $0x90] sm:$0xff] }
 0x1b1   : > { %v3669_v26 = vadd.f32 %v3542_v54, %v3423_v56  ;;  %3170 = vst.msk [vmem:[#allocation3 + $0x20] sm:$0xff] %vm372_vm5, %v3138_v1  ;;  %v3426_v37 = vld [vmem:[#allocation3 + $0x18] sm:$0xff]  ;;  %v3139_v40 = vadd.f32 %v3026_v32, %v2893_v13  ;;  %v2901_v54 = vld [vmem:[#allocation3 + $0x68] sm:$0xff] }
 0x1b2   : > { %3703 = vst.msk [vmem:[#allocation3 + $0x10] sm:$0xff] %vm372_vm5, %v3671_v63  ;;  %v3672_v61 = vadd.f32 %v5520_v28, %v3426_v37  ;;  %3173 = vst.msk [vmem:[#allocation3 + $0x38] sm:$0xff] %vm372_vm5, %v3141_v44  ;;  %v3424_v33 = vld [vmem:[#allocation3 + $0x8] sm:$0xff]  ;;  %v2904_v44 = vld [vmem:[#allocation3 + $0x80] sm:$0xff] }
 0x1b3   : > { %3701 = vst.msk [vmem:[#allocation3] sm:$0xff] %vm372_vm5, %v3669_v26  ;;  %v3670_v29 = vadd.f32 %v3545_v2, %v3424_v33  ;;  %3171 = vst.msk [vmem:[#allocation3 + $0x28] sm:$0xff] %vm372_vm5, %v3139_v40  ;;  %v2907_v37 = vld [vmem:[#allocation3 + $0x98] sm:$0xff] }
 0x1b4   : > { %3704 = vst.msk [vmem:[#allocation3 + $0x18] sm:$0xff] %vm372_vm5, %v3672_v61 }
 0x1b5   : > { %3702 = vst.msk [vmem:[#allocation3 + $0x8] sm:$0xff] %vm372_vm5, %v3670_v29  ;;  %v5493_v17 = vpop.f32.mrb[88].mxu1  ;;  %v5527_v10 = vpop.f32.mrb[88].mxu0 }
 0x1b6   : > { %v3144_v57 = vadd.f32 %v5493_v17, %v2898_v19  ;;  %v3039_v30 = vpop.f32.mrb[89].mxu1  ;;  %v3574_v58 = vpop.f32.mrb[89].mxu0 }
 0x1b7   : > { %v3429_v12 = vld [vmem:[#allocation3 + $0x30] sm:$0xff]  ;;  %v3142_v15 = vadd.f32 %v3039_v30, %v2896_v34  ;;  %v5494_v9 = vpop.f32.mrb[90].mxu1  ;;  %v5528_v45 = vpop.f32.mrb[90].mxu0 }
 0x1b8   : > { %v3675_v53 = vadd.f32 %v5523_v4, %v3429_v12  ;;  %3176 = vst.msk [vmem:[#allocation3 + $0x50] sm:$0xff] %vm372_vm5, %v3144_v57  ;;  %v3427_v59 = vld [vmem:[#allocation3 + $0x20] sm:$0xff]  ;;  %v3145_v36 = vadd.f32 %v5494_v9, %v2899_v46  ;;  %v3042_v21 = vpop.f32.mrb[91].mxu1  ;;  %v3577_v43 = vpop.f32.mrb[91].mxu0  ;;  %v2910_v9 = vld [vmem:[#allocation3 + $0xb0] sm:$0xff] }
 0x1b9   : > { %v3673_v11 = vadd.f32 %v3558_v18, %v3427_v59  ;;  %3174 = vst.msk [vmem:[#allocation3 + $0x40] sm:$0xff] %vm372_vm5, %v3142_v15  ;;  %v3430_v50 = vld [vmem:[#allocation3 + $0x38] sm:$0xff]  ;;  %v3143_v24 = vadd.f32 %v3042_v21, %v2897_v0  ;;  %v2905_v18 = vld [vmem:[#allocation3 + $0x88] sm:$0xff] }
 0x1ba   : > { %3707 = vst.msk [vmem:[#allocation3 + $0x30] sm:$0xff] %vm372_vm5, %v3675_v53  ;;  %v3676_v51 = vadd.f32 %v5524_v23, %v3430_v50  ;;  %3177 = vst.msk [vmem:[#allocation3 + $0x58] sm:$0xff] %vm372_vm5, %v3145_v36  ;;  %v3428_v6 = vld [vmem:[#allocation3 + $0x28] sm:$0xff]  ;;  %v2908_v36 = vld [vmem:[#allocation3 + $0xa0] sm:$0xff] }
 0x1bb   : > { %3705 = vst.msk [vmem:[#allocation3 + $0x20] sm:$0xff] %vm372_vm5, %v3673_v11  ;;  %v3674_v3 = vadd.f32 %v3561_v20, %v3428_v6  ;;  %3175 = vst.msk [vmem:[#allocation3 + $0x48] sm:$0xff] %vm372_vm5, %v3143_v24  ;;  %v2911_v50 = vld [vmem:[#allocation3 + $0xb8] sm:$0xff] }
 0x1bc   : > { %3708 = vst.msk [vmem:[#allocation3 + $0x38] sm:$0xff] %vm372_vm5, %v3676_v51 }
 0x1bd   : > { %3706 = vst.msk [vmem:[#allocation3 + $0x28] sm:$0xff] %vm372_vm5, %v3674_v3  ;;  %v5497_v35 = vpop.f32.mrb[92].mxu1  ;;  %v5531_v47 = vpop.f32.mrb[92].mxu0 }
 0x1be   : > { %v3148_v55 = vadd.f32 %v5497_v35, %v2902_v52  ;;  %v3055_v48 = vpop.f32.mrb[93].mxu1  ;;  %v3590_v60 = vpop.f32.mrb[93].mxu0 }
 0x1bf   : > { %v3433_v8 = vld [vmem:[#allocation3 + $0x50] sm:$0xff]  ;;  %v3146_v22 = vadd.f32 %v3055_v48, %v2900_v41  ;;  %v5498_v25 = vpop.f32.mrb[94].mxu1  ;;  %v5532_v1 = vpop.f32.mrb[94].mxu0 }
 0x1c0   : > { %v3679_v5 = vadd.f32 %v5527_v10, %v3433_v8  ;;  %3180 = vst.msk [vmem:[#allocation3 + $0x70] sm:$0xff] %vm372_vm5, %v3148_v55  ;;  %v3431_v16 = vld [vmem:[#allocation3 + $0x40] sm:$0xff]  ;;  %v3149_v31 = vadd.f32 %v5498_v25, %v2903_v38  ;;  %v3058_v49 = vpop.f32.mrb[95].mxu1  ;;  %v3593_v14 = vpop.f32.mrb[95].mxu0  ;;  %v2914_v25 = vld [vmem:[#allocation3 + $0xd0] sm:$0xff] }
 0x1c1   : > { %v3677_v28 = vadd.f32 %v3574_v58, %v3431_v16  ;;  %3178 = vst.msk [vmem:[#allocation3 + $0x60] sm:$0xff] %vm372_vm5, %v3146_v22  ;;  %v3434_v2 = vld [vmem:[#allocation3 + $0x58] sm:$0xff]  ;;  %v3147_v62 = vadd.f32 %v3058_v49, %v2901_v54  ;;  %v2909_v58 = vld [vmem:[#allocation3 + $0xa8] sm:$0xff] }
 0x1c2   : > { %3711 = vst.msk [vmem:[#allocation3 + $0x50] sm:$0xff] %vm372_vm5, %v3679_v5  ;;  %v3680_v39 = vadd.f32 %v5528_v45, %v3434_v2  ;;  %3181 = vst.msk [vmem:[#allocation3 + $0x78] sm:$0xff] %vm372_vm5, %v3149_v31  ;;  %v3432_v42 = vld [vmem:[#allocation3 + $0x48] sm:$0xff]  ;;  %v2912_v31 = vld [vmem:[#allocation3 + $0xc0] sm:$0xff] }
 0x1c3   : > { %3709 = vst.msk [vmem:[#allocation3 + $0x40] sm:$0xff] %vm372_vm5, %v3677_v28  ;;  %v3678_v7 = vadd.f32 %v3577_v43, %v3432_v42  ;;  %3179 = vst.msk [vmem:[#allocation3 + $0x68] sm:$0xff] %vm372_vm5, %v3147_v62  ;;  %v2915_v2 = vld [vmem:[#allocation3 + $0xd8] sm:$0xff] }
 0x1c4   : > { %3712 = vst.msk [vmem:[#allocation3 + $0x58] sm:$0xff] %vm372_vm5, %v3680_v39 }
 0x1c5   : > { %3710 = vst.msk [vmem:[#allocation3 + $0x48] sm:$0xff] %vm372_vm5, %v3678_v7  ;;  %v5501_v63 = vpop.f32.mrb[96].mxu1  ;;  %v5535_v17 = vpop.f32.mrb[96].mxu0 }
 0x1c6   : > { %v3152_v56 = vadd.f32 %v5501_v63, %v2906_v27  ;;  %v3071_v13 = vpop.f32.mrb[97].mxu1  ;;  %v3606_v30 = vpop.f32.mrb[97].mxu0 }
 0x1c7   : > { %v3437_v32 = vld [vmem:[#allocation3 + $0x70] sm:$0xff]  ;;  %v3150_v26 = vadd.f32 %v3071_v13, %v2904_v44  ;;  %v5502_v40 = vpop.f32.mrb[98].mxu1  ;;  %v5536_v15 = vpop.f32.mrb[98].mxu0 }
 0x1c8   : > { %v3683_v4 = vadd.f32 %v5531_v47, %v3437_v32  ;;  %3184 = vst.msk [vmem:[#allocation3 + $0x90] sm:$0xff] %vm372_vm5, %v3152_v56  ;;  %v3435_v61 = vld [vmem:[#allocation3 + $0x60] sm:$0xff]  ;;  %v3153_v33 = vadd.f32 %v5502_v40, %v2907_v37  ;;  %v3074_v29 = vpop.f32.mrb[99].mxu1  ;;  %v3609_v46 = vpop.f32.mrb[99].mxu0  ;;  %v2918_v40 = vld [vmem:[#allocation3 + $0xf0] sm:$0xff] }
 0x1c9   : > { %v3681_v23 = vadd.f32 %v3590_v60, %v3435_v61  ;;  %3182 = vst.msk [vmem:[#allocation3 + $0x80] sm:$0xff] %vm372_vm5, %v3150_v26  ;;  %v3438_v20 = vld [vmem:[#allocation3 + $0x78] sm:$0xff]  ;;  %v3151_v19 = vadd.f32 %v3074_v29, %v2905_v18  ;;  %v2913_v60 = vld [vmem:[#allocation3 + $0xc8] sm:$0xff] }
 0x1ca   : > { %3715 = vst.msk [vmem:[#allocation3 + $0x70] sm:$0xff] %vm372_vm5, %v3683_v4  ;;  %v3684_v57 = vadd.f32 %v5532_v1, %v3438_v20  ;;  %3185 = vst.msk [vmem:[#allocation3 + $0x98] sm:$0xff] %vm372_vm5, %v3153_v33  ;;  %v3436_v34 = vld [vmem:[#allocation3 + $0x68] sm:$0xff]  ;;  %v2916_v33 = vld [vmem:[#allocation3 + $0xe0] sm:$0xff] }
 0x1cb   : > { %3713 = vst.msk [vmem:[#allocation3 + $0x60] sm:$0xff] %vm372_vm5, %v3681_v23  ;;  %v3682_v12 = vadd.f32 %v3593_v14, %v3436_v34  ;;  %3183 = vst.msk [vmem:[#allocation3 + $0x88] sm:$0xff] %vm372_vm5, %v3151_v19  ;;  %v2919_v20 = vld [vmem:[#allocation3 + $0xf8] sm:$0xff] }
 0x1cc   : > { %3716 = vst.msk [vmem:[#allocation3 + $0x78] sm:$0xff] %vm372_vm5, %v3684_v57 }
 0x1cd   : > { %3714 = vst.msk [vmem:[#allocation3 + $0x68] sm:$0xff] %vm372_vm5, %v3682_v12  ;;  %v5505_v53 = vpop.f32.mrb[100].mxu1  ;;  %v5539_v35 = vpop.f32.mrb[100].mxu0 }
 0x1ce   : > { %v3156_v59 = vadd.f32 %v5505_v53, %v2910_v9  ;;  %v3087_v0 = vpop.f32.mrb[101].mxu1  ;;  %v3622_v48 = vpop.f32.mrb[101].mxu0 }
 0x1cf   : > { %v3441_v21 = vld [vmem:[#allocation3 + $0x90] sm:$0xff]  ;;  %v3154_v11 = vadd.f32 %v3087_v0, %v2908_v36  ;;  %v5506_v24 = vpop.f32.mrb[102].mxu1  ;;  %v5540_v22 = vpop.f32.mrb[102].mxu0 }
 0x1d0   : > { %v3687_v10 = vadd.f32 %v5535_v17, %v3441_v21  ;;  %3188 = vst.msk [vmem:[#allocation3 + $0xb0] sm:$0xff] %vm372_vm5, %v3156_v59  ;;  %v3439_v51 = vld [vmem:[#allocation3 + $0x80] sm:$0xff]  ;;  %v3157_v6 = vadd.f32 %v5506_v24, %v2911_v50  ;;  %v3090_v3 = vpop.f32.mrb[103].mxu1  ;;  %v3625_v38 = vpop.f32.mrb[103].mxu0  ;;  %v3751_v24 = vld [vmem:[#allocation3 + $0x10] sm:$0xff] }
 0x1d1   : > { %v3685_v45 = vadd.f32 %v3606_v30, %v3439_v51  ;;  %3186 = vst.msk [vmem:[#allocation3 + $0xa0] sm:$0xff] %vm372_vm5, %v3154_v11  ;;  %v3442_v43 = vld [vmem:[#allocation3 + $0x98] sm:$0xff]  ;;  %v3155_v52 = vadd.f32 %v3090_v3, %v2909_v58  ;;  %v2917_v30 = vld [vmem:[#allocation3 + $0xe8] sm:$0xff] }
 0x1d2   : > { %3719 = vst.msk [vmem:[#allocation3 + $0x90] sm:$0xff] %vm372_vm5, %v3687_v10  ;;  %v3688_v55 = vadd.f32 %v5536_v15, %v3442_v43  ;;  %3189 = vst.msk [vmem:[#allocation3 + $0xb8] sm:$0xff] %vm372_vm5, %v3157_v6  ;;  %v3440_v41 = vld [vmem:[#allocation3 + $0x88] sm:$0xff]  ;;  %v3749_v6 = vld [vmem:[#allocation3] sm:$0xff] }
 0x1d3   : > { %3717 = vst.msk [vmem:[#allocation3 + $0x80] sm:$0xff] %vm372_vm5, %v3685_v45  ;;  %v3686_v8 = vadd.f32 %v3609_v46, %v3440_v41  ;;  %3187 = vst.msk [vmem:[#allocation3 + $0xa8] sm:$0xff] %vm372_vm5, %v3155_v52  ;;  %v3752_v43 = vld [vmem:[#allocation3 + $0x18] sm:$0xff] }
 0x1d4   : > { %3720 = vst.msk [vmem:[#allocation3 + $0x98] sm:$0xff] %vm372_vm5, %v3688_v55 }
 0x1d5   : > { %3718 = vst.msk [vmem:[#allocation3 + $0x88] sm:$0xff] %vm372_vm5, %v3686_v8  ;;  %v5509_v5 = vpop.f32.mrb[104].mxu1  ;;  %v5543_v63 = vpop.f32.mrb[104].mxu0 }
 0x1d6   : > { %v3160_v16 = vadd.f32 %v5509_v5, %v2914_v25  ;;  %v3103_v54 = vpop.f32.mrb[105].mxu1  ;;  %v3638_v13 = vpop.f32.mrb[105].mxu0 }
 0x1d7   : > { %v3445_v49 = vld [vmem:[#allocation3 + $0xb0] sm:$0xff]  ;;  %v3158_v28 = vadd.f32 %v3103_v54, %v2912_v31  ;;  %v5510_v62 = vpop.f32.mrb[106].mxu1  ;;  %v5544_v26 = vpop.f32.mrb[106].mxu0 }
 0x1d8   : > { %v3691_v47 = vadd.f32 %v5539_v35, %v3445_v49  ;;  %3192 = vst.msk [vmem:[#allocation3 + $0xd0] sm:$0xff] %vm372_vm5, %v3160_v16  ;;  %v3443_v39 = vld [vmem:[#allocation3 + $0xa0] sm:$0xff]  ;;  %v3161_v42 = vadd.f32 %v5510_v62, %v2915_v2  ;;  %v3106_v7 = vpop.f32.mrb[107].mxu1  ;;  %v3641_v37 = vpop.f32.mrb[107].mxu0  ;;  %v3755_v62 = vld [vmem:[#allocation3 + $0x30] sm:$0xff] }
 0x1d9   : > { %v3689_v1 = vadd.f32 %v3622_v48, %v3443_v39  ;;  %3190 = vst.msk [vmem:[#allocation3 + $0xc0] sm:$0xff] %vm372_vm5, %v3158_v28  ;;  %v3446_v14 = vld [vmem:[#allocation3 + $0xb8] sm:$0xff]  ;;  %v3159_v27 = vadd.f32 %v3106_v7, %v2913_v60  ;;  %v3750_v48 = vld [vmem:[#allocation3 + $0x8] sm:$0xff] }
 0x1da   : > { %3723 = vst.msk [vmem:[#allocation3 + $0xb0] sm:$0xff] %vm372_vm5, %v3691_v47  ;;  %v3692_v56 = vadd.f32 %v5540_v22, %v3446_v14  ;;  %3193 = vst.msk [vmem:[#allocation3 + $0xd8] sm:$0xff] %vm372_vm5, %v3161_v42  ;;  %v3444_v44 = vld [vmem:[#allocation3 + $0xa8] sm:$0xff]  ;;  %v3753_v42 = vld [vmem:[#allocation3 + $0x20] sm:$0xff] }
 0x1db   : > { %3721 = vst.msk [vmem:[#allocation3 + $0xa0] sm:$0xff] %vm372_vm5, %v3689_v1  ;;  %v3690_v32 = vadd.f32 %v3625_v38, %v3444_v44  ;;  %3191 = vst.msk [vmem:[#allocation3 + $0xc8] sm:$0xff] %vm372_vm5, %v3159_v27  ;;  %v3756_v14 = vld [vmem:[#allocation3 + $0x38] sm:$0xff] }
 0x1dc   : > { %3724 = vst.msk [vmem:[#allocation3 + $0xb8] sm:$0xff] %vm372_vm5, %v3692_v56 }
 0x1dd   : > { %3722 = vst.msk [vmem:[#allocation3 + $0xa8] sm:$0xff] %vm372_vm5, %v3690_v32  ;;  %v5513_v4 = vpop.f32.mrb[108].mxu1  ;;  %v5547_v53 = vpop.f32.mrb[108].mxu0 }
 0x1de   : > { %v3164_v61 = vadd.f32 %v5513_v4, %v2918_v40  ;;  %v3119_v18 = vpop.f32.mrb[109].mxu1  ;;  %v3654_v0 = vpop.f32.mrb[109].mxu0 }
 0x1df   : > { %v3449_v29 = vld [vmem:[#allocation3 + $0xd0] sm:$0xff]  ;;  %v3162_v23 = vadd.f32 %v3119_v18, %v2916_v33  ;;  %v5514_v19 = vpop.f32.mrb[110].mxu1  ;;  %v5548_v11 = vpop.f32.mrb[110].mxu0 }
 0x1e0   : > { %v3695_v17 = vadd.f32 %v5543_v63, %v3449_v29  ;;  %3196 = vst.msk [vmem:[#allocation3 + $0xf0] sm:$0xff] %vm372_vm5, %v3164_v61  ;;  %v3447_v57 = vld [vmem:[#allocation3 + $0xc0] sm:$0xff]  ;;  %v3165_v34 = vadd.f32 %v5514_v19, %v2919_v20  ;;  %v3122_v12 = vpop.f32.mrb[111].mxu1  ;;  %v3657_v50 = vpop.f32.mrb[111].mxu0  ;;  %v3759_v19 = vld [vmem:[#allocation3 + $0x50] sm:$0xff] }
 0x1e1   : > { %v3693_v15 = vadd.f32 %v3638_v13, %v3447_v57  ;;  %3194 = vst.msk [vmem:[#allocation3 + $0xe0] sm:$0xff] %vm372_vm5, %v3162_v23  ;;  %v3450_v46 = vld [vmem:[#allocation3 + $0xd8] sm:$0xff]  ;;  %v3163_v9 = vadd.f32 %v3122_v12, %v2917_v30  ;;  %v3754_v13 = vld [vmem:[#allocation3 + $0x28] sm:$0xff]  ;;  %v6831_v12 = vld [vmem:[%s6993_s2] ss:$0 sm:$0xff] }
 0x1e2   : > { %3727 = vst.msk [vmem:[#allocation3 + $0xd0] sm:$0xff] %vm372_vm5, %v3695_v17  ;;  %v3696_v59 = vadd.f32 %v5544_v26, %v3450_v46  ;;  %3197 = vst.msk [vmem:[#allocation3 + $0xf8] sm:$0xff] %vm372_vm5, %v3165_v34  ;;  %v3448_v36 = vld [vmem:[#allocation3 + $0xc8] sm:$0xff]  ;;  %v3757_v34 = vld [vmem:[#allocation3 + $0x40] sm:$0xff] }
 0x1e3   : > { %3725 = vst.msk [vmem:[#allocation3 + $0xc0] sm:$0xff] %vm372_vm5, %v3693_v15  ;;  %v3694_v21 = vadd.f32 %v3641_v37, %v3448_v36  ;;  %3195 = vst.msk [vmem:[#allocation3 + $0xe8] sm:$0xff] %vm372_vm5, %v3163_v9  ;;  %v3760_v9 = vld [vmem:[#allocation3 + $0x58] sm:$0xff] }
 0x1e4   : > { %3728 = vst.msk [vmem:[#allocation3 + $0xd8] sm:$0xff] %vm372_vm5, %v3696_v59 }
 0x1e5   : > { %3726 = vst.msk [vmem:[#allocation3 + $0xc8] sm:$0xff] %vm372_vm5, %v3694_v21  ;;  %v5553_v10 = vpop.f32.mrb[112].mxu1  ;;  %v5587_v5 = vpop.f32.mrb[112].mxu0  ;;  %v3758_v21 = vld [vmem:[#allocation3 + $0x48] sm:$0xff] }
 0x1e6   : > { %v3997_v51 = vadd.f32 %v5553_v10, %v3751_v24  ;;  %v3868_v58 = vpop.f32.mrb[113].mxu1  ;;  %v4402_v54 = vpop.f32.mrb[113].mxu0 }
 0x1e7   : > { %v3453_v3 = vld [vmem:[#allocation3 + $0xf0] sm:$0xff]  ;;  %v3995_v45 = vadd.f32 %v3868_v58, %v3749_v6  ;;  %v5554_v52 = vpop.f32.mrb[114].mxu1  ;;  %v5588_v28 = vpop.f32.mrb[114].mxu0 }
 0x1e8   : > { %v3699_v35 = vadd.f32 %v5547_v53, %v3453_v3  ;;  %v3451_v55 = vld [vmem:[#allocation3 + $0xe0] sm:$0xff]  ;;  %4029 = vst.msk [vmem:[#allocation3 + $0x10] sm:$0xff] %vm372_vm5, %v3997_v51  ;;  %v3998_v41 = vadd.f32 %v5554_v52, %v3752_v43  ;;  %v3871_v8 = vpop.f32.mrb[115].mxu1  ;;  %v4405_v2 = vpop.f32.mrb[115].mxu0 }
 0x1e9   : > { %v3697_v22 = vadd.f32 %v3654_v0, %v3451_v55  ;;  %v3454_v38 = vld [vmem:[#allocation3 + $0xf8] sm:$0xff]  ;;  %4027 = vst.msk [vmem:[#allocation3] sm:$0xff] %vm372_vm5, %v3995_v45  ;;  %v3996_v25 = vadd.f32 %v3871_v8, %v3750_v48 }
 0x1ea   : > { %3731 = vst.msk [vmem:[#allocation3 + $0xf0] sm:$0xff] %vm372_vm5, %v3699_v35  ;;  %v3700_v16 = vadd.f32 %v5548_v11, %v3454_v38  ;;  %v3452_v31 = vld [vmem:[#allocation3 + $0xe8] sm:$0xff]  ;;  %4030 = vst.msk [vmem:[#allocation3 + $0x18] sm:$0xff] %vm372_vm5, %v3998_v41 }
 0x1eb   : > { %3729 = vst.msk [vmem:[#allocation3 + $0xe0] sm:$0xff] %vm372_vm5, %v3697_v22  ;;  %v3698_v49 = vadd.f32 %v3657_v50, %v3452_v31  ;;  %4028 = vst.msk [vmem:[#allocation3 + $0x8] sm:$0xff] %vm372_vm5, %v3996_v25  ;;  %v3763_v31 = vld [vmem:[#allocation3 + $0x70] sm:$0xff] }
 0x1ec   : > { %3732 = vst.msk [vmem:[#allocation3 + $0xf8] sm:$0xff] %vm372_vm5, %v3700_v16 }
 0x1ed   : > { %3730 = vst.msk [vmem:[#allocation3 + $0xe8] sm:$0xff] %vm372_vm5, %v3698_v49  ;;  %v5557_v47 = vpop.f32.mrb[116].mxu1  ;;  %v5591_v4 = vpop.f32.mrb[116].mxu0 }
 0x1ee   : > { %v4001_v39 = vadd.f32 %v5557_v47, %v3755_v62  ;;  %v3884_v60 = vpop.f32.mrb[117].mxu1  ;;  %v4418_v18 = vpop.f32.mrb[117].mxu0  ;;  %v3761_v62 = vld [vmem:[#allocation3 + $0x60] sm:$0xff] }
 0x1ef   : > { %v4285_v7 = vld [vmem:[#allocation3 + $0x10] sm:$0xff]  ;;  %v3999_v1 = vadd.f32 %v3884_v60, %v3753_v42  ;;  %v5558_v27 = vpop.f32.mrb[118].mxu1  ;;  %v5592_v23 = vpop.f32.mrb[118].mxu0 }
 0x1f0   : > { %v4531_v63 = vadd.f32 %v5587_v5, %v4285_v7  ;;  %4033 = vst.msk [vmem:[#allocation3 + $0x30] sm:$0xff] %vm372_vm5, %v4001_v39  ;;  %v4283_v56 = vld [vmem:[#allocation3] sm:$0xff]  ;;  %v4002_v44 = vadd.f32 %v5558_v27, %v3756_v14  ;;  %v3887_v32 = vpop.f32.mrb[119].mxu1  ;;  %v4421_v20 = vpop.f32.mrb[119].mxu0 }
 0x1f1   : > { %v4529_v26 = vadd.f32 %v4402_v54, %v4283_v56  ;;  %4031 = vst.msk [vmem:[#allocation3 + $0x20] sm:$0xff] %vm372_vm5, %v3999_v1  ;;  %v4286_v37 = vld [vmem:[#allocation3 + $0x18] sm:$0xff]  ;;  %v4000_v40 = vadd.f32 %v3887_v32, %v3754_v13  ;;  %v3762_v13 = vld [vmem:[#allocation3 + $0x68] sm:$0xff] }
 0x1f2   : > { %4563 = vst.msk [vmem:[#allocation3 + $0x10] sm:$0xff] %vm372_vm5, %v4531_v63  ;;  %v4532_v61 = vadd.f32 %v5588_v28, %v4286_v37  ;;  %4034 = vst.msk [vmem:[#allocation3 + $0x38] sm:$0xff] %vm372_vm5, %v4002_v44  ;;  %v4284_v33 = vld [vmem:[#allocation3 + $0x8] sm:$0xff]  ;;  %v3764_v1 = vld [vmem:[#allocation3 + $0x78] sm:$0xff] }
 0x1f3   : > { %4561 = vst.msk [vmem:[#allocation3] sm:$0xff] %vm372_vm5, %v4529_v26  ;;  %v4530_v29 = vadd.f32 %v4405_v2, %v4284_v33  ;;  %4032 = vst.msk [vmem:[#allocation3 + $0x28] sm:$0xff] %vm372_vm5, %v4000_v40 }
 0x1f4   : > { %4564 = vst.msk [vmem:[#allocation3 + $0x18] sm:$0xff] %vm372_vm5, %v4532_v61 }
 0x1f5   : > { %4562 = vst.msk [vmem:[#allocation3 + $0x8] sm:$0xff] %vm372_vm5, %v4530_v29  ;;  %v5561_v17 = vpop.f32.mrb[120].mxu1  ;;  %v5595_v6 = vpop.f32.mrb[120].mxu0 }
 0x1f6   : > { %v4005_v57 = vadd.f32 %v5561_v17, %v3759_v19  ;;  %v3900_v30 = vpop.f32.mrb[121].mxu1  ;;  %v4434_v52 = vpop.f32.mrb[121].mxu0 }
 0x1f7   : > { %v4289_v15 = vld [vmem:[#allocation3 + $0x30] sm:$0xff]  ;;  %v4003_v46 = vadd.f32 %v3900_v30, %v3757_v34  ;;  %v5562_v53 = vpop.f32.mrb[122].mxu1  ;;  %v5596_v48 = vpop.f32.mrb[122].mxu0 }
 0x1f8   : > { %v4535_v59 = vadd.f32 %v5591_v4, %v4289_v15  ;;  %4037 = vst.msk [vmem:[#allocation3 + $0x50] sm:$0xff] %vm372_vm5, %v4005_v57  ;;  %v4287_v36 = vld [vmem:[#allocation3 + $0x20] sm:$0xff]  ;;  %v4006_v0 = vadd.f32 %v5562_v53, %v3760_v9  ;;  %v3903_v11 = vpop.f32.mrb[123].mxu1  ;;  %v4437_v25 = vpop.f32.mrb[123].mxu0 }
 0x1f9   : > { %v4595_v50 = vld [vmem:[#allocation3 + $0x10] sm:$0xff]  ;;  %v4533_v24 = vadd.f32 %v4418_v18, %v4287_v36  ;;  %4035 = vst.msk [vmem:[#allocation3 + $0x40] sm:$0xff] %vm372_vm5, %v4003_v46  ;;  %v4290_v10 = vld [vmem:[#allocation3 + $0x38] sm:$0xff]  ;;  %v4004_v51 = vadd.f32 %v3903_v11, %v3758_v21 }
 0x1fa   : > { %v4634_v58 = vadd.f32 %v6831_v12, %v4595_v50  ;;  %v4593_v3 = vld [vmem:[#allocation3] sm:$0xff]  ;;  %4567 = vst.msk [vmem:[#allocation3 + $0x30] sm:$0xff] %vm372_vm5, %v4535_v59  ;;  %v4536_v45 = vadd.f32 %v5592_v23, %v4290_v10  ;;  %4038 = vst.msk [vmem:[#allocation3 + $0x58] sm:$0xff] %vm372_vm5, %v4006_v0  ;;  %v4288_v43 = vld [vmem:[#allocation3 + $0x28] sm:$0xff] }
 0x1fb   : > { %v4632_v35 = vadd.f32 %v6831_v12, %v4593_v3  ;;  %v4596_v55 = vld [vmem:[#allocation3 + $0x18] sm:$0xff]  ;;  %4565 = vst.msk [vmem:[#allocation3 + $0x20] sm:$0xff] %vm372_vm5, %v4533_v24  ;;  %v4534_v41 = vadd.f32 %v4421_v20, %v4288_v43  ;;  %4036 = vst.msk [vmem:[#allocation3 + $0x48] sm:$0xff] %vm372_vm5, %v4004_v51  ;;  %v3767_v0 = vld [vmem:[#allocation3 + $0x90] sm:$0xff] }
 0x1fc   : > { %v4666_v8 = vmax.f32 %v4634_v58, 0.0  ;;  %v4635_v22 = vadd.f32 %v6831_v12, %v4596_v55  ;;  %v4594_v38 = vld [vmem:[#allocation3 + $0x8] sm:$0xff]  ;;  %4568 = vst.msk [vmem:[#allocation3 + $0x38] sm:$0xff] %vm372_vm5, %v4536_v45  ;;  %v3765_v10 = vld [vmem:[#allocation3 + $0x80] sm:$0xff]  ;;  %v3768_v43 = vld [vmem:[#allocation3 + $0x98] sm:$0xff] }
 0x1fd   : > { %v4664_v5 = vmax.f32 %v4632_v35, 0.0  ;;  %v4633_v16 = vadd.f32 %v6831_v12, %v4594_v38  ;;  %4566 = vst.msk [vmem:[#allocation3 + $0x28] sm:$0xff] %vm372_vm5, %v4534_v41  ;;  %v5565_v54 = vpop.f32.mrb[124].mxu1  ;;  %v5599_v33 = vpop.f32.mrb[124].mxu0 }
 0x1fe   : > { %v5128_v49 = vpack.c.bf16 %v4666_v8, %v4666_v8  ;;  %v4667_v28 = vmax.f32 %v4635_v22, 0.0  ;;  %v4009_v2 = vadd.f32 %v5565_v54, %v3763_v31  ;;  %v3916_v47 = vpop.f32.mrb[125].mxu1  ;;  %v4450_v19 = vpop.f32.mrb[125].mxu0  ;;  %v3766_v8 = vld [vmem:[#allocation3 + $0x88] sm:$0xff] }
 0x1ff   : > { %v5126_v39 = vpack.c.bf16 %v4664_v5, %v4664_v5  ;;  %v4665_v42 = vmax.f32 %v4633_v16, 0.0  ;;  %v4293_v60 = vld [vmem:[#allocation3 + $0x50] sm:$0xff]  ;;  %v4007_v7 = vadd.f32 %v3916_v47, %v3761_v62  ;;  %v5566_v14 = vpop.f32.mrb[126].mxu1  ;;  %v5600_v30 = vpop.f32.mrb[126].mxu0 }
 0x200   : > { %4827 = vst.msk [vmem:[%s6848_s15 + $0x8] sm:$0xf] %vm4824_vm6, %v5128_v49  ;;  %v5129_v27 = vpack.c.bf16 %v4667_v28, %v4667_v28  ;;  %v4539_v63 = vadd.f32 %v5595_v6, %v4293_v60  ;;  %v4291_v56 = vld [vmem:[#allocation3 + $0x40] sm:$0xff]  ;;  %v4010_v44 = vadd.f32 %v5566_v14, %v3764_v1  ;;  %v3919_v32 = vpop.f32.mrb[127].mxu1  ;;  %v4453_v53 = vpop.f32.mrb[127].mxu0 }
 0x201   : > { %4041 = vst.msk [vmem:[#allocation3 + $0x70] sm:$0xff] %vm372_vm5, %v4009_v2  ;;  %v5127_v26 = vpack.c.bf16 %v4665_v42, %v4665_v42  ;;  %v4599_v37 = vld [vmem:[#allocation3 + $0x30] sm:$0xff]  ;;  %v4537_v40 = vadd.f32 %v4434_v52, %v4291_v56  ;;  %4039 = vst.msk [vmem:[#allocation3 + $0x60] sm:$0xff] %vm372_vm5, %v4007_v7  ;;  %v4294_v4 = vld [vmem:[#allocation3 + $0x58] sm:$0xff]  ;;  %v4008_v61 = vadd.f32 %v3919_v32, %v3762_v13 }
 0x202   : > { %4825 = vst.msk [vmem:[%s6848_s15] sm:$0xf] %vm4824_vm6, %v5126_v39  ;;  %4828 = vst.msk [vmem:[%s6848_s15 + $0xc] sm:$0xf] %vm4824_vm6, %v5129_v27  ;;  %v4638_v18 = vadd.f32 %v6831_v12, %v4599_v37  ;;  %v4597_v29 = vld [vmem:[#allocation3 + $0x20] sm:$0xff]  ;;  %v4540_v23 = vadd.f32 %v5596_v48, %v4294_v4  ;;  %v4292_v20 = vld [vmem:[#allocation3 + $0x48] sm:$0xff] }
 0x203   : > { %4571 = vst.msk [vmem:[#allocation3 + $0x50] sm:$0xff] %vm372_vm5, %v4539_v63  ;;  %4042 = vst.msk [vmem:[#allocation3 + $0x78] sm:$0xff] %vm372_vm5, %v4010_v44  ;;  %v4636_v17 = vadd.f32 %v6831_v12, %v4597_v29  ;;  %v4600_v57 = vld [vmem:[#allocation3 + $0x38] sm:$0xff]  ;;  %v4538_v34 = vadd.f32 %v4437_v25, %v4292_v20  ;;  %v3771_v13 = vld [vmem:[#allocation3 + $0xb0] sm:$0xff] }
 0x204   : > { %4826 = vst.msk [vmem:[%s6848_s15 + $0x4] sm:$0xf] %vm4824_vm6, %v5127_v26  ;;  %v4670_v15 = vmax.f32 %v4638_v18, 0.0  ;;  %v4639_v46 = vadd.f32 %v6831_v12, %v4600_v57  ;;  %v4598_v9 = vld [vmem:[#allocation3 + $0x28] sm:$0xff]  ;;  %v3769_v4 = vld [vmem:[#allocation3 + $0xa0] sm:$0xff]  ;;  %v3772_v20 = vld [vmem:[#allocation3 + $0xb8] sm:$0xff] }
 0x205   : > { %4569 = vst.msk [vmem:[#allocation3 + $0x40] sm:$0xff] %vm372_vm5, %v4537_v40  ;;  %4040 = vst.msk [vmem:[#allocation3 + $0x68] sm:$0xff] %vm372_vm5, %v4008_v61  ;;  %v4668_v59 = vmax.f32 %v4636_v17, 0.0  ;;  %v4637_v36 = vadd.f32 %v6831_v12, %v4598_v9  ;;  %v5569_v21 = vpop.f32.mrb[128].mxu1  ;;  %v5603_v54 = vpop.f32.mrb[128].mxu0 }
 0x206   : > { %4572 = vst.msk [vmem:[#allocation3 + $0x58] sm:$0xff] %vm372_vm5, %v4540_v23  ;;  %4570 = vst.msk [vmem:[#allocation3 + $0x48] sm:$0xff] %vm372_vm5, %v4538_v34  ;;  %v5132_v11 = vpack.c.bf16 %v4670_v15, %v4670_v15  ;;  %v4671_v50 = vmax.f32 %v4639_v46, 0.0  ;;  %v4013_v24 = vadd.f32 %v5569_v21, %v3767_v0  ;;  %v3932_v51 = vpop.f32.mrb[129].mxu1  ;;  %v4466_v47 = vpop.f32.mrb[129].mxu0  ;;  %v3770_v15 = vld [vmem:[#allocation3 + $0xa8] sm:$0xff] }
 0x207   : > { %v5130_v6 = vpack.c.bf16 %v4668_v59, %v4668_v59  ;;  %v4669_v58 = vmax.f32 %v4637_v36, 0.0  ;;  %v4011_v45 = vadd.f32 %v3932_v51, %v3765_v10  ;;  %v5570_v52 = vpop.f32.mrb[130].mxu1  ;;  %v5604_v7 = vpop.f32.mrb[130].mxu0 }
 0x208   : > { %v4297_v3 = vld [vmem:[#allocation3 + $0x70] sm:$0xff]  ;;  %4831 = vst.msk [vmem:[%s6848_s15 + $0x18] sm:$0xf] %vm4824_vm6, %v5132_v11  ;;  %v5133_v35 = vpack.c.bf16 %v4671_v50, %v4671_v50  ;;  %v4295_v41 = vld [vmem:[#allocation3 + $0x60] sm:$0xff]  ;;  %v4014_v48 = vadd.f32 %v5570_v52, %v3768_v43  ;;  %v3935_v22 = vpop.f32.mrb[131].mxu1  ;;  %v4469_v63 = vpop.f32.mrb[131].mxu0 }
 0x209   : > { %v4543_v55 = vadd.f32 %v5599_v33, %v4297_v3  ;;  %4045 = vst.msk [vmem:[#allocation3 + $0x90] sm:$0xff] %vm372_vm5, %v4013_v24  ;;  %v5131_v38 = vpack.c.bf16 %v4669_v58, %v4669_v58  ;;  %v4541_v5 = vadd.f32 %v4450_v19, %v4295_v41  ;;  %4043 = vst.msk [vmem:[#allocation3 + $0x80] sm:$0xff] %vm372_vm5, %v4011_v45 }
 0x20a   : > { %4829 = vst.msk [vmem:[%s6848_s15 + $0x10] sm:$0xf] %vm4824_vm6, %v5130_v6  ;;  %v4603_v25 = vld [vmem:[#allocation3 + $0x50] sm:$0xff]  ;;  %v4298_v16 = vld [vmem:[#allocation3 + $0x78] sm:$0xff]  ;;  %v4012_v31 = vadd.f32 %v3935_v22, %v3766_v8  ;;  %4832 = vst.msk [vmem:[%s6848_s15 + $0x1c] sm:$0xf] %vm4824_vm6, %v5133_v35 }
 0x20b   : > { %v4642_v49 = vadd.f32 %v6831_v12, %v4603_v25  ;;  %4575 = vst.msk [vmem:[#allocation3 + $0x70] sm:$0xff] %vm372_vm5, %v4543_v55  ;;  %v4544_v2 = vadd.f32 %v5600_v30, %v4298_v16  ;;  %4046 = vst.msk [vmem:[#allocation3 + $0x98] sm:$0xff] %vm372_vm5, %v4014_v48  ;;  %v3775_v8 = vld [vmem:[#allocation3 + $0xd0] sm:$0xff]  ;;  %v3773_v16 = vld [vmem:[#allocation3 + $0xc0] sm:$0xff] }
 0x20c   : > { %v4601_v28 = vld [vmem:[#allocation3 + $0x40] sm:$0xff]  ;;  %v4296_v62 = vld [vmem:[#allocation3 + $0x68] sm:$0xff]  ;;  %4830 = vst.msk [vmem:[%s6848_s15 + $0x14] sm:$0xf] %vm4824_vm6, %v5131_v38 }
 0x20d   : > { %v4640_v39 = vadd.f32 %v6831_v12, %v4601_v28  ;;  %v4604_v42 = vld [vmem:[#allocation3 + $0x58] sm:$0xff]  ;;  %4573 = vst.msk [vmem:[#allocation3 + $0x60] sm:$0xff] %vm372_vm5, %v4541_v5  ;;  %v4542_v60 = vadd.f32 %v4453_v53, %v4296_v62  ;;  %4044 = vst.msk [vmem:[#allocation3 + $0x88] sm:$0xff] %vm372_vm5, %v4012_v31  ;;  %v4674_v1 = vmax.f32 %v4642_v49, 0.0  ;;  %v4602_v27 = vld [vmem:[#allocation3 + $0x48] sm:$0xff]  ;;  %v5573_v32 = vpop.f32.mrb[132].mxu1 }
 0x20e   : > { %v4643_v14 = vadd.f32 %v6831_v12, %v4604_v42  ;;  %4576 = vst.msk [vmem:[#allocation3 + $0x78] sm:$0xff] %vm372_vm5, %v4544_v2  ;;  %v4641_v44 = vadd.f32 %v6831_v12, %v4602_v27  ;;  %v4017_v40 = vadd.f32 %v5573_v32, %v3771_v13  ;;  %v3948_v61 = vpop.f32.mrb[133].mxu1  ;;  %v5607_v21 = vpop.f32.mrb[132].mxu0  ;;  %v3776_v62 = vld [vmem:[#allocation3 + $0xd8] sm:$0xff] }
 0x20f   : > { %v4672_v56 = vmax.f32 %v4640_v39, 0.0  ;;  %4574 = vst.msk [vmem:[#allocation3 + $0x68] sm:$0xff] %vm372_vm5, %v4542_v60  ;;  %v5136_v26 = vpack.c.bf16 %v4674_v1, %v4674_v1  ;;  %v4015_v23 = vadd.f32 %v3948_v61, %v3769_v4  ;;  %v5574_v19 = vpop.f32.mrb[134].mxu1  ;;  %v4482_v51 = vpop.f32.mrb[133].mxu0  ;;  %v3774_v1 = vld [vmem:[#allocation3 + $0xc8] sm:$0xff] }
 0x210   : > { %v4675_v37 = vmax.f32 %v4643_v14, 0.0  ;;  %v4673_v18 = vmax.f32 %v4641_v44, 0.0  ;;  %v4301_v29 = vld [vmem:[#allocation3 + $0x90] sm:$0xff]  ;;  %4049 = vst.msk [vmem:[#allocation3 + $0xb0] sm:$0xff] %vm372_vm5, %v4017_v40  ;;  %v4299_v34 = vld [vmem:[#allocation3 + $0x80] sm:$0xff]  ;;  %v4018_v30 = vadd.f32 %v5574_v19, %v3772_v20  ;;  %v3951_v46 = vpop.f32.mrb[135].mxu1 }
 0x211   : > { %v5134_v33 = vpack.c.bf16 %v4672_v56, %v4672_v56  ;;  %4835 = vst.msk [vmem:[%s6848_s15 + $0x28] sm:$0xf] %vm4824_vm6, %v5136_v26  ;;  %v4547_v57 = vadd.f32 %v5603_v54, %v4301_v29  ;;  %v4545_v59 = vadd.f32 %v4466_v47, %v4299_v34  ;;  %v4016_v0 = vadd.f32 %v3951_v46, %v3770_v15  ;;  %v5608_v45 = vpop.f32.mrb[134].mxu0  ;;  %v3779_v15 = vld [vmem:[#allocation3 + $0xf0] sm:$0xff] }
 0x212   : > { %v5137_v17 = vpack.c.bf16 %v4675_v37, %v4675_v37  ;;  %v5135_v9 = vpack.c.bf16 %v4673_v18, %v4673_v18  ;;  %v4607_v53 = vld [vmem:[#allocation3 + $0x70] sm:$0xff]  ;;  %4047 = vst.msk [vmem:[#allocation3 + $0xa0] sm:$0xff] %vm372_vm5, %v4015_v23  ;;  %v4302_v36 = vld [vmem:[#allocation3 + $0x98] sm:$0xff]  ;;  %4050 = vst.msk [vmem:[#allocation3 + $0xb8] sm:$0xff] %vm372_vm5, %v4018_v30  ;;  %v4485_v55 = vpop.f32.mrb[135].mxu0 }
 0x213   : > { %4833 = vst.msk [vmem:[%s6848_s15 + $0x20] sm:$0xf] %vm4824_vm6, %v5134_v33  ;;  %v4646_v11 = vadd.f32 %v6831_v12, %v4607_v53  ;;  %v4548_v24 = vadd.f32 %v5604_v7, %v4302_v36  ;;  %v3777_v36 = vld [vmem:[#allocation3 + $0xe0] sm:$0xff] }
 0x214   : > { %4836 = vst.msk [vmem:[%s6848_s15 + $0x2c] sm:$0xf] %vm4824_vm6, %v5137_v17  ;;  %v4605_v50 = vld [vmem:[#allocation3 + $0x60] sm:$0xff]  ;;  %v4300_v10 = vld [vmem:[#allocation3 + $0x88] sm:$0xff]  ;;  %4834 = vst.msk [vmem:[%s6848_s15 + $0x24] sm:$0xf] %vm4824_vm6, %v5135_v9 }
 0x215   : > { %4579 = vst.msk [vmem:[#allocation3 + $0x90] sm:$0xff] %vm372_vm5, %v4547_v57  ;;  %v4644_v6 = vadd.f32 %v6831_v12, %v4605_v50  ;;  %v4608_v58 = vld [vmem:[#allocation3 + $0x78] sm:$0xff]  ;;  %4577 = vst.msk [vmem:[#allocation3 + $0x80] sm:$0xff] %vm372_vm5, %v4545_v59  ;;  %v4546_v3 = vadd.f32 %v4469_v63, %v4300_v10  ;;  %v4678_v43 = vmax.f32 %v4646_v11, 0.0  ;;  %v5577_v22 = vpop.f32.mrb[136].mxu1  ;;  %v5611_v32 = vpop.f32.mrb[136].mxu0 }
 0x216   : > { %4048 = vst.msk [vmem:[#allocation3 + $0xa8] sm:$0xff] %vm372_vm5, %v4016_v0  ;;  %v4647_v52 = vadd.f32 %v6831_v12, %v4608_v58  ;;  %v4606_v35 = vld [vmem:[#allocation3 + $0x68] sm:$0xff]  ;;  %4580 = vst.msk [vmem:[#allocation3 + $0x98] sm:$0xff] %vm372_vm5, %v4548_v24  ;;  %v4021_v5 = vadd.f32 %v5577_v22, %v3775_v8  ;;  %v3964_v31 = vpop.f32.mrb[137].mxu1  ;;  %v4498_v61 = vpop.f32.mrb[137].mxu0  ;;  %v3780_v10 = vld [vmem:[#allocation3 + $0xf8] sm:$0xff] }
 0x217   : > { %v4676_v41 = vmax.f32 %v4644_v6, 0.0  ;;  %v4645_v48 = vadd.f32 %v6831_v12, %v4606_v35  ;;  %4578 = vst.msk [vmem:[#allocation3 + $0x88] sm:$0xff] %vm372_vm5, %v4546_v3  ;;  %v5140_v38 = vpack.c.bf16 %v4678_v43, %v4678_v43  ;;  %v4305_v28 = vld [vmem:[#allocation3 + $0xb0] sm:$0xff]  ;;  %v4019_v2 = vadd.f32 %v3964_v31, %v3773_v16  ;;  %v5578_v47 = vpop.f32.mrb[138].mxu1  ;;  %v5612_v23 = vpop.f32.mrb[138].mxu0  ;;  %v3778_v43 = vld [vmem:[#allocation3 + $0xe8] sm:$0xff] }
 0x218   : > { %v4679_v25 = vmax.f32 %v4647_v52, 0.0  ;;  %v4551_v42 = vadd.f32 %v5607_v21, %v4305_v28  ;;  %4053 = vst.msk [vmem:[#allocation3 + $0xd0] sm:$0xff] %vm372_vm5, %v4021_v5  ;;  %v4022_v7 = vadd.f32 %v5578_v47, %v3776_v62  ;;  %v3967_v14 = vpop.f32.mrb[139].mxu1  ;;  %v4501_v57 = vpop.f32.mrb[139].mxu0 }
 0x219   : > { %v5138_v54 = vpack.c.bf16 %v4676_v41, %v4676_v41  ;;  %v4677_v49 = vmax.f32 %v4645_v48, 0.0  ;;  %4839 = vst.msk [vmem:[%s6848_s15 + $0x38] sm:$0xf] %vm4824_vm6, %v5140_v38  ;;  %v4303_v60 = vld [vmem:[#allocation3 + $0xa0] sm:$0xff]  ;;  %v4306_v44 = vld [vmem:[#allocation3 + $0xb8] sm:$0xff]  ;;  %v4020_v13 = vadd.f32 %v3967_v14, %v3774_v1 }
 0x21a   : > { %v5141_v39 = vpack.c.bf16 %v4679_v25, %v4679_v25  ;;  %v4549_v56 = vadd.f32 %v4482_v51, %v4303_v60  ;;  %4051 = vst.msk [vmem:[#allocation3 + $0xc0] sm:$0xff] %vm372_vm5, %v4019_v2  ;;  %4583 = vst.msk [vmem:[#allocation3 + $0xb0] sm:$0xff] %vm372_vm5, %v4551_v42  ;;  %v4552_v40 = vadd.f32 %v5608_v45, %v4306_v44 }
 0x21b   : > { %4837 = vst.msk [vmem:[%s6848_s15 + $0x30] sm:$0xf] %vm4824_vm6, %v5138_v54  ;;  %v5139_v27 = vpack.c.bf16 %v4677_v49, %v4677_v49 }
 0x21c   : > { %v4611_v63 = vld [vmem:[#allocation3 + $0x90] sm:$0xff]  ;;  %4840 = vst.msk [vmem:[%s6848_s15 + $0x3c] sm:$0xf] %vm4824_vm6, %v5141_v39  ;;  %v4609_v37 = vld [vmem:[#allocation3 + $0x80] sm:$0xff] }
 0x21d   : > { %v4650_v26 = vadd.f32 %v6831_v12, %v4611_v63  ;;  %4054 = vst.msk [vmem:[#allocation3 + $0xd8] sm:$0xff] %vm372_vm5, %v4022_v7  ;;  %v4304_v4 = vld [vmem:[#allocation3 + $0xa8] sm:$0xff]  ;;  %v4648_v33 = vadd.f32 %v6831_v12, %v4609_v37  ;;  %v4612_v18 = vld [vmem:[#allocation3 + $0x98] sm:$0xff]  ;;  %4581 = vst.msk [vmem:[#allocation3 + $0xa0] sm:$0xff] %vm372_vm5, %v4549_v56  ;;  %v5581_v46 = vpop.f32.mrb[140].mxu1  ;;  %v5615_v22 = vpop.f32.mrb[140].mxu0 }
 0x21e   : > { %4838 = vst.msk [vmem:[%s6848_s15 + $0x34] sm:$0xf] %vm4824_vm6, %v5139_v27  ;;  %v4550_v29 = vadd.f32 %v4485_v55, %v4304_v4  ;;  %v4651_v19 = vadd.f32 %v6831_v12, %v4612_v18  ;;  %v4610_v17 = vld [vmem:[#allocation3 + $0x88] sm:$0xff]  ;;  %v4025_v59 = vadd.f32 %v5581_v46, %v3779_v15  ;;  %v3980_v0 = vpop.f32.mrb[141].mxu1  ;;  %v4514_v31 = vpop.f32.mrb[141].mxu0 }
 0x21f   : > { %4052 = vst.msk [vmem:[#allocation3 + $0xc8] sm:$0xff] %vm372_vm5, %v4020_v13  ;;  %v4682_v20 = vmax.f32 %v4650_v26, 0.0  ;;  %4584 = vst.msk [vmem:[#allocation3 + $0xb8] sm:$0xff] %vm372_vm5, %v4552_v40  ;;  %v4680_v34 = vmax.f32 %v4648_v33, 0.0  ;;  %v4649_v30 = vadd.f32 %v6831_v12, %v4610_v17  ;;  %v4309_v50 = vld [vmem:[#allocation3 + $0xd0] sm:$0xff]  ;;  %v4023_v24 = vadd.f32 %v3980_v0, %v3777_v36  ;;  %v5582_v51 = vpop.f32.mrb[142].mxu1 }
 0x220   : > { %4582 = vst.msk [vmem:[#allocation3 + $0xa8] sm:$0xff] %vm372_vm5, %v4550_v29  ;;  %v4683_v53 = vmax.f32 %v4651_v19, 0.0  ;;  %v4555_v58 = vadd.f32 %v5611_v32, %v4309_v50  ;;  %4057 = vst.msk [vmem:[#allocation3 + $0xf0] sm:$0xff] %vm372_vm5, %v4025_v59  ;;  %v4026_v45 = vadd.f32 %v5582_v51, %v3780_v10  ;;  %v3983_v52 = vpop.f32.mrb[143].mxu1  ;;  %v5616_v2 = vpop.f32.mrb[142].mxu0 }
 0x221   : > { %v5144_v9 = vpack.c.bf16 %v4682_v20, %v4682_v20  ;;  %v5142_v21 = vpack.c.bf16 %v4680_v34, %v4680_v34  ;;  %v4681_v11 = vmax.f32 %v4649_v30, 0.0  ;;  %v4307_v3 = vld [vmem:[#allocation3 + $0xc0] sm:$0xff]  ;;  %v4615_v55 = vld [vmem:[#allocation3 + $0xb0] sm:$0xff]  ;;  %4055 = vst.msk [vmem:[#allocation3 + $0xe0] sm:$0xff] %vm372_vm5, %v4023_v24  ;;  %v4024_v8 = vadd.f32 %v3983_v52, %v3778_v43  ;;  %v4517_v42 = vpop.f32.mrb[143].mxu0 }
 0x222   : > { %v5145_v6 = vpack.c.bf16 %v4683_v53, %v4683_v53  ;;  %v4553_v41 = vadd.f32 %v4498_v61, %v4307_v3  ;;  %v4654_v38 = vadd.f32 %v6831_v12, %v4615_v55  ;;  %4587 = vst.msk [vmem:[#allocation3 + $0xd0] sm:$0xff] %vm372_vm5, %v4555_v58  ;;  %4058 = vst.msk [vmem:[#allocation3 + $0xf8] sm:$0xff] %vm372_vm5, %v4026_v45 }
 0x223   : > { %4843 = vst.msk [vmem:[%s6848_s15 + $0x48] sm:$0xf] %vm4824_vm6, %v5144_v9  ;;  %4841 = vst.msk [vmem:[%s6848_s15 + $0x40] sm:$0xf] %vm4824_vm6, %v5142_v21  ;;  %v5143_v35 = vpack.c.bf16 %v4681_v11, %v4681_v11 }
 0x224   : > { %v4310_v48 = vld [vmem:[#allocation3 + $0xd8] sm:$0xff]  ;;  %4844 = vst.msk [vmem:[%s6848_s15 + $0x4c] sm:$0xf] %vm4824_vm6, %v5145_v6  ;;  %v4613_v25 = vld [vmem:[#allocation3 + $0xa0] sm:$0xff]  ;;  %v4686_v62 = vmax.f32 %v4654_v38, 0.0 }
 0x225   : > { %v4556_v5 = vadd.f32 %v5612_v23, %v4310_v48  ;;  %4842 = vst.msk [vmem:[%s6848_s15 + $0x44] sm:$0xf] %vm4824_vm6, %v5143_v35  ;;  %v4652_v54 = vadd.f32 %v6831_v12, %v4613_v25 }
 0x226   : > { %v4308_v16 = vld [vmem:[#allocation3 + $0xc8] sm:$0xff]  ;;  %v4616_v49 = vld [vmem:[#allocation3 + $0xb8] sm:$0xff]  ;;  %4585 = vst.msk [vmem:[#allocation3 + $0xc0] sm:$0xff] %vm372_vm5, %v4553_v41  ;;  %4056 = vst.msk [vmem:[#allocation3 + $0xe8] sm:$0xff] %vm372_vm5, %v4024_v8  ;;  %v5148_v1 = vpack.c.bf16 %v4686_v62, %v4686_v62 }
 0x227   : > { %v4554_v28 = vadd.f32 %v4501_v57, %v4308_v16  ;;  %v4655_v47 = vadd.f32 %v6831_v12, %v4616_v49  ;;  %v4614_v39 = vld [vmem:[#allocation3 + $0xa8] sm:$0xff]  ;;  %4588 = vst.msk [vmem:[#allocation3 + $0xd8] sm:$0xff] %vm372_vm5, %v4556_v5  ;;  %v4684_v60 = vmax.f32 %v4652_v54, 0.0  ;;  %v4313_v56 = vld [vmem:[#allocation3 + $0xf0] sm:$0xff] }
 0x228   : > { %v4653_v7 = vadd.f32 %v6831_v12, %v4614_v39  ;;  %4847 = vst.msk [vmem:[%s6848_s15 + $0x58] sm:$0xf] %vm4824_vm6, %v5148_v1  ;;  %v4559_v13 = vadd.f32 %v5615_v22, %v4313_v56  ;;  %v4311_v32 = vld [vmem:[#allocation3 + $0xe0] sm:$0xff] }
 0x229   : > { %4586 = vst.msk [vmem:[#allocation3 + $0xc8] sm:$0xff] %vm372_vm5, %v4554_v28  ;;  %v4687_v14 = vmax.f32 %v4655_v47, 0.0  ;;  %v5146_v27 = vpack.c.bf16 %v4684_v60, %v4684_v60  ;;  %v4619_v37 = vld [vmem:[#allocation3 + $0xd0] sm:$0xff]  ;;  %v4557_v40 = vadd.f32 %v4514_v31, %v4311_v32  ;;  %v4314_v4 = vld [vmem:[#allocation3 + $0xf8] sm:$0xff] }
 0x22a   : > { %v4685_v63 = vmax.f32 %v4653_v7, 0.0  ;;  %v4658_v61 = vadd.f32 %v6831_v12, %v4619_v37  ;;  %4591 = vst.msk [vmem:[#allocation3 + $0xf0] sm:$0xff] %vm372_vm5, %v4559_v13  ;;  %v4560_v18 = vadd.f32 %v5616_v2, %v4314_v4 }
 0x22b   : > { %v5149_v44 = vpack.c.bf16 %v4687_v14, %v4687_v14  ;;  %4845 = vst.msk [vmem:[%s6848_s15 + $0x50] sm:$0xf] %vm4824_vm6, %v5146_v27 }
 0x22c   : > { %v5147_v26 = vpack.c.bf16 %v4685_v63, %v4685_v63  ;;  %4589 = vst.msk [vmem:[#allocation3 + $0xe0] sm:$0xff] %vm372_vm5, %v4557_v40  ;;  %v4690_v17 = vmax.f32 %v4658_v61, 0.0  ;;  %4592 = vst.msk [vmem:[#allocation3 + $0xf8] sm:$0xff] %vm372_vm5, %v4560_v18 }
 0x22d   : > { %4848 = vst.msk [vmem:[%s6848_s15 + $0x5c] sm:$0xf] %vm4824_vm6, %v5149_v44  ;;  %v4617_v33 = vld [vmem:[#allocation3 + $0xc0] sm:$0xff]  ;;  %v4312_v29 = vld [vmem:[#allocation3 + $0xe8] sm:$0xff] }
 0x22e   : > { %4846 = vst.msk [vmem:[%s6848_s15 + $0x54] sm:$0xf] %vm4824_vm6, %v5147_v26  ;;  %v4656_v23 = vadd.f32 %v6831_v12, %v4617_v33  ;;  %v4620_v20 = vld [vmem:[#allocation3 + $0xd8] sm:$0xff]  ;;  %v4558_v19 = vadd.f32 %v4517_v42, %v4312_v29  ;;  %v5152_v46 = vpack.c.bf16 %v4690_v17, %v4690_v17 }
 0x22f   : > { %v4659_v57 = vadd.f32 %v6831_v12, %v4620_v20 }
 0x230   : > { %v4618_v34 = vld [vmem:[#allocation3 + $0xc8] sm:$0xff]  ;;  %v4688_v30 = vmax.f32 %v4656_v23, 0.0  ;;  %4590 = vst.msk [vmem:[#allocation3 + $0xe8] sm:$0xff] %vm372_vm5, %v4558_v19 }
 0x231   : > { %v4657_v15 = vadd.f32 %v6831_v12, %v4618_v34  ;;  %v4691_v9 = vmax.f32 %v4659_v57, 0.0  ;;  %4851 = vst.msk [vmem:[%s6848_s15 + $0x68] sm:$0xf] %vm4824_vm6, %v5152_v46  ;;  %v4623_v21 = vld [vmem:[#allocation3 + $0xf0] sm:$0xff] }
 0x232   : > { %v5150_v53 = vpack.c.bf16 %v4688_v30, %v4688_v30  ;;  %v4662_v11 = vadd.f32 %v6831_v12, %v4623_v21 }
 0x233   : > { %v4689_v59 = vmax.f32 %v4657_v15, 0.0  ;;  %v5153_v36 = vpack.c.bf16 %v4691_v9, %v4691_v9  ;;  %v4621_v50 = vld [vmem:[#allocation3 + $0xe0] sm:$0xff]  ;;  %v4624_v10 = vld [vmem:[#allocation3 + $0xf8] sm:$0xff] }
 0x234   : > { %4849 = vst.msk [vmem:[%s6848_s15 + $0x60] sm:$0xf] %vm4824_vm6, %v5150_v53  ;;  %v4660_v24 = vadd.f32 %v6831_v12, %v4621_v50  ;;  %v4694_v51 = vmax.f32 %v4662_v11, 0.0  ;;  %v4663_v6 = vadd.f32 %v6831_v12, %v4624_v10 }
 0x235   : > { %v5151_v0 = vpack.c.bf16 %v4689_v59, %v4689_v59  ;;  %4852 = vst.msk [vmem:[%s6848_s15 + $0x6c] sm:$0xf] %vm4824_vm6, %v5153_v36 }
 0x236   : > { %v4692_v3 = vmax.f32 %v4660_v24, 0.0  ;;  %v5156_v43 = vpack.c.bf16 %v4694_v51, %v4694_v51  ;;  %v4695_v52 = vmax.f32 %v4663_v6, 0.0 }
 0x237   : > { %4850 = vst.msk [vmem:[%s6848_s15 + $0x64] sm:$0xf] %vm4824_vm6, %v5151_v0  ;;  %v4622_v58 = vld [vmem:[#allocation3 + $0xe8] sm:$0xff] }
 0x238   : > { %v4661_v45 = vadd.f32 %v6831_v12, %v4622_v58  ;;  %v5154_v35 = vpack.c.bf16 %v4692_v3, %v4692_v3  ;;  %4855 = vst.msk [vmem:[%s6848_s15 + $0x78] sm:$0xf] %vm4824_vm6, %v5156_v43  ;;  %v5157_v41 = vpack.c.bf16 %v4695_v52, %v4695_v52 }
 0x23a   : > { %v4693_v55 = vmax.f32 %v4661_v45, 0.0  ;;  %4853 = vst.msk [vmem:[%s6848_s15 + $0x70] sm:$0xf] %vm4824_vm6, %v5154_v35  ;;  %4856 = vst.msk [vmem:[%s6848_s15 + $0x7c] sm:$0xf] %vm4824_vm6, %v5157_v41 }
 0x23c   : > { %v5155_v48 = vpack.c.bf16 %v4693_v55, %v4693_v55 }
 0x23e   : > { %4854 = vst.msk [vmem:[%s6848_s15 + $0x74] sm:$0xf] %vm4824_vm6, %v5155_v48 }
 0x23f PF: > { %s13_s12 = sadd.s32 1, %s5652_s12  }
 0x240   : > { %p10_p4 = scmp.ge.s32.totalorder %s13_s12, 4  }
 0x242   :  { %12 = sbr.rel (!%p10_p4) target bundleno = 1 (0x1), region = 72 }

</bundles_post_ra>
